<compile_context>
chip_gen: v5e
topology: v5e:2x2
jax: 0.10.0
libtpu: 0.0.40
codegen_flags: <defaults>
</compile_context>

<pallas_src>
import functools

import jax
import jax.numpy as jnp
from jax import lax
from jax.experimental import pallas as pl
from jax.experimental.pallas import tpu as pltpu

EPS = 1e-5


# --------------------------- hardware-aware knobs ----------------------------

def _vmem_limit_bytes():
    """Generation-aware scoped-VMEM limit (~75% of physical, capped 100 MiB)."""
    cap = 128 * 1024 * 1024
    try:
        cap = int(pltpu.get_tpu_info().vmem_capacity_bytes)
    except Exception:
        pass
    return int(min(cap * 3 // 4, 100 * 1024 * 1024))


def _detect_core_split():
    """2 on multi-TensorCore chips (v7x) if detectable, else 1."""
    try:
        info = pltpu.get_tpu_info()
    except Exception:
        return 1
    for attr in ("num_cores", "core_count", "num_tensorcores",
                 "tensorcore_count"):
        v = getattr(info, attr, None)
        if isinstance(v, int) and v > 1:
            return 2
    return 1


def _cparams(semantics, vmem_limit):
    return pltpu.CompilerParams(dimension_semantics=semantics,
                                vmem_limit_bytes=int(vmem_limit))


def _pick_tile(total, cap, split, sublane=True):
    """Largest divisor of `total` <= cap with (total//tile) % split == 0.
    If `sublane`, the tile must be a multiple of 8 (or the full extent)."""
    cap = max(1, min(int(cap), total))
    for t in range(cap, 0, -1):
        if total % t or (total // t) % split:
            continue
        if sublane and (t % 8) and t != total:
            continue
        return t
    return total if split == 1 else None


def _pick_tile_rows(rows, cin, cout, split, act_bytes, vmem_limit, target=1024):
    # Coarse per-row VMEM footprint of a 1x1 stage (double-buffered in/out
    # blocks + f32 matmul result); just keeps very wide shapes legal.
    per_row = 2 * cin * 4 + cout * (4 + 2 * act_bytes)
    cap = min(target, max(8, (vmem_limit // 6) // max(per_row, 1)))
    return _pick_tile(rows, cap, split, sublane=True)


def _pick_tile_h(H, N, W, c1, c2, split, act_bytes, vmem_limit):
    # Per-output-image-row VMEM footprint of the fused 3x3 kernel; the nine
    # shifted taps (f32) dominate.
    per_row = N * W * (9 * c1 * (4 + act_bytes)       # taps f32 + cast copy
                       + 3 * c1 * act_bytes           # slab + halos
                       + c2 * (4 + 2 * act_bytes))    # f32 result + out blocks
    cap = max(1, (vmem_limit // 4) // max(per_row, 1))
    return _pick_tile(H, cap, split, sublane=False)


# ------------------------------ Pallas kernels -------------------------------

def _conv1x1_stats_kernel(x_ref, w_ref, y_ref, sum_ref, sq_ref, *, cdtype):
    """y = x @ w for one row tile; accumulate per-channel sum / sum(y^2)
    directly into the grid-resident (1, 8, Cout) stats output blocks."""
    i = pl.program_id(1)

    @pl.when(i == 0)
    def _():
        sum_ref[...] = jnp.zeros_like(sum_ref)
        sq_ref[...] = jnp.zeros_like(sq_ref)

    y = jnp.dot(x_ref[...].astype(cdtype), w_ref[...],
                preferred_element_type=jnp.float32)          # (tile, Cout) f32
    y_ref[...] = y.astype(y_ref.dtype)
    sum_ref[...] += jnp.sum(y, axis=0, keepdims=True)        # broadcast to 8 rows
    sq_ref[...] += jnp.sum(y * y, axis=0, keepdims=True)


def _conv3x3_fused_kernel(top_ref, slab_ref, bot_ref, scale_ref, shift_ref,
                          w_ref, y_ref, sum_ref, sq_ref, *, cdtype):
    """Fused: bn1 affine + ReLU on the freshly loaded slab/halos, build the
    nine 3x3 taps in VMEM, one big-K matmul, accumulate bn2 statistics."""
    c = pl.program_id(0)
    i = pl.program_id(1)
    g = c * pl.num_programs(1) + i
    n_slabs = pl.num_programs(0) * pl.num_programs(1)

    @pl.when(i == 0)
    def _():
        sum_ref[...] = jnp.zeros_like(sum_ref)
        sq_ref[...] = jnp.zeros_like(sq_ref)

    scale = scale_ref[...].reshape(1, 1, 1, -1)
    shift = shift_ref[...].reshape(1, 1, 1, -1)

    def bn_relu(v):
        return jnp.maximum(v.astype(jnp.float32) * scale + shift, 0.0)

    h_mid = bn_relu(slab_ref[...])                                # (N,Th,W,C1)
    # Halo rows are index-clamped in the BlockSpec; zero them at image borders
    # so they act as the conv's zero padding.
    h_top = bn_relu(top_ref[...]) * jnp.where(g == 0, 0.0, 1.0)
    h_bot = bn_relu(bot_ref[...]) * jnp.where(g == n_slabs - 1, 0.0, 1.0)

    h = jnp.concatenate([h_top, h_mid, h_bot], axis=1)            # (N,Th+2,W,C1)
    n, th2, w, c1 = h.shape
    th = th2 - 2
    zcol = jnp.zeros((n, th2, 1, c1), h.dtype)
    h = jnp.concatenate([zcol, h, zcol], axis=2)                  # (N,Th+2,W+2,C1)

    taps = [h[:, dy:dy + th, dx:dx + w, :]
            for dy in range(3) for dx in range(3)]
    patches = jnp.concatenate(taps, axis=-1)                      # (N,Th,W,9*C1)
    patches = patches.reshape(n * th * w, 9 * c1).astype(cdtype)

    y = jnp.dot(patches, w_ref[...], preferred_element_type=jnp.float32)
    y_ref[...] = y.reshape(y_ref.shape).astype(y_ref.dtype)
    sum_ref[...] += jnp.sum(y, axis=0, keepdims=True)
    sq_ref[...] += jnp.sum(y * y, axis=0, keepdims=True)


def _bn_relu_conv1x1_stats_kernel(y_ref, scale_ref, shift_ref, w_ref,
                                  o_ref, sum_ref, sq_ref, *, cdtype):
    """Fused: bn2 affine + ReLU, 1x1 conv matmul, bn3 statistics."""
    i = pl.program_id(1)

    @pl.when(i == 0)
    def _():
        sum_ref[...] = jnp.zeros_like(sum_ref)
        sq_ref[...] = jnp.zeros_like(sq_ref)

    h = jnp.maximum(y_ref[...].astype(jnp.float32) * scale_ref[...]
                    + shift_ref[...], 0.0)
    y = jnp.dot(h.astype(cdtype), w_ref[...], preferred_element_type=jnp.float32)
    o_ref[...] = y.astype(o_ref.dtype)
    sum_ref[...] += jnp.sum(y, axis=0, keepdims=True)
    sq_ref[...] += jnp.sum(y * y, axis=0, keepdims=True)


def _bn_add_relu_kernel(y_ref, scale_ref, shift_ref, res_ref, o_ref):
    """Final bn3 affine + residual add + ReLU on one row tile."""
    o_ref[...] = jnp.maximum(
        y_ref[...].astype(jnp.float32) * scale_ref[...] + shift_ref[...]
        + res_ref[...], 0.0)


# ---------------------------- pallas_call wrappers ----------------------------

def _conv1x1_stats(x2d, w, tile, split, cdtype, act_dtype, vmem_limit):
    rows, cin = x2d.shape
    cout = w.shape[1]
    per_core = (rows // tile) // split
    kernel = functools.partial(_conv1x1_stats_kernel, cdtype=cdtype)
    return pl.pallas_call(
        kernel,
        out_shape=(jax.ShapeDtypeStruct((rows, cout), act_dtype),
                   jax.ShapeDtypeStruct((split, 8, cout), jnp.float32),
                   jax.ShapeDtypeStruct((split, 8, cout), jnp.float32)),
        grid=(split, per_core),
        in_specs=[pl.BlockSpec((tile, cin), lambda c, i: (c * per_core + i, 0)),
                  pl.BlockSpec((cin, cout), lambda c, i: (0, 0))],
        out_specs=(pl.BlockSpec((tile, cout), lambda c, i: (c * per_core + i, 0)),
                   pl.BlockSpec((1, 8, cout), lambda c, i: (c, 0, 0)),
                   pl.BlockSpec((1, 8, cout), lambda c, i: (c, 0, 0))),
        compiler_params=_cparams(("parallel", "arbitrary"), vmem_limit),
    )(x2d, w)


def _conv3x3_fused(y1_4d, scale1, shift1, w2mat, th, split, cdtype, act_dtype,
                   vmem_limit):
    N, H, W, c1 = y1_4d.shape
    c2 = w2mat.shape[1]
    per_core = (H // th) // split

    def slab_idx(c, i):
        return (0, c * per_core + i, 0, 0)

    def top_idx(c, i):                       # halo block size 1 -> row index
        return (0, jnp.maximum((c * per_core + i) * th - 1, 0), 0, 0)

    def bot_idx(c, i):
        return (0, jnp.minimum((c * per_core + i + 1) * th, H - 1), 0, 0)

    kernel = functools.partial(_conv3x3_fused_kernel, cdtype=cdtype)
    return pl.pallas_call(
        kernel,
        out_shape=(jax.ShapeDtypeStruct((N, H, W, c2), act_dtype),
                   jax.ShapeDtypeStruct((split, 8, c2), jnp.float32),
                   jax.ShapeDtypeStruct((split, 8, c2), jnp.float32)),
        grid=(split, per_core),
        in_specs=[pl.BlockSpec((N, 1, W, c1), top_idx),
                  pl.BlockSpec((N, th, W, c1), slab_idx),
                  pl.BlockSpec((N, 1, W, c1), bot_idx),
                  pl.BlockSpec((1, c1), lambda c, i: (0, 0)),
                  pl.BlockSpec((1, c1), lambda c, i: (0, 0)),
                  pl.BlockSpec((9 * c1, c2), lambda c, i: (0, 0))],
        out_specs=(pl.BlockSpec((N, th, W, c2), slab_idx),
                   pl.BlockSpec((1, 8, c2), lambda c, i: (c, 0, 0)),
                   pl.BlockSpec((1, 8, c2), lambda c, i: (c, 0, 0))),
        compiler_params=_cparams(("parallel", "arbitrary"), vmem_limit),
    )(y1_4d, y1_4d, y1_4d, scale1, shift1, w2mat)


def _bn_relu_conv1x1_stats(y2d, scale, shift, w, tile, split, cdtype, act_dtype,
                           vmem_limit):
    rows, cin = y2d.shape
    cout = w.shape[1]
    per_core = (rows // tile) // split
    kernel = functools.partial(_bn_relu_conv1x1_stats_kernel, cdtype=cdtype)
    return pl.pallas_call(
        kernel,
        out_shape=(jax.ShapeDtypeStruct((rows, cout), act_dtype),
                   jax.ShapeDtypeStruct((split, 8, cout), jnp.float32),
                   jax.ShapeDtypeStruct((split, 8, cout), jnp.float32)),
        grid=(split, per_core),
        in_specs=[pl.BlockSpec((tile, cin), lambda c, i: (c * per_core + i, 0)),
                  pl.BlockSpec((1, cin), lambda c, i: (0, 0)),
                  pl.BlockSpec((1, cin), lambda c, i: (0, 0)),
                  pl.BlockSpec((cin, cout), lambda c, i: (0, 0))],
        out_specs=(pl.BlockSpec((tile, cout), lambda c, i: (c * per_core + i, 0)),
                   pl.BlockSpec((1, 8, cout), lambda c, i: (c, 0, 0)),
                   pl.BlockSpec((1, 8, cout), lambda c, i: (c, 0, 0))),
        compiler_params=_cparams(("parallel", "arbitrary"), vmem_limit),
    )(y2d, scale, shift, w)


def _bn_add_relu(y2d, scale, shift, res2d, tile, vmem_limit):
    rows, c = y2d.shape
    return pl.pallas_call(
        _bn_add_relu_kernel,
        out_shape=jax.ShapeDtypeStruct((rows, c), jnp.float32),
        grid=(rows // tile,),
        in_specs=[pl.BlockSpec((tile, c), lambda i: (i, 0)),
                  pl.BlockSpec((1, c), lambda i: (0, 0)),
                  pl.BlockSpec((1, c), lambda i: (0, 0)),
                  pl.BlockSpec((tile, c), lambda i: (i, 0))],
        out_specs=pl.BlockSpec((tile, c), lambda i: (i, 0)),
        compiler_params=_cparams(("parallel",), vmem_limit),
    )(y2d, scale, shift, res2d)


# ------------------------------ JAX-side glue ---------------------------------

def _bn_affine(s, sq, count, gamma, beta):
    """Finalize training-mode BN from per-core (split, 8, C) partial sums."""
    s = jnp.sum(s[:, 0, :], axis=0, keepdims=True)       # (1, C)
    sq = jnp.sum(sq[:, 0, :], axis=0, keepdims=True)
    mean = s / count
    var = jnp.maximum(sq / count - mean * mean, 0.0)     # biased (training mode)
    scale = gamma.reshape(1, -1) * lax.rsqrt(var + EPS)
    shift = beta.reshape(1, -1) - mean * scale
    return scale, shift


def bottleneck_forward(x_nchw, params, stride=1, compute_dtype=jnp.bfloat16,
                       core_split=None, tile_rows=None, tile_h=None):
    """Pallas implementation of Bottleneck.forward (downsample=None)."""
    # downsample is None => the residual add is only shape-valid for stride==1
    assert stride == 1, "downsample=None requires stride == 1"
    N, C, H, W = x_nchw.shape
    rows = N * H * W

    c1 = params['w1'].shape[0]
    c2 = params['w2'].shape[0]
    c3 = params['w3'].shape[0]
    assert c3 == C, "residual add requires matching channel count"

    vmem_limit = _vmem_limit_bytes()
    act_dtype = compute_dtype
    act_bytes = jnp.dtype(act_dtype).itemsize
    if core_split is None:
        core_split = _detect_core_split()

    # --- per-stage tile selection (VMEM- and core-split-aware) ---
    def _valid(tile, total, split):
        return (tile is not None and total % tile == 0
                and (total // tile) % split == 0)

    chosen = None
    for split in ([core_split, 1] if core_split > 1 else [1]):
        t1 = tile_rows or _pick_tile_rows(rows, C, c1, split, act_bytes, vmem_limit)
        t3 = tile_rows or _pick_tile_rows(rows, c2, c3, split, act_bytes, vmem_limit)
        th = tile_h or _pick_tile_h(H, N, W, c1, c2, split, act_bytes, vmem_limit)
        tf = tile_rows or _pick_tile_rows(rows, c3 + C, c3, 1, act_bytes, vmem_limit)
        if (_valid(t1, rows, split) and _valid(t3, rows, split)
                and _valid(th, H, split) and _valid(tf, rows, 1)):
            chosen = (split, t1, t3, th, tf)
            break
    assert chosen is not None, "could not find legal tile sizes"
    split, t1, t3, th, tf = chosen

    # TODO(synk): fold these layout changes into the first/last kernels.
    x2d = jnp.transpose(x_nchw, (0, 2, 3, 1)).reshape(rows, C)

    cdt = compute_dtype
    w1 = params['w1'][:, :, 0, 0].T.astype(cdt)                          # (C,  C1)
    w2 = jnp.transpose(params['w2'], (2, 3, 1, 0)).reshape(9 * c1, c2).astype(cdt)
    w3 = params['w3'][:, :, 0, 0].T.astype(cdt)                          # (C2, C3)

    # --- stage 1: conv1 (1x1) + bn1 statistics (bias cancelled by BN) ---
    y1, s1, q1 = _conv1x1_stats(x2d, w1, t1, split, cdt, act_dtype, vmem_limit)
    scale1, shift1 = _bn_affine(s1, q1, float(rows), params['g1'], params['bt1'])

    # --- stage 2 (fused): bn1-apply + relu + conv2 (3x3, halo slabs) + bn2 stats
    y1_4d = y1.reshape(N, H, W, c1)                      # free (row-major) view
    y2_4d, s2, q2 = _conv3x3_fused(y1_4d, scale1, shift1, w2, th, split,
                                   cdt, act_dtype, vmem_limit)
    scale2, shift2 = _bn_affine(s2, q2, float(rows), params['g2'], params['bt2'])

    # --- stage 3 (fused): bn2-apply + relu + conv3 (1x1) + bn3 stats ---
    y2 = y2_4d.reshape(rows, c2)
    y3, s3, q3 = _bn_relu_conv1x1_stats(y2, scale2, shift2, w3, t3, split,
                                        cdt, act_dtype, vmem_limit)
    scale3, shift3 = _bn_affine(s3, q3, float(rows), params['g3'], params['bt3'])

    # --- finalize: bn3-apply + residual add + relu ---
    out2d = _bn_add_relu(y3, scale3, shift3, x2d, tf, vmem_limit)
    return jnp.transpose(out2d.reshape(N, H, W, c3), (0, 3, 1, 2))       # NCHW


# ------------------------ Pure-JAX reference (check) --------------------------

def ref_forward(x, p, stride=1):
    def conv(x, w, b, s, pad):
        y = lax.conv_general_dilated(
            x, w, (s, s), pad, dimension_numbers=('NCHW', 'OIHW', 'NCHW'))
        return y + b.reshape(1, -1, 1, 1)

    def bn(y, g, bt):
        mean = jnp.mean(y, axis=(0, 2, 3), keepdims=True)
        var = jnp.mean((y - mean) ** 2, axis=(0, 2, 3), keepdims=True)
        return ((y - mean) * lax.rsqrt(var + EPS) * g.reshape(1, -1, 1, 1)
                + bt.reshape(1, -1, 1, 1))

    relu = lambda t: jnp.maximum(t, 0.0)
    out = relu(bn(conv(x, p['w1'], p['b1'], 1, [(0, 0), (0, 0)]),
                  p['g1'], p['bt1']))
    out = relu(bn(conv(out, p['w2'], p['b2'], stride, [(1, 1), (1, 1)]),
                  p['g2'], p['bt2']))
    out = bn(conv(out, p['w3'], p['b3'], 1, [(0, 0), (0, 0)]),
             p['g3'], p['bt3'])
    return relu(out + x)


# ---------------------------------- main ---------------------------------------

if __name__ == "__main__":
    key = jax.random.PRNGKey(0)
    n, stride = 4, 1
    m = n * stride
    N, H, W = 2, 16, 16

    ks = jax.random.split(key, 13)
    f32 = jnp.float32
    x = jax.random.normal(ks[0], (N, n, H, W), f32)

    params = dict(
        # PyTorch Conv2d layouts: (Cout, Cin, kh, kw); biases kept for the
        # reference (they are a no-op under training-mode BN).
        w1=0.3 * jax.random.normal(ks[1], (n, n, 1, 1), f32),
        b1=0.1 * jax.random.normal(ks[2], (n,), f32),
        g1=1.0 + 0.1 * jax.random.normal(ks[3], (n,), f32),
        bt1=0.1 * jax.random.normal(ks[4], (n,), f32),
        w2=0.1 * jax.random.normal(ks[5], (n, n, 3, 3), f32),
        b2=0.1 * jax.random.normal(ks[6], (n,), f32),
        g2=1.0 + 0.1 * jax.random.normal(ks[7], (n,), f32),
        bt2=0.1 * jax.random.normal(ks[8], (n,), f32),
        w3=0.3 * jax.random.normal(ks[9], (m, n, 1, 1), f32),
        b3=0.1 * jax.random.normal(ks[10], (m,), f32),
        g3=1.0 + 0.1 * jax.random.normal(ks[11], (m,), f32),
        bt3=0.1 * jax.random.normal(ks[12], (m,), f32),
    )

    ref = jax.block_until_ready(ref_forward(x, params, stride=stride))

    fwd = jax.jit(bottleneck_forward,
                  static_argnames=("stride", "compute_dtype", "core_split",
                                   "tile_rows", "tile_h"))

    # 1) f32 matmul path: tight check of the kernel logic (taps, halos, BN).
    out_f32 = jax.block_until_ready(
        fwd(x, params, stride=stride, compute_dtype=jnp.float32, core_split=1))
    assert out_f32.shape == ref.shape == (N, m, H, W)
    err_f32 = float(jnp.max(jnp.abs(out_f32 - ref)))
    assert err_f32 < 1e-3, f"f32 path mismatch: {err_f32}"

    # 2) bf16 MXU path (default) with a 2-way core split: exercises the
    #    per-core partial-statistics path (runs sequentially on 1-TC chips).
    out_bf16 = jax.block_until_ready(
        fwd(x, params, stride=stride, compute_dtype=jnp.bfloat16, core_split=2))
    max_err = float(jnp.max(jnp.abs(out_bf16 - ref)))
    mean_err = float(jnp.mean(jnp.abs(out_bf16 - ref)))
    assert max_err < 2e-1 and mean_err < 3e-2, (max_err, mean_err)

    print("KERNEL_OK")
</pallas_src>

<mosaic_0001>
module attributes {stable_mosaic.version = 11 : i64} {
  func.func @_bn_relu_conv1x1_stats_kernel(%arg0: i32, %arg1: i32, %arg2: memref<512x4xf32, #tpu.memory_space<vmem>>, %arg3: memref<1x4xf32, #tpu.memory_space<vmem>>, %arg4: memref<1x4xf32, #tpu.memory_space<vmem>>, %arg5: memref<4x4xf32, #tpu.memory_space<vmem>>, %arg6: memref<512x4xf32, #tpu.memory_space<vmem>>, %arg7: memref<1x8x4xf32, #tpu.memory_space<vmem>>, %arg8: memref<1x8x4xf32, #tpu.memory_space<vmem>>) attributes {dimension_semantics = [#tpu.dimension_semantics<parallel>, #tpu.dimension_semantics<arbitrary>], iteration_bounds = array<i64: 1, 1>, scalar_prefetch = 0 : i64, scratch_operands = 0 : i64, tpu.core_type = #tpu.core_type<tc>, window_params = [{transform_indices = @transform_0, window_bounds = array<i64: 512, 4>}, {pipeline_mode = #tpu.pipeline_mode<synchronous>, transform_indices = @transform_1, window_bounds = array<i64: 1, 4>}, {pipeline_mode = #tpu.pipeline_mode<synchronous>, transform_indices = @transform_2, window_bounds = array<i64: 1, 4>}, {pipeline_mode = #tpu.pipeline_mode<synchronous>, transform_indices = @transform_3, window_bounds = array<i64: 4, 4>}, {transform_indices = @transform_4, window_bounds = array<i64: 512, 4>}, {transform_indices = @transform_5, window_bounds = array<i64: 1, 8, 4>}, {transform_indices = @transform_6, window_bounds = array<i64: 1, 8, 4>}]} {
    %c0_i32 = arith.constant 0 : i32
    %0 = arith.cmpi eq, %arg1, %c0_i32 : i32
    %1 = arith.extui %0 : i1 to i32
    %c0_i32_0 = arith.constant 0 : i32
    %2 = arith.cmpi ne, %1, %c0_i32_0 : i32
    scf.if %2 {
      %cst_25 = arith.constant 0.000000e+00 : f32
      %30 = vector.broadcast %cst_25 : f32 to vector<1x8x4xf32>
      %c0_26 = arith.constant 0 : index
      %c0_27 = arith.constant 0 : index
      %c0_28 = arith.constant 0 : index
      %31 = vector.load %arg7[%c0_26, %c0_27, %c0_28] : memref<1x8x4xf32, #tpu.memory_space<vmem>>, vector<1x8x4xf32>
      tpu.vector_store %arg7[%c0_26, %c0_27, %c0_28], %30 {strides = array<i32>} : memref<1x8x4xf32, #tpu.memory_space<vmem>>, vector<1x8x4xf32>,
      %cst_29 = arith.constant 0.000000e+00 : f32
      %32 = vector.broadcast %cst_29 : f32 to vector<1x8x4xf32>
      %c0_30 = arith.constant 0 : index
      %c0_31 = arith.constant 0 : index
      %c0_32 = arith.constant 0 : index
      %33 = vector.load %arg8[%c0_30, %c0_31, %c0_32] : memref<1x8x4xf32, #tpu.memory_space<vmem>>, vector<1x8x4xf32>
      tpu.vector_store %arg8[%c0_30, %c0_31, %c0_32], %32 {strides = array<i32>} : memref<1x8x4xf32, #tpu.memory_space<vmem>>, vector<1x8x4xf32>,
    } else {
    }
    %c0 = arith.constant 0 : index
    %c0_1 = arith.constant 0 : index
    %3 = vector.load %arg2[%c0, %c0_1] : memref<512x4xf32, #tpu.memory_space<vmem>>, vector<512x4xf32>
    %c0_2 = arith.constant 0 : index
    %c0_3 = arith.constant 0 : index
    %4 = vector.load %arg3[%c0_2, %c0_3] : memref<1x4xf32, #tpu.memory_space<vmem>>, vector<1x4xf32>
    %5 = vector.broadcast %4 : vector<1x4xf32> to vector<512x4xf32>
    %6 = arith.mulf %3, %5 : vector<512x4xf32>
    %c0_4 = arith.constant 0 : index
    %c0_5 = arith.constant 0 : index
    %7 = vector.load %arg4[%c0_4, %c0_5] : memref<1x4xf32, #tpu.memory_space<vmem>>, vector<1x4xf32>
    %8 = vector.broadcast %7 : vector<1x4xf32> to vector<512x4xf32>
    %9 = arith.addf %6, %8 : vector<512x4xf32>
    %cst = arith.constant 0.000000e+00 : f32
    %10 = vector.broadcast %cst : f32 to vector<512x4xf32>
    %11 = arith.maximumf %9, %10 : vector<512x4xf32>
    %c0_6 = arith.constant 0 : index
    %c0_7 = arith.constant 0 : index
    %12 = vector.load %arg5[%c0_6, %c0_7] : memref<4x4xf32, #tpu.memory_space<vmem>>, vector<4x4xf32>
    %cst_8 = arith.constant dense<0.000000e+00> : vector<512x4xf32>
    %13 = tpu.matmul %11, %12, %cst_8 {dimension_numbers = #tpu.dot_dimension_numbers<[1], [0], [0], [1], [0, 0, 1, 1], [], []>} : vector<512x4xf32>, vector<4x4xf32>, vector<512x4xf32> -> vector<512x4xf32>
    %c0_9 = arith.constant 0 : index
    %c0_10 = arith.constant 0 : index
    %14 = vector.load %arg6[%c0_9, %c0_10] : memref<512x4xf32, #tpu.memory_space<vmem>>, vector<512x4xf32>
    tpu.vector_store %arg6[%c0_9, %c0_10], %13 {strides = array<i32>} : memref<512x4xf32, #tpu.memory_space<vmem>>, vector<512x4xf32>,
    %c0_11 = arith.constant 0 : index
    %c0_12 = arith.constant 0 : index
    %c0_13 = arith.constant 0 : index
    %15 = vector.load %arg7[%c0_11, %c0_12, %c0_13] : memref<1x8x4xf32, #tpu.memory_space<vmem>>, vector<1x8x4xf32>
    %cst_14 = arith.constant dense<0.000000e+00> : vector<4xf32>
    %16 = vector.multi_reduction <add>, %13, %cst_14 [0] : vector<512x4xf32> to vector<4xf32>
    %17 = vector.shape_cast %16 : vector<4xf32> to vector<1x4xf32>
    %18 = vector.shape_cast %17 : vector<1x4xf32> to vector<1x1x4xf32>
    %19 = vector.broadcast %18 : vector<1x1x4xf32> to vector<1x8x4xf32>
    %20 = arith.addf %15, %19 : vector<1x8x4xf32>
    %c0_15 = arith.constant 0 : index
    %c0_16 = arith.constant 0 : index
    %c0_17 = arith.constant 0 : index
    %21 = vector.load %arg7[%c0_15, %c0_16, %c0_17] : memref<1x8x4xf32, #tpu.memory_space<vmem>>, vector<1x8x4xf32>
    tpu.vector_store %arg7[%c0_15, %c0_16, %c0_17], %20 {strides = array<i32>} : memref<1x8x4xf32, #tpu.memory_space<vmem>>, vector<1x8x4xf32>,
    %c0_18 = arith.constant 0 : index
    %c0_19 = arith.constant 0 : index
    %c0_20 = arith.constant 0 : index
    %22 = vector.load %arg8[%c0_18, %c0_19, %c0_20] : memref<1x8x4xf32, #tpu.memory_space<vmem>>, vector<1x8x4xf32>
    %23 = arith.mulf %13, %13 : vector<512x4xf32>
    %cst_21 = arith.constant dense<0.000000e+00> : vector<4xf32>
    %24 = vector.multi_reduction <add>, %23, %cst_21 [0] : vector<512x4xf32> to vector<4xf32>
    %25 = vector.shape_cast %24 : vector<4xf32> to vector<1x4xf32>
    %26 = vector.shape_cast %25 : vector<1x4xf32> to vector<1x1x4xf32>
    %27 = vector.broadcast %26 : vector<1x1x4xf32> to vector<1x8x4xf32>
    %28 = arith.addf %22, %27 : vector<1x8x4xf32>
    %c0_22 = arith.constant 0 : index
    %c0_23 = arith.constant 0 : index
    %c0_24 = arith.constant 0 : index
    %29 = vector.load %arg8[%c0_22, %c0_23, %c0_24] : memref<1x8x4xf32, #tpu.memory_space<vmem>>, vector<1x8x4xf32>
    tpu.vector_store %arg8[%c0_22, %c0_23, %c0_24], %28 {strides = array<i32>} : memref<1x8x4xf32, #tpu.memory_space<vmem>>, vector<1x8x4xf32>,
    return
  }
  func.func @transform_0(%arg0: i32, %arg1: i32) -> (i32, i32) {
    %c1_i32 = arith.constant 1 : i32
    %0 = arith.muli %arg0, %c1_i32 : i32
    %1 = arith.addi %0, %arg1 : i32
    %c0_i32 = arith.constant 0 : i32
    %c0_i32_0 = arith.constant 0 : i32
    return %1, %c0_i32 : i32, i32
  }
  func.func @transform_1(%arg0: i32, %arg1: i32) -> (i32, i32) {
    %c0_i32 = arith.constant 0 : i32
    %c0_i32_0 = arith.constant 0 : i32
    %c0_i32_1 = arith.constant 0 : i32
    return %c0_i32, %c0_i32_0 : i32, i32
  }
  func.func @transform_2(%arg0: i32, %arg1: i32) -> (i32, i32) {
    %c0_i32 = arith.constant 0 : i32
    %c0_i32_0 = arith.constant 0 : i32
    %c0_i32_1 = arith.constant 0 : i32
    return %c0_i32, %c0_i32_0 : i32, i32
  }
  func.func @transform_3(%arg0: i32, %arg1: i32) -> (i32, i32) {
    %c0_i32 = arith.constant 0 : i32
    %c0_i32_0 = arith.constant 0 : i32
    %c0_i32_1 = arith.constant 0 : i32
    return %c0_i32, %c0_i32_0 : i32, i32
  }
  func.func @transform_4(%arg0: i32, %arg1: i32) -> (i32, i32) {
    %c1_i32 = arith.constant 1 : i32
    %0 = arith.muli %arg0, %c1_i32 : i32
    %1 = arith.addi %0, %arg1 : i32
    %c0_i32 = arith.constant 0 : i32
    %c0_i32_0 = arith.constant 0 : i32
    return %1, %c0_i32 : i32, i32
  }
  func.func @transform_5(%arg0: i32, %arg1: i32) -> (i32, i32, i32) {
    %c0_i32 = arith.constant 0 : i32
    %c0_i32_0 = arith.constant 0 : i32
    %c0_i32_1 = arith.constant 0 : i32
    return %arg0, %c0_i32, %c0_i32_0 : i32, i32, i32
  }
  func.func @transform_6(%arg0: i32, %arg1: i32) -> (i32, i32, i32) {
    %c0_i32 = arith.constant 0 : i32
    %c0_i32_0 = arith.constant 0 : i32
    %c0_i32_1 = arith.constant 0 : i32
    return %arg0, %c0_i32, %c0_i32_0 : i32, i32, i32
  }
}

module attributes {stable_mosaic.version = 11 : i64} {
  func.func @_conv1x1_stats_kernel(%arg0: i32, %arg1: i32, %arg2: memref<512x4xf32, #tpu.memory_space<vmem>>, %arg3: memref<4x4xf32, #tpu.memory_space<vmem>>, %arg4: memref<512x4xf32, #tpu.memory_space<vmem>>, %arg5: memref<1x8x4xf32, #tpu.memory_space<vmem>>, %arg6: memref<1x8x4xf32, #tpu.memory_space<vmem>>) attributes {dimension_semantics = [#tpu.dimension_semantics<parallel>, #tpu.dimension_semantics<arbitrary>], iteration_bounds = array<i64: 1, 1>, scalar_prefetch = 0 : i64, scratch_operands = 0 : i64, tpu.core_type = #tpu.core_type<tc>, window_params = [{transform_indices = @transform_0, window_bounds = array<i64: 512, 4>}, {pipeline_mode = #tpu.pipeline_mode<synchronous>, transform_indices = @transform_1, window_bounds = array<i64: 4, 4>}, {transform_indices = @transform_2, window_bounds = array<i64: 512, 4>}, {transform_indices = @transform_3, window_bounds = array<i64: 1, 8, 4>}, {transform_indices = @transform_4, window_bounds = array<i64: 1, 8, 4>}]} {
    %c0_i32 = arith.constant 0 : i32
    %0 = arith.cmpi eq, %arg1, %c0_i32 : i32
    %1 = arith.extui %0 : i1 to i32
    %c0_i32_0 = arith.constant 0 : i32
    %2 = arith.cmpi ne, %1, %c0_i32_0 : i32
    scf.if %2 {
      %cst_20 = arith.constant 0.000000e+00 : f32
      %22 = vector.broadcast %cst_20 : f32 to vector<1x8x4xf32>
      %c0_21 = arith.constant 0 : index
      %c0_22 = arith.constant 0 : index
      %c0_23 = arith.constant 0 : index
      %23 = vector.load %arg5[%c0_21, %c0_22, %c0_23] : memref<1x8x4xf32, #tpu.memory_space<vmem>>, vector<1x8x4xf32>
      tpu.vector_store %arg5[%c0_21, %c0_22, %c0_23], %22 {strides = array<i32>} : memref<1x8x4xf32, #tpu.memory_space<vmem>>, vector<1x8x4xf32>,
      %cst_24 = arith.constant 0.000000e+00 : f32
      %24 = vector.broadcast %cst_24 : f32 to vector<1x8x4xf32>
      %c0_25 = arith.constant 0 : index
      %c0_26 = arith.constant 0 : index
      %c0_27 = arith.constant 0 : index
      %25 = vector.load %arg6[%c0_25, %c0_26, %c0_27] : memref<1x8x4xf32, #tpu.memory_space<vmem>>, vector<1x8x4xf32>
      tpu.vector_store %arg6[%c0_25, %c0_26, %c0_27], %24 {strides = array<i32>} : memref<1x8x4xf32, #tpu.memory_space<vmem>>, vector<1x8x4xf32>,
    } else {
    }
    %c0 = arith.constant 0 : index
    %c0_1 = arith.constant 0 : index
    %3 = vector.load %arg2[%c0, %c0_1] : memref<512x4xf32, #tpu.memory_space<vmem>>, vector<512x4xf32>
    %c0_2 = arith.constant 0 : index
    %c0_3 = arith.constant 0 : index
    %4 = vector.load %arg3[%c0_2, %c0_3] : memref<4x4xf32, #tpu.memory_space<vmem>>, vector<4x4xf32>
    %cst = arith.constant dense<0.000000e+00> : vector<512x4xf32>
    %5 = tpu.matmul %3, %4, %cst {dimension_numbers = #tpu.dot_dimension_numbers<[1], [0], [0], [1], [0, 0, 1, 1], [], []>} : vector<512x4xf32>, vector<4x4xf32>, vector<512x4xf32> -> vector<512x4xf32>
    %c0_4 = arith.constant 0 : index
    %c0_5 = arith.constant 0 : index
    %6 = vector.load %arg4[%c0_4, %c0_5] : memref<512x4xf32, #tpu.memory_space<vmem>>, vector<512x4xf32>
    tpu.vector_store %arg4[%c0_4, %c0_5], %5 {strides = array<i32>} : memref<512x4xf32, #tpu.memory_space<vmem>>, vector<512x4xf32>,
    %c0_6 = arith.constant 0 : index
    %c0_7 = arith.constant 0 : index
    %c0_8 = arith.constant 0 : index
    %7 = vector.load %arg5[%c0_6, %c0_7, %c0_8] : memref<1x8x4xf32, #tpu.memory_space<vmem>>, vector<1x8x4xf32>
    %cst_9 = arith.constant dense<0.000000e+00> : vector<4xf32>
    %8 = vector.multi_reduction <add>, %5, %cst_9 [0] : vector<512x4xf32> to vector<4xf32>
    %9 = vector.shape_cast %8 : vector<4xf32> to vector<1x4xf32>
    %10 = vector.shape_cast %9 : vector<1x4xf32> to vector<1x1x4xf32>
    %11 = vector.broadcast %10 : vector<1x1x4xf32> to vector<1x8x4xf32>
    %12 = arith.addf %7, %11 : vector<1x8x4xf32>
    %c0_10 = arith.constant 0 : index
    %c0_11 = arith.constant 0 : index
    %c0_12 = arith.constant 0 : index
    %13 = vector.load %arg5[%c0_10, %c0_11, %c0_12] : memref<1x8x4xf32, #tpu.memory_space<vmem>>, vector<1x8x4xf32>
    tpu.vector_store %arg5[%c0_10, %c0_11, %c0_12], %12 {strides = array<i32>} : memref<1x8x4xf32, #tpu.memory_space<vmem>>, vector<1x8x4xf32>,
    %c0_13 = arith.constant 0 : index
    %c0_14 = arith.constant 0 : index
    %c0_15 = arith.constant 0 : index
    %14 = vector.load %arg6[%c0_13, %c0_14, %c0_15] : memref<1x8x4xf32, #tpu.memory_space<vmem>>, vector<1x8x4xf32>
    %15 = arith.mulf %5, %5 : vector<512x4xf32>
    %cst_16 = arith.constant dense<0.000000e+00> : vector<4xf32>
    %16 = vector.multi_reduction <add>, %15, %cst_16 [0] : vector<512x4xf32> to vector<4xf32>
    %17 = vector.shape_cast %16 : vector<4xf32> to vector<1x4xf32>
    %18 = vector.shape_cast %17 : vector<1x4xf32> to vector<1x1x4xf32>
    %19 = vector.broadcast %18 : vector<1x1x4xf32> to vector<1x8x4xf32>
    %20 = arith.addf %14, %19 : vector<1x8x4xf32>
    %c0_17 = arith.constant 0 : index
    %c0_18 = arith.constant 0 : index
    %c0_19 = arith.constant 0 : index
    %21 = vector.load %arg6[%c0_17, %c0_18, %c0_19] : memref<1x8x4xf32, #tpu.memory_space<vmem>>, vector<1x8x4xf32>
    tpu.vector_store %arg6[%c0_17, %c0_18, %c0_19], %20 {strides = array<i32>} : memref<1x8x4xf32, #tpu.memory_space<vmem>>, vector<1x8x4xf32>,
    return
  }
  func.func @transform_0(%arg0: i32, %arg1: i32) -> (i32, i32) {
    %c1_i32 = arith.constant 1 : i32
    %0 = arith.muli %arg0, %c1_i32 : i32
    %1 = arith.addi %0, %arg1 : i32
    %c0_i32 = arith.constant 0 : i32
    %c0_i32_0 = arith.constant 0 : i32
    return %1, %c0_i32 : i32, i32
  }
  func.func @transform_1(%arg0: i32, %arg1: i32) -> (i32, i32) {
    %c0_i32 = arith.constant 0 : i32
    %c0_i32_0 = arith.constant 0 : i32
    %c0_i32_1 = arith.constant 0 : i32
    return %c0_i32, %c0_i32_0 : i32, i32
  }
  func.func @transform_2(%arg0: i32, %arg1: i32) -> (i32, i32) {
    %c1_i32 = arith.constant 1 : i32
    %0 = arith.muli %arg0, %c1_i32 : i32
    %1 = arith.addi %0, %arg1 : i32
    %c0_i32 = arith.constant 0 : i32
    %c0_i32_0 = arith.constant 0 : i32
    return %1, %c0_i32 : i32, i32
  }
  func.func @transform_3(%arg0: i32, %arg1: i32) -> (i32, i32, i32) {
    %c0_i32 = arith.constant 0 : i32
    %c0_i32_0 = arith.constant 0 : i32
    %c0_i32_1 = arith.constant 0 : i32
    return %arg0, %c0_i32, %c0_i32_0 : i32, i32, i32
  }
  func.func @transform_4(%arg0: i32, %arg1: i32) -> (i32, i32, i32) {
    %c0_i32 = arith.constant 0 : i32
    %c0_i32_0 = arith.constant 0 : i32
    %c0_i32_1 = arith.constant 0 : i32
    return %arg0, %c0_i32, %c0_i32_0 : i32, i32, i32
  }
}

module attributes {stable_mosaic.version = 11 : i64} {
  func.func @_conv3x3_fused_kernel(%arg0: i32, %arg1: i32, %arg2: memref<2x1x16x4xf32, #tpu.memory_space<vmem>>, %arg3: memref<2x16x16x4xf32, #tpu.memory_space<vmem>>, %arg4: memref<2x1x16x4xf32, #tpu.memory_space<vmem>>, %arg5: memref<1x4xf32, #tpu.memory_space<vmem>>, %arg6: memref<1x4xf32, #tpu.memory_space<vmem>>, %arg7: memref<36x4xf32, #tpu.memory_space<vmem>>, %arg8: memref<2x16x16x4xf32, #tpu.memory_space<vmem>>, %arg9: memref<1x8x4xf32, #tpu.memory_space<vmem>>, %arg10: memref<1x8x4xf32, #tpu.memory_space<vmem>>) attributes {dimension_semantics = [#tpu.dimension_semantics<parallel>, #tpu.dimension_semantics<arbitrary>], iteration_bounds = array<i64: 1, 1>, scalar_prefetch = 0 : i64, scratch_operands = 0 : i64, tpu.core_type = #tpu.core_type<tc>, window_params = [{transform_indices = @transform_0, window_bounds = array<i64: 2, 1, 16, 4>}, {transform_indices = @transform_1, window_bounds = array<i64: 2, 16, 16, 4>}, {transform_indices = @transform_2, window_bounds = array<i64: 2, 1, 16, 4>}, {pipeline_mode = #tpu.pipeline_mode<synchronous>, transform_indices = @transform_3, window_bounds = array<i64: 1, 4>}, {pipeline_mode = #tpu.pipeline_mode<synchronous>, transform_indices = @transform_4, window_bounds = array<i64: 1, 4>}, {pipeline_mode = #tpu.pipeline_mode<synchronous>, transform_indices = @transform_5, window_bounds = array<i64: 36, 4>}, {transform_indices = @transform_6, window_bounds = array<i64: 2, 16, 16, 4>}, {transform_indices = @transform_7, window_bounds = array<i64: 1, 8, 4>}, {transform_indices = @transform_8, window_bounds = array<i64: 1, 8, 4>}]} {
    %c1_i32 = arith.constant 1 : i32
    %0 = arith.muli %arg0, %c1_i32 : i32
    %1 = arith.addi %0, %arg1 : i32
    %c0_i32 = arith.constant 0 : i32
    %2 = arith.cmpi eq, %arg1, %c0_i32 : i32
    %3 = arith.extui %2 : i1 to i32
    %c0_i32_0 = arith.constant 0 : i32
    %4 = arith.cmpi ne, %3, %c0_i32_0 : i32
    scf.if %4 {
      %cst_46 = arith.constant 0.000000e+00 : f32
      %71 = vector.broadcast %cst_46 : f32 to vector<1x8x4xf32>
      %c0_47 = arith.constant 0 : index
      %c0_48 = arith.constant 0 : index
      %c0_49 = arith.constant 0 : index
      %72 = vector.load %arg9[%c0_47, %c0_48, %c0_49] : memref<1x8x4xf32, #tpu.memory_space<vmem>>, vector<1x8x4xf32>
      tpu.vector_store %arg9[%c0_47, %c0_48, %c0_49], %71 {strides = array<i32>} : memref<1x8x4xf32, #tpu.memory_space<vmem>>, vector<1x8x4xf32>,
      %cst_50 = arith.constant 0.000000e+00 : f32
      %73 = vector.broadcast %cst_50 : f32 to vector<1x8x4xf32>
      %c0_51 = arith.constant 0 : index
      %c0_52 = arith.constant 0 : index
      %c0_53 = arith.constant 0 : index
      %74 = vector.load %arg10[%c0_51, %c0_52, %c0_53] : memref<1x8x4xf32, #tpu.memory_space<vmem>>, vector<1x8x4xf32>
      tpu.vector_store %arg10[%c0_51, %c0_52, %c0_53], %73 {strides = array<i32>} : memref<1x8x4xf32, #tpu.memory_space<vmem>>, vector<1x8x4xf32>,
    } else {
    }
    %c0 = arith.constant 0 : index
    %c0_1 = arith.constant 0 : index
    %5 = vector.load %arg5[%c0, %c0_1] : memref<1x4xf32, #tpu.memory_space<vmem>>, vector<1x4xf32>
    %6 = vector.shape_cast %5 : vector<1x4xf32> to vector<1x1x1x4xf32>
    %c0_2 = arith.constant 0 : index
    %c0_3 = arith.constant 0 : index
    %7 = vector.load %arg6[%c0_2, %c0_3] : memref<1x4xf32, #tpu.memory_space<vmem>>, vector<1x4xf32>
    %8 = vector.shape_cast %7 : vector<1x4xf32> to vector<1x1x1x4xf32>
    %c0_4 = arith.constant 0 : index
    %c0_5 = arith.constant 0 : index
    %c0_6 = arith.constant 0 : index
    %c0_7 = arith.constant 0 : index
    %9 = vector.load %arg3[%c0_4, %c0_5, %c0_6, %c0_7] : memref<2x16x16x4xf32, #tpu.memory_space<vmem>>, vector<2x16x16x4xf32>
    %10 = vector.broadcast %6 : vector<1x1x1x4xf32> to vector<2x16x16x4xf32>
    %11 = arith.mulf %9, %10 : vector<2x16x16x4xf32>
    %12 = vector.broadcast %8 : vector<1x1x1x4xf32> to vector<2x16x16x4xf32>
    %13 = arith.addf %11, %12 : vector<2x16x16x4xf32>
    %cst = arith.constant 0.000000e+00 : f32
    %14 = vector.broadcast %cst : f32 to vector<2x16x16x4xf32>
    %15 = arith.maximumf %13, %14 : vector<2x16x16x4xf32>
    %c0_8 = arith.constant 0 : index
    %c0_9 = arith.constant 0 : index
    %c0_10 = arith.constant 0 : index
    %c0_11 = arith.constant 0 : index
    %16 = vector.load %arg2[%c0_8, %c0_9, %c0_10, %c0_11] : memref<2x1x16x4xf32, #tpu.memory_space<vmem>>, vector<2x1x16x4xf32>
    %17 = vector.broadcast %6 : vector<1x1x1x4xf32> to vector<2x1x16x4xf32>
    %18 = arith.mulf %16, %17 : vector<2x1x16x4xf32>
    %19 = vector.broadcast %8 : vector<1x1x1x4xf32> to vector<2x1x16x4xf32>
    %20 = arith.addf %18, %19 : vector<2x1x16x4xf32>
    %cst_12 = arith.constant 0.000000e+00 : f32
    %21 = vector.broadcast %cst_12 : f32 to vector<2x1x16x4xf32>
    %22 = arith.maximumf %20, %21 : vector<2x1x16x4xf32>
    %c0_i32_13 = arith.constant 0 : i32
    %23 = arith.cmpi eq, %1, %c0_i32_13 : i32
    %cst_14 = arith.constant 0.000000e+00 : f32
    %cst_15 = arith.constant 1.000000e+00 : f32
    %24 = arith.select %23, %cst_14, %cst_15 : f32
    %25 = vector.broadcast %24 : f32 to vector<2x1x16x4xf32>
    %26 = arith.mulf %22, %25 : vector<2x1x16x4xf32>
    %c0_16 = arith.constant 0 : index
    %c0_17 = arith.constant 0 : index
    %c0_18 = arith.constant 0 : index
    %c0_19 = arith.constant 0 : index
    %27 = vector.load %arg4[%c0_16, %c0_17, %c0_18, %c0_19] : memref<2x1x16x4xf32, #tpu.memory_space<vmem>>, vector<2x1x16x4xf32>
    %28 = vector.broadcast %6 : vector<1x1x1x4xf32> to vector<2x1x16x4xf32>
    %29 = arith.mulf %27, %28 : vector<2x1x16x4xf32>
    %30 = vector.broadcast %8 : vector<1x1x1x4xf32> to vector<2x1x16x4xf32>
    %31 = arith.addf %29, %30 : vector<2x1x16x4xf32>
    %cst_20 = arith.constant 0.000000e+00 : f32
    %32 = vector.broadcast %cst_20 : f32 to vector<2x1x16x4xf32>
    %33 = arith.maximumf %31, %32 : vector<2x1x16x4xf32>
    %c0_i32_21 = arith.constant 0 : i32
    %34 = arith.cmpi eq, %1, %c0_i32_21 : i32
    %cst_22 = arith.constant 0.000000e+00 : f32
    %cst_23 = arith.constant 1.000000e+00 : f32
    %35 = arith.select %34, %cst_22, %cst_23 : f32
    %36 = vector.broadcast %35 : f32 to vector<2x1x16x4xf32>
    %37 = arith.mulf %33, %36 : vector<2x1x16x4xf32>
    %38 = tpu.concatenate %26, %15, %37 in 1 : vector<2x1x16x4xf32>, vector<2x16x16x4xf32>, vector<2x1x16x4xf32> -> vector<2x18x16x4xf32>
    %cst_24 = arith.constant 0.000000e+00 : f32
    %39 = vector.broadcast %cst_24 : f32 to vector<2x18x1x4xf32>
    %40 = tpu.concatenate %39, %38, %39 in 2 : vector<2x18x1x4xf32>, vector<2x18x16x4xf32>, vector<2x18x1x4xf32> -> vector<2x18x18x4xf32>
    %41 = vector.extract_strided_slice %40 {offsets = [0, 0, 0, 0], sizes = [2, 16, 16, 4], strides = [1, 1, 1, 1]} : vector<2x18x18x4xf32> to vector<2x16x16x4xf32>
    %42 = vector.extract_strided_slice %40 {offsets = [0, 0, 1, 0], sizes = [2, 16, 16, 4], strides = [1, 1, 1, 1]} : vector<2x18x18x4xf32> to vector<2x16x16x4xf32>
    %43 = vector.extract_strided_slice %40 {offsets = [0, 0, 2, 0], sizes = [2, 16, 16, 4], strides = [1, 1, 1, 1]} : vector<2x18x18x4xf32> to vector<2x16x16x4xf32>
    %44 = vector.extract_strided_slice %40 {offsets = [0, 1, 0, 0], sizes = [2, 16, 16, 4], strides = [1, 1, 1, 1]} : vector<2x18x18x4xf32> to vector<2x16x16x4xf32>
    %45 = vector.extract_strided_slice %40 {offsets = [0, 1, 1, 0], sizes = [2, 16, 16, 4], strides = [1, 1, 1, 1]} : vector<2x18x18x4xf32> to vector<2x16x16x4xf32>
    %46 = vector.extract_strided_slice %40 {offsets = [0, 1, 2, 0], sizes = [2, 16, 16, 4], strides = [1, 1, 1, 1]} : vector<2x18x18x4xf32> to vector<2x16x16x4xf32>
    %47 = vector.extract_strided_slice %40 {offsets = [0, 2, 0, 0], sizes = [2, 16, 16, 4], strides = [1, 1, 1, 1]} : vector<2x18x18x4xf32> to vector<2x16x16x4xf32>
    %48 = vector.extract_strided_slice %40 {offsets = [0, 2, 1, 0], sizes = [2, 16, 16, 4], strides = [1, 1, 1, 1]} : vector<2x18x18x4xf32> to vector<2x16x16x4xf32>
    %49 = vector.extract_strided_slice %40 {offsets = [0, 2, 2, 0], sizes = [2, 16, 16, 4], strides = [1, 1, 1, 1]} : vector<2x18x18x4xf32> to vector<2x16x16x4xf32>
    %50 = tpu.concatenate %41, %42, %43, %44, %45, %46, %47, %48, %49 in 3 : vector<2x16x16x4xf32>, vector<2x16x16x4xf32>, vector<2x16x16x4xf32>, vector<2x16x16x4xf32>, vector<2x16x16x4xf32>, vector<2x16x16x4xf32>, vector<2x16x16x4xf32>, vector<2x16x16x4xf32>, vector<2x16x16x4xf32> -> vector<2x16x16x36xf32>
    %51 = vector.shape_cast %50 : vector<2x16x16x36xf32> to vector<512x36xf32>
    %c0_25 = arith.constant 0 : index
    %c0_26 = arith.constant 0 : index
    %52 = vector.load %arg7[%c0_25, %c0_26] : memref<36x4xf32, #tpu.memory_space<vmem>>, vector<36x4xf32>
    %cst_27 = arith.constant dense<0.000000e+00> : vector<512x4xf32>
    %53 = tpu.matmul %51, %52, %cst_27 {dimension_numbers = #tpu.dot_dimension_numbers<[1], [0], [0], [1], [0, 0, 1, 1], [], []>} : vector<512x36xf32>, vector<36x4xf32>, vector<512x4xf32> -> vector<512x4xf32>
    %54 = vector.shape_cast %53 : vector<512x4xf32> to vector<2x16x16x4xf32>
    %c0_28 = arith.constant 0 : index
    %c0_29 = arith.constant 0 : index
    %c0_30 = arith.constant 0 : index
    %c0_31 = arith.constant 0 : index
    %55 = vector.load %arg8[%c0_28, %c0_29, %c0_30, %c0_31] : memref<2x16x16x4xf32, #tpu.memory_space<vmem>>, vector<2x16x16x4xf32>
    tpu.vector_store %arg8[%c0_28, %c0_29, %c0_30, %c0_31], %54 {strides = array<i32>} : memref<2x16x16x4xf32, #tpu.memory_space<vmem>>, vector<2x16x16x4xf32>,
    %c0_32 = arith.constant 0 : index
    %c0_33 = arith.constant 0 : index
    %c0_34 = arith.constant 0 : index
    %56 = vector.load %arg9[%c0_32, %c0_33, %c0_34] : memref<1x8x4xf32, #tpu.memory_space<vmem>>, vector<1x8x4xf32>
    %cst_35 = arith.constant dense<0.000000e+00> : vector<4xf32>
    %57 = vector.multi_reduction <add>, %53, %cst_35 [0] : vector<512x4xf32> to vector<4xf32>
    %58 = vector.shape_cast %57 : vector<4xf32> to vector<1x4xf32>
    %59 = vector.shape_cast %58 : vector<1x4xf32> to vector<1x1x4xf32>
    %60 = vector.broadcast %59 : vector<1x1x4xf32> to vector<1x8x4xf32>
    %61 = arith.addf %56, %60 : vector<1x8x4xf32>
    %c0_36 = arith.constant 0 : index
    %c0_37 = arith.constant 0 : index
    %c0_38 = arith.constant 0 : index
    %62 = vector.load %arg9[%c0_36, %c0_37, %c0_38] : memref<1x8x4xf32, #tpu.memory_space<vmem>>, vector<1x8x4xf32>
    tpu.vector_store %arg9[%c0_36, %c0_37, %c0_38], %61 {strides = array<i32>} : memref<1x8x4xf32, #tpu.memory_space<vmem>>, vector<1x8x4xf32>,
    %c0_39 = arith.constant 0 : index
    %c0_40 = arith.constant 0 : index
    %c0_41 = arith.constant 0 : index
    %63 = vector.load %arg10[%c0_39, %c0_40, %c0_41] : memref<1x8x4xf32, #tpu.memory_space<vmem>>, vector<1x8x4xf32>
    %64 = arith.mulf %53, %53 : vector<512x4xf32>
    %cst_42 = arith.constant dense<0.000000e+00> : vector<4xf32>
    %65 = vector.multi_reduction <add>, %64, %cst_42 [0] : vector<512x4xf32> to vector<4xf32>
    %66 = vector.shape_cast %65 : vector<4xf32> to vector<1x4xf32>
    %67 = vector.shape_cast %66 : vector<1x4xf32> to vector<1x1x4xf32>
    %68 = vector.broadcast %67 : vector<1x1x4xf32> to vector<1x8x4xf32>
    %69 = arith.addf %63, %68 : vector<1x8x4xf32>
    %c0_43 = arith.constant 0 : index
    %c0_44 = arith.constant 0 : index
    %c0_45 = arith.constant 0 : index
    %70 = vector.load %arg10[%c0_43, %c0_44, %c0_45] : memref<1x8x4xf32, #tpu.memory_space<vmem>>, vector<1x8x4xf32>
    tpu.vector_store %arg10[%c0_43, %c0_44, %c0_45], %69 {strides = array<i32>} : memref<1x8x4xf32, #tpu.memory_space<vmem>>, vector<1x8x4xf32>,
    return
  }
  func.func @transform_0(%arg0: i32, %arg1: i32) -> (i32, i32, i32, i32) {
    %c1_i32 = arith.constant 1 : i32
    %0 = arith.muli %arg0, %c1_i32 : i32
    %1 = arith.addi %0, %arg1 : i32
    %c16_i32 = arith.constant 16 : i32
    %2 = arith.muli %1, %c16_i32 : i32
    %c1_i32_0 = arith.constant 1 : i32
    %3 = arith.subi %2, %c1_i32_0 : i32
    %c0_i32 = arith.constant 0 : i32
    %4 = arith.maxsi %3, %c0_i32 : i32
    %c0_i32_1 = arith.constant 0 : i32
    %c0_i32_2 = arith.constant 0 : i32
    %c0_i32_3 = arith.constant 0 : i32
    %c0_i32_4 = arith.constant 0 : i32
    return %c0_i32_1, %4, %c0_i32_2, %c0_i32_3 : i32, i32, i32, i32
  }
  func.func @transform_1(%arg0: i32, %arg1: i32) -> (i32, i32, i32, i32) {
    %c1_i32 = arith.constant 1 : i32
    %0 = arith.muli %arg0, %c1_i32 : i32
    %1 = arith.addi %0, %arg1 : i32
    %c0_i32 = arith.constant 0 : i32
    %c0_i32_0 = arith.constant 0 : i32
    %c0_i32_1 = arith.constant 0 : i32
    %c0_i32_2 = arith.constant 0 : i32
    return %c0_i32, %1, %c0_i32_0, %c0_i32_1 : i32, i32, i32, i32
  }
  func.func @transform_2(%arg0: i32, %arg1: i32) -> (i32, i32, i32, i32) {
    %c1_i32 = arith.constant 1 : i32
    %0 = arith.muli %arg0, %c1_i32 : i32
    %1 = arith.addi %0, %arg1 : i32
    %c1_i32_0 = arith.constant 1 : i32
    %2 = arith.addi %1, %c1_i32_0 : i32
    %c16_i32 = arith.constant 16 : i32
    %3 = arith.muli %2, %c16_i32 : i32
    %c15_i32 = arith.constant 15 : i32
    %4 = arith.minsi %3, %c15_i32 : i32
    %c0_i32 = arith.constant 0 : i32
    %c0_i32_1 = arith.constant 0 : i32
    %c0_i32_2 = arith.constant 0 : i32
    %c0_i32_3 = arith.constant 0 : i32
    return %c0_i32, %4, %c0_i32_1, %c0_i32_2 : i32, i32, i32, i32
  }
  func.func @transform_3(%arg0: i32, %arg1: i32) -> (i32, i32) {
    %c0_i32 = arith.constant 0 : i32
    %c0_i32_0 = arith.constant 0 : i32
    %c0_i32_1 = arith.constant 0 : i32
    return %c0_i32, %c0_i32_0 : i32, i32
  }
  func.func @transform_4(%arg0: i32, %arg1: i32) -> (i32, i32) {
    %c0_i32 = arith.constant 0 : i32
    %c0_i32_0 = arith.constant 0 : i32
    %c0_i32_1 = arith.constant 0 : i32
    return %c0_i32, %c0_i32_0 : i32, i32
  }
  func.func @transform_5(%arg0: i32, %arg1: i32) -> (i32, i32) {
    %c0_i32 = arith.constant 0 : i32
    %c0_i32_0 = arith.constant 0 : i32
    %c0_i32_1 = arith.constant 0 : i32
    return %c0_i32, %c0_i32_0 : i32, i32
  }
  func.func @transform_6(%arg0: i32, %arg1: i32) -> (i32, i32, i32, i32) {
    %c1_i32 = arith.constant 1 : i32
    %0 = arith.muli %arg0, %c1_i32 : i32
    %1 = arith.addi %0, %arg1 : i32
    %c0_i32 = arith.constant 0 : i32
    %c0_i32_0 = arith.constant 0 : i32
    %c0_i32_1 = arith.constant 0 : i32
    %c0_i32_2 = arith.constant 0 : i32
    return %c0_i32, %1, %c0_i32_0, %c0_i32_1 : i32, i32, i32, i32
  }
  func.func @transform_7(%arg0: i32, %arg1: i32) -> (i32, i32, i32) {
    %c0_i32 = arith.constant 0 : i32
    %c0_i32_0 = arith.constant 0 : i32
    %c0_i32_1 = arith.constant 0 : i32
    return %arg0, %c0_i32, %c0_i32_0 : i32, i32, i32
  }
  func.func @transform_8(%arg0: i32, %arg1: i32) -> (i32, i32, i32) {
    %c0_i32 = arith.constant 0 : i32
    %c0_i32_0 = arith.constant 0 : i32
    %c0_i32_1 = arith.constant 0 : i32
    return %arg0, %c0_i32, %c0_i32_0 : i32, i32, i32
  }
}

module attributes {stable_mosaic.version = 11 : i64} {
  func.func @_bn_add_relu_kernel(%arg0: i32, %arg1: memref<512x4xf32, #tpu.memory_space<vmem>>, %arg2: memref<1x4xf32, #tpu.memory_space<vmem>>, %arg3: memref<1x4xf32, #tpu.memory_space<vmem>>, %arg4: memref<512x4xf32, #tpu.memory_space<vmem>>, %arg5: memref<512x4xf32, #tpu.memory_space<vmem>>) attributes {dimension_semantics = [#tpu.dimension_semantics<parallel>], iteration_bounds = array<i64: 1>, scalar_prefetch = 0 : i64, scratch_operands = 0 : i64, tpu.core_type = #tpu.core_type<tc>, window_params = [{transform_indices = @transform_0, window_bounds = array<i64: 512, 4>}, {pipeline_mode = #tpu.pipeline_mode<synchronous>, transform_indices = @transform_1, window_bounds = array<i64: 1, 4>}, {pipeline_mode = #tpu.pipeline_mode<synchronous>, transform_indices = @transform_2, window_bounds = array<i64: 1, 4>}, {transform_indices = @transform_3, window_bounds = array<i64: 512, 4>}, {transform_indices = @transform_4, window_bounds = array<i64: 512, 4>}]} {
    %c0 = arith.constant 0 : index
    %c0_0 = arith.constant 0 : index
    %0 = vector.load %arg1[%c0, %c0_0] : memref<512x4xf32, #tpu.memory_space<vmem>>, vector<512x4xf32>
    %c0_1 = arith.constant 0 : index
    %c0_2 = arith.constant 0 : index
    %1 = vector.load %arg2[%c0_1, %c0_2] : memref<1x4xf32, #tpu.memory_space<vmem>>, vector<1x4xf32>
    %2 = vector.broadcast %1 : vector<1x4xf32> to vector<512x4xf32>
    %3 = arith.mulf %0, %2 : vector<512x4xf32>
    %c0_3 = arith.constant 0 : index
    %c0_4 = arith.constant 0 : index
    %4 = vector.load %arg3[%c0_3, %c0_4] : memref<1x4xf32, #tpu.memory_space<vmem>>, vector<1x4xf32>
    %5 = vector.broadcast %4 : vector<1x4xf32> to vector<512x4xf32>
    %6 = arith.addf %3, %5 : vector<512x4xf32>
    %c0_5 = arith.constant 0 : index
    %c0_6 = arith.constant 0 : index
    %7 = vector.load %arg4[%c0_5, %c0_6] : memref<512x4xf32, #tpu.memory_space<vmem>>, vector<512x4xf32>
    %8 = arith.addf %6, %7 : vector<512x4xf32>
    %cst = arith.constant 0.000000e+00 : f32
    %9 = vector.broadcast %cst : f32 to vector<512x4xf32>
    %10 = arith.maximumf %8, %9 : vector<512x4xf32>
    %c0_7 = arith.constant 0 : index
    %c0_8 = arith.constant 0 : index
    %11 = vector.load %arg5[%c0_7, %c0_8] : memref<512x4xf32, #tpu.memory_space<vmem>>, vector<512x4xf32>
    tpu.vector_store %arg5[%c0_7, %c0_8], %10 {strides = array<i32>} : memref<512x4xf32, #tpu.memory_space<vmem>>, vector<512x4xf32>,
    return
  }
  func.func @transform_0(%arg0: i32) -> (i32, i32) {
    %c0_i32 = arith.constant 0 : i32
    %c0_i32_0 = arith.constant 0 : i32
    return %arg0, %c0_i32 : i32, i32
  }
  func.func @transform_1(%arg0: i32) -> (i32, i32) {
    %c0_i32 = arith.constant 0 : i32
    %c0_i32_0 = arith.constant 0 : i32
    %c0_i32_1 = arith.constant 0 : i32
    return %c0_i32, %c0_i32_0 : i32, i32
  }
  func.func @transform_2(%arg0: i32) -> (i32, i32) {
    %c0_i32 = arith.constant 0 : i32
    %c0_i32_0 = arith.constant 0 : i32
    %c0_i32_1 = arith.constant 0 : i32
    return %c0_i32, %c0_i32_0 : i32, i32
  }
  func.func @transform_3(%arg0: i32) -> (i32, i32) {
    %c0_i32 = arith.constant 0 : i32
    %c0_i32_0 = arith.constant 0 : i32
    return %arg0, %c0_i32 : i32, i32
  }
  func.func @transform_4(%arg0: i32) -> (i32, i32) {
    %c0_i32 = arith.constant 0 : i32
    %c0_i32_0 = arith.constant 0 : i32
    return %arg0, %c0_i32 : i32, i32
  }
}

</mosaic_0001>

<bundles_post_ra>
// kernel: bottleneck_forward.4
= control target key start
LH: loop header
LB: loop body
LE: loop exit
PB: predicated region body
PF: predicated region fallthrough
CT: control target
= control target key end

     0   :  { %vm315_vm0 = vcmask 1043456   ;;  %vm54_vm1 = vcmask 31744   ;;  %s2022_s1 = inlined_call_operand.vmem [shape: f32[4,4], index: 1, kind: input, shape index: {}]   ;;  %s2023_s0 = inlined_call_operand.vmem [shape: f32[512,4], index: 0, kind: input, shape index: {}]   ;;  %s2024_s2 = inlined_call_operand.vmem [shape: f32[512,4], index: 2, kind: output, shape index: {0}]   ;;  %s2025_s3 = inlined_call_operand.vmem [shape: f32[1,8,4], index: 3, kind: output, shape index: {1}]   ;;  %s2026_s4 = inlined_call_operand.vmem [shape: f32[1,8,4], index: 4, kind: output, shape index: {2}]  }
   0x1   :  { %v121_v0 = vld [vmem:[%s2022_s1] sm:$0xf]  ;;  %v58_v3 = vld [vmem:[%s2023_s0 + $0x8] sm:$0xff]  ;;  %v59_v5 = vld [vmem:[%s2023_s0 + $0x10] sm:$0xff] }
   0x2   :  { %v57_v1 = vld [vmem:[%s2023_s0] sm:$0xff]  ;;  %968 = vmatpush.msk.msra.mxu0 %vm315_vm0, %v121_v0  ;;  %1033 = vmatpush.msk.msra.mxu1 %vm315_vm0, %v121_v0  ;;  %v74_v4 = vld [vmem:[%s2023_s0 + $0x88] sm:$0xff]  ;;  %v75_v6 = vld [vmem:[%s2023_s0 + $0x90] sm:$0xff] }
   0x3   :  { %969 = vmatmul.msk.f32.vlgmr.msra.gmra.mxu0 %vm54_vm1, %v57_v1  ;;  %v73_v2 = vld [vmem:[%s2023_s0 + $0x80] sm:$0xff]  ;;  %1034 = vmatpush.msk.msra.mxu2 %vm315_vm0, %v121_v0  ;;  %v60_v7 = vld [vmem:[%s2023_s0 + $0x18] sm:$0xff]  ;;  %v90_v12 = vld [vmem:[%s2023_s0 + $0x108] sm:$0xff] }
   0x4   :  { %985 = vmatmul.msk.f32.vlgmr.msra.gmra.mxu1 %vm54_vm1, %v73_v2  ;;  %1035 = vmatpush.msk.msra.mxu3 %vm315_vm0, %v121_v0  ;;  %v76_v8 = vld [vmem:[%s2023_s0 + $0x98] sm:$0xff]  ;;  %v89_v9 = vld [vmem:[%s2023_s0 + $0x100] sm:$0xff]  ;;  %v62_v13 = vld [vmem:[%s2023_s0 + $0x28] sm:$0xff] }
   0x5   :  { %1001 = vmatmul.msk.f32.vlgmr.msra.gmra.mxu2 %vm54_vm1, %v89_v9  ;;  %v61_v10 = vld [vmem:[%s2023_s0 + $0x20] sm:$0xff]  ;;  %v78_v14 = vld [vmem:[%s2023_s0 + $0xa8] sm:$0xff]  ;;  %v91_v15 = vld [vmem:[%s2023_s0 + $0x110] sm:$0xff] }
   0x6   :  { %v77_v11 = vld [vmem:[%s2023_s0 + $0xa0] sm:$0xff]  ;;  %v63_v16 = vld [vmem:[%s2023_s0 + $0x30] sm:$0xff]  ;;  %v92_v18 = vld [vmem:[%s2023_s0 + $0x118] sm:$0xff] }
   0x7   :  { %v79_v17 = vld [vmem:[%s2023_s0 + $0xb0] sm:$0xff]  ;;  %v64_v19 = vld [vmem:[%s2023_s0 + $0x38] sm:$0xff]  ;;  %v93_v21 = vld [vmem:[%s2023_s0 + $0x120] sm:$0xff] }
   0x8   :  { %v80_v20 = vld [vmem:[%s2023_s0 + $0xb8] sm:$0xff]  ;;  %v105_v22 = vld [vmem:[%s2023_s0 + $0x180] sm:$0xff]  ;;  %v94_v25 = vld [vmem:[%s2023_s0 + $0x128] sm:$0xff] }
   0x9   :  { %1017 = vmatmul.msk.f32.vlgmr.msra.gmra.mxu3 %vm54_vm1, %v105_v22  ;;  %v65_v23 = vld [vmem:[%s2023_s0 + $0x40] sm:$0xff]  ;;  %v106_v26 = vld [vmem:[%s2023_s0 + $0x188] sm:$0xff]  ;;  %v95_v29 = vld [vmem:[%s2023_s0 + $0x130] sm:$0xff] }
   0xa   :  { %v81_v24 = vld [vmem:[%s2023_s0 + $0xc0] sm:$0xff]  ;;  %v66_v27 = vld [vmem:[%s2023_s0 + $0x48] sm:$0xff]  ;;  %v107_v30 = vld [vmem:[%s2023_s0 + $0x190] sm:$0xff] }
   0xb   :  { %970 = vmatmul.msk.f32.gmra.mxu0 %vm54_vm1, %v58_v3  ;;  %v82_v28 = vld [vmem:[%s2023_s0 + $0xc8] sm:$0xff]  ;;  %v67_v31 = vld [vmem:[%s2023_s0 + $0x50] sm:$0xff]  ;;  %v96_v33 = vld [vmem:[%s2023_s0 + $0x138] sm:$0xff] }
   0xc   :  { %986 = vmatmul.msk.f32.gmra.mxu1 %vm54_vm1, %v74_v4  ;;  %v83_v32 = vld [vmem:[%s2023_s0 + $0xd0] sm:$0xff]  ;;  %v108_v34 = vld [vmem:[%s2023_s0 + $0x198] sm:$0xff]  ;;  %v97_v37 = vld [vmem:[%s2023_s0 + $0x140] sm:$0xff] }
   0xd   :  { %1002 = vmatmul.msk.f32.gmra.mxu2 %vm54_vm1, %v90_v12  ;;  %v68_v35 = vld [vmem:[%s2023_s0 + $0x58] sm:$0xff]  ;;  %v109_v38 = vld [vmem:[%s2023_s0 + $0x1a0] sm:$0xff]  ;;  %v98_v41 = vld [vmem:[%s2023_s0 + $0x148] sm:$0xff] }
   0xe   :  { %v84_v36 = vld [vmem:[%s2023_s0 + $0xd8] sm:$0xff]  ;;  %v69_v39 = vld [vmem:[%s2023_s0 + $0x60] sm:$0xff]  ;;  %v110_v42 = vld [vmem:[%s2023_s0 + $0x1a8] sm:$0xff] }
   0xf   :  { %v85_v40 = vld [vmem:[%s2023_s0 + $0xe0] sm:$0xff]  ;;  %v70_v43 = vld [vmem:[%s2023_s0 + $0x68] sm:$0xff]  ;;  %v99_v45 = vld [vmem:[%s2023_s0 + $0x150] sm:$0xff] }
  0x10   :  { %v86_v44 = vld [vmem:[%s2023_s0 + $0xe8] sm:$0xff]  ;;  %v111_v46 = vld [vmem:[%s2023_s0 + $0x1b0] sm:$0xff]  ;;  %v100_v49 = vld [vmem:[%s2023_s0 + $0x158] sm:$0xff] }
  0x11   :  { %1018 = vmatmul.msk.f32.gmra.mxu3 %vm54_vm1, %v106_v26  ;;  %v71_v47 = vld [vmem:[%s2023_s0 + $0x70] sm:$0xff]  ;;  %v112_v50 = vld [vmem:[%s2023_s0 + $0x1b8] sm:$0xff]  ;;  %v101_v53 = vld [vmem:[%s2023_s0 + $0x160] sm:$0xff] }
  0x12   :  { %v87_v48 = vld [vmem:[%s2023_s0 + $0xf0] sm:$0xff]  ;;  %v72_v51 = vld [vmem:[%s2023_s0 + $0x78] sm:$0xff]  ;;  %v113_v54 = vld [vmem:[%s2023_s0 + $0x1c0] sm:$0xff] }
  0x13   :  { %971 = vmatmul.msk.f32.gmra.mxu0 %vm54_vm1, %v59_v5  ;;  %v88_v52 = vld [vmem:[%s2023_s0 + $0xf8] sm:$0xff]  ;;  %v102_v57 = vld [vmem:[%s2023_s0 + $0x168] sm:$0xff]  ;;  %v103_v5 = vld [vmem:[%s2023_s0 + $0x170] sm:$0xff] }
  0x14   :  { %987 = vmatmul.msk.f32.gmra.mxu1 %vm54_vm1, %v75_v6  ;;  %v114_v58 = vld [vmem:[%s2023_s0 + $0x1c8] sm:$0xff]  ;;  %v115_v6 = vld [vmem:[%s2023_s0 + $0x1d0] sm:$0xff] }
  0x15   :  { %1003 = vmatmul.msk.f32.gmra.mxu2 %vm54_vm1, %v91_v15  ;;  %v116_v15 = vld [vmem:[%s2023_s0 + $0x1d8] sm:$0xff] }
  0x19   :  { %1019 = vmatmul.msk.f32.gmra.mxu3 %vm54_vm1, %v107_v30 }
  0x1b   :  { %972 = vmatmul.msk.f32.gmra.mxu0 %vm54_vm1, %v60_v7 }
  0x1c   :  { %988 = vmatmul.msk.f32.gmra.mxu1 %vm54_vm1, %v76_v8 }
  0x1d   :  { %1004 = vmatmul.msk.f32.gmra.mxu2 %vm54_vm1, %v92_v18 }
  0x21   :  { %1020 = vmatmul.msk.f32.gmra.mxu3 %vm54_vm1, %v108_v34 }
  0x23   :  { %973 = vmatmul.msk.f32.gmra.mxu0 %vm54_vm1, %v61_v10 }
  0x24   :  { %989 = vmatmul.msk.f32.gmra.mxu1 %vm54_vm1, %v77_v11 }
  0x25   :  { %1005 = vmatmul.msk.f32.gmra.mxu2 %vm54_vm1, %v93_v21 }
  0x29   :  { %1021 = vmatmul.msk.f32.gmra.mxu3 %vm54_vm1, %v109_v38 }
  0x2b   :  { %974 = vmatmul.msk.f32.gmra.mxu0 %vm54_vm1, %v62_v13 }
  0x2c   :  { %990 = vmatmul.msk.f32.gmra.mxu1 %vm54_vm1, %v78_v14  ;;  %v104_v14 = vld [vmem:[%s2023_s0 + $0x178] sm:$0xff] }
  0x2d   :  { %1006 = vmatmul.msk.f32.gmra.mxu2 %vm54_vm1, %v94_v25 }
  0x31   :  { %1022 = vmatmul.msk.f32.gmra.mxu3 %vm54_vm1, %v110_v42 }
  0x33   :  { %975 = vmatmul.msk.f32.gmra.mxu0 %vm54_vm1, %v63_v16 }
  0x34   :  { %991 = vmatmul.msk.f32.gmra.mxu1 %vm54_vm1, %v79_v17 }
  0x35   :  { %1007 = vmatmul.msk.f32.gmra.mxu2 %vm54_vm1, %v95_v29 }
  0x39   :  { %1023 = vmatmul.msk.f32.gmra.mxu3 %vm54_vm1, %v111_v46 }
  0x3b   :  { %976 = vmatmul.msk.f32.gmra.mxu0 %vm54_vm1, %v64_v19 }
  0x3c   :  { %992 = vmatmul.msk.f32.gmra.mxu1 %vm54_vm1, %v80_v20 }
  0x3d   :  { %1008 = vmatmul.msk.f32.gmra.mxu2 %vm54_vm1, %v96_v33 }
  0x41   :  { %1024 = vmatmul.msk.f32.gmra.mxu3 %vm54_vm1, %v112_v50 }
  0x43   :  { %977 = vmatmul.msk.f32.gmra.mxu0 %vm54_vm1, %v65_v23  ;;  %v117_v23 = vld [vmem:[%s2023_s0 + $0x1e0] sm:$0xff] }
  0x44   :  { %993 = vmatmul.msk.f32.gmra.mxu1 %vm54_vm1, %v81_v24 }
  0x45   :  { %1009 = vmatmul.msk.f32.gmra.mxu2 %vm54_vm1, %v97_v37 }
  0x49   :  { %1025 = vmatmul.msk.f32.gmra.mxu3 %vm54_vm1, %v113_v54 }
  0x4b   :  { %978 = vmatmul.msk.f32.gmra.mxu0 %vm54_vm1, %v66_v27 }
  0x4c   :  { %994 = vmatmul.msk.f32.gmra.mxu1 %vm54_vm1, %v82_v28 }
  0x4d   :  { %1010 = vmatmul.msk.f32.gmra.mxu2 %vm54_vm1, %v98_v41 }
  0x51   :  { %1026 = vmatmul.msk.f32.gmra.mxu3 %vm54_vm1, %v114_v58 }
  0x53   :  { %979 = vmatmul.msk.f32.gmra.mxu0 %vm54_vm1, %v67_v31 }
  0x54   :  { %995 = vmatmul.msk.f32.gmra.mxu1 %vm54_vm1, %v83_v32  ;;  %v118_v32 = vld [vmem:[%s2023_s0 + $0x1e8] sm:$0xff] }
  0x55   :  { %1011 = vmatmul.msk.f32.gmra.mxu2 %vm54_vm1, %v99_v45 }
  0x59   :  { %1027 = vmatmul.msk.f32.gmra.mxu3 %vm54_vm1, %v115_v6 }
  0x5b   :  { %980 = vmatmul.msk.f32.gmra.mxu0 %vm54_vm1, %v68_v35 }
  0x5c   :  { %996 = vmatmul.msk.f32.gmra.mxu1 %vm54_vm1, %v84_v36  ;;  %v119_v36 = vld [vmem:[%s2023_s0 + $0x1f0] sm:$0xff] }
  0x5d   :  { %1012 = vmatmul.msk.f32.gmra.mxu2 %vm54_vm1, %v100_v49 }
  0x61   :  { %1028 = vmatmul.msk.f32.gmra.mxu3 %vm54_vm1, %v116_v15 }
  0x63   :  { %981 = vmatmul.msk.f32.gmra.mxu0 %vm54_vm1, %v69_v39 }
  0x64   :  { %997 = vmatmul.msk.f32.gmra.mxu1 %vm54_vm1, %v85_v40  ;;  %v120_v40 = vld [vmem:[%s2023_s0 + $0x1f8] sm:$0xff] }
  0x65   :  { %1013 = vmatmul.msk.f32.gmra.mxu2 %vm54_vm1, %v101_v53 }
  0x69   :  { %1029 = vmatmul.msk.f32.gmra.mxu3 %vm54_vm1, %v117_v23 }
  0x6b   :  { %982 = vmatmul.msk.f32.gmra.mxu0 %vm54_vm1, %v70_v43 }
  0x6c   :  { %998 = vmatmul.msk.f32.gmra.mxu1 %vm54_vm1, %v86_v44 }
  0x6d   :  { %1014 = vmatmul.msk.f32.gmra.mxu2 %vm54_vm1, %v102_v57 }
  0x71   :  { %1030 = vmatmul.msk.f32.gmra.mxu3 %vm54_vm1, %v118_v32 }
  0x73   :  { %983 = vmatmul.msk.f32.gmra.mxu0 %vm54_vm1, %v71_v47 }
  0x74   :  { %999 = vmatmul.msk.f32.gmra.mxu1 %vm54_vm1, %v87_v48 }
  0x75   :  { %1015 = vmatmul.msk.f32.gmra.mxu2 %vm54_vm1, %v103_v5 }
  0x79   :  { %1031 = vmatmul.msk.f32.gmra.mxu3 %vm54_vm1, %v119_v36 }
  0x7b   :  { %984 = vmatmul.msk.f32.gmra.mxu0 %vm54_vm1, %v72_v51 }
  0x7c   :  { %1000 = vmatmul.msk.f32.gmra.mxu1 %vm54_vm1, %v88_v52 }
  0x7d   :  { %1016 = vmatmul.msk.f32.gmra.mxu2 %vm54_vm1, %v104_v14 }
  0x80   :  { %v336_v55 = vpop.f32.mrf.mxu0 }
  0x81   :  { %528 = vst.msk [vmem:[%s2024_s2] sm:$0xff] %vm54_vm1, %v336_v55  ;;  %v1286_v56 = vpop.f32.mrf.mxu1  ;;  %v729_v59 = vmul.f32 %v336_v55, %v336_v55  ;;  %v593_v61 = vsel %vm54_vm1, %v336_v55, 0.0  ;;  %1032 = vmatmul.msk.f32.gmra.mxu3 %vm54_vm1, %v120_v40 }
  0x82   :  { %544 = vst.msk [vmem:[%s2024_s2 + $0x80] sm:$0xff] %vm54_vm1, %v1286_v56 }
  0x83   :  { %v793_v2 = vsel %vm54_vm1, %v729_v59, 0.0 }
  0x88   :  { %v339_v60 = vpop.f32.mrf.mxu0  ;;  %v1362_v25 = vpop.f32.mrf.mxu2 }
  0x89   :  { %529 = vst.msk [vmem:[%s2024_s2 + $0x8] sm:$0xff] %vm54_vm1, %v339_v60  ;;  %v594_v62 = vsel %vm54_vm1, %v339_v60, 0.0  ;;  %v730_v63 = vmul.f32 %v339_v60, %v339_v60  ;;  %v1307_v0 = vpop.f32.mrf.mxu1 }
  0x8a   :  { %v595_v1 = vadd.f32 %v594_v62, %v593_v61  ;;  %545 = vst.msk [vmem:[%s2024_s2 + $0x88] sm:$0xff] %vm54_vm1, %v1307_v0 }
  0x8b   :  { %v794_v3 = vsel %vm54_vm1, %v730_v63, 0.0  ;;  %560 = vst.msk [vmem:[%s2024_s2 + $0x100] sm:$0xff] %vm54_vm1, %v1362_v25 }
  0x8c   :  { %v795_v4 = vadd.f32 %v794_v3, %v793_v2  ;;  %v1460_v47 = vpop.f32.mrf.mxu3 }
  0x8d   :  { %576 = vst.msk [vmem:[%s2024_s2 + $0x180] sm:$0xff] %vm54_vm1, %v1460_v47 }
  0x90   :  { %v342_v7 = vpop.f32.mrf.mxu0  ;;  %v1390_v34 = vpop.f32.mrf.mxu2 }
  0x91   :  { %530 = vst.msk [vmem:[%s2024_s2 + $0x10] sm:$0xff] %vm54_vm1, %v342_v7  ;;  %v596_v8 = vsel %vm54_vm1, %v342_v7, 0.0  ;;  %v731_v9 = vmul.f32 %v342_v7, %v342_v7  ;;  %v1329_v10 = vpop.f32.mrf.mxu1 }
  0x92   :  { %v597_v11 = vadd.f32 %v596_v8, %v595_v1  ;;  %546 = vst.msk [vmem:[%s2024_s2 + $0x90] sm:$0xff] %vm54_vm1, %v1329_v10 }
  0x93   :  { %v796_v12 = vsel %vm54_vm1, %v731_v9, 0.0  ;;  %561 = vst.msk [vmem:[%s2024_s2 + $0x108] sm:$0xff] %vm54_vm1, %v1390_v34 }
  0x94   :  { %v797_v13 = vadd.f32 %v796_v12, %v795_v4  ;;  %v1485_v51 = vpop.f32.mrf.mxu3 }
  0x95   :  { %577 = vst.msk [vmem:[%s2024_s2 + $0x188] sm:$0xff] %vm54_vm1, %v1485_v51 }
  0x98   :  { %v345_v16 = vpop.f32.mrf.mxu0  ;;  %v1412_v38 = vpop.f32.mrf.mxu2 }
  0x99   :  { %531 = vst.msk [vmem:[%s2024_s2 + $0x18] sm:$0xff] %vm54_vm1, %v345_v16  ;;  %v598_v17 = vsel %vm54_vm1, %v345_v16, 0.0  ;;  %v732_v18 = vmul.f32 %v345_v16, %v345_v16  ;;  %v1350_v19 = vpop.f32.mrf.mxu1 }
  0x9a   :  { %v599_v20 = vadd.f32 %v598_v17, %v597_v11  ;;  %547 = vst.msk [vmem:[%s2024_s2 + $0x98] sm:$0xff] %vm54_vm1, %v1350_v19 }
  0x9b   :  { %v798_v21 = vsel %vm54_vm1, %v732_v18, 0.0  ;;  %562 = vst.msk [vmem:[%s2024_s2 + $0x110] sm:$0xff] %vm54_vm1, %v1412_v38 }
  0x9c   :  { %v799_v22 = vadd.f32 %v798_v21, %v797_v13  ;;  %v1510_v55 = vpop.f32.mrf.mxu3 }
  0x9d   :  { %578 = vst.msk [vmem:[%s2024_s2 + $0x190] sm:$0xff] %vm54_vm1, %v1510_v55 }
  0xa0   :  { %v348_v24 = vpop.f32.mrf.mxu0  ;;  %v1434_v42 = vpop.f32.mrf.mxu2 }
  0xa1   :  { %532 = vst.msk [vmem:[%s2024_s2 + $0x20] sm:$0xff] %vm54_vm1, %v348_v24  ;;  %v600_v26 = vsel %vm54_vm1, %v348_v24, 0.0  ;;  %v733_v27 = vmul.f32 %v348_v24, %v348_v24  ;;  %v1369_v28 = vpop.f32.mrf.mxu1 }
  0xa2   :  { %v1371_v29 = vadd.f32 %v600_v26, %v599_v20  ;;  %548 = vst.msk [vmem:[%s2024_s2 + $0xa0] sm:$0xff] %vm54_vm1, %v1369_v28 }
  0xa3   :  { %v800_v30 = vsel %vm54_vm1, %v733_v27, 0.0  ;;  %563 = vst.msk [vmem:[%s2024_s2 + $0x118] sm:$0xff] %vm54_vm1, %v1434_v42 }
  0xa4   :  { %v1384_v31 = vadd.f32 %v800_v30, %v799_v22  ;;  %v1535_v60 = vpop.f32.mrf.mxu3 }
  0xa5   :  { %579 = vst.msk [vmem:[%s2024_s2 + $0x198] sm:$0xff] %vm54_vm1, %v1535_v60 }
  0xa8   :  { %v351_v33 = vpop.f32.mrf.mxu0  ;;  %v1452_v45 = vpop.f32.mrf.mxu2 }
  0xa9   :  { %533 = vst.msk [vmem:[%s2024_s2 + $0x28] sm:$0xff] %vm54_vm1, %v351_v33  ;;  %v1396_v35 = vpop.f32.mrf.mxu1  ;;  %v734_v63 = vmul.f32 %v351_v33, %v351_v33  ;;  %v602_v3 = vsel %vm54_vm1, %v351_v33, 0.0 }
  0xaa   :  { %549 = vst.msk [vmem:[%s2024_s2 + $0xa8] sm:$0xff] %vm54_vm1, %v1396_v35  ;;  %v603_v8 = vadd.f32 %v602_v3, %v1371_v29 }
  0xab   :  { %564 = vst.msk [vmem:[%s2024_s2 + $0x120] sm:$0xff] %vm54_vm1, %v1452_v45  ;;  %v802_v5 = vsel %vm54_vm1, %v734_v63, 0.0 }
  0xac   :  { %v1560_v2 = vpop.f32.mrf.mxu3  ;;  %v803_v13 = vadd.f32 %v802_v5, %v1384_v31 }
  0xad   :  { %580 = vst.msk [vmem:[%s2024_s2 + $0x1a0] sm:$0xff] %vm54_vm1, %v1560_v2 }
  0xb0   :  { %v354_v37 = vpop.f32.mrf.mxu0  ;;  %v1477_v49 = vpop.f32.mrf.mxu2 }
  0xb1   :  { %534 = vst.msk [vmem:[%s2024_s2 + $0x30] sm:$0xff] %vm54_vm1, %v354_v37  ;;  %v1418_v39 = vpop.f32.mrf.mxu1  ;;  %v735_v4 = vmul.f32 %v354_v37, %v354_v37  ;;  %v604_v6 = vsel %vm54_vm1, %v354_v37, 0.0 }
  0xb2   :  { %550 = vst.msk [vmem:[%s2024_s2 + $0xb0] sm:$0xff] %vm54_vm1, %v1418_v39  ;;  %v605_v14 = vadd.f32 %v604_v6, %v603_v8 }
  0xb3   :  { %565 = vst.msk [vmem:[%s2024_s2 + $0x128] sm:$0xff] %vm54_vm1, %v1477_v49  ;;  %v804_v9 = vsel %vm54_vm1, %v735_v4, 0.0 }
  0xb4   :  { %v1594_v22 = vpop.f32.mrf.mxu3  ;;  %v805_v23 = vadd.f32 %v804_v9, %v803_v13 }
  0xb5   :  { %581 = vst.msk [vmem:[%s2024_s2 + $0x1a8] sm:$0xff] %vm54_vm1, %v1594_v22 }
  0xb8   :  { %v357_v41 = vpop.f32.mrf.mxu0  ;;  %v1502_v53 = vpop.f32.mrf.mxu2 }
  0xb9   :  { %535 = vst.msk [vmem:[%s2024_s2 + $0x38] sm:$0xff] %vm54_vm1, %v357_v41  ;;  %v1440_v43 = vpop.f32.mrf.mxu1  ;;  %v736_v7 = vmul.f32 %v357_v41, %v357_v41  ;;  %v606_v11 = vsel %vm54_vm1, %v357_v41, 0.0 }
  0xba   :  { %551 = vst.msk [vmem:[%s2024_s2 + $0xb8] sm:$0xff] %vm54_vm1, %v1440_v43  ;;  %v607_v24 = vadd.f32 %v606_v11, %v605_v14 }
  0xbb   :  { %566 = vst.msk [vmem:[%s2024_s2 + $0x130] sm:$0xff] %vm54_vm1, %v1502_v53  ;;  %v806_v17 = vsel %vm54_vm1, %v736_v7, 0.0 }
  0xbc   :  { %v807_v30 = vadd.f32 %v806_v17, %v805_v23  ;;  %v1627_v9 = vpop.f32.mrf.mxu3 }
  0xbd   :  { %582 = vst.msk [vmem:[%s2024_s2 + $0x1b0] sm:$0xff] %vm54_vm1, %v1627_v9 }
  0xc0   :  { %v360_v44 = vpop.f32.mrf.mxu0  ;;  %v1527_v58 = vpop.f32.mrf.mxu2 }
  0xc1   :  { %536 = vst.msk [vmem:[%s2024_s2 + $0x40] sm:$0xff] %vm54_vm1, %v360_v44  ;;  %v1458_v46 = vpop.f32.mrf.mxu1  ;;  %v737_v12 = vmul.f32 %v360_v44, %v360_v44  ;;  %v608_v18 = vsel %vm54_vm1, %v360_v44, 0.0 }
  0xc2   :  { %552 = vst.msk [vmem:[%s2024_s2 + $0xc0] sm:$0xff] %vm54_vm1, %v1458_v46  ;;  %v609_v31 = vadd.f32 %v608_v18, %v607_v24 }
  0xc3   :  { %567 = vst.msk [vmem:[%s2024_s2 + $0x138] sm:$0xff] %vm54_vm1, %v1527_v58  ;;  %v808_v26 = vsel %vm54_vm1, %v737_v12, 0.0 }
  0xc4   :  { %v809_v37 = vadd.f32 %v808_v26, %v807_v30 }
  0xc8   :  { %v363_v48 = vpop.f32.mrf.mxu0  ;;  %v1552_v62 = vpop.f32.mrf.mxu2 }
  0xc9   :  { %537 = vst.msk [vmem:[%s2024_s2 + $0x48] sm:$0xff] %vm54_vm1, %v363_v48  ;;  %v1483_v50 = vpop.f32.mrf.mxu1  ;;  %v738_v20 = vmul.f32 %v363_v48, %v363_v48  ;;  %v610_v27 = vsel %vm54_vm1, %v363_v48, 0.0 }
  0xca   :  { %553 = vst.msk [vmem:[%s2024_s2 + $0xc8] sm:$0xff] %vm54_vm1, %v1483_v50  ;;  %v611_v40 = vadd.f32 %v610_v27, %v609_v31  ;;  %v745_v31 = vmul.f32 %v1286_v56, %v1286_v56 }
  0xcb   :  { %568 = vst.msk [vmem:[%s2024_s2 + $0x140] sm:$0xff] %vm54_vm1, %v1552_v62  ;;  %v810_v32 = vsel %vm54_vm1, %v738_v20, 0.0 }
  0xcc   :  { %v811_v63 = vadd.f32 %v810_v32, %v809_v37  ;;  %v1660_v37 = vpop.f32.mrf.mxu3 }
  0xcd   :  { %583 = vst.msk [vmem:[%s2024_s2 + $0x1b8] sm:$0xff] %vm54_vm1, %v1660_v37 }
  0xd0   :  { %v366_v52 = vpop.f32.mrf.mxu0  ;;  %v1584_v16 = vpop.f32.mrf.mxu2 }
  0xd1   :  { %538 = vst.msk [vmem:[%s2024_s2 + $0x50] sm:$0xff] %vm54_vm1, %v366_v52  ;;  %v1508_v54 = vpop.f32.mrf.mxu1  ;;  %v739_v29 = vmul.f32 %v366_v52, %v366_v52  ;;  %v612_v33 = vsel %vm54_vm1, %v366_v52, 0.0 }
  0xd2   :  { %554 = vst.msk [vmem:[%s2024_s2 + $0xd0] sm:$0xff] %vm54_vm1, %v1508_v54  ;;  %v613_v3 = vadd.f32 %v612_v33, %v611_v40 }
  0xd3   :  { %569 = vst.msk [vmem:[%s2024_s2 + $0x148] sm:$0xff] %vm54_vm1, %v1584_v16  ;;  %v812_v41 = vsel %vm54_vm1, %v739_v29, 0.0 }
  0xd8   :  { %v369_v57 = vpop.f32.mrf.mxu0  ;;  %v1617_v5 = vpop.f32.mrf.mxu2 }
  0xd9   :  { %539 = vst.msk [vmem:[%s2024_s2 + $0x58] sm:$0xff] %vm54_vm1, %v369_v57  ;;  %v1533_v59 = vpop.f32.mrf.mxu1  ;;  %v740_v36 = vmul.f32 %v369_v57, %v369_v57  ;;  %v614_v44 = vsel %vm54_vm1, %v369_v57, 0.0  ;;  %v813_v57 = vadd.f32 %v812_v41, %v811_v63 }
  0xda   :  { %555 = vst.msk [vmem:[%s2024_s2 + $0xd8] sm:$0xff] %vm54_vm1, %v1533_v59  ;;  %v615_v11 = vadd.f32 %v614_v44, %v613_v3  ;;  %v624_v44 = vsel %vm54_vm1, %v1286_v56, 0.0  ;;  %v824_v56 = vsel %vm54_vm1, %v745_v31, 0.0 }
  0xdb   :  { %v814_v6 = vsel %vm54_vm1, %v740_v36, 0.0  ;;  %570 = vst.msk [vmem:[%s2024_s2 + $0x150] sm:$0xff] %vm54_vm1, %v1617_v5 }
  0xdc   :  { %v815_v14 = vadd.f32 %v814_v6, %v813_v57  ;;  %v626_v6 = vsel %vm54_vm1, %v1307_v0, 0.0 }
  0xe0   :  { %v372_v61 = vpop.f32.mrf.mxu0  ;;  %v1649_v30 = vpop.f32.mrf.mxu2 }
  0xe1   :  { %540 = vst.msk [vmem:[%s2024_s2 + $0x60] sm:$0xff] %vm54_vm1, %v372_v61  ;;  %v1558_v1 = vpop.f32.mrf.mxu1  ;;  %v741_v48 = vmul.f32 %v372_v61, %v372_v61  ;;  %v616_v7 = vsel %vm54_vm1, %v372_v61, 0.0 }
  0xe2   :  { %556 = vst.msk [vmem:[%s2024_s2 + $0xe0] sm:$0xff] %vm54_vm1, %v1558_v1  ;;  %v617_v17 = vadd.f32 %v616_v7, %v615_v11  ;;  %v747_v7 = vmul.f32 %v1329_v10, %v1329_v10 }
  0xe3   :  { %v816_v61 = vsel %vm54_vm1, %v741_v48, 0.0  ;;  %v746_v48 = vmul.f32 %v1307_v0, %v1307_v0  ;;  %571 = vst.msk [vmem:[%s2024_s2 + $0x158] sm:$0xff] %vm54_vm1, %v1649_v30  ;;  %v630_v0 = vsel %vm54_vm1, %v1350_v19, 0.0 }
  0xe5   :  { %v826_v11 = vsel %vm54_vm1, %v746_v48, 0.0  ;;  %v752_v48 = vmul.f32 %v1440_v43, %v1440_v43 }
  0xe8   :  { %v375_v15 = vpop.f32.mrf.mxu0 }
  0xe9   :  { %541 = vst.msk [vmem:[%s2024_s2 + $0x68] sm:$0xff] %vm54_vm1, %v375_v15  ;;  %v1592_v21 = vpop.f32.mrf.mxu1  ;;  %v742_v8 = vmul.f32 %v375_v15, %v375_v15  ;;  %v618_v12 = vsel %vm54_vm1, %v375_v15, 0.0  ;;  %v817_v15 = vadd.f32 %v816_v61, %v815_v14  ;;  %v628_v61 = vsel %vm54_vm1, %v1329_v10, 0.0  ;;  %v1704_v10 = vpop.f32.mrf.mxu3 }
  0xea   :  { %557 = vst.msk [vmem:[%s2024_s2 + $0xe8] sm:$0xff] %vm54_vm1, %v1592_v21  ;;  %v619_v23 = vadd.f32 %v618_v12, %v617_v17  ;;  %v748_v12 = vmul.f32 %v1350_v19, %v1350_v19  ;;  %v1692_v17 = vpop.f32.mrf.mxu2 }
  0xeb   :  { %v818_v18 = vsel %vm54_vm1, %v742_v8, 0.0  ;;  %572 = vst.msk [vmem:[%s2024_s2 + $0x160] sm:$0xff] %vm54_vm1, %v1692_v17 }
  0xec   :  { %v819_v26 = vadd.f32 %v818_v18, %v817_v15  ;;  %v828_v18 = vsel %vm54_vm1, %v747_v7, 0.0  ;;  %584 = vst.msk [vmem:[%s2024_s2 + $0x1c0] sm:$0xff] %vm54_vm1, %v1704_v10  ;;  %v830_v19 = vsel %vm54_vm1, %v748_v12, 0.0 }
  0xf0   :  { %v378_v4 = vpop.f32.mrf.mxu0 }
  0xf1   :  { %542 = vst.msk [vmem:[%s2024_s2 + $0x70] sm:$0xff] %vm54_vm1, %v378_v4  ;;  %v1625_v52 = vpop.f32.mrf.mxu1  ;;  %v743_v13 = vmul.f32 %v378_v4, %v378_v4  ;;  %v620_v20 = vsel %vm54_vm1, %v378_v4, 0.0 }
  0xf2   :  { %558 = vst.msk [vmem:[%s2024_s2 + $0xf0] sm:$0xff] %vm54_vm1, %v1625_v52  ;;  %v621_v27 = vadd.f32 %v620_v20, %v619_v23  ;;  %v749_v20 = vmul.f32 %v1369_v28, %v1369_v28 }
  0xf3   :  { %v820_v24 = vsel %vm54_vm1, %v743_v13, 0.0 }
  0xf4   :  { %v821_v40 = vadd.f32 %v820_v24, %v819_v26  ;;  %v632_v24 = vsel %vm54_vm1, %v1369_v28, 0.0  ;;  %v750_v26 = vmul.f32 %v1396_v35, %v1396_v35  ;;  %v832_v31 = vsel %vm54_vm1, %v749_v20, 0.0 }
  0xf5   :  { %v636_v28 = vsel %vm54_vm1, %v1418_v39, 0.0 }
  0xf8   :  { %v381_v29 = vpop.f32.mrf.mxu0 }
  0xf9   :  { %543 = vst.msk [vmem:[%s2024_s2 + $0x78] sm:$0xff] %vm54_vm1, %v381_v29  ;;  %v622_v32 = vsel %vm54_vm1, %v381_v29, 0.0  ;;  %v744_v33 = vmul.f32 %v381_v29, %v381_v29  ;;  %v1658_v36 = vpop.f32.mrf.mxu1 }
  0xfa   :  { %v623_v41 = vadd.f32 %v622_v32, %v621_v27  ;;  %559 = vst.msk [vmem:[%s2024_s2 + $0xf8] sm:$0xff] %vm54_vm1, %v1658_v36  ;;  %v634_v32 = vsel %vm54_vm1, %v1396_v35, 0.0  ;;  %v638_v35 = vsel %vm54_vm1, %v1440_v43, 0.0  ;;  %v838_v43 = vsel %vm54_vm1, %v752_v48, 0.0 }
  0xfb   :  { %v822_v63 = vsel %vm54_vm1, %v744_v33, 0.0  ;;  %v751_v33 = vmul.f32 %v1418_v39, %v1418_v39  ;;  %v1738_v39 = vpop.f32.mrf.mxu3  ;;  %v650_v48 = vsel %vm54_vm1, %v1592_v21, 0.0 }
  0xfc   :  { %v625_v3 = vadd.f32 %v624_v44, %v623_v41  ;;  %v823_v4 = vadd.f32 %v822_v63, %v821_v40  ;;  %v834_v44 = vsel %vm54_vm1, %v750_v26, 0.0  ;;  %585 = vst.msk [vmem:[%s2024_s2 + $0x1c8] sm:$0xff] %vm54_vm1, %v1738_v39 }
  0xfe   :  { %v627_v8 = vadd.f32 %v626_v6, %v625_v3  ;;  %v825_v57 = vadd.f32 %v824_v56, %v823_v4  ;;  %v1726_v4 = vpop.f32.mrf.mxu2  ;;  %v836_v56 = vsel %vm54_vm1, %v751_v33, 0.0  ;;  %v753_v6 = vmul.f32 %v1458_v46, %v1458_v46 }
  0xff   :  { %573 = vst.msk [vmem:[%s2024_s2 + $0x168] sm:$0xff] %vm54_vm1, %v1726_v4  ;;  %v648_v33 = vsel %vm54_vm1, %v1558_v1, 0.0 }
 0x100   :  { %v629_v13 = vadd.f32 %v628_v61, %v627_v8  ;;  %v827_v14 = vadd.f32 %v826_v11, %v825_v57  ;;  %v640_v57 = vsel %vm54_vm1, %v1458_v46, 0.0  ;;  %v754_v11 = vmul.f32 %v1483_v50, %v1483_v50 }
 0x101   :  { %v644_v46 = vsel %vm54_vm1, %v1508_v54, 0.0 }
 0x102   :  { %v631_v15 = vadd.f32 %v630_v0, %v629_v13  ;;  %v829_v23 = vadd.f32 %v828_v18, %v827_v14  ;;  %v840_v13 = vsel %vm54_vm1, %v753_v6, 0.0  ;;  %v642_v14 = vsel %vm54_vm1, %v1483_v50, 0.0 }
 0x103   :  { %v755_v18 = vmul.f32 %v1508_v54, %v1508_v54  ;;  %v646_v50 = vsel %vm54_vm1, %v1533_v59, 0.0  ;;  %v1772_v54 = vpop.f32.mrf.mxu3  ;;  %v652_v6 = vsel %vm54_vm1, %v1625_v52, 0.0 }
 0x104   :  { %v633_v27 = vadd.f32 %v632_v24, %v631_v15  ;;  %v831_v29 = vadd.f32 %v830_v19, %v829_v23  ;;  %v842_v15 = vsel %vm54_vm1, %v754_v11, 0.0  ;;  %v756_v23 = vmul.f32 %v1533_v59, %v1533_v59  ;;  %586 = vst.msk [vmem:[%s2024_s2 + $0x1d0] sm:$0xff] %vm54_vm1, %v1772_v54 }
 0x106   :  { %v635_v40 = vadd.f32 %v634_v32, %v633_v27  ;;  %v833_v41 = vadd.f32 %v832_v31, %v831_v29  ;;  %v1760_v26 = vpop.f32.mrf.mxu2  ;;  %v844_v27 = vsel %vm54_vm1, %v755_v18, 0.0  ;;  %v757_v29 = vmul.f32 %v1558_v1, %v1558_v1 }
 0x107   :  { %574 = vst.msk [vmem:[%s2024_s2 + $0x170] sm:$0xff] %vm54_vm1, %v1760_v26  ;;  %v846_v59 = vsel %vm54_vm1, %v756_v23, 0.0 }
 0x108   :  { %v835_v63 = vadd.f32 %v834_v44, %v833_v41  ;;  %v637_v3 = vadd.f32 %v636_v28, %v635_v40  ;;  %v758_v40 = vmul.f32 %v1592_v21, %v1592_v21  ;;  %v848_v28 = vsel %vm54_vm1, %v757_v29, 0.0 }
 0x109   :  { %v761_v21 = vmul.f32 %v1362_v25, %v1362_v25 }
 0x10a   :  { %v639_v7 = vadd.f32 %v638_v35, %v637_v3  ;;  %v837_v8 = vadd.f32 %v836_v56, %v835_v63  ;;  %v759_v63 = vmul.f32 %v1625_v52, %v1625_v52  ;;  %v760_v3 = vmul.f32 %v1658_v36, %v1658_v36 }
 0x10b   :  { %v850_v1 = vsel %vm54_vm1, %v758_v40, 0.0  ;;  %v1807_v52 = vpop.f32.mrf.mxu3 }
 0x10c   :  { %v641_v61 = vadd.f32 %v640_v57, %v639_v7  ;;  %v839_v12 = vadd.f32 %v838_v43, %v837_v8  ;;  %v654_v7 = vsel %vm54_vm1, %v1658_v36, 0.0  ;;  %v852_v11 = vsel %vm54_vm1, %v759_v63, 0.0  ;;  %587 = vst.msk [vmem:[%s2024_s2 + $0x1d8] sm:$0xff] %vm54_vm1, %v1807_v52 }
 0x10d   :  { %v666_v63 = vsel %vm54_vm1, %v1477_v49, 0.0 }
 0x10e   :  { %v643_v0 = vadd.f32 %v642_v14, %v641_v61  ;;  %v841_v20 = vadd.f32 %v840_v13, %v839_v12  ;;  %v1796_v57 = vpop.f32.mrf.mxu2  ;;  %v854_v61 = vsel %vm54_vm1, %v760_v3, 0.0  ;;  %v656_v13 = vsel %vm54_vm1, %v1362_v25, 0.0 }
 0x10f   :  { %575 = vst.msk [vmem:[%s2024_s2 + $0x178] sm:$0xff] %vm54_vm1, %v1796_v57  ;;  %v762_v14 = vmul.f32 %v1390_v34, %v1390_v34  ;;  %v660_v25 = vsel %vm54_vm1, %v1412_v38, 0.0  ;;  %v767_v3 = vmul.f32 %v1502_v53, %v1502_v53 }
 0x110   :  { %v645_v19 = vadd.f32 %v644_v46, %v643_v0  ;;  %v843_v24 = vadd.f32 %v842_v15, %v841_v20  ;;  %v856_v20 = vsel %vm54_vm1, %v761_v21, 0.0  ;;  %v658_v15 = vsel %vm54_vm1, %v1390_v34, 0.0 }
 0x111   :  { %v763_v46 = vmul.f32 %v1412_v38, %v1412_v38  ;;  %v662_v34 = vsel %vm54_vm1, %v1434_v42, 0.0  ;;  %v769_v21 = vmul.f32 %v1552_v62, %v1552_v62 }
 0x112   :  { %v647_v31 = vadd.f32 %v646_v50, %v645_v19  ;;  %v845_v32 = vadd.f32 %v844_v27, %v843_v24  ;;  %v858_v24 = vsel %vm54_vm1, %v762_v14, 0.0  ;;  %v764_v27 = vmul.f32 %v1434_v42, %v1434_v42 }
 0x113   :  { %v766_v42 = vmul.f32 %v1477_v49, %v1477_v49  ;;  %v670_v49 = vsel %vm54_vm1, %v1527_v58, 0.0 }
 0x114   :  { %v847_v41 = vadd.f32 %v846_v59, %v845_v32  ;;  %v649_v44 = vadd.f32 %v648_v33, %v647_v31  ;;  %v860_v31 = vsel %vm54_vm1, %v763_v46, 0.0  ;;  %v765_v32 = vmul.f32 %v1452_v45, %v1452_v45  ;;  %v1833_v59 = vpop.f32.mrf.mxu3 }
 0x115   :  { %588 = vst.msk [vmem:[%s2024_s2 + $0x1e0] sm:$0xff] %vm54_vm1, %v1833_v59  ;;  %v862_v38 = vsel %vm54_vm1, %v764_v27, 0.0 }
 0x116   :  { %v849_v56 = vadd.f32 %v848_v28, %v847_v41  ;;  %v651_v35 = vadd.f32 %v650_v48, %v649_v44  ;;  %v664_v41 = vsel %vm54_vm1, %v1452_v45, 0.0  ;;  %v864_v48 = vsel %vm54_vm1, %v765_v32, 0.0 }
 0x117   :  { %v668_v45 = vsel %vm54_vm1, %v1502_v53, 0.0  ;;  %v680_v32 = vsel %vm54_vm1, %v1692_v17, 0.0 }
 0x118   :  { %v851_v8 = vadd.f32 %v850_v1, %v849_v56  ;;  %v653_v43 = vadd.f32 %v652_v6, %v651_v35  ;;  %v866_v1 = vsel %vm54_vm1, %v766_v42, 0.0  ;;  %v768_v6 = vmul.f32 %v1527_v58, %v1527_v58 }
 0x119   :  { %v770_v58 = vmul.f32 %v1584_v16, %v1584_v16  ;;  %v775_v42 = vmul.f32 %v1760_v26, %v1760_v26 }
 0x11a   :  { %v853_v36 = vadd.f32 %v852_v11, %v851_v8  ;;  %v655_v12 = vadd.f32 %v654_v7, %v653_v43  ;;  %v868_v43 = vsel %vm54_vm1, %v767_v3, 0.0  ;;  %v870_v53 = vsel %vm54_vm1, %v768_v6, 0.0 }
 0x11b   :  { %v686_v3 = vsel %vm54_vm1, %v1796_v57, 0.0 }
 0x11c   :  { %v657_v18 = vadd.f32 %v656_v13, %v655_v12  ;;  %v855_v0 = vadd.f32 %v854_v61, %v853_v36  ;;  %v1860_v11 = vpop.f32.mrf.mxu3  ;;  %v672_v12 = vsel %vm54_vm1, %v1552_v62, 0.0  ;;  %v676_v62 = vsel %vm54_vm1, %v1617_v5, 0.0 }
 0x11d   :  { %589 = vst.msk [vmem:[%s2024_s2 + $0x1e8] sm:$0xff] %vm54_vm1, %v1860_v11 }
 0x11e   :  { %v659_v23 = vadd.f32 %v658_v15, %v657_v18  ;;  %v857_v19 = vadd.f32 %v856_v20, %v855_v0  ;;  %v872_v18 = vsel %vm54_vm1, %v769_v21, 0.0  ;;  %v674_v0 = vsel %vm54_vm1, %v1584_v16, 0.0 }
 0x11f   :  { %v771_v20 = vmul.f32 %v1617_v5, %v1617_v5  ;;  %v678_v16 = vsel %vm54_vm1, %v1649_v30, 0.0 }
 0x120   :  { %v661_v50 = vadd.f32 %v660_v25, %v659_v23  ;;  %v859_v29 = vadd.f32 %v858_v24, %v857_v19  ;;  %v874_v23 = vsel %vm54_vm1, %v770_v58, 0.0  ;;  %v772_v19 = vmul.f32 %v1649_v30, %v1649_v30 }
 0x121   :  { %v876_v27 = vsel %vm54_vm1, %v771_v20, 0.0  ;;  %v774_v30 = vmul.f32 %v1726_v4, %v1726_v4 }
 0x122   :  { %v663_v33 = vadd.f32 %v662_v34, %v661_v50  ;;  %v861_v40 = vadd.f32 %v860_v31, %v859_v29  ;;  %v773_v50 = vmul.f32 %v1692_v17, %v1692_v17  ;;  %v878_v5 = vsel %vm54_vm1, %v772_v19, 0.0 }
 0x123   :  { %v882_v17 = vsel %vm54_vm1, %v774_v30, 0.0  ;;  %v782_v19 = vmul.f32 %v1594_v22, %v1594_v22 }
 0x124   :  { %v665_v44 = vadd.f32 %v664_v41, %v663_v33  ;;  %v863_v28 = vadd.f32 %v862_v38, %v861_v40  ;;  %v1887_v29 = vpop.f32.mrf.mxu3  ;;  %v880_v38 = vsel %vm54_vm1, %v773_v50, 0.0  ;;  %v682_v41 = vsel %vm54_vm1, %v1726_v4, 0.0 }
 0x125   :  { %590 = vst.msk [vmem:[%s2024_s2 + $0x1f0] sm:$0xff] %vm54_vm1, %v1887_v29  ;;  %v777_v4 = vmul.f32 %v1460_v47, %v1460_v47 }
 0x126   :  { %v667_v56 = vadd.f32 %v666_v63, %v665_v44  ;;  %v865_v35 = vadd.f32 %v864_v48, %v863_v28  ;;  %v776_v44 = vmul.f32 %v1796_v57, %v1796_v57  ;;  %v684_v63 = vsel %vm54_vm1, %v1760_v26, 0.0 }
 0x127   :  { %v688_v26 = vsel %vm54_vm1, %v1460_v47, 0.0  ;;  %v778_v57 = vmul.f32 %v1485_v51, %v1485_v51  ;;  %v690_v47 = vsel %vm54_vm1, %v1485_v51, 0.0  ;;  %v694_v51 = vsel %vm54_vm1, %v1535_v60, 0.0 }
 0x128   :  { %v867_v7 = vadd.f32 %v866_v1, %v865_v35  ;;  %v669_v8 = vadd.f32 %v668_v45, %v667_v56  ;;  %v884_v1 = vsel %vm54_vm1, %v775_v42, 0.0  ;;  %v886_v45 = vsel %vm54_vm1, %v776_v44, 0.0 }
 0x129   :  { %v890_v58 = vsel %vm54_vm1, %v778_v57, 0.0  ;;  %v786_v44 = vmul.f32 %v1738_v39, %v1738_v39 }
 0x12a   :  { %v671_v61 = vadd.f32 %v670_v49, %v669_v8  ;;  %v869_v36 = vadd.f32 %v868_v43, %v867_v7  ;;  %v1037_v43 = vmov 0.0  }
 0x12b   :  { %55 = vst.msk [vmem:[%s2025_s3] sm:$0xff] %vm54_vm1, %v1037_v43 }
 0x12c   :  { %v673_v13 = vadd.f32 %v672_v12, %v671_v61  ;;  %v871_v14 = vadd.f32 %v870_v53, %v869_v36  ;;  %v1915_v6 = vpop.f32.mrf.mxu3  ;;  %56 = vst.msk [vmem:[%s2026_s4] sm:$0xff] %vm54_vm1, %v1037_v43  ;;  %v888_v61 = vsel %vm54_vm1, %v777_v4, 0.0  ;;  %v779_v36 = vmul.f32 %v1510_v55, %v1510_v55 }
 0x12d   :  { %591 = vst.msk [vmem:[%s2024_s2 + $0x1f8] sm:$0xff] %vm54_vm1, %v1915_v6  ;;  %v788_v4 = vmul.f32 %v1807_v52, %v1807_v52 }
 0x12e   :  { %v675_v15 = vadd.f32 %v674_v0, %v673_v13  ;;  %v873_v46 = vadd.f32 %v872_v18, %v871_v14  ;;  %v692_v13 = vsel %vm54_vm1, %v1510_v55, 0.0  ;;  %v780_v14 = vmul.f32 %v1535_v60, %v1535_v60 }
 0x12f   :  { %v892_v20 = vsel %vm54_vm1, %v779_v36, 0.0  ;;  %v696_v55 = vsel %vm54_vm1, %v1560_v2, 0.0  ;;  %v698_v60 = vsel %vm54_vm1, %v1594_v22, 0.0  ;;  %v702_v22 = vsel %vm54_vm1, %v1660_v37, 0.0 }
 0x130   :  { %v677_v24 = vadd.f32 %v676_v62, %v675_v15  ;;  %v875_v25 = vadd.f32 %v874_v23, %v873_v46  ;;  %v781_v15 = vmul.f32 %v1560_v2, %v1560_v2  ;;  %v894_v62 = vsel %vm54_vm1, %v780_v14, 0.0 }
 0x131   :  { %v700_v2 = vsel %vm54_vm1, %v1627_v9, 0.0  ;;  %v910_v43 = vsel %vm54_vm1, %v788_v4, 0.0  ;;  %v791_v36 = vmul.f32 %v1887_v29, %v1887_v29  ;;  %v718_v14 = vsel %vm54_vm1, %v1915_v6, 0.0 }
 0x132   :  { %v679_v31 = vadd.f32 %v678_v16, %v677_v24  ;;  %v877_v34 = vadd.f32 %v876_v27, %v875_v25  ;;  %v896_v27 = vsel %vm54_vm1, %v781_v15, 0.0  ;;  %v783_v16 = vmul.f32 %v1627_v9, %v1627_v9 }
 0x133   :  { %v704_v9 = vsel %vm54_vm1, %v1704_v10, 0.0 }
 0x134   :  { %v879_v33 = vadd.f32 %v878_v5, %v877_v34  ;;  %v681_v40 = vadd.f32 %v680_v32, %v679_v31  ;;  %v898_v34 = vsel %vm54_vm1, %v782_v19, 0.0  ;;  %v784_v5 = vmul.f32 %v1660_v37, %v1660_v37 }
 0x135   :  { %v706_v37 = vsel %vm54_vm1, %v1738_v39, 0.0  ;;  %v710_v39 = vsel %vm54_vm1, %v1807_v52, 0.0  ;;  %v714_v52 = vsel %vm54_vm1, %v1860_v11, 0.0 }
 0x136   :  { %v881_v28 = vadd.f32 %v880_v38, %v879_v33  ;;  %v683_v48 = vadd.f32 %v682_v41, %v681_v40  ;;  %v900_v33 = vsel %vm54_vm1, %v783_v16, 0.0  ;;  %v785_v40 = vmul.f32 %v1704_v10, %v1704_v10 }
 0x137   :  { %v902_v42 = vsel %vm54_vm1, %v784_v5, 0.0  ;;  %v708_v10 = vsel %vm54_vm1, %v1772_v54, 0.0 }
 0x138   :  { %v883_v56 = vadd.f32 %v882_v17, %v881_v28  ;;  %v685_v35 = vadd.f32 %v684_v63, %v683_v48  ;;  %v904_v17 = vsel %vm54_vm1, %v785_v40, 0.0  ;;  %v787_v63 = vmul.f32 %v1772_v54, %v1772_v54 }
 0x139   :  { %v712_v54 = vsel %vm54_vm1, %v1833_v59, 0.0 }
 0x13a   :  { %v885_v7 = vadd.f32 %v884_v1, %v883_v56  ;;  %v687_v8 = vadd.f32 %v686_v3, %v685_v35  ;;  %v906_v35 = vsel %vm54_vm1, %v786_v44, 0.0 }
 0x13c   :  { %v689_v49 = vadd.f32 %v688_v26, %v687_v8  ;;  %v887_v21 = vadd.f32 %v886_v45, %v885_v7  ;;  %v908_v7 = vsel %vm54_vm1, %v787_v63, 0.0  ;;  %v789_v8 = vmul.f32 %v1833_v59, %v1833_v59 }
 0x13e   :  { %v691_v53 = vadd.f32 %v690_v47, %v689_v49  ;;  %v889_v12 = vadd.f32 %v888_v61, %v887_v21  ;;  %v790_v49 = vmul.f32 %v1860_v11, %v1860_v11  ;;  %v912_v47 = vsel %vm54_vm1, %v789_v8, 0.0 }
 0x13f   :  { %v916_v11 = vsel %vm54_vm1, %v791_v36, 0.0 }
 0x140   :  { %v693_v18 = vadd.f32 %v692_v13, %v691_v53  ;;  %v891_v0 = vadd.f32 %v890_v58, %v889_v12  ;;  %v792_v53 = vmul.f32 %v1915_v6, %v1915_v6  ;;  %v914_v59 = vsel %vm54_vm1, %v790_v49, 0.0  ;;  %v592_v6 = vld [vmem:[%s2025_s3] sm:$0xff] }
 0x141   :  { %v716_v13 = vsel %vm54_vm1, %v1887_v29, 0.0 }
 0x142   :  { %v695_v46 = vadd.f32 %v694_v51, %v693_v18  ;;  %v893_v23 = vadd.f32 %v892_v20, %v891_v0  ;;  %v918_v20 = vsel %vm54_vm1, %v792_v53, 0.0 }
 0x144   :  { %v697_v24 = vadd.f32 %v696_v55, %v695_v46  ;;  %v895_v25 = vadd.f32 %v894_v62, %v893_v23 }
 0x146   :  { %v699_v50 = vadd.f32 %v698_v60, %v697_v24  ;;  %v897_v31 = vadd.f32 %v896_v27, %v895_v25 }
 0x148   :  { %v899_v32 = vadd.f32 %v898_v34, %v897_v31  ;;  %v701_v30 = vadd.f32 %v700_v2, %v699_v50  ;;  %v728_v31 = vld [vmem:[%s2026_s4] sm:$0xff] }
 0x14a   :  { %v703_v38 = vadd.f32 %v702_v22, %v701_v30  ;;  %v901_v41 = vadd.f32 %v900_v33, %v899_v32 }
 0x14c   :  { %v705_v28 = vadd.f32 %v704_v9, %v703_v38  ;;  %v903_v48 = vadd.f32 %v902_v42, %v901_v41 }
 0x14e   :  { %v707_v3 = vadd.f32 %v706_v37, %v705_v28  ;;  %v905_v56 = vadd.f32 %v904_v17, %v903_v48 }
 0x150   :  { %v709_v1 = vadd.f32 %v708_v10, %v707_v3  ;;  %v907_v45 = vadd.f32 %v906_v35, %v905_v56 }
 0x152   :  { %v711_v26 = vadd.f32 %v710_v39, %v709_v1  ;;  %v909_v57 = vadd.f32 %v908_v7, %v907_v45 }
 0x154   :  { %v911_v21 = vadd.f32 %v910_v43, %v909_v57  ;;  %v713_v61 = vadd.f32 %v712_v54, %v711_v26 }
 0x156   :  { %v913_v12 = vadd.f32 %v912_v47, %v911_v21  ;;  %v715_v58 = vadd.f32 %v714_v52, %v713_v61 }
 0x158   :  { %v915_v18 = vadd.f32 %v914_v59, %v913_v12  ;;  %v717_v0 = vadd.f32 %v716_v13, %v715_v58 }
 0x15a   :  { %v917_v51 = vadd.f32 %v916_v11, %v915_v18  ;;  %v719_v15 = vadd.f32 %v718_v14, %v717_v0 }
 0x15c   :  { %v720_v46 = vrot.slane %v719_v15, 4  ;;  %v919_v23 = vadd.f32 %v918_v20, %v917_v51 }
 0x15e   :  { %v721_v62 = vadd.f32 %v720_v46, %v719_v15  ;;  %v920_v55 = vrot.slane %v919_v23, 4 }
 0x160   :  { %v722_v19 = vrot.slane %v721_v62, 2  ;;  %v921_v24 = vadd.f32 %v920_v55, %v919_v23 }
 0x162   :  { %v723_v25 = vadd.f32 %v722_v19, %v721_v62  ;;  %v922_v27 = vrot.slane %v921_v24, 2 }
 0x164   :  { %v724_v29 = vrot.slane %v723_v25, 1  ;;  %v923_v60 = vadd.f32 %v922_v27, %v921_v24 }
 0x166   :  { %v725_v16 = vadd.f32 %v724_v29, %v723_v25  ;;  %v924_v50 = vrot.slane %v923_v60, 1 }
 0x168   :  { %v726_v34 = vadd.f32 %v725_v16, %v592_v6  ;;  %v925_v2 = vadd.f32 %v924_v50, %v923_v60 }
 0x16a   :  { %727 = vst.msk [vmem:[%s2025_s3] sm:$0xff] %vm54_vm1, %v726_v34  ;;  %v926_v5 = vadd.f32 %v925_v2, %v728_v31 }
 0x16c   :  { %927 = vst.msk [vmem:[%s2026_s4] sm:$0xff] %vm54_vm1, %v926_v5 }

// kernel: bottleneck_forward.6
= control target key start
LH: loop header
LB: loop body
LE: loop exit
PB: predicated region body
PF: predicated region fallthrough
CT: control target
= control target key end

     0   :  { %vm521_vm0 = vcmask 1043456   ;;  %vm60_vm1 = vcmask 31744   ;;  %s2384_s3 = inlined_call_operand.vmem [shape: f32[4,4], index: 3, kind: input, shape index: {}]   ;;  %s2385_s0 = inlined_call_operand.vmem [shape: f32[512,4], index: 0, kind: input, shape index: {}]   ;;  %s2386_s1 = inlined_call_operand.vmem [shape: f32[1,4], index: 1, kind: input, shape index: {}]   ;;  %s2387_s2 = inlined_call_operand.vmem [shape: f32[1,4], index: 2, kind: input, shape index: {}]   ;;  %s2388_s4 = inlined_call_operand.vmem [shape: f32[512,4], index: 4, kind: output, shape index: {0}]   ;;  %s2389_s5 = inlined_call_operand.vmem [shape: f32[1,8,4], index: 5, kind: output, shape index: {1}]   ;;  %s2390_s6 = inlined_call_operand.vmem [shape: f32[1,8,4], index: 6, kind: output, shape index: {2}]  }
   0x1   :  { %v327_v0 = vld [vmem:[%s2384_s3] sm:$0xf]  ;;  %v64_v4 = vld [vmem:[%s2385_s0 + $0x8] sm:$0xff]  ;;  %v65_v14 = vld [vmem:[%s2385_s0 + $0x10] sm:$0xff] }
   0x2   :  { %v63_v1 = vld [vmem:[%s2385_s0] sm:$0xff]  ;;  %1174 = vmatpush.msk.msra.mxu0 %vm521_vm0, %v327_v0  ;;  %1239 = vmatpush.msk.msra.mxu1 %vm521_vm0, %v327_v0  ;;  %v80_v15 = vld [vmem:[%s2385_s0 + $0x88] sm:$0xff]  ;;  %v66_v22 = vld [vmem:[%s2385_s0 + $0x18] sm:$0xff] }
   0x3   :  { %v1290_v2 = vld [vmem:[%s2386_s1] ss:$0 sm:$0xff]  ;;  %1240 = vmatpush.msk.msra.mxu2 %vm521_vm0, %v327_v0  ;;  %1241 = vmatpush.msk.msra.mxu3 %vm521_vm0, %v327_v0  ;;  %v81_v23 = vld [vmem:[%s2385_s0 + $0x90] sm:$0xff]  ;;  %v82_v31 = vld [vmem:[%s2385_s0 + $0x98] sm:$0xff] }
   0x4   :  { %v1295_v3 = vld [vmem:[%s2387_s2] ss:$0 sm:$0xff]  ;;  %v131_v5 = vmul.f32 %v1290_v2, %v63_v1  ;;  %v132_v9 = vmul.f32 %v1290_v2, %v64_v4  ;;  %v148_v16 = vmul.f32 %v1290_v2, %v80_v15  ;;  %v133_v18 = vmul.f32 %v1290_v2, %v65_v14  ;;  %v68_v42 = vld [vmem:[%s2385_s0 + $0x28] sm:$0xff]  ;;  %v69_v54 = vld [vmem:[%s2385_s0 + $0x30] sm:$0xff] }
   0x5   :  { %v79_v6 = vld [vmem:[%s2385_s0 + $0x80] sm:$0xff]  ;;  %v149_v24 = vmul.f32 %v1290_v2, %v81_v23  ;;  %v134_v26 = vmul.f32 %v1290_v2, %v66_v22  ;;  %v150_v32 = vmul.f32 %v1290_v2, %v82_v31  ;;  %v96_v45 = vld [vmem:[%s2385_s0 + $0x108] sm:$0xff]  ;;  %v136_v47 = vmul.f32 %v1290_v2, %v68_v42  ;;  %v97_v57 = vld [vmem:[%s2385_s0 + $0x110] sm:$0xff] }
   0x6   :  { %v147_v7 = vmul.f32 %v1290_v2, %v79_v6  ;;  %v199_v8 = vadd.f32 %v1295_v3, %v131_v5  ;;  %v200_v13 = vadd.f32 %v1295_v3, %v132_v9  ;;  %v216_v19 = vadd.f32 %v1295_v3, %v148_v16  ;;  %v67_v30 = vld [vmem:[%s2385_s0 + $0x20] sm:$0xff]  ;;  %v84_v55 = vld [vmem:[%s2385_s0 + $0xa8] sm:$0xff]  ;;  %v70_v4 = vld [vmem:[%s2385_s0 + $0x38] sm:$0xff] }
   0x7   :  { %v201_v21 = vadd.f32 %v1295_v3, %v133_v18  ;;  %v217_v27 = vadd.f32 %v1295_v3, %v149_v24  ;;  %v202_v29 = vadd.f32 %v1295_v3, %v134_v26  ;;  %v95_v33 = vld [vmem:[%s2385_s0 + $0x100] sm:$0xff]  ;;  %v135_v35 = vmul.f32 %v1290_v2, %v67_v30  ;;  %v85_v5 = vld [vmem:[%s2385_s0 + $0xb0] sm:$0xff] }
   0x8   :  { %v215_v10 = vadd.f32 %v1295_v3, %v147_v7  ;;  %v263_v11 = vmax.f32 %v199_v8, 0.0  ;;  %v264_v17 = vmax.f32 %v200_v13, 0.0  ;;  %v280_v20 = vmax.f32 %v216_v19, 0.0  ;;  %v83_v43 = vld [vmem:[%s2385_s0 + $0xa0] sm:$0xff]  ;;  %v98_v7 = vld [vmem:[%s2385_s0 + $0x118] sm:$0xff] }
   0x9   :  { %v265_v25 = vmax.f32 %v201_v21, 0.0  ;;  %v281_v28 = vmax.f32 %v217_v27, 0.0  ;;  %v266_v34 = vmax.f32 %v202_v29, 0.0  ;;  %v218_v36 = vadd.f32 %v1295_v3, %v150_v32  ;;  %v71_v15 = vld [vmem:[%s2385_s0 + $0x40] sm:$0xff]  ;;  %v72_v32 = vld [vmem:[%s2385_s0 + $0x48] sm:$0xff] }
   0xa   :  { %v279_v12 = vmax.f32 %v215_v10, 0.0  ;;  %1175 = vmatmul.msk.f32.vlgmr.msra.gmra.mxu0 %vm60_vm1, %v263_v11  ;;  %v163_v37 = vmul.f32 %v1290_v2, %v95_v33  ;;  %v203_v40 = vadd.f32 %v1295_v3, %v135_v35  ;;  %v151_v44 = vmul.f32 %v1290_v2, %v83_v43  ;;  %v111_v21 = vld [vmem:[%s2385_s0 + $0x180] sm:$0xff] }
   0xb   :  { %v282_v38 = vmax.f32 %v218_v36, 0.0  ;;  %v164_v49 = vmul.f32 %v1290_v2, %v96_v45  ;;  %v204_v52 = vadd.f32 %v1295_v3, %v136_v47  ;;  %v152_v56 = vmul.f32 %v1290_v2, %v84_v55  ;;  %v87_v33 = vld [vmem:[%s2385_s0 + $0xc0] sm:$0xff]  ;;  %v100_v36 = vld [vmem:[%s2385_s0 + $0x128] sm:$0xff] }
   0xc   :  { %1191 = vmatmul.msk.f32.vlgmr.msra.gmra.mxu1 %vm60_vm1, %v279_v12  ;;  %v231_v39 = vadd.f32 %v1295_v3, %v163_v37  ;;  %v267_v46 = vmax.f32 %v203_v40, 0.0  ;;  %v219_v48 = vadd.f32 %v1295_v3, %v151_v44  ;;  %v137_v59 = vmul.f32 %v1290_v2, %v69_v54  ;;  %v112_v37 = vld [vmem:[%s2385_s0 + $0x188] sm:$0xff] }
   0xd   :  { %v232_v51 = vadd.f32 %v1295_v3, %v164_v49  ;;  %v268_v58 = vmax.f32 %v204_v52, 0.0  ;;  %v220_v60 = vadd.f32 %v1295_v3, %v152_v56  ;;  %v165_v61 = vmul.f32 %v1290_v2, %v97_v57  ;;  %v88_v49 = vld [vmem:[%s2385_s0 + $0xc8] sm:$0xff]  ;;  %v101_v52 = vld [vmem:[%s2385_s0 + $0x130] sm:$0xff] }
   0xe   :  { %v295_v41 = vmax.f32 %v231_v39, 0.0  ;;  %v283_v50 = vmax.f32 %v219_v48, 0.0  ;;  %v205_v0 = vadd.f32 %v1295_v3, %v137_v59  ;;  %v153_v6 = vmul.f32 %v1290_v2, %v85_v5 }
   0xf   :  { %v296_v53 = vmax.f32 %v232_v51, 0.0  ;;  %v284_v62 = vmax.f32 %v220_v60, 0.0  ;;  %v233_v63 = vadd.f32 %v1295_v3, %v165_v61  ;;  %v138_v9 = vmul.f32 %v1290_v2, %v70_v4 }
  0x10   :  { %1207 = vmatmul.msk.f32.vlgmr.msra.gmra.mxu2 %vm60_vm1, %v295_v41  ;;  %v269_v8 = vmax.f32 %v205_v0, 0.0  ;;  %v221_v10 = vadd.f32 %v1295_v3, %v153_v6  ;;  %v166_v11 = vmul.f32 %v1290_v2, %v98_v7  ;;  %v139_v19 = vmul.f32 %v1290_v2, %v71_v15  ;;  %v74_v0 = vld [vmem:[%s2385_s0 + $0x58] sm:$0xff] }
  0x11   :  { %v297_v1 = vmax.f32 %v233_v63, 0.0  ;;  %v206_v14 = vadd.f32 %v1295_v3, %v138_v9  ;;  %v168_v40 = vmul.f32 %v1290_v2, %v100_v36  ;;  %v180_v41 = vmul.f32 %v1290_v2, %v112_v37  ;;  %v102_v6 = vld [vmem:[%s2385_s0 + $0x138] sm:$0xff] }
  0x12   :  { %1176 = vmatmul.msk.f32.gmra.mxu0 %vm60_vm1, %v264_v17  ;;  %v285_v12 = vmax.f32 %v221_v10, 0.0  ;;  %v234_v13 = vadd.f32 %v1295_v3, %v166_v11  ;;  %v86_v17 = vld [vmem:[%s2385_s0 + $0xb8] sm:$0xff]  ;;  %v207_v29 = vadd.f32 %v1295_v3, %v139_v19  ;;  %v169_v56 = vmul.f32 %v1290_v2, %v101_v52 }
  0x13   :  { %v154_v18 = vmul.f32 %v1290_v2, %v86_v17  ;;  %v270_v22 = vmax.f32 %v206_v14, 0.0  ;;  %v236_v43 = vadd.f32 %v1295_v3, %v168_v40  ;;  %v248_v44 = vadd.f32 %v1295_v3, %v180_v41  ;;  %v114_v7 = vld [vmem:[%s2385_s0 + $0x198] sm:$0xff] }
  0x14   :  { %1192 = vmatmul.msk.f32.gmra.mxu1 %vm60_vm1, %v280_v20  ;;  %v298_v16 = vmax.f32 %v234_v13, 0.0  ;;  %v99_v20 = vld [vmem:[%s2385_s0 + $0x120] sm:$0xff]  ;;  %v271_v35 = vmax.f32 %v207_v29, 0.0  ;;  %v237_v59 = vadd.f32 %v1295_v3, %v169_v56  ;;  %v170_v10 = vmul.f32 %v1290_v2, %v102_v6  ;;  %v90_v19 = vld [vmem:[%s2385_s0 + $0xd8] sm:$0xff] }
  0x15   :  { %v222_v23 = vadd.f32 %v1295_v3, %v154_v18  ;;  %v167_v24 = vmul.f32 %v1290_v2, %v99_v20  ;;  %v300_v47 = vmax.f32 %v236_v43, 0.0  ;;  %v312_v48 = vmax.f32 %v248_v44, 0.0 }
  0x16   :  { %v182_v11 = vmul.f32 %v1290_v2, %v114_v7  ;;  %v238_v13 = vadd.f32 %v1295_v3, %v170_v10  ;;  %v158_v20 = vmul.f32 %v1290_v2, %v90_v19 }
  0x17   :  { %v286_v26 = vmax.f32 %v222_v23, 0.0  ;;  %v235_v27 = vadd.f32 %v1295_v3, %v167_v24  ;;  %v115_v23 = vld [vmem:[%s2385_s0 + $0x1a0] sm:$0xff] }
  0x18   :  { %1208 = vmatmul.msk.f32.gmra.mxu2 %vm60_vm1, %v296_v53  ;;  %v113_v53 = vld [vmem:[%s2385_s0 + $0x190] sm:$0xff]  ;;  %v250_v14 = vadd.f32 %v1295_v3, %v182_v11  ;;  %v302_v17 = vmax.f32 %v238_v13, 0.0 }
  0x19   :  { %v299_v30 = vmax.f32 %v235_v27, 0.0  ;;  %v181_v57 = vmul.f32 %v1290_v2, %v113_v53  ;;  %v183_v27 = vmul.f32 %v1290_v2, %v115_v23  ;;  %v119_v23 = vld [vmem:[%s2385_s0 + $0x1c0] sm:$0xff] }
  0x1a   :  { %1177 = vmatmul.msk.f32.gmra.mxu0 %vm60_vm1, %v265_v25  ;;  %v179_v25 = vmul.f32 %v1290_v2, %v111_v21  ;;  %v314_v18 = vmax.f32 %v250_v14, 0.0 }
  0x1b   :  { %v249_v60 = vadd.f32 %v1295_v3, %v181_v57 }
  0x1c   :  { %1193 = vmatmul.msk.f32.gmra.mxu1 %vm60_vm1, %v281_v28  ;;  %v247_v28 = vadd.f32 %v1295_v3, %v179_v25  ;;  %v226_v25 = vadd.f32 %v1295_v3, %v158_v20  ;;  %v94_v20 = vld [vmem:[%s2385_s0 + $0xf8] sm:$0xff] }
  0x1d   :  { %v313_v63 = vmax.f32 %v249_v60, 0.0 }
  0x1e   :  { %v311_v31 = vmax.f32 %v247_v28, 0.0  ;;  %v290_v28 = vmax.f32 %v226_v25, 0.0 }
  0x20   :  { %1209 = vmatmul.msk.f32.gmra.mxu2 %vm60_vm1, %v297_v1  ;;  %1223 = vmatmul.msk.f32.vlgmr.msra.gmra.mxu3 %vm60_vm1, %v311_v31  ;;  %v89_v1 = vld [vmem:[%s2385_s0 + $0xd0] sm:$0xff] }
  0x21   :  { %v157_v4 = vmul.f32 %v1290_v2, %v89_v1 }
  0x22   :  { %1178 = vmatmul.msk.f32.gmra.mxu0 %vm60_vm1, %v266_v34  ;;  %v155_v34 = vmul.f32 %v1290_v2, %v87_v33 }
  0x23   :  { %v225_v9 = vadd.f32 %v1295_v3, %v157_v4  ;;  %v78_v4 = vld [vmem:[%s2385_s0 + $0x78] sm:$0xff] }
  0x24   :  { %1194 = vmatmul.msk.f32.gmra.mxu1 %vm60_vm1, %v282_v38  ;;  %v140_v38 = vmul.f32 %v1290_v2, %v72_v32  ;;  %v223_v39 = vadd.f32 %v1295_v3, %v155_v34  ;;  %v76_v34 = vld [vmem:[%s2385_s0 + $0x68] sm:$0xff]  ;;  %v146_v10 = vmul.f32 %v1290_v2, %v78_v4 }
  0x25   :  { %v144_v40 = vmul.f32 %v1290_v2, %v76_v34  ;;  %v120_v34 = vld [vmem:[%s2385_s0 + $0x1c8] sm:$0xff] }
  0x26   :  { %v287_v42 = vmax.f32 %v223_v39, 0.0  ;;  %v208_v45 = vadd.f32 %v1295_v3, %v140_v38  ;;  %v104_v38 = vld [vmem:[%s2385_s0 + $0x148] sm:$0xff] }
  0x27   :  { %v116_v39 = vld [vmem:[%s2385_s0 + $0x1a8] sm:$0xff] }
  0x28   :  { %1210 = vmatmul.msk.f32.gmra.mxu2 %vm60_vm1, %v298_v16  ;;  %1224 = vmatmul.msk.f32.gmra.mxu3 %vm60_vm1, %v312_v48  ;;  %v272_v54 = vmax.f32 %v208_v45, 0.0  ;;  %v75_v16 = vld [vmem:[%s2385_s0 + $0x60] sm:$0xff]  ;;  %v184_v43 = vmul.f32 %v1290_v2, %v116_v39  ;;  %v77_v48 = vld [vmem:[%s2385_s0 + $0x70] sm:$0xff] }
  0x29   :  { %v143_v21 = vmul.f32 %v1290_v2, %v75_v16  ;;  %v145_v53 = vmul.f32 %v1290_v2, %v77_v48 }
  0x2a   :  { %1179 = vmatmul.msk.f32.gmra.mxu0 %vm60_vm1, %v267_v46  ;;  %v73_v46 = vld [vmem:[%s2385_s0 + $0x50] sm:$0xff] }
  0x2b   :  { %v141_v51 = vmul.f32 %v1290_v2, %v73_v46  ;;  %v211_v31 = vadd.f32 %v1295_v3, %v143_v21  ;;  %v252_v46 = vadd.f32 %v1295_v3, %v184_v43  ;;  %v162_v21 = vmul.f32 %v1290_v2, %v94_v20  ;;  %v109_v43 = vld [vmem:[%s2385_s0 + $0x170] sm:$0xff] }
  0x2c   :  { %1195 = vmatmul.msk.f32.gmra.mxu1 %vm60_vm1, %v283_v50  ;;  %v156_v50 = vmul.f32 %v1290_v2, %v88_v49 }
  0x2d   :  { %v209_v61 = vadd.f32 %v1295_v3, %v141_v51  ;;  %v275_v37 = vmax.f32 %v211_v31, 0.0  ;;  %v92_v51 = vld [vmem:[%s2385_s0 + $0xe8] sm:$0xff]  ;;  %v230_v25 = vadd.f32 %v1295_v3, %v162_v21 }
  0x2e   :  { %v224_v55 = vadd.f32 %v1295_v3, %v156_v50  ;;  %v316_v50 = vmax.f32 %v252_v46, 0.0  ;;  %v160_v52 = vmul.f32 %v1290_v2, %v92_v51  ;;  %v177_v46 = vmul.f32 %v1290_v2, %v109_v43 }
  0x2f   :  { %v273_v5 = vmax.f32 %v209_v61, 0.0 }
  0x30   :  { %1211 = vmatmul.msk.f32.gmra.mxu2 %vm60_vm1, %v299_v30  ;;  %1225 = vmatmul.msk.f32.gmra.mxu3 %vm60_vm1, %v313_v63  ;;  %v251_v30 = vadd.f32 %v1295_v3, %v183_v27  ;;  %v228_v57 = vadd.f32 %v1295_v3, %v160_v52  ;;  %v213_v63 = vadd.f32 %v1295_v3, %v145_v53 }
  0x31   :  { %v187_v27 = vmul.f32 %v1290_v2, %v119_v23  ;;  %v245_v53 = vadd.f32 %v1295_v3, %v177_v46 }
  0x32   :  { %1180 = vmatmul.msk.f32.gmra.mxu0 %vm60_vm1, %v268_v58  ;;  %v288_v58 = vmax.f32 %v224_v55, 0.0  ;;  %v315_v33 = vmax.f32 %v251_v30, 0.0  ;;  %v117_v55 = vld [vmem:[%s2385_s0 + $0x1b0] sm:$0xff]  ;;  %v292_v60 = vmax.f32 %v228_v57, 0.0  ;;  %v277_v7 = vmax.f32 %v213_v63, 0.0 }
  0x33   :  { %v255_v30 = vadd.f32 %v1295_v3, %v187_v27 }
  0x34   :  { %1196 = vmatmul.msk.f32.gmra.mxu1 %vm60_vm1, %v284_v62  ;;  %v301_v62 = vmax.f32 %v237_v59, 0.0  ;;  %v185_v59 = vmul.f32 %v1290_v2, %v117_v55 }
  0x38   :  { %1212 = vmatmul.msk.f32.gmra.mxu2 %vm60_vm1, %v300_v47  ;;  %1226 = vmatmul.msk.f32.gmra.mxu3 %vm60_vm1, %v314_v18  ;;  %v212_v47 = vadd.f32 %v1295_v3, %v144_v40 }
  0x3a   :  { %1181 = vmatmul.msk.f32.gmra.mxu0 %vm60_vm1, %v269_v8  ;;  %v142_v8 = vmul.f32 %v1290_v2, %v74_v0  ;;  %v276_v56 = vmax.f32 %v212_v47, 0.0 }
  0x3c   :  { %1197 = vmatmul.msk.f32.gmra.mxu1 %vm60_vm1, %v285_v12  ;;  %v289_v12 = vmax.f32 %v225_v9, 0.0  ;;  %v210_v15 = vadd.f32 %v1295_v3, %v142_v8  ;;  %v106_v8 = vld [vmem:[%s2385_s0 + $0x158] sm:$0xff] }
  0x3d   :  { %v118_v9 = vld [vmem:[%s2385_s0 + $0x1b8] sm:$0xff] }
  0x3e   :  { %v274_v24 = vmax.f32 %v210_v15, 0.0  ;;  %v186_v13 = vmul.f32 %v1290_v2, %v118_v9 }
  0x40   :  { %1213 = vmatmul.msk.f32.gmra.mxu2 %vm60_vm1, %v301_v62  ;;  %1227 = vmatmul.msk.f32.gmra.mxu3 %vm60_vm1, %v315_v33  ;;  %v253_v62 = vadd.f32 %v1295_v3, %v185_v59  ;;  %v254_v16 = vadd.f32 %v1295_v3, %v186_v13  ;;  %v108_v33 = vld [vmem:[%s2385_s0 + $0x168] sm:$0xff] }
  0x42   :  { %1182 = vmatmul.msk.f32.gmra.mxu0 %vm60_vm1, %v270_v22  ;;  %v103_v22 = vld [vmem:[%s2385_s0 + $0x140] sm:$0xff]  ;;  %v317_v1 = vmax.f32 %v253_v62, 0.0  ;;  %v318_v19 = vmax.f32 %v254_v16, 0.0  ;;  %v122_v62 = vld [vmem:[%s2385_s0 + $0x1d8] sm:$0xff] }
  0x44   :  { %1198 = vmatmul.msk.f32.gmra.mxu1 %vm60_vm1, %v286_v26  ;;  %v171_v26 = vmul.f32 %v1290_v2, %v103_v22  ;;  %v107_v22 = vld [vmem:[%s2385_s0 + $0x160] sm:$0xff] }
  0x46   :  { %v239_v29 = vadd.f32 %v1295_v3, %v171_v26  ;;  %v175_v26 = vmul.f32 %v1290_v2, %v107_v22 }
  0x48   :  { %1214 = vmatmul.msk.f32.gmra.mxu2 %vm60_vm1, %v302_v17  ;;  %v303_v32 = vmax.f32 %v239_v29, 0.0  ;;  %1228 = vmatmul.msk.f32.gmra.mxu3 %vm60_vm1, %v316_v50  ;;  %v214_v17 = vadd.f32 %v1295_v3, %v146_v10  ;;  %v243_v29 = vadd.f32 %v1295_v3, %v175_v26 }
  0x4a   :  { %1183 = vmatmul.msk.f32.gmra.mxu0 %vm60_vm1, %v271_v35  ;;  %v91_v35 = vld [vmem:[%s2385_s0 + $0xe0] sm:$0xff]  ;;  %v307_v31 = vmax.f32 %v243_v29, 0.0 }
  0x4b   :  { %v159_v36 = vmul.f32 %v1290_v2, %v91_v35  ;;  %v176_v35 = vmul.f32 %v1290_v2, %v108_v33 }
  0x4c   :  { %1199 = vmatmul.msk.f32.gmra.mxu1 %vm60_vm1, %v287_v42  ;;  %v172_v42 = vmul.f32 %v1290_v2, %v104_v38 }
  0x4d   :  { %v227_v41 = vadd.f32 %v1295_v3, %v159_v36  ;;  %v188_v36 = vmul.f32 %v1290_v2, %v120_v34  ;;  %v244_v39 = vadd.f32 %v1295_v3, %v176_v35 }
  0x4e   :  { %v240_v45 = vadd.f32 %v1295_v3, %v172_v42 }
  0x4f   :  { %v291_v44 = vmax.f32 %v227_v41, 0.0  ;;  %v256_v40 = vadd.f32 %v1295_v3, %v188_v36  ;;  %v308_v41 = vmax.f32 %v244_v39, 0.0 }
  0x50   :  { %1215 = vmatmul.msk.f32.gmra.mxu2 %vm60_vm1, %v303_v32  ;;  %v304_v49 = vmax.f32 %v240_v45, 0.0  ;;  %1229 = vmatmul.msk.f32.gmra.mxu3 %vm60_vm1, %v317_v1  ;;  %v319_v32 = vmax.f32 %v255_v30, 0.0 }
  0x51   :  { %v320_v42 = vmax.f32 %v256_v40, 0.0 }
  0x52   :  { %1184 = vmatmul.msk.f32.gmra.mxu0 %vm60_vm1, %v272_v54  ;;  %v105_v54 = vld [vmem:[%s2385_s0 + $0x150] sm:$0xff] }
  0x54   :  { %1200 = vmatmul.msk.f32.gmra.mxu1 %vm60_vm1, %v288_v58  ;;  %v173_v58 = vmul.f32 %v1290_v2, %v105_v54 }
  0x56   :  { %v241_v61 = vadd.f32 %v1295_v3, %v173_v58  ;;  %v309_v58 = vmax.f32 %v245_v53, 0.0 }
  0x58   :  { %1216 = vmatmul.msk.f32.gmra.mxu2 %vm60_vm1, %v304_v49  ;;  %v305_v0 = vmax.f32 %v241_v61, 0.0  ;;  %1230 = vmatmul.msk.f32.gmra.mxu3 %vm60_vm1, %v318_v19  ;;  %v110_v61 = vld [vmem:[%s2385_s0 + $0x178] sm:$0xff] }
  0x59   :  { %v178_v63 = vmul.f32 %v1290_v2, %v110_v61 }
  0x5a   :  { %1185 = vmatmul.msk.f32.gmra.mxu0 %vm60_vm1, %v273_v5  ;;  %v93_v5 = vld [vmem:[%s2385_s0 + $0xf0] sm:$0xff] }
  0x5b   :  { %v161_v6 = vmul.f32 %v1290_v2, %v93_v5 }
  0x5c   :  { %1201 = vmatmul.msk.f32.gmra.mxu1 %vm60_vm1, %v289_v12  ;;  %v174_v12 = vmul.f32 %v1290_v2, %v106_v8 }
  0x5d   :  { %v229_v11 = vadd.f32 %v1295_v3, %v161_v6 }
  0x5e   :  { %v242_v15 = vadd.f32 %v1295_v3, %v174_v12 }
  0x5f   :  { %v293_v14 = vmax.f32 %v229_v11, 0.0 }
  0x60   :  { %1217 = vmatmul.msk.f32.gmra.mxu2 %vm60_vm1, %v305_v0  ;;  %v306_v18 = vmax.f32 %v242_v15, 0.0  ;;  %1231 = vmatmul.msk.f32.gmra.mxu3 %vm60_vm1, %v319_v32  ;;  %v190_v0 = vmul.f32 %v1290_v2, %v122_v62 }
  0x62   :  { %1186 = vmatmul.msk.f32.gmra.mxu0 %vm60_vm1, %v274_v24  ;;  %v278_v24 = vmax.f32 %v214_v17, 0.0  ;;  %v258_v8 = vadd.f32 %v1295_v3, %v190_v0 }
  0x64   :  { %1202 = vmatmul.msk.f32.gmra.mxu1 %vm60_vm1, %v290_v28  ;;  %v294_v28 = vmax.f32 %v230_v25, 0.0  ;;  %v322_v12 = vmax.f32 %v258_v8, 0.0  ;;  %v124_v25 = vld [vmem:[%s2385_s0 + $0x1e8] sm:$0xff] }
  0x65   :  { %v192_v26 = vmul.f32 %v1290_v2, %v124_v25 }
  0x67   :  { %v260_v33 = vadd.f32 %v1295_v3, %v192_v26 }
  0x68   :  { %1218 = vmatmul.msk.f32.gmra.mxu2 %vm60_vm1, %v306_v18  ;;  %1232 = vmatmul.msk.f32.gmra.mxu3 %vm60_vm1, %v320_v42 }
  0x69   :  { %v324_v36 = vmax.f32 %v260_v33, 0.0 }
  0x6a   :  { %1187 = vmatmul.msk.f32.gmra.mxu0 %vm60_vm1, %v275_v37 }
  0x6c   :  { %1203 = vmatmul.msk.f32.gmra.mxu1 %vm60_vm1, %v291_v44  ;;  %v121_v44 = vld [vmem:[%s2385_s0 + $0x1d0] sm:$0xff] }
  0x6d   :  { %v189_v47 = vmul.f32 %v1290_v2, %v121_v44 }
  0x6f   :  { %v257_v54 = vadd.f32 %v1295_v3, %v189_v47 }
  0x70   :  { %1219 = vmatmul.msk.f32.gmra.mxu2 %vm60_vm1, %v307_v31 }
  0x71   :  { %v321_v59 = vmax.f32 %v257_v54, 0.0 }
  0x72   :  { %1188 = vmatmul.msk.f32.gmra.mxu0 %vm60_vm1, %v276_v56 }
  0x73   :  { %1233 = vmatmul.msk.f32.gmra.mxu3 %vm60_vm1, %v321_v59 }
  0x74   :  { %1204 = vmatmul.msk.f32.gmra.mxu1 %vm60_vm1, %v292_v60 }
  0x78   :  { %1220 = vmatmul.msk.f32.gmra.mxu2 %vm60_vm1, %v308_v41 }
  0x7a   :  { %1189 = vmatmul.msk.f32.gmra.mxu0 %vm60_vm1, %v277_v7  ;;  %v246_v7 = vadd.f32 %v1295_v3, %v178_v63 }
  0x7b   :  { %1234 = vmatmul.msk.f32.gmra.mxu3 %vm60_vm1, %v322_v12 }
  0x7c   :  { %1205 = vmatmul.msk.f32.gmra.mxu1 %vm60_vm1, %v293_v14  ;;  %v310_v11 = vmax.f32 %v246_v7, 0.0  ;;  %v123_v14 = vld [vmem:[%s2385_s0 + $0x1e0] sm:$0xff] }
  0x7d   :  { %v191_v15 = vmul.f32 %v1290_v2, %v123_v14 }
  0x7f   :  { %v259_v20 = vadd.f32 %v1295_v3, %v191_v15 }
  0x80   :  { %1221 = vmatmul.msk.f32.gmra.mxu2 %vm60_vm1, %v309_v58 }
  0x81   :  { %v323_v23 = vmax.f32 %v259_v20, 0.0 }
  0x82   :  { %1190 = vmatmul.msk.f32.gmra.mxu0 %vm60_vm1, %v278_v24 }
  0x83   :  { %1235 = vmatmul.msk.f32.gmra.mxu3 %vm60_vm1, %v323_v23 }
  0x84   :  { %1206 = vmatmul.msk.f32.gmra.mxu1 %vm60_vm1, %v294_v28 }
  0x87   :  { %v542_v37 = vpop.f32.mrf.mxu0 }
  0x88   :  { %734 = vst.msk [vmem:[%s2388_s4] sm:$0xff] %vm60_vm1, %v542_v37  ;;  %v935_v45 = vmul.f32 %v542_v37, %v542_v37  ;;  %v799_v48 = vsel %vm60_vm1, %v542_v37, 0.0  ;;  %1222 = vmatmul.msk.f32.gmra.mxu2 %vm60_vm1, %v310_v11  ;;  %v125_v37 = vld [vmem:[%s2385_s0 + $0x1f0] sm:$0xff] }
  0x89   :  { %v1630_v38 = vpop.f32.mrf.mxu1  ;;  %v193_v39 = vmul.f32 %v1290_v2, %v125_v37 }
  0x8a   :  { %750 = vst.msk [vmem:[%s2388_s4 + $0x80] sm:$0xff] %vm60_vm1, %v1630_v38  ;;  %v999_v56 = vsel %vm60_vm1, %v935_v45, 0.0  ;;  %v126_v45 = vld [vmem:[%s2385_s0 + $0x1f8] sm:$0xff] }
  0x8b   :  { %1236 = vmatmul.msk.f32.gmra.mxu3 %vm60_vm1, %v324_v36  ;;  %v261_v43 = vadd.f32 %v1295_v3, %v193_v39  ;;  %v194_v46 = vmul.f32 %v1290_v2, %v126_v45 }
  0x8d   :  { %v325_v44 = vmax.f32 %v261_v43, 0.0 }
  0x8f   :  { %v545_v49 = vpop.f32.mrf.mxu0 }
  0x90   :  { %735 = vst.msk [vmem:[%s2388_s4 + $0x8] sm:$0xff] %vm60_vm1, %v545_v49  ;;  %v800_v50 = vsel %vm60_vm1, %v545_v49, 0.0  ;;  %v936_v51 = vmul.f32 %v545_v49, %v545_v49 }
  0x91   :  { %v1655_v52 = vpop.f32.mrf.mxu1  ;;  %v801_v55 = vadd.f32 %v800_v50, %v799_v48  ;;  %v262_v50 = vadd.f32 %v1295_v3, %v194_v46 }
  0x92   :  { %751 = vst.msk [vmem:[%s2388_s4 + $0x88] sm:$0xff] %vm60_vm1, %v1655_v52  ;;  %v1000_v57 = vsel %vm60_vm1, %v936_v51, 0.0 }
  0x93   :  { %v1001_v60 = vadd.f32 %v1000_v57, %v999_v56  ;;  %v1716_v28 = vpop.f32.mrf.mxu2  ;;  %1237 = vmatmul.msk.f32.gmra.mxu3 %vm60_vm1, %v325_v44  ;;  %v326_v2 = vmax.f32 %v262_v50, 0.0 }
  0x94   :  { %766 = vst.msk [vmem:[%s2388_s4 + $0x100] sm:$0xff] %vm60_vm1, %v1716_v28 }
  0x97   :  { %v548_v1 = vpop.f32.mrf.mxu0 }
  0x98   :  { %736 = vst.msk [vmem:[%s2388_s4 + $0x10] sm:$0xff] %vm60_vm1, %v548_v1  ;;  %v802_v4 = vsel %vm60_vm1, %v548_v1, 0.0  ;;  %v937_v5 = vmul.f32 %v548_v1, %v548_v1 }
  0x99   :  { %v1681_v6 = vpop.f32.mrf.mxu1  ;;  %v803_v9 = vadd.f32 %v802_v4, %v801_v55 }
  0x9a   :  { %752 = vst.msk [vmem:[%s2388_s4 + $0x90] sm:$0xff] %vm60_vm1, %v1681_v6  ;;  %v1002_v10 = vsel %vm60_vm1, %v937_v5, 0.0 }
  0x9b   :  { %v1003_v13 = vadd.f32 %v1002_v10, %v1001_v60  ;;  %v1748_v41 = vpop.f32.mrf.mxu2  ;;  %1238 = vmatmul.msk.f32.gmra.mxu3 %vm60_vm1, %v326_v2 }
  0x9c   :  { %767 = vst.msk [vmem:[%s2388_s4 + $0x108] sm:$0xff] %vm60_vm1, %v1748_v41 }
  0x9f   :  { %v551_v16 = vpop.f32.mrf.mxu0 }
  0xa0   :  { %737 = vst.msk [vmem:[%s2388_s4 + $0x18] sm:$0xff] %vm60_vm1, %v551_v16  ;;  %v804_v17 = vsel %vm60_vm1, %v551_v16, 0.0  ;;  %v938_v18 = vmul.f32 %v551_v16, %v551_v16 }
  0xa1   :  { %v1702_v19 = vpop.f32.mrf.mxu1  ;;  %v805_v21 = vadd.f32 %v804_v17, %v803_v9 }
  0xa2   :  { %753 = vst.msk [vmem:[%s2388_s4 + $0x98] sm:$0xff] %vm60_vm1, %v1702_v19  ;;  %v1004_v22 = vsel %vm60_vm1, %v938_v18, 0.0 }
  0xa3   :  { %v1005_v24 = vadd.f32 %v1004_v22, %v1003_v13  ;;  %v1773_v48 = vpop.f32.mrf.mxu2  ;;  %v1819_v57 = vpop.f32.mrf.mxu3 }
  0xa4   :  { %768 = vst.msk [vmem:[%s2388_s4 + $0x110] sm:$0xff] %vm60_vm1, %v1773_v48 }
  0xa5   :  { %782 = vst.msk [vmem:[%s2388_s4 + $0x180] sm:$0xff] %vm60_vm1, %v1819_v57 }
  0xa7   :  { %v554_v27 = vpop.f32.mrf.mxu0 }
  0xa8   :  { %738 = vst.msk [vmem:[%s2388_s4 + $0x20] sm:$0xff] %vm60_vm1, %v554_v27  ;;  %v806_v29 = vsel %vm60_vm1, %v554_v27, 0.0  ;;  %v939_v30 = vmul.f32 %v554_v27, %v554_v27 }
  0xa9   :  { %v1723_v31 = vpop.f32.mrf.mxu1  ;;  %v1725_v32 = vadd.f32 %v806_v29, %v805_v21 }
  0xaa   :  { %754 = vst.msk [vmem:[%s2388_s4 + $0xa0] sm:$0xff] %vm60_vm1, %v1723_v31  ;;  %v1006_v34 = vsel %vm60_vm1, %v939_v30, 0.0 }
  0xab   :  { %v1739_v35 = vadd.f32 %v1006_v34, %v1005_v24  ;;  %v1793_v53 = vpop.f32.mrf.mxu2  ;;  %v1844_v61 = vpop.f32.mrf.mxu3 }
  0xac   :  { %769 = vst.msk [vmem:[%s2388_s4 + $0x118] sm:$0xff] %vm60_vm1, %v1793_v53 }
  0xad   :  { %783 = vst.msk [vmem:[%s2388_s4 + $0x188] sm:$0xff] %vm60_vm1, %v1844_v61 }
  0xaf   :  { %v1746_v40 = vpop.f32.mrf.mxu0 }
  0xb0   :  { %739 = vst.msk [vmem:[%s2388_s4 + $0x28] sm:$0xff] %vm60_vm1, %v1746_v40  ;;  %v940_v11 = vmul.f32 %v1746_v40, %v1746_v40  ;;  %v808_v14 = vsel %vm60_vm1, %v1746_v40, 0.0 }
  0xb1   :  { %v1755_v42 = vpop.f32.mrf.mxu1  ;;  %v809_v20 = vadd.f32 %v808_v14, %v1725_v32 }
  0xb2   :  { %755 = vst.msk [vmem:[%s2388_s4 + $0xa8] sm:$0xff] %vm60_vm1, %v1755_v42  ;;  %v1008_v16 = vsel %vm60_vm1, %v940_v11, 0.0 }
  0xb3   :  { %v1811_v55 = vpop.f32.mrf.mxu2  ;;  %v1869_v1 = vpop.f32.mrf.mxu3  ;;  %v1009_v24 = vadd.f32 %v1008_v16, %v1739_v35 }
  0xb4   :  { %770 = vst.msk [vmem:[%s2388_s4 + $0x120] sm:$0xff] %vm60_vm1, %v1811_v55 }
  0xb5   :  { %784 = vst.msk [vmem:[%s2388_s4 + $0x190] sm:$0xff] %vm60_vm1, %v1869_v1 }
  0xb7   :  { %v560_v47 = vpop.f32.mrf.mxu0 }
  0xb8   :  { %740 = vst.msk [vmem:[%s2388_s4 + $0x30] sm:$0xff] %vm60_vm1, %v560_v47  ;;  %v941_v15 = vmul.f32 %v560_v47, %v560_v47  ;;  %v810_v17 = vsel %vm60_vm1, %v560_v47, 0.0 }
  0xb9   :  { %v1779_v49 = vpop.f32.mrf.mxu1  ;;  %v811_v25 = vadd.f32 %v810_v17, %v809_v20 }
  0xba   :  { %756 = vst.msk [vmem:[%s2388_s4 + $0xb0] sm:$0xff] %vm60_vm1, %v1779_v49  ;;  %v1010_v21 = vsel %vm60_vm1, %v941_v15, 0.0 }
  0xbb   :  { %v1836_v59 = vpop.f32.mrf.mxu2  ;;  %v1894_v8 = vpop.f32.mrf.mxu3  ;;  %v1011_v36 = vadd.f32 %v1010_v21, %v1009_v24 }
  0xbc   :  { %771 = vst.msk [vmem:[%s2388_s4 + $0x128] sm:$0xff] %vm60_vm1, %v1836_v59 }
  0xbd   :  { %785 = vst.msk [vmem:[%s2388_s4 + $0x198] sm:$0xff] %vm60_vm1, %v1894_v8 }
  0xbf   :  { %v563_v51 = vpop.f32.mrf.mxu0 }
  0xc0   :  { %741 = vst.msk [vmem:[%s2388_s4 + $0x38] sm:$0xff] %vm60_vm1, %v563_v51  ;;  %v942_v18 = vmul.f32 %v563_v51, %v563_v51  ;;  %v812_v22 = vsel %vm60_vm1, %v563_v51, 0.0 }
  0xc1   :  { %v1799_v54 = vpop.f32.mrf.mxu1  ;;  %v813_v35 = vadd.f32 %v812_v22, %v811_v25 }
  0xc2   :  { %757 = vst.msk [vmem:[%s2388_s4 + $0xb8] sm:$0xff] %vm60_vm1, %v1799_v54  ;;  %v1012_v29 = vsel %vm60_vm1, %v942_v18, 0.0 }
  0xc3   :  { %v1861_v63 = vpop.f32.mrf.mxu2  ;;  %v1921_v13 = vpop.f32.mrf.mxu3  ;;  %v1013_v43 = vadd.f32 %v1012_v29, %v1011_v36 }
  0xc4   :  { %772 = vst.msk [vmem:[%s2388_s4 + $0x130] sm:$0xff] %vm60_vm1, %v1861_v63 }
  0xc5   :  { %786 = vst.msk [vmem:[%s2388_s4 + $0x1a0] sm:$0xff] %vm60_vm1, %v1921_v13 }
  0xc7   :  { %v566_v3 = vpop.f32.mrf.mxu0 }
  0xc8   :  { %742 = vst.msk [vmem:[%s2388_s4 + $0x40] sm:$0xff] %vm60_vm1, %v566_v3  ;;  %v943_v23 = vmul.f32 %v566_v3, %v566_v3  ;;  %v814_v30 = vsel %vm60_vm1, %v566_v3, 0.0 }
  0xc9   :  { %v1817_v56 = vpop.f32.mrf.mxu1  ;;  %v815_v44 = vadd.f32 %v814_v30, %v813_v35 }
  0xca   :  { %758 = vst.msk [vmem:[%s2388_s4 + $0xc0] sm:$0xff] %vm60_vm1, %v1817_v56  ;;  %v1014_v37 = vsel %vm60_vm1, %v943_v23, 0.0 }
  0xcb   :  { %v1886_v5 = vpop.f32.mrf.mxu2  ;;  %v1956_v34 = vpop.f32.mrf.mxu3  ;;  %v1015_v50 = vadd.f32 %v1014_v37, %v1013_v43 }
  0xcc   :  { %773 = vst.msk [vmem:[%s2388_s4 + $0x138] sm:$0xff] %vm60_vm1, %v1886_v5 }
  0xcd   :  { %787 = vst.msk [vmem:[%s2388_s4 + $0x1a8] sm:$0xff] %vm60_vm1, %v1956_v34 }
  0xcf   :  { %v569_v58 = vpop.f32.mrf.mxu0 }
  0xd0   :  { %743 = vst.msk [vmem:[%s2388_s4 + $0x48] sm:$0xff] %vm60_vm1, %v569_v58  ;;  %v944_v33 = vmul.f32 %v569_v58, %v569_v58  ;;  %v816_v39 = vsel %vm60_vm1, %v569_v58, 0.0 }
  0xd1   :  { %v1842_v60 = vpop.f32.mrf.mxu1  ;;  %v817_v2 = vadd.f32 %v816_v39, %v815_v44  ;;  %v951_v44 = vmul.f32 %v1630_v38, %v1630_v38 }
  0xd2   :  { %759 = vst.msk [vmem:[%s2388_s4 + $0xc8] sm:$0xff] %vm60_vm1, %v1842_v60  ;;  %v1016_v45 = vsel %vm60_vm1, %v944_v33, 0.0 }
  0xd3   :  { %v1911_v10 = vpop.f32.mrf.mxu2  ;;  %v1017_v11 = vadd.f32 %v1016_v45, %v1015_v50  ;;  %v1989_v21 = vpop.f32.mrf.mxu3 }
  0xd4   :  { %774 = vst.msk [vmem:[%s2388_s4 + $0x140] sm:$0xff] %vm60_vm1, %v1911_v10 }
  0xd5   :  { %788 = vst.msk [vmem:[%s2388_s4 + $0x1b0] sm:$0xff] %vm60_vm1, %v1989_v21 }
  0xd7   :  { %v572_v62 = vpop.f32.mrf.mxu0 }
  0xd8   :  { %744 = vst.msk [vmem:[%s2388_s4 + $0x50] sm:$0xff] %vm60_vm1, %v572_v62  ;;  %v945_v40 = vmul.f32 %v572_v62, %v572_v62  ;;  %v818_v46 = vsel %vm60_vm1, %v572_v62, 0.0 }
  0xd9   :  { %v1867_v0 = vpop.f32.mrf.mxu1  ;;  %v819_v14 = vadd.f32 %v818_v46, %v817_v2 }
  0xda   :  { %760 = vst.msk [vmem:[%s2388_s4 + $0xd0] sm:$0xff] %vm60_vm1, %v1867_v0  ;;  %v1018_v51 = vsel %vm60_vm1, %v945_v40, 0.0 }
  0xdb   :  { %v1946_v27 = vpop.f32.mrf.mxu2  ;;  %v2022_v50 = vpop.f32.mrf.mxu3 }
  0xdc   :  { %775 = vst.msk [vmem:[%s2388_s4 + $0x148] sm:$0xff] %vm60_vm1, %v1946_v27 }
  0xdd   :  { %789 = vst.msk [vmem:[%s2388_s4 + $0x1b8] sm:$0xff] %vm60_vm1, %v2022_v50 }
  0xdf   :  { %v575_v4 = vpop.f32.mrf.mxu0 }
  0xe0   :  { %745 = vst.msk [vmem:[%s2388_s4 + $0x58] sm:$0xff] %vm60_vm1, %v575_v4  ;;  %v946_v47 = vmul.f32 %v575_v4, %v575_v4  ;;  %v820_v3 = vsel %vm60_vm1, %v575_v4, 0.0  ;;  %v1019_v4 = vadd.f32 %v1018_v51, %v1017_v11 }
  0xe1   :  { %v1892_v7 = vpop.f32.mrf.mxu1  ;;  %v821_v22 = vadd.f32 %v820_v3, %v819_v14  ;;  %v830_v3 = vsel %vm60_vm1, %v1630_v38, 0.0  ;;  %v1030_v38 = vsel %vm60_vm1, %v951_v44, 0.0 }
  0xe2   :  { %761 = vst.msk [vmem:[%s2388_s4 + $0xd8] sm:$0xff] %vm60_vm1, %v1892_v7  ;;  %v1020_v17 = vsel %vm60_vm1, %v946_v47, 0.0 }
  0xe3   :  { %v1979_v16 = vpop.f32.mrf.mxu2  ;;  %v1021_v25 = vadd.f32 %v1020_v17, %v1019_v4  ;;  %v832_v17 = vsel %vm60_vm1, %v1655_v52, 0.0 }
  0xe4   :  { %776 = vst.msk [vmem:[%s2388_s4 + $0x150] sm:$0xff] %vm60_vm1, %v1979_v16 }
  0xe7   :  { %v578_v9 = vpop.f32.mrf.mxu0 }
  0xe8   :  { %746 = vst.msk [vmem:[%s2388_s4 + $0x60] sm:$0xff] %vm60_vm1, %v578_v9  ;;  %v947_v58 = vmul.f32 %v578_v9, %v578_v9  ;;  %v822_v18 = vsel %vm60_vm1, %v578_v9, 0.0 }
  0xe9   :  { %v1919_v12 = vpop.f32.mrf.mxu1  ;;  %v823_v29 = vadd.f32 %v822_v18, %v821_v22  ;;  %v953_v18 = vmul.f32 %v1681_v6, %v1681_v6 }
  0xea   :  { %762 = vst.msk [vmem:[%s2388_s4 + $0xe0] sm:$0xff] %vm60_vm1, %v1919_v12  ;;  %v1022_v9 = vsel %vm60_vm1, %v947_v58, 0.0  ;;  %v952_v58 = vmul.f32 %v1655_v52, %v1655_v52  ;;  %v836_v52 = vsel %vm60_vm1, %v1702_v19, 0.0 }
  0xeb   :  { %v2011_v43 = vpop.f32.mrf.mxu2 }
  0xec   :  { %777 = vst.msk [vmem:[%s2388_s4 + $0x158] sm:$0xff] %vm60_vm1, %v2011_v43  ;;  %v1032_v22 = vsel %vm60_vm1, %v952_v58, 0.0  ;;  %v958_v58 = vmul.f32 %v1799_v54, %v1799_v54 }
  0xef   :  { %v581_v26 = vpop.f32.mrf.mxu0 }
  0xf0   :  { %747 = vst.msk [vmem:[%s2388_s4 + $0x68] sm:$0xff] %vm60_vm1, %v581_v26  ;;  %v948_v20 = vmul.f32 %v581_v26, %v581_v26  ;;  %v824_v23 = vsel %vm60_vm1, %v581_v26, 0.0  ;;  %v1023_v26 = vadd.f32 %v1022_v9, %v1021_v25  ;;  %v834_v9 = vsel %vm60_vm1, %v1681_v6, 0.0  ;;  %v2066_v6 = vpop.f32.mrf.mxu3 }
  0xf1   :  { %v1954_v32 = vpop.f32.mrf.mxu1  ;;  %v825_v36 = vadd.f32 %v824_v23, %v823_v29  ;;  %v954_v23 = vmul.f32 %v1702_v19, %v1702_v19  ;;  %790 = vst.msk [vmem:[%s2388_s4 + $0x1c0] sm:$0xff] %vm60_vm1, %v2066_v6 }
  0xf2   :  { %763 = vst.msk [vmem:[%s2388_s4 + $0xe8] sm:$0xff] %vm60_vm1, %v1954_v32  ;;  %v1024_v30 = vsel %vm60_vm1, %v948_v20, 0.0 }
  0xf3   :  { %v1025_v37 = vadd.f32 %v1024_v30, %v1023_v26  ;;  %v2054_v29 = vpop.f32.mrf.mxu2  ;;  %v1034_v30 = vsel %vm60_vm1, %v953_v18, 0.0  ;;  %v1036_v19 = vsel %vm60_vm1, %v954_v23, 0.0 }
  0xf4   :  { %778 = vst.msk [vmem:[%s2388_s4 + $0x160] sm:$0xff] %vm60_vm1, %v2054_v29 }
  0xf7   :  { %v584_v15 = vpop.f32.mrf.mxu0 }
  0xf8   :  { %748 = vst.msk [vmem:[%s2388_s4 + $0x70] sm:$0xff] %vm60_vm1, %v584_v15  ;;  %v949_v24 = vmul.f32 %v584_v15, %v584_v15  ;;  %v826_v33 = vsel %vm60_vm1, %v584_v15, 0.0 }
  0xf9   :  { %v1987_v62 = vpop.f32.mrf.mxu1  ;;  %v827_v39 = vadd.f32 %v826_v33, %v825_v36  ;;  %v955_v33 = vmul.f32 %v1723_v31, %v1723_v31 }
  0xfa   :  { %764 = vst.msk [vmem:[%s2388_s4 + $0xf0] sm:$0xff] %vm60_vm1, %v1987_v62  ;;  %v1026_v35 = vsel %vm60_vm1, %v949_v24, 0.0 }
  0xfb   :  { %v1027_v2 = vadd.f32 %v1026_v35, %v1025_v37  ;;  %v838_v35 = vsel %vm60_vm1, %v1723_v31, 0.0  ;;  %v956_v37 = vmul.f32 %v1755_v42, %v1755_v42  ;;  %v1038_v44 = vsel %vm60_vm1, %v955_v33, 0.0 }
  0xfc   :  { %v842_v31 = vsel %vm60_vm1, %v1779_v49, 0.0 }
  0xff   :  { %v587_v40 = vpop.f32.mrf.mxu0 }
 0x100   :  { %749 = vst.msk [vmem:[%s2388_s4 + $0x78] sm:$0xff] %vm60_vm1, %v587_v40  ;;  %v828_v45 = vsel %vm60_vm1, %v587_v40, 0.0  ;;  %v950_v46 = vmul.f32 %v587_v40, %v587_v40 }
 0x101   :  { %v2020_v47 = vpop.f32.mrf.mxu1  ;;  %v829_v51 = vadd.f32 %v828_v45, %v827_v39  ;;  %v840_v45 = vsel %vm60_vm1, %v1755_v42, 0.0  ;;  %v844_v42 = vsel %vm60_vm1, %v1799_v54, 0.0  ;;  %v1044_v54 = vsel %vm60_vm1, %v958_v58, 0.0 }
 0x102   :  { %765 = vst.msk [vmem:[%s2388_s4 + $0xf8] sm:$0xff] %vm60_vm1, %v2020_v47  ;;  %v1028_v11 = vsel %vm60_vm1, %v950_v46, 0.0  ;;  %v957_v46 = vmul.f32 %v1779_v49, %v1779_v49  ;;  %v2100_v49 = vpop.f32.mrf.mxu3  ;;  %v856_v58 = vsel %vm60_vm1, %v1954_v32, 0.0 }
 0x103   :  { %v831_v14 = vadd.f32 %v830_v3, %v829_v51  ;;  %v1029_v15 = vadd.f32 %v1028_v11, %v1027_v2  ;;  %v1040_v3 = vsel %vm60_vm1, %v956_v37, 0.0  ;;  %791 = vst.msk [vmem:[%s2388_s4 + $0x1c8] sm:$0xff] %vm60_vm1, %v2100_v49 }
 0x105   :  { %v833_v20 = vadd.f32 %v832_v17, %v831_v14  ;;  %v1031_v4 = vadd.f32 %v1030_v38, %v1029_v15  ;;  %v2088_v15 = vpop.f32.mrf.mxu2  ;;  %v1042_v38 = vsel %vm60_vm1, %v957_v46, 0.0  ;;  %v959_v17 = vmul.f32 %v1817_v56, %v1817_v56 }
 0x106   :  { %779 = vst.msk [vmem:[%s2388_s4 + $0x168] sm:$0xff] %vm60_vm1, %v2088_v15  ;;  %v854_v46 = vsel %vm60_vm1, %v1919_v12, 0.0 }
 0x107   :  { %v835_v24 = vadd.f32 %v834_v9, %v833_v20  ;;  %v1033_v25 = vadd.f32 %v1032_v22, %v1031_v4  ;;  %v846_v4 = vsel %vm60_vm1, %v1817_v56, 0.0  ;;  %v960_v22 = vmul.f32 %v1842_v60, %v1842_v60 }
 0x108   :  { %v850_v56 = vsel %vm60_vm1, %v1867_v0, 0.0 }
 0x109   :  { %v837_v26 = vadd.f32 %v836_v52, %v835_v24  ;;  %v1035_v36 = vadd.f32 %v1034_v30, %v1033_v25  ;;  %v1046_v24 = vsel %vm60_vm1, %v959_v17, 0.0  ;;  %v848_v25 = vsel %vm60_vm1, %v1842_v60, 0.0 }
 0x10a   :  { %v961_v30 = vmul.f32 %v1867_v0, %v1867_v0  ;;  %v852_v60 = vsel %vm60_vm1, %v1892_v7, 0.0  ;;  %v2134_v0 = vpop.f32.mrf.mxu3  ;;  %v858_v17 = vsel %vm60_vm1, %v1987_v62, 0.0 }
 0x10b   :  { %v839_v39 = vadd.f32 %v838_v35, %v837_v26  ;;  %v1037_v40 = vadd.f32 %v1036_v19, %v1035_v36  ;;  %v1048_v26 = vsel %vm60_vm1, %v960_v22, 0.0  ;;  %v962_v36 = vmul.f32 %v1892_v7, %v1892_v7  ;;  %792 = vst.msk [vmem:[%s2388_s4 + $0x1d0] sm:$0xff] %vm60_vm1, %v2134_v0 }
 0x10d   :  { %v841_v2 = vadd.f32 %v840_v45, %v839_v39  ;;  %v1039_v51 = vadd.f32 %v1038_v44, %v1037_v40  ;;  %v2122_v37 = vpop.f32.mrf.mxu2  ;;  %v1050_v39 = vsel %vm60_vm1, %v961_v30, 0.0  ;;  %v963_v40 = vmul.f32 %v1919_v12, %v1919_v12 }
 0x10e   :  { %780 = vst.msk [vmem:[%s2388_s4 + $0x170] sm:$0xff] %vm60_vm1, %v2122_v37  ;;  %v1052_v7 = vsel %vm60_vm1, %v962_v36, 0.0 }
 0x10f   :  { %v1041_v11 = vadd.f32 %v1040_v3, %v1039_v51  ;;  %v843_v14 = vadd.f32 %v842_v31, %v841_v2  ;;  %v964_v2 = vmul.f32 %v1954_v32, %v1954_v32  ;;  %v1054_v31 = vsel %vm60_vm1, %v963_v40, 0.0 }
 0x110   :  { %v967_v32 = vmul.f32 %v1716_v28, %v1716_v28 }
 0x111   :  { %v845_v18 = vadd.f32 %v844_v42, %v843_v14  ;;  %v1043_v20 = vadd.f32 %v1042_v38, %v1041_v11  ;;  %v965_v11 = vmul.f32 %v1987_v62, %v1987_v62  ;;  %v966_v14 = vmul.f32 %v2020_v47, %v2020_v47 }
 0x112   :  { %v1056_v12 = vsel %vm60_vm1, %v964_v2, 0.0  ;;  %v2169_v62 = vpop.f32.mrf.mxu3 }
 0x113   :  { %v847_v9 = vadd.f32 %v846_v4, %v845_v18  ;;  %v1045_v23 = vadd.f32 %v1044_v54, %v1043_v20  ;;  %v860_v18 = vsel %vm60_vm1, %v2020_v47, 0.0  ;;  %v1058_v22 = vsel %vm60_vm1, %v965_v11, 0.0  ;;  %793 = vst.msk [vmem:[%s2388_s4 + $0x1d8] sm:$0xff] %vm60_vm1, %v2169_v62 }
 0x114   :  { %v872_v11 = vsel %vm60_vm1, %v1836_v59, 0.0 }
 0x115   :  { %v849_v52 = vadd.f32 %v848_v25, %v847_v9  ;;  %v1047_v33 = vadd.f32 %v1046_v24, %v1045_v23  ;;  %v2158_v4 = vpop.f32.mrf.mxu2  ;;  %v1060_v9 = vsel %vm60_vm1, %v966_v14, 0.0  ;;  %v862_v24 = vsel %vm60_vm1, %v1716_v28, 0.0 }
 0x116   :  { %781 = vst.msk [vmem:[%s2388_s4 + $0x178] sm:$0xff] %vm60_vm1, %v2158_v4  ;;  %v968_v25 = vmul.f32 %v1748_v41, %v1748_v41  ;;  %v866_v28 = vsel %vm60_vm1, %v1773_v48, 0.0  ;;  %v973_v14 = vmul.f32 %v1861_v63, %v1861_v63 }
 0x117   :  { %v851_v19 = vadd.f32 %v850_v56, %v849_v52  ;;  %v1049_v35 = vadd.f32 %v1048_v26, %v1047_v33  ;;  %v1062_v33 = vsel %vm60_vm1, %v967_v32, 0.0  ;;  %v864_v26 = vsel %vm60_vm1, %v1748_v41, 0.0 }
 0x118   :  { %v969_v56 = vmul.f32 %v1773_v48, %v1773_v48  ;;  %v868_v41 = vsel %vm60_vm1, %v1793_v53, 0.0  ;;  %v975_v32 = vmul.f32 %v1911_v10, %v1911_v10 }
 0x119   :  { %v853_v44 = vadd.f32 %v852_v60, %v851_v19  ;;  %v1051_v45 = vadd.f32 %v1050_v39, %v1049_v35  ;;  %v1064_v35 = vsel %vm60_vm1, %v968_v25, 0.0  ;;  %v970_v39 = vmul.f32 %v1793_v53, %v1793_v53 }
 0x11a   :  { %v972_v53 = vmul.f32 %v1836_v59, %v1836_v59  ;;  %v876_v59 = vsel %vm60_vm1, %v1886_v5, 0.0 }
 0x11b   :  { %v1053_v51 = vadd.f32 %v1052_v7, %v1051_v45  ;;  %v855_v3 = vadd.f32 %v854_v46, %v853_v44  ;;  %v1066_v44 = vsel %vm60_vm1, %v969_v56, 0.0  ;;  %v971_v45 = vmul.f32 %v1811_v55, %v1811_v55  ;;  %v2195_v7 = vpop.f32.mrf.mxu3 }
 0x11c   :  { %794 = vst.msk [vmem:[%s2388_s4 + $0x1e0] sm:$0xff] %vm60_vm1, %v2195_v7  ;;  %v1068_v48 = vsel %vm60_vm1, %v970_v39, 0.0 }
 0x11d   :  { %v1055_v38 = vadd.f32 %v1054_v31, %v1053_v51  ;;  %v857_v42 = vadd.f32 %v856_v58, %v855_v3  ;;  %v870_v51 = vsel %vm60_vm1, %v1811_v55, 0.0  ;;  %v1070_v58 = vsel %vm60_vm1, %v971_v45, 0.0 }
 0x11e   :  { %v874_v55 = vsel %vm60_vm1, %v1861_v63, 0.0  ;;  %v886_v45 = vsel %vm60_vm1, %v2054_v29, 0.0 }
 0x11f   :  { %v1057_v20 = vadd.f32 %v1056_v12, %v1055_v38  ;;  %v859_v54 = vadd.f32 %v858_v17, %v857_v42  ;;  %v1072_v12 = vsel %vm60_vm1, %v972_v53, 0.0  ;;  %v974_v17 = vmul.f32 %v1886_v5, %v1886_v5 }
 0x120   :  { %v976_v5 = vmul.f32 %v1946_v27, %v1946_v27  ;;  %v981_v53 = vmul.f32 %v2122_v37, %v2122_v37 }
 0x121   :  { %v1059_v47 = vadd.f32 %v1058_v22, %v1057_v20  ;;  %v861_v23 = vadd.f32 %v860_v18, %v859_v54  ;;  %v1074_v54 = vsel %vm60_vm1, %v973_v14, 0.0  ;;  %v1076_v63 = vsel %vm60_vm1, %v974_v17, 0.0 }
 0x122   :  { %v892_v14 = vsel %vm60_vm1, %v2158_v4, 0.0 }
 0x123   :  { %v863_v30 = vadd.f32 %v862_v24, %v861_v23  ;;  %v1061_v52 = vadd.f32 %v1060_v9, %v1059_v47  ;;  %v2222_v22 = vpop.f32.mrf.mxu3  ;;  %v878_v23 = vsel %vm60_vm1, %v1911_v10, 0.0  ;;  %v882_v10 = vsel %vm60_vm1, %v1979_v16, 0.0 }
 0x124   :  { %795 = vst.msk [vmem:[%s2388_s4 + $0x1e8] sm:$0xff] %vm60_vm1, %v2222_v22 }
 0x125   :  { %v865_v36 = vadd.f32 %v864_v26, %v863_v30  ;;  %v1063_v19 = vadd.f32 %v1062_v33, %v1061_v52  ;;  %v1078_v30 = vsel %vm60_vm1, %v975_v32, 0.0  ;;  %v880_v52 = vsel %vm60_vm1, %v1946_v27, 0.0 }
 0x126   :  { %v977_v33 = vmul.f32 %v1979_v16, %v1979_v16  ;;  %v884_v27 = vsel %vm60_vm1, %v2011_v43, 0.0 }
 0x127   :  { %v867_v60 = vadd.f32 %v866_v28, %v865_v36  ;;  %v1065_v40 = vadd.f32 %v1064_v35, %v1063_v19  ;;  %v1080_v36 = vsel %vm60_vm1, %v976_v5, 0.0  ;;  %v978_v19 = vmul.f32 %v2011_v43, %v2011_v43 }
 0x128   :  { %v1082_v39 = vsel %vm60_vm1, %v977_v33, 0.0  ;;  %v980_v43 = vmul.f32 %v2088_v15, %v2088_v15 }
 0x129   :  { %v869_v46 = vadd.f32 %v868_v41, %v867_v60  ;;  %v1067_v2 = vadd.f32 %v1066_v44, %v1065_v40  ;;  %v979_v60 = vmul.f32 %v2054_v29, %v2054_v29  ;;  %v1084_v16 = vsel %vm60_vm1, %v978_v19, 0.0 }
 0x12a   :  { %v1088_v29 = vsel %vm60_vm1, %v980_v43, 0.0  ;;  %v988_v19 = vmul.f32 %v1956_v34, %v1956_v34 }
 0x12b   :  { %v871_v3 = vadd.f32 %v870_v51, %v869_v46  ;;  %v1069_v31 = vadd.f32 %v1068_v48, %v1067_v2  ;;  %v2249_v40 = vpop.f32.mrf.mxu3  ;;  %v1086_v48 = vsel %vm60_vm1, %v979_v60, 0.0  ;;  %v888_v51 = vsel %vm60_vm1, %v2088_v15, 0.0 }
 0x12c   :  { %796 = vst.msk [vmem:[%s2388_s4 + $0x1f0] sm:$0xff] %vm60_vm1, %v2249_v40  ;;  %v983_v15 = vmul.f32 %v1819_v57, %v1819_v57 }
 0x12d   :  { %v873_v38 = vadd.f32 %v872_v11, %v871_v3  ;;  %v1071_v42 = vadd.f32 %v1070_v58, %v1069_v31  ;;  %v982_v3 = vmul.f32 %v2158_v4, %v2158_v4  ;;  %v890_v11 = vsel %vm60_vm1, %v2122_v37, 0.0 }
 0x12e   :  { %v894_v37 = vsel %vm60_vm1, %v1819_v57, 0.0  ;;  %v984_v4 = vmul.f32 %v1844_v61, %v1844_v61  ;;  %v896_v57 = vsel %vm60_vm1, %v1844_v61, 0.0  ;;  %v900_v61 = vsel %vm60_vm1, %v1894_v8, 0.0 }
 0x12f   :  { %v1073_v18 = vadd.f32 %v1072_v12, %v1071_v42  ;;  %v875_v20 = vadd.f32 %v874_v55, %v873_v38  ;;  %v1090_v12 = vsel %vm60_vm1, %v981_v53, 0.0  ;;  %v1092_v55 = vsel %vm60_vm1, %v982_v3, 0.0 }
 0x130   :  { %v1096_v5 = vsel %vm60_vm1, %v984_v4, 0.0  ;;  %v992_v3 = vmul.f32 %v2100_v49, %v2100_v49 }
 0x131   :  { %v877_v9 = vadd.f32 %v876_v59, %v875_v20  ;;  %v1075_v47 = vadd.f32 %v1074_v54, %v1073_v18  ;;  %v1245_v54 = vmov 0.0  }
 0x132   :  { %61 = vst.msk [vmem:[%s2389_s5] sm:$0xff] %vm60_vm1, %v1245_v54 }
 0x133   :  { %v879_v24 = vadd.f32 %v878_v23, %v877_v9  ;;  %v1077_v25 = vadd.f32 %v1076_v63, %v1075_v47  ;;  %v2277_v17 = vpop.f32.mrf.mxu3  ;;  %62 = vst.msk [vmem:[%s2390_s6] sm:$0xff] %vm60_vm1, %v1245_v54  ;;  %v1094_v9 = vsel %vm60_vm1, %v983_v15, 0.0  ;;  %v985_v47 = vmul.f32 %v1869_v1, %v1869_v1 }
 0x134   :  { %797 = vst.msk [vmem:[%s2388_s4 + $0x1f8] sm:$0xff] %vm60_vm1, %v2277_v17  ;;  %v994_v15 = vmul.f32 %v2169_v62, %v2169_v62 }
 0x135   :  { %v881_v26 = vadd.f32 %v880_v52, %v879_v24  ;;  %v1079_v56 = vadd.f32 %v1078_v30, %v1077_v25  ;;  %v898_v24 = vsel %vm60_vm1, %v1869_v1, 0.0  ;;  %v986_v25 = vmul.f32 %v1894_v8, %v1894_v8 }
 0x136   :  { %v1098_v33 = vsel %vm60_vm1, %v985_v47, 0.0  ;;  %v902_v1 = vsel %vm60_vm1, %v1921_v13, 0.0  ;;  %v904_v8 = vsel %vm60_vm1, %v1956_v34, 0.0  ;;  %v908_v34 = vsel %vm60_vm1, %v2022_v50, 0.0 }
 0x137   :  { %v883_v35 = vadd.f32 %v882_v10, %v881_v26  ;;  %v1081_v28 = vadd.f32 %v1080_v36, %v1079_v56  ;;  %v987_v26 = vmul.f32 %v1921_v13, %v1921_v13  ;;  %v1100_v10 = vsel %vm60_vm1, %v986_v25, 0.0 }
 0x138   :  { %v906_v13 = vsel %vm60_vm1, %v1989_v21, 0.0  ;;  %v1116_v54 = vsel %vm60_vm1, %v994_v15, 0.0  ;;  %v997_v47 = vmul.f32 %v2249_v40, %v2249_v40  ;;  %v924_v25 = vsel %vm60_vm1, %v2277_v17, 0.0 }
 0x139   :  { %v885_v44 = vadd.f32 %v884_v27, %v883_v35  ;;  %v1083_v41 = vadd.f32 %v1082_v39, %v1081_v28  ;;  %v1102_v39 = vsel %vm60_vm1, %v987_v26, 0.0  ;;  %v989_v27 = vmul.f32 %v1989_v21, %v1989_v21 }
 0x13a   :  { %v910_v21 = vsel %vm60_vm1, %v2066_v6, 0.0 }
 0x13b   :  { %v1085_v46 = vadd.f32 %v1084_v16, %v1083_v41  ;;  %v887_v2 = vadd.f32 %v886_v45, %v885_v44  ;;  %v1104_v41 = vsel %vm60_vm1, %v988_v19, 0.0  ;;  %v990_v16 = vmul.f32 %v2022_v50, %v2022_v50 }
 0x13c   :  { %v912_v50 = vsel %vm60_vm1, %v2100_v49, 0.0  ;;  %v916_v49 = vsel %vm60_vm1, %v2169_v62, 0.0  ;;  %v920_v62 = vsel %vm60_vm1, %v2222_v22, 0.0 }
 0x13d   :  { %v1087_v31 = vadd.f32 %v1086_v48, %v1085_v46  ;;  %v889_v58 = vadd.f32 %v888_v51, %v887_v2  ;;  %v1106_v46 = vsel %vm60_vm1, %v989_v27, 0.0  ;;  %v991_v2 = vmul.f32 %v2066_v6, %v2066_v6 }
 0x13e   :  { %v1108_v53 = vsel %vm60_vm1, %v990_v16, 0.0  ;;  %v914_v6 = vsel %vm60_vm1, %v2134_v0, 0.0 }
 0x13f   :  { %v1089_v38 = vadd.f32 %v1088_v29, %v1087_v31  ;;  %v891_v42 = vadd.f32 %v890_v11, %v889_v58  ;;  %v1110_v29 = vsel %vm60_vm1, %v991_v2, 0.0  ;;  %v993_v11 = vmul.f32 %v2134_v0, %v2134_v0 }
 0x140   :  { %v918_v0 = vsel %vm60_vm1, %v2195_v7, 0.0 }
 0x141   :  { %v1091_v18 = vadd.f32 %v1090_v12, %v1089_v38  ;;  %v893_v20 = vadd.f32 %v892_v14, %v891_v42  ;;  %v1112_v42 = vsel %vm60_vm1, %v992_v3, 0.0 }
 0x143   :  { %v895_v59 = vadd.f32 %v894_v37, %v893_v20  ;;  %v1093_v32 = vadd.f32 %v1092_v55, %v1091_v18  ;;  %v1114_v18 = vsel %vm60_vm1, %v993_v11, 0.0  ;;  %v995_v20 = vmul.f32 %v2195_v7, %v2195_v7 }
 0x145   :  { %v897_v63 = vadd.f32 %v896_v57, %v895_v59  ;;  %v1095_v23 = vadd.f32 %v1094_v9, %v1093_v32  ;;  %v996_v59 = vmul.f32 %v2222_v22, %v2222_v22  ;;  %v1118_v57 = vsel %vm60_vm1, %v995_v20, 0.0 }
 0x146   :  { %v1122_v22 = vsel %vm60_vm1, %v997_v47, 0.0 }
 0x147   :  { %v899_v30 = vadd.f32 %v898_v24, %v897_v63  ;;  %v1097_v52 = vadd.f32 %v1096_v5, %v1095_v23  ;;  %v998_v63 = vmul.f32 %v2277_v17, %v2277_v17  ;;  %v1120_v7 = vsel %vm60_vm1, %v996_v59, 0.0  ;;  %v798_v17 = vld [vmem:[%s2389_s5] sm:$0xff] }
 0x148   :  { %v922_v24 = vsel %vm60_vm1, %v2249_v40, 0.0 }
 0x149   :  { %v901_v56 = vadd.f32 %v900_v61, %v899_v30  ;;  %v1099_v36 = vadd.f32 %v1098_v33, %v1097_v52  ;;  %v1124_v33 = vsel %vm60_vm1, %v998_v63, 0.0 }
 0x14b   :  { %v903_v35 = vadd.f32 %v902_v1, %v901_v56  ;;  %v1101_v28 = vadd.f32 %v1100_v10, %v1099_v36 }
 0x14d   :  { %v905_v60 = vadd.f32 %v904_v8, %v903_v35  ;;  %v1103_v44 = vadd.f32 %v1102_v39, %v1101_v28 }
 0x14f   :  { %v1105_v45 = vadd.f32 %v1104_v41, %v1103_v44  ;;  %v907_v43 = vadd.f32 %v906_v13, %v905_v60  ;;  %v934_v44 = vld [vmem:[%s2390_s6] sm:$0xff] }
 0x151   :  { %v909_v48 = vadd.f32 %v908_v34, %v907_v43  ;;  %v1107_v51 = vadd.f32 %v1106_v46, %v1105_v45 }
 0x153   :  { %v911_v31 = vadd.f32 %v910_v21, %v909_v48  ;;  %v1109_v58 = vadd.f32 %v1108_v53, %v1107_v51 }
 0x155   :  { %v913_v14 = vadd.f32 %v912_v50, %v911_v31  ;;  %v1111_v38 = vadd.f32 %v1110_v29, %v1109_v58 }
 0x157   :  { %v915_v12 = vadd.f32 %v914_v6, %v913_v14  ;;  %v1113_v55 = vadd.f32 %v1112_v42, %v1111_v38 }
 0x159   :  { %v917_v37 = vadd.f32 %v916_v49, %v915_v12  ;;  %v1115_v4 = vadd.f32 %v1114_v18, %v1113_v55 }
 0x15b   :  { %v1117_v32 = vadd.f32 %v1116_v54, %v1115_v4  ;;  %v919_v9 = vadd.f32 %v918_v0, %v917_v37 }
 0x15d   :  { %v1119_v23 = vadd.f32 %v1118_v57, %v1117_v32  ;;  %v921_v5 = vadd.f32 %v920_v62, %v919_v9 }
 0x15f   :  { %v1121_v30 = vadd.f32 %v1120_v7, %v1119_v23  ;;  %v923_v52 = vadd.f32 %v922_v24, %v921_v5 }
 0x161   :  { %v1123_v61 = vadd.f32 %v1122_v22, %v1121_v30  ;;  %v925_v26 = vadd.f32 %v924_v25, %v923_v52 }
 0x163   :  { %v926_v56 = vrot.slane %v925_v26, 4  ;;  %v1125_v36 = vadd.f32 %v1124_v33, %v1123_v61 }
 0x165   :  { %v927_v10 = vadd.f32 %v926_v56, %v925_v26  ;;  %v1126_v1 = vrot.slane %v1125_v36, 4 }
 0x167   :  { %v928_v19 = vrot.slane %v927_v10, 2  ;;  %v1127_v35 = vadd.f32 %v1126_v1, %v1125_v36 }
 0x169   :  { %v929_v28 = vadd.f32 %v928_v19, %v927_v10  ;;  %v1128_v39 = vrot.slane %v1127_v35, 2 }
 0x16b   :  { %v930_v40 = vrot.slane %v929_v28, 1  ;;  %v1129_v8 = vadd.f32 %v1128_v39, %v1127_v35 }
 0x16d   :  { %v931_v27 = vadd.f32 %v930_v40, %v929_v28  ;;  %v1130_v60 = vrot.slane %v1129_v8, 1 }
 0x16f   :  { %v932_v41 = vadd.f32 %v931_v27, %v798_v17  ;;  %v1131_v13 = vadd.f32 %v1130_v60, %v1129_v8 }
 0x171   :  { %933 = vst.msk [vmem:[%s2389_s5] sm:$0xff] %vm60_vm1, %v932_v41  ;;  %v1132_v16 = vadd.f32 %v1131_v13, %v934_v44 }
 0x173   :  { %1133 = vst.msk [vmem:[%s2390_s6] sm:$0xff] %vm60_vm1, %v1132_v16 }

// kernel: bottleneck_forward.7
= control target key start
LH: loop header
LB: loop body
LE: loop exit
PB: predicated region body
PF: predicated region fallthrough
CT: control target
= control target key end

     0   :  { %vm409_vm0 = vcmask 31744   ;;  %s1283_s0 = inlined_call_operand.vmem [shape: f32[512,4], index: 0, kind: input, shape index: {}]   ;;  %s1284_s1 = inlined_call_operand.vmem [shape: f32[1,4], index: 1, kind: input, shape index: {}]   ;;  %s1285_s2 = inlined_call_operand.vmem [shape: f32[1,4], index: 2, kind: input, shape index: {}]   ;;  %s1286_s3 = inlined_call_operand.vmem [shape: f32[512,4], index: 3, kind: input, shape index: {}]   ;;  %s1287_s4 = inlined_call_operand.vmem [shape: f32[512,4], index: 4, kind: output, shape index: {}]  }
   0x1   :  { %v17_v0 = vld [vmem:[%s1283_s0] sm:$0xff]  ;;  %v18_v4 = vld [vmem:[%s1283_s0 + $0x8] sm:$0xff]  ;;  %v19_v5 = vld [vmem:[%s1283_s0 + $0x10] sm:$0xff] }
   0x2   :  { %v511_v1 = vld [vmem:[%s1284_s1] ss:$0 sm:$0xff]  ;;  %v218_v8 = vld [vmem:[%s1286_s3 + $0x8] sm:$0xff]  ;;  %v20_v10 = vld [vmem:[%s1283_s0 + $0x18] sm:$0xff] }
   0x3   :  { %v516_v2 = vld [vmem:[%s1285_s2] ss:$0 sm:$0xff]  ;;  %v85_v3 = vmul.f32 %v511_v1, %v17_v0  ;;  %v86_v7 = vmul.f32 %v511_v1, %v18_v4  ;;  %v87_v9 = vmul.f32 %v511_v1, %v19_v5  ;;  %v219_v12 = vld [vmem:[%s1286_s3 + $0x10] sm:$0xff]  ;;  %v88_v13 = vmul.f32 %v511_v1, %v20_v10  ;;  %v22_v15 = vld [vmem:[%s1283_s0 + $0x28] sm:$0xff] }
   0x4   :  { %v217_v6 = vld [vmem:[%s1286_s3] sm:$0xff]  ;;  %v220_v18 = vld [vmem:[%s1286_s3 + $0x18] sm:$0xff]  ;;  %v90_v20 = vmul.f32 %v511_v1, %v22_v15  ;;  %v23_v21 = vld [vmem:[%s1283_s0 + $0x30] sm:$0xff] }
   0x5   :  { %v153_v11 = vadd.f32 %v516_v2, %v85_v3  ;;  %v21_v14 = vld [vmem:[%s1283_s0 + $0x20] sm:$0xff]  ;;  %v154_v16 = vadd.f32 %v516_v2, %v86_v7  ;;  %v155_v17 = vadd.f32 %v516_v2, %v87_v9  ;;  %v156_v23 = vadd.f32 %v516_v2, %v88_v13  ;;  %v222_v25 = vld [vmem:[%s1286_s3 + $0x28] sm:$0xff]  ;;  %v24_v27 = vld [vmem:[%s1283_s0 + $0x38] sm:$0xff] }
   0x6   :  { %v89_v19 = vmul.f32 %v511_v1, %v21_v14  ;;  %v221_v24 = vld [vmem:[%s1286_s3 + $0x20] sm:$0xff]  ;;  %v91_v26 = vmul.f32 %v511_v1, %v23_v21  ;;  %v158_v31 = vadd.f32 %v516_v2, %v90_v20  ;;  %v223_v32 = vld [vmem:[%s1286_s3 + $0x30] sm:$0xff]  ;;  %v92_v37 = vmul.f32 %v511_v1, %v24_v27  ;;  %v26_v38 = vld [vmem:[%s1283_s0 + $0x48] sm:$0xff] }
   0x7   :  { %v281_v22 = vadd.f32 %v217_v6, %v153_v11  ;;  %v282_v28 = vadd.f32 %v218_v8, %v154_v16  ;;  %v283_v29 = vadd.f32 %v219_v12, %v155_v17  ;;  %v25_v33 = vld [vmem:[%s1283_s0 + $0x40] sm:$0xff]  ;;  %v284_v35 = vadd.f32 %v220_v18, %v156_v23  ;;  %v27_v39 = vld [vmem:[%s1283_s0 + $0x50] sm:$0xff]  ;;  %v224_v44 = vld [vmem:[%s1286_s3 + $0x38] sm:$0xff] }
   0x8   :  { %v157_v30 = vadd.f32 %v516_v2, %v89_v19  ;;  %v159_v36 = vadd.f32 %v516_v2, %v91_v26  ;;  %v286_v43 = vadd.f32 %v222_v25, %v158_v31  ;;  %v28_v45 = vld [vmem:[%s1283_s0 + $0x58] sm:$0xff]  ;;  %v160_v48 = vadd.f32 %v516_v2, %v92_v37  ;;  %v29_v50 = vld [vmem:[%s1283_s0 + $0x60] sm:$0xff]  ;;  %v30_v51 = vld [vmem:[%s1283_s0 + $0x68] sm:$0xff] }
   0x9   :  { %v345_v34 = vmax.f32 %v281_v22, 0.0  ;;  %v346_v40 = vmax.f32 %v282_v28, 0.0  ;;  %v347_v41 = vmax.f32 %v283_v29, 0.0  ;;  %v348_v46 = vmax.f32 %v284_v35, 0.0  ;;  %v225_v54 = vld [vmem:[%s1286_s3 + $0x40] sm:$0xff]  ;;  %v31_v57 = vld [vmem:[%s1283_s0 + $0x70] sm:$0xff] }
   0xa   :  { %v285_v42 = vadd.f32 %v221_v24, %v157_v30  ;;  %v287_v47 = vadd.f32 %v223_v32, %v159_v36  ;;  %v93_v49 = vmul.f32 %v511_v1, %v25_v33  ;;  %v350_v53 = vmax.f32 %v286_v43, 0.0  ;;  %v226_v61 = vld [vmem:[%s1286_s3 + $0x48] sm:$0xff]  ;;  %v227_v62 = vld [vmem:[%s1286_s3 + $0x50] sm:$0xff]  ;;  %v228_v4 = vld [vmem:[%s1286_s3 + $0x58] sm:$0xff] }
   0xb   :  { %410 = vst.msk [vmem:[%s1287_s4] sm:$0xff] %vm409_vm0, %v345_v34  ;;  %v94_v55 = vmul.f32 %v511_v1, %v26_v38  ;;  %v95_v56 = vmul.f32 %v511_v1, %v27_v39  ;;  %v288_v59 = vadd.f32 %v224_v44, %v160_v48  ;;  %v96_v63 = vmul.f32 %v511_v1, %v28_v45  ;;  %v32_v7 = vld [vmem:[%s1283_s0 + $0x78] sm:$0xff]  ;;  %v229_v11 = vld [vmem:[%s1286_s3 + $0x60] sm:$0xff]  ;;  %v230_v12 = vld [vmem:[%s1286_s3 + $0x68] sm:$0xff] }
   0xc   :  { %411 = vst.msk [vmem:[%s1287_s4 + $0x8] sm:$0xff] %vm409_vm0, %v346_v40  ;;  %v349_v52 = vmax.f32 %v285_v42, 0.0  ;;  %v351_v58 = vmax.f32 %v287_v47, 0.0  ;;  %v161_v60 = vadd.f32 %v516_v2, %v93_v49  ;;  %v97_v5 = vmul.f32 %v511_v1, %v29_v50  ;;  %v231_v18 = vld [vmem:[%s1286_s3 + $0x70] sm:$0xff]  ;;  %v33_v19 = vld [vmem:[%s1283_s0 + $0x80] sm:$0xff]  ;;  %v34_v24 = vld [vmem:[%s1283_s0 + $0x88] sm:$0xff] }
   0xd   :  { %412 = vst.msk [vmem:[%s1287_s4 + $0x10] sm:$0xff] %vm409_vm0, %v347_v41  ;;  %v162_v0 = vadd.f32 %v516_v2, %v94_v55  ;;  %v163_v3 = vadd.f32 %v516_v2, %v95_v56  ;;  %v98_v6 = vmul.f32 %v511_v1, %v30_v51  ;;  %v352_v8 = vmax.f32 %v288_v59, 0.0  ;;  %v35_v25 = vld [vmem:[%s1283_s0 + $0x90] sm:$0xff]  ;;  %v232_v30 = vld [vmem:[%s1286_s3 + $0x78] sm:$0xff]  ;;  %v37_v36 = vld [vmem:[%s1283_s0 + $0xa0] sm:$0xff] }
   0xe   :  { %413 = vst.msk [vmem:[%s1287_s4 + $0x18] sm:$0xff] %vm409_vm0, %v348_v46  ;;  %v289_v9 = vadd.f32 %v225_v54, %v161_v60  ;;  %v164_v10 = vadd.f32 %v516_v2, %v96_v63  ;;  %v99_v13 = vmul.f32 %v511_v1, %v31_v57  ;;  %v165_v16 = vadd.f32 %v516_v2, %v97_v5  ;;  %v36_v31 = vld [vmem:[%s1283_s0 + $0x98] sm:$0xff]  ;;  %v38_v37 = vld [vmem:[%s1283_s0 + $0xa8] sm:$0xff]  ;;  %v233_v40 = vld [vmem:[%s1286_s3 + $0x80] sm:$0xff] }
   0xf   :  { %414 = vst.msk [vmem:[%s1287_s4 + $0x20] sm:$0xff] %vm409_vm0, %v349_v52  ;;  %v290_v14 = vadd.f32 %v226_v61, %v162_v0  ;;  %v291_v15 = vadd.f32 %v227_v62, %v163_v3  ;;  %v166_v17 = vadd.f32 %v516_v2, %v98_v6  ;;  %v100_v23 = vmul.f32 %v511_v1, %v32_v7  ;;  %v39_v43 = vld [vmem:[%s1283_s0 + $0xb0] sm:$0xff]  ;;  %v234_v47 = vld [vmem:[%s1286_s3 + $0x88] sm:$0xff]  ;;  %v236_v52 = vld [vmem:[%s1286_s3 + $0x98] sm:$0xff] }
  0x10   :  { %415 = vst.msk [vmem:[%s1287_s4 + $0x28] sm:$0xff] %vm409_vm0, %v350_v53  ;;  %v353_v20 = vmax.f32 %v289_v9, 0.0  ;;  %v292_v21 = vadd.f32 %v228_v4, %v164_v10  ;;  %v167_v22 = vadd.f32 %v516_v2, %v99_v13  ;;  %v293_v28 = vadd.f32 %v229_v11, %v165_v16  ;;  %v235_v48 = vld [vmem:[%s1286_s3 + $0x90] sm:$0xff]  ;;  %v40_v55 = vld [vmem:[%s1283_s0 + $0xb8] sm:$0xff]  ;;  %v237_v59 = vld [vmem:[%s1286_s3 + $0xa0] sm:$0xff] }
  0x11   :  { %416 = vst.msk [vmem:[%s1287_s4 + $0x30] sm:$0xff] %vm409_vm0, %v351_v58  ;;  %v354_v26 = vmax.f32 %v290_v14, 0.0  ;;  %v355_v27 = vmax.f32 %v291_v15, 0.0  ;;  %v294_v29 = vadd.f32 %v230_v12, %v166_v17  ;;  %v168_v34 = vadd.f32 %v516_v2, %v100_v23  ;;  %v238_v60 = vld [vmem:[%s1286_s3 + $0xa8] sm:$0xff]  ;;  %v239_v4 = vld [vmem:[%s1286_s3 + $0xb0] sm:$0xff]  ;;  %v41_v5 = vld [vmem:[%s1283_s0 + $0xc0] sm:$0xff] }
  0x12   :  { %417 = vst.msk [vmem:[%s1287_s4 + $0x38] sm:$0xff] %vm409_vm0, %v352_v8  ;;  %v356_v32 = vmax.f32 %v292_v21, 0.0  ;;  %v295_v33 = vadd.f32 %v231_v18, %v167_v22  ;;  %v101_v35 = vmul.f32 %v511_v1, %v33_v19  ;;  %v357_v38 = vmax.f32 %v293_v28, 0.0  ;;  %v42_v10 = vld [vmem:[%s1283_s0 + $0xc8] sm:$0xff]  ;;  %v43_v11 = vld [vmem:[%s1283_s0 + $0xd0] sm:$0xff]  ;;  %v240_v16 = vld [vmem:[%s1286_s3 + $0xb8] sm:$0xff] }
  0x13   :  { %418 = vst.msk [vmem:[%s1287_s4 + $0x40] sm:$0xff] %vm409_vm0, %v353_v20  ;;  %v358_v39 = vmax.f32 %v294_v29, 0.0  ;;  %v102_v41 = vmul.f32 %v511_v1, %v34_v24  ;;  %v103_v42 = vmul.f32 %v511_v1, %v35_v25  ;;  %v296_v45 = vadd.f32 %v232_v30, %v168_v34  ;;  %v44_v17 = vld [vmem:[%s1283_s0 + $0xd8] sm:$0xff]  ;;  %v45_v22 = vld [vmem:[%s1283_s0 + $0xe0] sm:$0xff]  ;;  %v46_v23 = vld [vmem:[%s1283_s0 + $0xe8] sm:$0xff] }
  0x14   :  { %419 = vst.msk [vmem:[%s1287_s4 + $0x48] sm:$0xff] %vm409_vm0, %v354_v26  ;;  %v359_v44 = vmax.f32 %v295_v33, 0.0  ;;  %v169_v46 = vadd.f32 %v516_v2, %v101_v35  ;;  %v104_v49 = vmul.f32 %v511_v1, %v36_v31  ;;  %v105_v53 = vmul.f32 %v511_v1, %v37_v36  ;;  %v241_v26 = vld [vmem:[%s1286_s3 + $0xc0] sm:$0xff]  ;;  %v47_v29 = vld [vmem:[%s1283_s0 + $0xf0] sm:$0xff]  ;;  %v242_v33 = vld [vmem:[%s1286_s3 + $0xc8] sm:$0xff] }
  0x15   :  { %420 = vst.msk [vmem:[%s1287_s4 + $0x50] sm:$0xff] %vm409_vm0, %v355_v27  ;;  %v170_v50 = vadd.f32 %v516_v2, %v102_v41  ;;  %v171_v51 = vadd.f32 %v516_v2, %v103_v42  ;;  %v106_v54 = vmul.f32 %v511_v1, %v38_v37  ;;  %v360_v56 = vmax.f32 %v296_v45, 0.0  ;;  %v243_v34 = vld [vmem:[%s1286_s3 + $0xd0] sm:$0xff]  ;;  %v48_v41 = vld [vmem:[%s1283_s0 + $0xf8] sm:$0xff]  ;;  %v245_v45 = vld [vmem:[%s1286_s3 + $0xe0] sm:$0xff] }
  0x16   :  { %421 = vst.msk [vmem:[%s1287_s4 + $0x58] sm:$0xff] %vm409_vm0, %v356_v32  ;;  %v297_v57 = vadd.f32 %v233_v40, %v169_v46  ;;  %v172_v58 = vadd.f32 %v516_v2, %v104_v49  ;;  %v107_v61 = vmul.f32 %v511_v1, %v39_v43  ;;  %v173_v0 = vadd.f32 %v516_v2, %v105_v53  ;;  %v246_v46 = vld [vmem:[%s1286_s3 + $0xe8] sm:$0xff]  ;;  %v49_v53 = vld [vmem:[%s1283_s0 + $0x100] sm:$0xff] }
  0x17   :  { %422 = vst.msk [vmem:[%s1287_s4 + $0x60] sm:$0xff] %vm409_vm0, %v357_v38  ;;  %v298_v62 = vadd.f32 %v234_v47, %v170_v50  ;;  %v299_v63 = vadd.f32 %v235_v48, %v171_v51  ;;  %v174_v3 = vadd.f32 %v516_v2, %v106_v54  ;;  %v108_v9 = vmul.f32 %v511_v1, %v40_v55  ;;  %v244_v38 = vld [vmem:[%s1286_s3 + $0xd8] sm:$0xff] }
  0x18   :  { %423 = vst.msk [vmem:[%s1287_s4 + $0x68] sm:$0xff] %vm409_vm0, %v358_v39  ;;  %v361_v6 = vmax.f32 %v297_v57, 0.0  ;;  %v300_v7 = vadd.f32 %v236_v52, %v172_v58  ;;  %v175_v8 = vadd.f32 %v516_v2, %v107_v61  ;;  %v301_v14 = vadd.f32 %v237_v59, %v173_v0  ;;  %v247_v52 = vld [vmem:[%s1286_s3 + $0xf0] sm:$0xff]  ;;  %v50_v58 = vld [vmem:[%s1283_s0 + $0x108] sm:$0xff]  ;;  %v248_v0 = vld [vmem:[%s1286_s3 + $0xf8] sm:$0xff] }
  0x19   :  { %424 = vst.msk [vmem:[%s1287_s4 + $0x70] sm:$0xff] %vm409_vm0, %v359_v44  ;;  %v362_v12 = vmax.f32 %v298_v62, 0.0  ;;  %v363_v13 = vmax.f32 %v299_v63, 0.0  ;;  %v302_v15 = vadd.f32 %v238_v60, %v174_v3  ;;  %v176_v20 = vadd.f32 %v516_v2, %v108_v9  ;;  %v51_v59 = vld [vmem:[%s1283_s0 + $0x110] sm:$0xff]  ;;  %v52_v3 = vld [vmem:[%s1283_s0 + $0x118] sm:$0xff]  ;;  %v54_v9 = vld [vmem:[%s1283_s0 + $0x128] sm:$0xff] }
  0x1a   :  { %425 = vst.msk [vmem:[%s1287_s4 + $0x78] sm:$0xff] %vm409_vm0, %v360_v56  ;;  %v364_v18 = vmax.f32 %v300_v7, 0.0  ;;  %v303_v19 = vadd.f32 %v239_v4, %v175_v8  ;;  %v109_v21 = vmul.f32 %v511_v1, %v41_v5  ;;  %v365_v24 = vmax.f32 %v301_v14, 0.0  ;;  %v53_v8 = vld [vmem:[%s1283_s0 + $0x120] sm:$0xff] }
  0x1b   :  { %426 = vst.msk [vmem:[%s1287_s4 + $0x80] sm:$0xff] %vm409_vm0, %v361_v6  ;;  %v366_v25 = vmax.f32 %v302_v15, 0.0  ;;  %v110_v27 = vmul.f32 %v511_v1, %v42_v10  ;;  %v111_v28 = vmul.f32 %v511_v1, %v43_v11  ;;  %v304_v31 = vadd.f32 %v240_v16, %v176_v20  ;;  %v55_v15 = vld [vmem:[%s1283_s0 + $0x130] sm:$0xff] }
  0x1c   :  { %427 = vst.msk [vmem:[%s1287_s4 + $0x88] sm:$0xff] %vm409_vm0, %v362_v12  ;;  %v367_v30 = vmax.f32 %v303_v19, 0.0  ;;  %v177_v32 = vadd.f32 %v516_v2, %v109_v21  ;;  %v112_v35 = vmul.f32 %v511_v1, %v44_v17  ;;  %v113_v39 = vmul.f32 %v511_v1, %v45_v22  ;;  %v249_v12 = vld [vmem:[%s1286_s3 + $0x100] sm:$0xff]  ;;  %v250_v19 = vld [vmem:[%s1286_s3 + $0x108] sm:$0xff]  ;;  %v251_v20 = vld [vmem:[%s1286_s3 + $0x110] sm:$0xff] }
  0x1d   :  { %428 = vst.msk [vmem:[%s1287_s4 + $0x90] sm:$0xff] %vm409_vm0, %v363_v13  ;;  %v178_v36 = vadd.f32 %v516_v2, %v110_v27  ;;  %v179_v37 = vadd.f32 %v516_v2, %v111_v28  ;;  %v114_v40 = vmul.f32 %v511_v1, %v46_v23  ;;  %v368_v42 = vmax.f32 %v304_v31, 0.0  ;;  %v56_v27 = vld [vmem:[%s1283_s0 + $0x138] sm:$0xff]  ;;  %v253_v31 = vld [vmem:[%s1286_s3 + $0x120] sm:$0xff] }
  0x1e   :  { %429 = vst.msk [vmem:[%s1287_s4 + $0x98] sm:$0xff] %vm409_vm0, %v364_v18  ;;  %v305_v43 = vadd.f32 %v241_v26, %v177_v32  ;;  %v180_v44 = vadd.f32 %v516_v2, %v112_v35  ;;  %v115_v47 = vmul.f32 %v511_v1, %v47_v29  ;;  %v181_v50 = vadd.f32 %v516_v2, %v113_v39  ;;  %v254_v32 = vld [vmem:[%s1286_s3 + $0x128] sm:$0xff]  ;;  %v57_v39 = vld [vmem:[%s1283_s0 + $0x140] sm:$0xff] }
  0x1f   :  { %430 = vst.msk [vmem:[%s1287_s4 + $0xa0] sm:$0xff] %vm409_vm0, %v365_v24  ;;  %v306_v48 = vadd.f32 %v242_v33, %v178_v36  ;;  %v307_v49 = vadd.f32 %v243_v34, %v179_v37  ;;  %v182_v51 = vadd.f32 %v516_v2, %v114_v40  ;;  %v116_v57 = vmul.f32 %v511_v1, %v48_v41  ;;  %v252_v24 = vld [vmem:[%s1286_s3 + $0x118] sm:$0xff] }
  0x20   :  { %431 = vst.msk [vmem:[%s1287_s4 + $0xa8] sm:$0xff] %vm409_vm0, %v366_v25  ;;  %v369_v54 = vmax.f32 %v305_v43, 0.0  ;;  %v308_v55 = vadd.f32 %v244_v38, %v180_v44  ;;  %v183_v56 = vadd.f32 %v516_v2, %v115_v47  ;;  %v309_v62 = vadd.f32 %v245_v45, %v181_v50  ;;  %v255_v38 = vld [vmem:[%s1286_s3 + $0x130] sm:$0xff]  ;;  %v58_v44 = vld [vmem:[%s1283_s0 + $0x148] sm:$0xff]  ;;  %v256_v50 = vld [vmem:[%s1286_s3 + $0x138] sm:$0xff] }
  0x21   :  { %432 = vst.msk [vmem:[%s1287_s4 + $0xb0] sm:$0xff] %vm409_vm0, %v367_v30  ;;  %v370_v60 = vmax.f32 %v306_v48, 0.0  ;;  %v371_v61 = vmax.f32 %v307_v49, 0.0  ;;  %v310_v63 = vadd.f32 %v246_v46, %v182_v51  ;;  %v184_v6 = vadd.f32 %v516_v2, %v116_v57  ;;  %v59_v45 = vld [vmem:[%s1283_s0 + $0x150] sm:$0xff]  ;;  %v60_v51 = vld [vmem:[%s1283_s0 + $0x158] sm:$0xff]  ;;  %v62_v57 = vld [vmem:[%s1283_s0 + $0x168] sm:$0xff] }
  0x22   :  { %433 = vst.msk [vmem:[%s1287_s4 + $0xb8] sm:$0xff] %vm409_vm0, %v368_v42  ;;  %v372_v4 = vmax.f32 %v308_v55, 0.0  ;;  %v311_v5 = vadd.f32 %v247_v52, %v183_v56  ;;  %v117_v7 = vmul.f32 %v511_v1, %v49_v53  ;;  %v373_v10 = vmax.f32 %v309_v62, 0.0  ;;  %v61_v56 = vld [vmem:[%s1283_s0 + $0x160] sm:$0xff] }
  0x23   :  { %434 = vst.msk [vmem:[%s1287_s4 + $0xc0] sm:$0xff] %vm409_vm0, %v369_v54  ;;  %v374_v11 = vmax.f32 %v310_v63, 0.0  ;;  %v118_v13 = vmul.f32 %v511_v1, %v50_v58  ;;  %v119_v14 = vmul.f32 %v511_v1, %v51_v59  ;;  %v312_v17 = vadd.f32 %v248_v0, %v184_v6  ;;  %v63_v63 = vld [vmem:[%s1283_s0 + $0x170] sm:$0xff] }
  0x24   :  { %435 = vst.msk [vmem:[%s1287_s4 + $0xc8] sm:$0xff] %vm409_vm0, %v370_v60  ;;  %v375_v16 = vmax.f32 %v311_v5, 0.0  ;;  %v185_v18 = vadd.f32 %v516_v2, %v117_v7  ;;  %v120_v21 = vmul.f32 %v511_v1, %v52_v3  ;;  %v121_v25 = vmul.f32 %v511_v1, %v53_v8  ;;  %v257_v60 = vld [vmem:[%s1286_s3 + $0x140] sm:$0xff]  ;;  %v258_v5 = vld [vmem:[%s1286_s3 + $0x148] sm:$0xff]  ;;  %v259_v6 = vld [vmem:[%s1286_s3 + $0x150] sm:$0xff] }
  0x25   :  { %436 = vst.msk [vmem:[%s1287_s4 + $0xd0] sm:$0xff] %vm409_vm0, %v371_v61  ;;  %v186_v22 = vadd.f32 %v516_v2, %v118_v13  ;;  %v187_v23 = vadd.f32 %v516_v2, %v119_v14  ;;  %v122_v26 = vmul.f32 %v511_v1, %v54_v9  ;;  %v376_v28 = vmax.f32 %v312_v17, 0.0  ;;  %v64_v13 = vld [vmem:[%s1283_s0 + $0x178] sm:$0xff]  ;;  %v261_v17 = vld [vmem:[%s1286_s3 + $0x160] sm:$0xff] }
  0x26   :  { %437 = vst.msk [vmem:[%s1287_s4 + $0xd8] sm:$0xff] %vm409_vm0, %v372_v4  ;;  %v313_v29 = vadd.f32 %v249_v12, %v185_v18  ;;  %v188_v30 = vadd.f32 %v516_v2, %v120_v21  ;;  %v123_v33 = vmul.f32 %v511_v1, %v55_v15  ;;  %v189_v36 = vadd.f32 %v516_v2, %v121_v25  ;;  %v262_v18 = vld [vmem:[%s1286_s3 + $0x168] sm:$0xff]  ;;  %v65_v25 = vld [vmem:[%s1283_s0 + $0x180] sm:$0xff] }
  0x27   :  { %438 = vst.msk [vmem:[%s1287_s4 + $0xe0] sm:$0xff] %vm409_vm0, %v373_v10  ;;  %v314_v34 = vadd.f32 %v250_v19, %v186_v22  ;;  %v315_v35 = vadd.f32 %v251_v20, %v187_v23  ;;  %v190_v37 = vadd.f32 %v516_v2, %v122_v26  ;;  %v124_v43 = vmul.f32 %v511_v1, %v56_v27  ;;  %v260_v10 = vld [vmem:[%s1286_s3 + $0x158] sm:$0xff] }
  0x28   :  { %439 = vst.msk [vmem:[%s1287_s4 + $0xe8] sm:$0xff] %vm409_vm0, %v374_v11  ;;  %v377_v40 = vmax.f32 %v313_v29, 0.0  ;;  %v316_v41 = vadd.f32 %v252_v24, %v188_v30  ;;  %v191_v42 = vadd.f32 %v516_v2, %v123_v33  ;;  %v317_v48 = vadd.f32 %v253_v31, %v189_v36  ;;  %v263_v24 = vld [vmem:[%s1286_s3 + $0x170] sm:$0xff]  ;;  %v66_v30 = vld [vmem:[%s1283_s0 + $0x188] sm:$0xff]  ;;  %v264_v36 = vld [vmem:[%s1286_s3 + $0x178] sm:$0xff] }
  0x29   :  { %440 = vst.msk [vmem:[%s1287_s4 + $0xf0] sm:$0xff] %vm409_vm0, %v375_v16  ;;  %v378_v46 = vmax.f32 %v314_v34, 0.0  ;;  %v379_v47 = vmax.f32 %v315_v35, 0.0  ;;  %v318_v49 = vadd.f32 %v254_v32, %v190_v37  ;;  %v192_v54 = vadd.f32 %v516_v2, %v124_v43  ;;  %v67_v31 = vld [vmem:[%s1283_s0 + $0x190] sm:$0xff]  ;;  %v68_v37 = vld [vmem:[%s1283_s0 + $0x198] sm:$0xff]  ;;  %v70_v43 = vld [vmem:[%s1283_s0 + $0x1a8] sm:$0xff] }
  0x2a   :  { %441 = vst.msk [vmem:[%s1287_s4 + $0xf8] sm:$0xff] %vm409_vm0, %v376_v28  ;;  %v380_v52 = vmax.f32 %v316_v41, 0.0  ;;  %v319_v53 = vadd.f32 %v255_v38, %v191_v42  ;;  %v125_v55 = vmul.f32 %v511_v1, %v57_v39  ;;  %v381_v58 = vmax.f32 %v317_v48, 0.0  ;;  %v69_v42 = vld [vmem:[%s1283_s0 + $0x1a0] sm:$0xff] }
  0x2b   :  { %442 = vst.msk [vmem:[%s1287_s4 + $0x100] sm:$0xff] %vm409_vm0, %v377_v40  ;;  %v382_v59 = vmax.f32 %v318_v49, 0.0  ;;  %v126_v61 = vmul.f32 %v511_v1, %v58_v44  ;;  %v127_v62 = vmul.f32 %v511_v1, %v59_v45  ;;  %v320_v3 = vadd.f32 %v256_v50, %v192_v54  ;;  %v71_v49 = vld [vmem:[%s1283_s0 + $0x1b0] sm:$0xff] }
  0x2c   :  { %443 = vst.msk [vmem:[%s1287_s4 + $0x108] sm:$0xff] %vm409_vm0, %v378_v46  ;;  %v383_v0 = vmax.f32 %v319_v53, 0.0  ;;  %v193_v4 = vadd.f32 %v516_v2, %v125_v55  ;;  %v128_v7 = vmul.f32 %v511_v1, %v60_v51  ;;  %v129_v11 = vmul.f32 %v511_v1, %v61_v56  ;;  %v265_v46 = vld [vmem:[%s1286_s3 + $0x180] sm:$0xff]  ;;  %v266_v53 = vld [vmem:[%s1286_s3 + $0x188] sm:$0xff]  ;;  %v267_v54 = vld [vmem:[%s1286_s3 + $0x190] sm:$0xff] }
  0x2d   :  { %444 = vst.msk [vmem:[%s1287_s4 + $0x110] sm:$0xff] %vm409_vm0, %v379_v47  ;;  %v194_v8 = vadd.f32 %v516_v2, %v126_v61  ;;  %v195_v9 = vadd.f32 %v516_v2, %v127_v62  ;;  %v130_v12 = vmul.f32 %v511_v1, %v62_v57  ;;  %v384_v14 = vmax.f32 %v320_v3, 0.0  ;;  %v72_v61 = vld [vmem:[%s1283_s0 + $0x1b8] sm:$0xff]  ;;  %v269_v3 = vld [vmem:[%s1286_s3 + $0x1a0] sm:$0xff] }
  0x2e   :  { %445 = vst.msk [vmem:[%s1287_s4 + $0x118] sm:$0xff] %vm409_vm0, %v380_v52  ;;  %v321_v15 = vadd.f32 %v257_v60, %v193_v4  ;;  %v196_v16 = vadd.f32 %v516_v2, %v128_v7  ;;  %v131_v19 = vmul.f32 %v511_v1, %v63_v63  ;;  %v197_v22 = vadd.f32 %v516_v2, %v129_v11  ;;  %v270_v4 = vld [vmem:[%s1286_s3 + $0x1a8] sm:$0xff]  ;;  %v73_v11 = vld [vmem:[%s1283_s0 + $0x1c0] sm:$0xff] }
  0x2f   :  { %446 = vst.msk [vmem:[%s1287_s4 + $0x120] sm:$0xff] %vm409_vm0, %v381_v58  ;;  %v322_v20 = vadd.f32 %v258_v5, %v194_v8  ;;  %v323_v21 = vadd.f32 %v259_v6, %v195_v9  ;;  %v198_v23 = vadd.f32 %v516_v2, %v130_v12  ;;  %v132_v29 = vmul.f32 %v511_v1, %v64_v13  ;;  %v268_v58 = vld [vmem:[%s1286_s3 + $0x198] sm:$0xff] }
  0x30   :  { %447 = vst.msk [vmem:[%s1287_s4 + $0x128] sm:$0xff] %vm409_vm0, %v382_v59  ;;  %v385_v26 = vmax.f32 %v321_v15, 0.0  ;;  %v324_v27 = vadd.f32 %v260_v10, %v196_v16  ;;  %v199_v28 = vadd.f32 %v516_v2, %v131_v19  ;;  %v325_v34 = vadd.f32 %v261_v17, %v197_v22  ;;  %v271_v10 = vld [vmem:[%s1286_s3 + $0x1b0] sm:$0xff]  ;;  %v74_v16 = vld [vmem:[%s1283_s0 + $0x1c8] sm:$0xff]  ;;  %v272_v22 = vld [vmem:[%s1286_s3 + $0x1b8] sm:$0xff] }
  0x31   :  { %448 = vst.msk [vmem:[%s1287_s4 + $0x130] sm:$0xff] %vm409_vm0, %v383_v0  ;;  %v386_v32 = vmax.f32 %v322_v20, 0.0  ;;  %v387_v33 = vmax.f32 %v323_v21, 0.0  ;;  %v326_v35 = vadd.f32 %v262_v18, %v198_v23  ;;  %v200_v40 = vadd.f32 %v516_v2, %v132_v29  ;;  %v75_v17 = vld [vmem:[%s1283_s0 + $0x1d0] sm:$0xff]  ;;  %v76_v23 = vld [vmem:[%s1283_s0 + $0x1d8] sm:$0xff]  ;;  %v78_v29 = vld [vmem:[%s1283_s0 + $0x1e8] sm:$0xff] }
  0x32   :  { %449 = vst.msk [vmem:[%s1287_s4 + $0x138] sm:$0xff] %vm409_vm0, %v384_v14  ;;  %v388_v38 = vmax.f32 %v324_v27, 0.0  ;;  %v327_v39 = vadd.f32 %v263_v24, %v199_v28  ;;  %v133_v41 = vmul.f32 %v511_v1, %v65_v25  ;;  %v389_v44 = vmax.f32 %v325_v34, 0.0  ;;  %v77_v28 = vld [vmem:[%s1283_s0 + $0x1e0] sm:$0xff] }
  0x33   :  { %450 = vst.msk [vmem:[%s1287_s4 + $0x140] sm:$0xff] %vm409_vm0, %v385_v26  ;;  %v390_v45 = vmax.f32 %v326_v35, 0.0  ;;  %v134_v47 = vmul.f32 %v511_v1, %v66_v30  ;;  %v135_v48 = vmul.f32 %v511_v1, %v67_v31  ;;  %v328_v51 = vadd.f32 %v264_v36, %v200_v40  ;;  %v79_v35 = vld [vmem:[%s1283_s0 + $0x1f0] sm:$0xff] }
  0x34   :  { %451 = vst.msk [vmem:[%s1287_s4 + $0x148] sm:$0xff] %vm409_vm0, %v386_v32  ;;  %v391_v50 = vmax.f32 %v327_v39, 0.0  ;;  %v201_v52 = vadd.f32 %v516_v2, %v133_v41  ;;  %v136_v55 = vmul.f32 %v511_v1, %v68_v37  ;;  %v137_v59 = vmul.f32 %v511_v1, %v69_v42  ;;  %v273_v32 = vld [vmem:[%s1286_s3 + $0x1c0] sm:$0xff]  ;;  %v274_v39 = vld [vmem:[%s1286_s3 + $0x1c8] sm:$0xff]  ;;  %v275_v40 = vld [vmem:[%s1286_s3 + $0x1d0] sm:$0xff] }
  0x35   :  { %452 = vst.msk [vmem:[%s1287_s4 + $0x150] sm:$0xff] %vm409_vm0, %v387_v33  ;;  %v202_v56 = vadd.f32 %v516_v2, %v134_v47  ;;  %v203_v57 = vadd.f32 %v516_v2, %v135_v48  ;;  %v138_v60 = vmul.f32 %v511_v1, %v70_v43  ;;  %v392_v62 = vmax.f32 %v328_v51, 0.0  ;;  %v80_v47 = vld [vmem:[%s1283_s0 + $0x1f8] sm:$0xff]  ;;  %v277_v51 = vld [vmem:[%s1286_s3 + $0x1e0] sm:$0xff] }
  0x36   :  { %453 = vst.msk [vmem:[%s1287_s4 + $0x158] sm:$0xff] %vm409_vm0, %v388_v38  ;;  %v329_v63 = vadd.f32 %v265_v46, %v201_v52  ;;  %v204_v0 = vadd.f32 %v516_v2, %v136_v55  ;;  %v139_v5 = vmul.f32 %v511_v1, %v71_v49  ;;  %v205_v8 = vadd.f32 %v516_v2, %v137_v59  ;;  %v278_v52 = vld [vmem:[%s1286_s3 + $0x1e8] sm:$0xff] }
  0x37   :  { %454 = vst.msk [vmem:[%s1287_s4 + $0x160] sm:$0xff] %vm409_vm0, %v389_v44  ;;  %v330_v6 = vadd.f32 %v266_v53, %v202_v56  ;;  %v331_v7 = vadd.f32 %v267_v54, %v203_v57  ;;  %v206_v9 = vadd.f32 %v516_v2, %v138_v60  ;;  %v140_v15 = vmul.f32 %v511_v1, %v72_v61  ;;  %v276_v44 = vld [vmem:[%s1286_s3 + $0x1d8] sm:$0xff] }
  0x38   :  { %455 = vst.msk [vmem:[%s1287_s4 + $0x168] sm:$0xff] %vm409_vm0, %v390_v45  ;;  %v393_v12 = vmax.f32 %v329_v63, 0.0  ;;  %v332_v13 = vadd.f32 %v268_v58, %v204_v0  ;;  %v207_v14 = vadd.f32 %v516_v2, %v139_v5  ;;  %v333_v20 = vadd.f32 %v269_v3, %v205_v8  ;;  %v279_v58 = vld [vmem:[%s1286_s3 + $0x1f0] sm:$0xff]  ;;  %v280_v5 = vld [vmem:[%s1286_s3 + $0x1f8] sm:$0xff] }
  0x39   :  { %456 = vst.msk [vmem:[%s1287_s4 + $0x170] sm:$0xff] %vm409_vm0, %v391_v50  ;;  %v394_v18 = vmax.f32 %v330_v6, 0.0  ;;  %v395_v19 = vmax.f32 %v331_v7, 0.0  ;;  %v334_v21 = vadd.f32 %v270_v4, %v206_v9  ;;  %v208_v26 = vadd.f32 %v516_v2, %v140_v15 }
  0x3a   :  { %457 = vst.msk [vmem:[%s1287_s4 + $0x178] sm:$0xff] %vm409_vm0, %v392_v62  ;;  %v396_v24 = vmax.f32 %v332_v13, 0.0  ;;  %v335_v25 = vadd.f32 %v271_v10, %v207_v14  ;;  %v141_v27 = vmul.f32 %v511_v1, %v73_v11  ;;  %v397_v30 = vmax.f32 %v333_v20, 0.0 }
  0x3b   :  { %458 = vst.msk [vmem:[%s1287_s4 + $0x180] sm:$0xff] %vm409_vm0, %v393_v12  ;;  %v398_v31 = vmax.f32 %v334_v21, 0.0  ;;  %v142_v33 = vmul.f32 %v511_v1, %v74_v16  ;;  %v143_v34 = vmul.f32 %v511_v1, %v75_v17  ;;  %v336_v37 = vadd.f32 %v272_v22, %v208_v26 }
  0x3c   :  { %459 = vst.msk [vmem:[%s1287_s4 + $0x188] sm:$0xff] %vm409_vm0, %v394_v18  ;;  %v399_v36 = vmax.f32 %v335_v25, 0.0  ;;  %v209_v38 = vadd.f32 %v516_v2, %v141_v27  ;;  %v144_v41 = vmul.f32 %v511_v1, %v76_v23  ;;  %v145_v45 = vmul.f32 %v511_v1, %v77_v28 }
  0x3d   :  { %460 = vst.msk [vmem:[%s1287_s4 + $0x190] sm:$0xff] %vm409_vm0, %v395_v19  ;;  %v210_v42 = vadd.f32 %v516_v2, %v142_v33  ;;  %v211_v43 = vadd.f32 %v516_v2, %v143_v34  ;;  %v146_v46 = vmul.f32 %v511_v1, %v78_v29  ;;  %v400_v48 = vmax.f32 %v336_v37, 0.0 }
  0x3e   :  { %461 = vst.msk [vmem:[%s1287_s4 + $0x198] sm:$0xff] %vm409_vm0, %v396_v24  ;;  %v337_v49 = vadd.f32 %v273_v32, %v209_v38  ;;  %v212_v50 = vadd.f32 %v516_v2, %v144_v41  ;;  %v147_v53 = vmul.f32 %v511_v1, %v79_v35  ;;  %v213_v56 = vadd.f32 %v516_v2, %v145_v45 }
  0x3f   :  { %462 = vst.msk [vmem:[%s1287_s4 + $0x1a0] sm:$0xff] %vm409_vm0, %v397_v30  ;;  %v338_v54 = vadd.f32 %v274_v39, %v210_v42  ;;  %v339_v55 = vadd.f32 %v275_v40, %v211_v43  ;;  %v214_v57 = vadd.f32 %v516_v2, %v146_v46  ;;  %v148_v62 = vmul.f32 %v511_v1, %v80_v47 }
  0x40   :  { %463 = vst.msk [vmem:[%s1287_s4 + $0x1a8] sm:$0xff] %vm409_vm0, %v398_v31  ;;  %v401_v59 = vmax.f32 %v337_v49, 0.0  ;;  %v340_v60 = vadd.f32 %v276_v44, %v212_v50  ;;  %v215_v61 = vadd.f32 %v516_v2, %v147_v53  ;;  %v341_v3 = vadd.f32 %v277_v51, %v213_v56 }
  0x41   :  { %464 = vst.msk [vmem:[%s1287_s4 + $0x1b0] sm:$0xff] %vm409_vm0, %v399_v36  ;;  %v402_v63 = vmax.f32 %v338_v54, 0.0  ;;  %v403_v0 = vmax.f32 %v339_v55, 0.0  ;;  %v342_v4 = vadd.f32 %v278_v52, %v214_v57  ;;  %v216_v7 = vadd.f32 %v516_v2, %v148_v62 }
  0x42   :  { %465 = vst.msk [vmem:[%s1287_s4 + $0x1b8] sm:$0xff] %vm409_vm0, %v400_v48  ;;  %v404_v6 = vmax.f32 %v340_v60, 0.0  ;;  %v343_v1 = vadd.f32 %v279_v58, %v215_v61  ;;  %v405_v8 = vmax.f32 %v341_v3, 0.0 }
  0x43   :  { %466 = vst.msk [vmem:[%s1287_s4 + $0x1c0] sm:$0xff] %vm409_vm0, %v401_v59  ;;  %v406_v9 = vmax.f32 %v342_v4, 0.0  ;;  %v344_v11 = vadd.f32 %v280_v5, %v216_v7 }
  0x44   :  { %467 = vst.msk [vmem:[%s1287_s4 + $0x1c8] sm:$0xff] %vm409_vm0, %v402_v63  ;;  %v407_v10 = vmax.f32 %v343_v1, 0.0 }
  0x45   :  { %468 = vst.msk [vmem:[%s1287_s4 + $0x1d0] sm:$0xff] %vm409_vm0, %v403_v0  ;;  %v408_v2 = vmax.f32 %v344_v11, 0.0 }
  0x46   :  { %469 = vst.msk [vmem:[%s1287_s4 + $0x1d8] sm:$0xff] %vm409_vm0, %v404_v6 }
  0x47   :  { %470 = vst.msk [vmem:[%s1287_s4 + $0x1e0] sm:$0xff] %vm409_vm0, %v405_v8 }
  0x48   :  { %471 = vst.msk [vmem:[%s1287_s4 + $0x1e8] sm:$0xff] %vm409_vm0, %v406_v9 }
  0x49   :  { %472 = vst.msk [vmem:[%s1287_s4 + $0x1f0] sm:$0xff] %vm409_vm0, %v407_v10 }
  0x4a   :  { %473 = vst.msk [vmem:[%s1287_s4 + $0x1f8] sm:$0xff] %vm409_vm0, %v408_v2 }

// kernel: bottleneck_forward.5
= control target key start
LH: loop header
LB: loop body
LE: loop exit
PB: predicated region body
PF: predicated region fallthrough
CT: control target
= control target key end

     0   :  { %vm574_vm0 = vcmask 1040384   ;;  %vm923_vm1 = vcmask 1046528   ;;  %s4315_s29 = smov 4   ;;  %vm1276_vm2 = vcmask 1045504   ;;  %s4319_s24 = smov 20   ;;  %vm3547_vm3 = vcmask 1043456   ;;  %s9251_s0 = inlined_call_operand.vmem [shape: f32[2,16,16,4], index: 0, kind: input, shape index: {}, may-alias: {0,1,2}]   ;;  %s9252_s1 = inlined_call_operand.vmem [shape: f32[2,16,16,4], index: 1, kind: input, shape index: {}, may-alias: {0,1,2}]   ;;  %s9253_s2 = inlined_call_operand.vmem [shape: f32[2,16,16,4], index: 2, kind: input, shape index: {}, may-alias: {0,1,2}]   ;;  %s9254_s3 = inlined_call_operand.vmem [shape: f32[1,4], index: 3, kind: input, shape index: {}]   ;;  %s9255_s4 = inlined_call_operand.vmem [shape: f32[1,4], index: 4, kind: input, shape index: {}]   ;;  %s9256_s5 = inlined_call_operand.vmem [shape: f32[36,4], index: 5, kind: input, shape index: {}]   ;;  %s9257_s6 = inlined_call_operand.vmem [shape: f32[2,16,16,4], index: 6, kind: output, shape index: {0}]   ;;  %s9258_s7 = inlined_call_operand.vmem [shape: f32[1,8,4], index: 7, kind: output, shape index: {1}]   ;;  %s9259_s8 = inlined_call_operand.vmem [shape: f32[1,8,4], index: 8, kind: output, shape index: {2}]  }
   0x1   :  { %v201_v0 = vld [vmem:[%s9252_s1 + $0x20] sm:$0xff]  ;;  %v202_v1 = vld [vmem:[%s9252_s1 + $0x28] sm:$0xff]  ;;  %v199_v4 = vld [vmem:[%s9252_s1 + $0x10] sm:$0xff]  ;;  %s4320_s25 = smov 24   ;;  %s4321_s9 = smov 28   ;;  %vm192_vm4 = vcmask 31744  }
   0x2   :  { %v4378_v2 = vld [vmem:[%s9254_s3] ss:$0 sm:$0xff]  ;;  %v200_v5 = vld [vmem:[%s9252_s1 + $0x18] sm:$0xff]  ;;  %v198_v11 = vld [vmem:[%s9252_s1 + $0x8] sm:$0xff]  ;;  %s4322_s10 = smov 32   ;;  %vm2959_vm5 = vcmask 97280  }
   0x3   :  { %v4383_v3 = vld [vmem:[%s9255_s4] ss:$0 sm:$0xff]  ;;  %v268_v7 = vmul.f32 %v4378_v2, %v201_v0  ;;  %v269_v8 = vmul.f32 %v4378_v2, %v202_v1  ;;  %v266_v9 = vmul.f32 %v4378_v2, %v199_v4  ;;  %v267_v10 = vmul.f32 %v4378_v2, %v200_v5  ;;  %v60_v13 = vld [vmem:[%s9251_s0 + $0x8] sm:$0xff]  ;;  %v203_v54 = vld [vmem:[%s9252_s1 + $0x30] sm:$0xff] }
   0x4   :  { %v197_v6 = vld [vmem:[%s9252_s1] sm:$0xff]  ;;  %v265_v15 = vmul.f32 %v4378_v2, %v198_v11  ;;  %v464_v17 = vmul.f32 %v4378_v2, %v60_v13  ;;  %v204_v55 = vld [vmem:[%s9252_s1 + $0x38] sm:$0xff]  ;;  %v270_v0 = vmul.f32 %v4378_v2, %v203_v54  ;;  %v206_v5 = vld [vmem:[%s9252_s1 + $0x48] sm:$0xff]  ;;  %vm2894_vm6 = vcmask 64512  }
   0x5   :  { %v58_v12 = vld [vmem:[%s9251_s0] sm:$0xff]  ;;  %v264_v14 = vmul.f32 %v4378_v2, %v197_v6  ;;  %v335_v18 = vadd.f32 %v4383_v3, %v268_v7  ;;  %v336_v19 = vadd.f32 %v4383_v3, %v269_v8  ;;  %v333_v20 = vadd.f32 %v4383_v3, %v266_v9 }
   0x6   :  { %v463_v16 = vmul.f32 %v4378_v2, %v58_v12  ;;  %v334_v21 = vadd.f32 %v4383_v3, %v267_v10  ;;  %v332_v23 = vadd.f32 %v4383_v3, %v265_v15  ;;  %v468_v25 = vadd.f32 %v4383_v3, %v464_v17  ;;  %v205_v4 = vld [vmem:[%s9252_s1 + $0x40] sm:$0xff]  ;;  %v210_v17 = vld [vmem:[%s9252_s1 + $0x68] sm:$0xff] }
   0x7   :  { %v331_v22 = vadd.f32 %v4383_v3, %v264_v14  ;;  %v399_v26 = vmax.f32 %v335_v18, 0.0  ;;  %v400_v27 = vmax.f32 %v336_v19, 0.0  ;;  %v397_v28 = vmax.f32 %v333_v20, 0.0  ;;  %v209_v13 = vld [vmem:[%s9252_s1 + $0x60] sm:$0xff] }
   0x8   :  { %v467_v24 = vadd.f32 %v4383_v3, %v463_v16  ;;  %v398_v29 = vmax.f32 %v334_v21, 0.0  ;;  %v396_v31 = vmax.f32 %v332_v23, 0.0  ;;  %v472_v33 = vmax.f32 %v468_v25, 0.0 }
   0x9   :  { %v395_v30 = vmax.f32 %v331_v22, 0.0  ;;  %v584_v34 = vrot.slane %v399_v26, 7  ;;  %v585_v35 = vrot.slane %v400_v27, 7  ;;  %v581_v36 = vrot.slane %v397_v28, 7  ;;  %v207_v26 = vld [vmem:[%s9252_s1 + $0x50] sm:$0xff] }
   0xa   :  { %v471_v32 = vmax.f32 %v467_v24, 0.0  ;;  %v582_v37 = vrot.slane %v398_v29, 7  ;;  %v579_v39 = vrot.slane %v396_v31, 7  ;;  %v479_v41 = vmul.f32 0.0, %v472_v33 }
   0xb   :  { %v578_v38 = vrot.slane %v395_v30, 7  ;;  %v4420_v42 = vsel %vm574_vm0, %v584_v34, %v585_v35  ;;  %v4423_v43 = vsel %vm574_vm0, 0.0, %v584_v34  ;;  %v4429_v45 = vsel %vm574_vm0, 0.0, %v581_v36 }
   0xc   :  { %v478_v40 = vmul.f32 0.0, %v471_v32  ;;  %v4426_v44 = vsel %vm574_vm0, %v581_v36, %v582_v37  ;;  %v939_v46 = vrot.slane %v4423_v43, 1  ;;  %v940_v47 = vrot.slane %v4420_v42, 1 }
   0xd   :  { %v934_v48 = vrot.slane %v4429_v45, 1  ;;  %v935_v49 = vrot.slane %v4426_v44, 1  ;;  %v4436_v50 = vsel %vm574_vm0, %v578_v38, %v579_v39  ;;  %v4439_v51 = vsel %vm574_vm0, 0.0, %v578_v38 }
   0xe   :  { %9626 = vst [vmem:[#allocation4_spill] sm:$0xff] %v4436_v50  ;;  %v4442_v52 = vsel %vm574_vm0, %v582_v37, 0.0  ;;  %v4445_v53 = vsel %vm574_vm0, %v579_v39, 0.0  ;;  %v4456_v56 = vsel %vm923_vm1, %v939_v46, %v940_v47  ;;  %v929_v58 = vrot.slane %v4439_v51, 1 }
   0xf   :  { %9627 = vst [vmem:[#allocation5_spill] sm:$0xff] %v4439_v51  ;;  %v4459_v57 = vsel %vm923_vm1, %v934_v48, %v935_v49  ;;  %v930_v59 = vrot.slane %v4436_v50, 1  ;;  %1096 = vrot.lane.b32.xlu0 %v4456_v56, %s4315_s29  ;;  %v937_v60 = vrot.slane %v4442_v52, 1  ;;  %v575_v61 = vrot.slane %v478_v40, 7 }
  0x10   :  { %9628 = vst [vmem:[#allocation6_spill] sm:$0xff] %v4456_v56  ;;  %1092 = vrot.lane.b32.xlu2 %v4459_v57, %s4315_s29  ;;  %v576_v62 = vrot.slane %v479_v41, 7  ;;  %v271_v1 = vmul.f32 %v4378_v2, %v204_v55  ;;  %v932_v6 = vrot.slane %v4445_v53, 1  ;;  %v337_v11 = vadd.f32 %v4383_v3, %v270_v0 }
  0x11   :  { %9629 = vst [vmem:[#allocation7_spill] sm:$0xff] %v4459_v57  ;;  %v4469_v63 = vsel %vm923_vm1, %v929_v58, %v930_v59  ;;  %v4486_v8 = vsel %vm574_vm0, 0.0, %v575_v61  ;;  %v4496_v14 = vsel %vm923_vm1, %v935_v49, %v937_v60  ;;  %v272_v15 = vmul.f32 %v4378_v2, %v205_v4  ;;  %v211_v58 = vld [vmem:[%s9252_s1 + $0x70] sm:$0xff] }
  0x12   :  { %9630 = vst [vmem:[#allocation8_spill] sm:$0xff] %v4469_v63  ;;  %1088 = vrot.lane.b32.xlu1 %v4469_v63, %s4315_s29  ;;  %v4483_v7 = vsel %vm574_vm0, %v575_v61, %v576_v62  ;;  %v924_v9 = vrot.slane %v4486_v8, 1  ;;  %v338_v12 = vadd.f32 %v4383_v3, %v271_v1  ;;  %v273_v16 = vmul.f32 %v4378_v2, %v206_v5 }
  0x13   :  { %9631 = vst [vmem:[#allocation9_spill] sm:$0xff] %v4483_v7  ;;  %v925_v10 = vrot.slane %v4483_v7, 1  ;;  %v401_v19 = vmax.f32 %v337_v11, 0.0  ;;  %v4505_v21 = vsel %vm574_vm0, %v576_v62, 0.0  ;;  %v4508_v22 = vsel %vm574_vm0, %v585_v35, 0.0  ;;  %v208_v35 = vld [vmem:[%s9252_s1 + $0x58] sm:$0xff] }
  0x14   :  { %9632 = vst [vmem:[#allocation10_spill] sm:$0xff] %v4486_v8  ;;  %v402_v20 = vmax.f32 %v338_v12, 0.0  ;;  %v339_v23 = vadd.f32 %v4383_v3, %v272_v15  ;;  %v340_v24 = vadd.f32 %v4383_v3, %v273_v16  ;;  %v276_v25 = vmul.f32 %v4378_v2, %v209_v13 }
  0x15   :  { %9633 = vst [vmem:[#allocation11_spill] sm:$0xff] %v4496_v14  ;;  %v926_v18 = vsel %vm923_vm1, %v924_v9, %v925_v10  ;;  %v4517_v27 = vsel %vm923_vm1, %v930_v59, %v932_v6  ;;  %v587_v28 = vrot.slane %v401_v19, 7  ;;  %v277_v30 = vmul.f32 %v4378_v2, %v210_v17  ;;  %v212_v59 = vld [vmem:[%s9252_s1 + $0x78] sm:$0xff] }
  0x16   :  { %9634 = vst [vmem:[#allocation12_spill] sm:$0xff] %v4517_v27  ;;  %v588_v29 = vrot.slane %v402_v20, 7  ;;  %v927_v31 = vrot.slane %v4505_v21, 1  ;;  %v403_v32 = vmax.f32 %v339_v23, 0.0  ;;  %v404_v33 = vmax.f32 %v340_v24, 0.0  ;;  %v215_v20 = vld [vmem:[%s9252_s1 + $0x90] sm:$0xff] }
  0x17   :  { %1084 = vrot.lane.b32.xlu0 %v926_v18, %s4315_s29  ;;  %v343_v34 = vadd.f32 %v4383_v3, %v276_v25  ;;  %v4532_v37 = vsel %vm574_vm0, 0.0, %v587_v28  ;;  %v344_v38 = vadd.f32 %v4383_v3, %v277_v30  ;;  %v274_v39 = vmul.f32 %v4378_v2, %v207_v26 }
  0x18   :  { %1094 = vrot.lane.b32.xlu2 %v4496_v14, %s4315_s29  ;;  %v4529_v36 = vsel %vm574_vm0, %v587_v28, %v588_v29  ;;  %v944_v40 = vrot.slane %v4532_v37, 1  ;;  %v590_v46 = vrot.slane %v403_v32, 7  ;;  %v591_v48 = vrot.slane %v404_v33, 7  ;;  %v216_v28 = vld [vmem:[%s9252_s1 + $0x98] sm:$0xff]  ;;  %v213_v32 = vld [vmem:[%s9252_s1 + $0x80] sm:$0xff] }
  0x19   :  { %v945_v41 = vrot.slane %v4529_v36, 1  ;;  %v942_v49 = vrot.slane %v4508_v22, 1  ;;  %v275_v54 = vmul.f32 %v4378_v2, %v208_v35  ;;  %v928_v55 = vsel %vm923_vm1, %v925_v10, %v927_v31 }
  0x1a   :  { %1090 = vrot.lane.b32.xlu1 %v4517_v27, %s4315_s29  ;;  %v4553_v61 = vsel %vm574_vm0, %v588_v29, 0.0  ;;  %v407_v62 = vmax.f32 %v343_v34, 0.0  ;;  %v408_v0 = vmax.f32 %v344_v38, 0.0  ;;  %v4556_v1 = vsel %vm574_vm0, %v590_v46, %v591_v48 }
  0x1b   :  { %v4550_v60 = vsel %vm923_vm1, %v944_v40, %v945_v41  ;;  %9636 = vst [vmem:[#allocation14_spill] sm:$0xff] %v4556_v1  ;;  %v4559_v4 = vsel %vm574_vm0, %v591_v48, 0.0  ;;  %v341_v5 = vadd.f32 %v4383_v3, %v274_v39  ;;  %v342_v6 = vadd.f32 %v4383_v3, %v275_v54  ;;  %v214_v48 = vld [vmem:[%s9252_s1 + $0x88] sm:$0xff] }
  0x1c   :  { %9635 = vst [vmem:[#allocation13_spill] sm:$0xff] %v4550_v60  ;;  %v4566_v9 = vsel %vm923_vm1, %v940_v47, %v942_v49  ;;  %v278_v10 = vmul.f32 %v4378_v2, %v211_v58  ;;  %v279_v11 = vmul.f32 %v4378_v2, %v212_v59  ;;  %v4574_v12 = vsel %vm574_vm0, 0.0, %v590_v46 }
  0x1d   :  { %9637 = vst [vmem:[#allocation15_spill] sm:$0xff] %v4566_v9  ;;  %v947_v13 = vrot.slane %v4553_v61, 1  ;;  %v405_v15 = vmax.f32 %v341_v5, 0.0  ;;  %v406_v16 = vmax.f32 %v342_v6, 0.0  ;;  %v950_v17 = vrot.slane %v4556_v1, 1 }
  0x1e   :  { %v952_v47 = vrot.slane %v4559_v4, 1  ;;  %v596_v18 = vrot.slane %v407_v62, 7  ;;  %v597_v19 = vrot.slane %v408_v0, 7  ;;  %v345_v25 = vadd.f32 %v4383_v3, %v278_v10 }
  0x1f   :  { %1086 = vrot.lane.b32.xlu0 %v928_v55, %s4315_s29  ;;  %v593_v23 = vrot.slane %v405_v15, 7  ;;  %v594_v24 = vrot.slane %v406_v16, 7  ;;  %v346_v26 = vadd.f32 %v4383_v3, %v279_v11  ;;  %v949_v29 = vrot.slane %v4574_v12, 1  ;;  %v217_v11 = vld [vmem:[%s9252_s1 + $0xa0] sm:$0xff] }
  0x20   :  { %1100 = vrot.lane.b32.xlu2 %v4550_v60, %s4315_s29  ;;  %v4591_v30 = vsel %vm923_vm1, %v945_v41, %v947_v13  ;;  %v282_v31 = vmul.f32 %v4378_v2, %v215_v20  ;;  %v4598_v33 = vsel %vm923_vm1, %v950_v17, %v952_v47  ;;  %v4601_v34 = vsel %vm574_vm0, %v596_v18, %v597_v19  ;;  %v218_v13 = vld [vmem:[%s9252_s1 + $0xa8] sm:$0xff] }
  0x21   :  { %9638 = vst [vmem:[#allocation16_spill] sm:$0xff] %v4591_v30  ;;  %v4604_v35 = vsel %vm574_vm0, 0.0, %v596_v18  ;;  %v283_v38 = vmul.f32 %v4378_v2, %v216_v28  ;;  %v4608_v39 = vsel %vm574_vm0, %v593_v23, %v594_v24  ;;  %v4611_v40 = vsel %vm574_vm0, 0.0, %v593_v23 }
  0x22   :  { %1098 = vrot.lane.b32.xlu1 %v4566_v9, %s4315_s29  ;;  %9639 = vst [vmem:[#allocation17_spill] sm:$0xff] %v4598_v33  ;;  %v409_v41 = vmax.f32 %v345_v25, 0.0  ;;  %v410_v46 = vmax.f32 %v346_v26, 0.0  ;;  %v4617_v49 = vsel %vm923_vm1, %v949_v29, %v950_v17  ;;  %v280_v54 = vmul.f32 %v4378_v2, %v213_v32 }
  0x23   :  { %9640 = vst [vmem:[#allocation18_spill] sm:$0xff] %v4601_v34  ;;  %v959_v55 = vrot.slane %v4604_v35, 1  ;;  %v960_v58 = vrot.slane %v4601_v34, 1  ;;  %v4627_v59 = vsel %vm574_vm0, %v594_v24, 0.0  ;;  %v349_v62 = vadd.f32 %v4383_v3, %v282_v31 }
  0x24   :  { %9641 = vst [vmem:[#allocation19_spill] sm:$0xff] %v4604_v35  ;;  %v955_v0 = vrot.slane %v4608_v39, 1  ;;  %v954_v5 = vrot.slane %v4611_v40, 1  ;;  %v350_v6 = vadd.f32 %v4383_v3, %v283_v38  ;;  %v281_v10 = vmul.f32 %v4378_v2, %v214_v48 }
  0x25   :  { %9642 = vst [vmem:[#allocation20_spill] sm:$0xff] %v4608_v39  ;;  %v599_v15 = vrot.slane %v409_v41, 7  ;;  %v600_v16 = vrot.slane %v410_v46, 7  ;;  %v347_v17 = vadd.f32 %v4383_v3, %v280_v54  ;;  %v957_v47 = vrot.slane %v4627_v59, 1 }
  0x26   :  { %9643 = vst [vmem:[#allocation21_spill] sm:$0xff] %v4611_v40  ;;  %v348_v18 = vadd.f32 %v4383_v3, %v281_v10  ;;  %v4646_v20 = vsel %vm574_vm0, %v597_v19, 0.0  ;;  %v413_v23 = vmax.f32 %v349_v62, 0.0  ;;  %v284_v24 = vmul.f32 %v4378_v2, %v217_v11 }
  0x27   :  { %9644 = vst [vmem:[#allocation22_spill] sm:$0xff] %v4617_v49  ;;  %1102 = vrot.lane.b32.xlu0 %v4591_v30, %s4315_s29  ;;  %v285_v25 = vmul.f32 %v4378_v2, %v218_v13  ;;  %v4651_v26 = vsel %vm923_vm1, %v959_v55, %v960_v58  ;;  %v4654_v28 = vsel %vm923_vm1, %v954_v5, %v955_v0  ;;  %v414_v29 = vmax.f32 %v350_v6, 0.0  ;;  %v221_v13 = vld [vmem:[%s9252_s1 + $0xc0] sm:$0xff] }
  0x28   :  { %1106 = vrot.lane.b32.xlu2 %v4598_v33, %s4315_s29  ;;  %9645 = vst [vmem:[#allocation23_spill] sm:$0xff] %v4651_v26  ;;  %v4657_v31 = vsel %vm574_vm0, %v599_v15, %v600_v16  ;;  %v4660_v32 = vsel %vm574_vm0, %v600_v16, 0.0  ;;  %v411_v19 = vmax.f32 %v347_v17, 0.0  ;;  %v412_v38 = vmax.f32 %v348_v18, 0.0  ;;  %v219_v17 = vld [vmem:[%s9252_s1 + $0xb0] sm:$0xff] }
  0x29   :  { %9646 = vst [vmem:[#allocation24_spill] sm:$0xff] %v4654_v28  ;;  %v4663_v41 = vsel %vm923_vm1, %v955_v0, %v957_v47  ;;  %v962_v46 = vrot.slane %v4646_v20, 1  ;;  %v4671_v48 = vsel %vm574_vm0, 0.0, %v599_v15  ;;  %v605_v54 = vrot.slane %v413_v23, 7  ;;  %v222_v15 = vld [vmem:[%s9252_s1 + $0xc8] sm:$0xff]  ;;  %v220_v47 = vld [vmem:[%s9252_s1 + $0xb8] sm:$0xff] }
  0x2a   :  { %1104 = vrot.lane.b32.xlu1 %v4617_v49, %s4315_s29  ;;  %9647 = vst [vmem:[#allocation25_spill] sm:$0xff] %v4663_v41  ;;  %v351_v55 = vadd.f32 %v4383_v3, %v284_v24  ;;  %v352_v62 = vadd.f32 %v4383_v3, %v285_v25  ;;  %v965_v5 = vrot.slane %v4657_v31, 1  ;;  %v967_v0 = vrot.slane %v4660_v32, 1 }
  0x2b   :  { %v606_v6 = vrot.slane %v414_v29, 7  ;;  %v602_v10 = vrot.slane %v411_v19, 7  ;;  %v603_v11 = vrot.slane %v412_v38, 7  ;;  %v964_v16 = vrot.slane %v4671_v48, 1 }
  0x2c   :  { %v4693_v18 = vsel %vm923_vm1, %v960_v58, %v962_v46  ;;  %v4696_v23 = vsel %vm574_vm0, 0.0, %v605_v54  ;;  %v415_v24 = vmax.f32 %v351_v55, 0.0  ;;  %v416_v25 = vmax.f32 %v352_v62, 0.0 }
  0x2d   :  { %9648 = vst [vmem:[#allocation26_spill] sm:$0xff] %v4693_v18  ;;  %v4699_v29 = vsel %vm923_vm1, %v965_v5, %v967_v0  ;;  %v4702_v19 = vsel %vm574_vm0, %v605_v54, %v606_v6  ;;  %v288_v38 = vmul.f32 %v4378_v2, %v221_v13  ;;  %v4710_v58 = vsel %vm574_vm0, 0.0, %v602_v10 }
  0x2e   :  { %9649 = vst [vmem:[#allocation27_spill] sm:$0xff] %v4699_v29  ;;  %v286_v46 = vmul.f32 %v4378_v2, %v219_v17  ;;  %v287_v55 = vmul.f32 %v4378_v2, %v220_v47  ;;  %v4715_v62 = vsel %vm923_vm1, %v964_v16, %v965_v5  ;;  %v974_v54 = vrot.slane %v4696_v23, 1 }
  0x2f   :  { %1108 = vrot.lane.b32.xlu0 %v4654_v28, %s4315_s29  ;;  %v4707_v28 = vsel %vm574_vm0, %v602_v10, %v603_v11  ;;  %9650 = vst [vmem:[#allocation28_spill] sm:$0xff] %v4715_v62  ;;  %v975_v0 = vrot.slane %v4702_v19, 1  ;;  %v4724_v10 = vsel %vm574_vm0, %v603_v11, 0.0  ;;  %v608_v13 = vrot.slane %v415_v24, 7 }
  0x30   :  { %1112 = vrot.lane.b32.xlu2 %v4651_v26, %s4315_s29  ;;  %v289_v26 = vmul.f32 %v4378_v2, %v222_v15  ;;  %v609_v15 = vrot.slane %v416_v25, 7  ;;  %v970_v17 = vrot.slane %v4707_v28, 1  ;;  %v969_v5 = vrot.slane %v4710_v58, 1  ;;  %v224_v25 = vld [vmem:[%s9252_s1 + $0xd8] sm:$0xff] }
  0x31   :  { %v355_v16 = vadd.f32 %v4383_v3, %v288_v38  ;;  %v353_v11 = vadd.f32 %v4383_v3, %v286_v46  ;;  %v354_v24 = vadd.f32 %v4383_v3, %v287_v55  ;;  %v4742_v38 = vsel %vm574_vm0, %v606_v6, 0.0 }
  0x32   :  { %1110 = vrot.lane.b32.xlu1 %v4663_v41, %s4315_s29  ;;  %v356_v47 = vadd.f32 %v4383_v3, %v289_v26  ;;  %v4745_v26 = vsel %vm923_vm1, %v974_v54, %v975_v0  ;;  %v4748_v33 = vsel %vm574_vm0, %v608_v13, %v609_v15  ;;  %v4755_v55 = vsel %vm923_vm1, %v969_v5, %v970_v17 }
  0x33   :  { %9651 = vst [vmem:[#allocation29_spill] sm:$0xff] %v4745_v26  ;;  %v419_v41 = vmax.f32 %v355_v16, 0.0  ;;  %v291_v60 = vmul.f32 %v4378_v2, %v224_v25  ;;  %v417_v6 = vmax.f32 %v353_v11, 0.0  ;;  %v418_v49 = vmax.f32 %v354_v24, 0.0 }
  0x34   :  { %9652 = vst [vmem:[#allocation30_spill] sm:$0xff] %v4748_v33  ;;  %v420_v30 = vmax.f32 %v356_v47, 0.0  ;;  %v977_v56 = vrot.slane %v4742_v38, 1  ;;  %v980_v5 = vrot.slane %v4748_v33, 1  ;;  %v225_v47 = vld [vmem:[%s9252_s1 + $0xe0] sm:$0xff]  ;;  %vm3024_vm7 = vcmask 130048  }
  0x35   :  { %9654 = vst [vmem:[#allocation32_spill] sm:$0xff] %v4755_v55  ;;  %v614_v11 = vrot.slane %v419_v41, 7  ;;  %v358_v25 = vadd.f32 %v4383_v3, %v291_v60  ;;  %v292_v41 = vmul.f32 %v4378_v2, %v225_v47  ;;  %vm3154_vm8 = vcmask 195584  }
  0x36   :  { %v615_v24 = vrot.slane %v420_v30, 7  ;;  %v4795_v60 = vsel %vm923_vm1, %v975_v0, %v977_v56  ;;  %vm3089_vm9 = vcmask 162816   ;;  %vm3219_vm10 = vcmask 228352  }
  0x37   :  { %1114 = vrot.lane.b32.xlu0 %v4693_v18, %s4315_s29  ;;  %v972_v18 = vrot.slane %v4724_v10, 1  ;;  %9657 = vst [vmem:[#allocation35_spill] sm:$0xff] %v4795_v60  ;;  %vm3284_vm11 = vcmask 261120   ;;  %vm3354_vm12 = vcmask 293888  }
  0x38   :  { %1118 = vrot.lane.b32.xlu2 %v4699_v29, %s4315_s29  ;;  %v223_v29 = vld [vmem:[%s9252_s1 + $0xd0] sm:$0xff] }
  0x39   :  { %v290_v46 = vmul.f32 %v4378_v2, %v223_v29  ;;  %v4759_v54 = vsel %vm923_vm1, %v970_v17, %v972_v18  ;;  %v64_v29 = vld [vmem:[%s9251_s0 + $0x108] sm:$0xff]  ;;  %v4775_v17 = vsel %vm574_vm0, 0.0, %v608_v13 }
  0x3a   :  { %1116 = vrot.lane.b32.xlu1 %v4715_v62, %s4315_s29  ;;  %v4751_v62 = vsel %vm574_vm0, %v609_v15, 0.0  ;;  %9655 = vst [vmem:[#allocation33_spill] sm:$0xff] %v4759_v54  ;;  %v62_v15 = vld [vmem:[%s9251_s0 + $0x100] sm:$0xff]  ;;  %v226_v13 = vld [vmem:[%s9252_s1 + $0xe8] sm:$0xff]  ;;  %v979_v9 = vrot.slane %v4775_v17, 1  ;;  %s4316_s0 = smov 8  }
  0x3b   :  { %9653 = vst [vmem:[#allocation31_spill] sm:$0xff] %v4751_v62  ;;  %v982_v18 = vrot.slane %v4751_v62, 1  ;;  %v357_v16 = vadd.f32 %v4383_v3, %v290_v46  ;;  %v465_v14 = vmul.f32 %v4378_v2, %v62_v15  ;;  %v466_v46 = vmul.f32 %v4378_v2, %v64_v29 }
  0x3c   :  { %v422_v15 = vmax.f32 %v358_v25, 0.0  ;;  %v293_v29 = vmul.f32 %v4378_v2, %v226_v13  ;;  %v4813_v0 = vsel %vm923_vm1, %v979_v9, %v980_v5  ;;  %v229_v9 = vld [vmem:[%s9252_s1 + $0x100] sm:$0xff] }
  0x3d   :  { %v4792_v30 = vsel %vm923_vm1, %v980_v5, %v982_v18  ;;  %v469_v18 = vadd.f32 %v4383_v3, %v465_v14  ;;  %v470_v56 = vadd.f32 %v4383_v3, %v466_v46  ;;  %9662 = vst [vmem:[#allocation40_spill] sm:$0xff] %v4813_v0  ;;  %v230_v5 = vld [vmem:[%s9252_s1 + $0x108] sm:$0xff]  ;;  %v296_v63 = vmul.f32 %v4378_v2, %v229_v9 }
  0x3e   :  { %9656 = vst [vmem:[#allocation34_spill] sm:$0xff] %v4792_v30  ;;  %v297_v57 = vmul.f32 %v4378_v2, %v230_v5 }
  0x3f   :  { %1120 = vrot.lane.b32.xlu0 %v4755_v55, %s4315_s29  ;;  %v612_v55 = vrot.slane %v418_v49, 7  ;;  %v4798_v49 = vsel %vm574_vm0, %v614_v11, %v615_v24 }
  0x40   :  { %1124 = vrot.lane.b32.xlu2 %v4745_v26, %s4315_s29  ;;  %v611_v26 = vrot.slane %v417_v6, 7  ;;  %v421_v6 = vmax.f32 %v357_v16, 0.0  ;;  %9658 = vst [vmem:[#allocation36_spill] sm:$0xff] %v4798_v49  ;;  %v359_v16 = vadd.f32 %v4383_v3, %v292_v41  ;;  %v618_v41 = vrot.slane %v422_v15, 7 }
  0x41   :  { %v4823_v25 = vsel %vm574_vm0, %v612_v55, 0.0 }
  0x42   :  { %1122 = vrot.lane.b32.xlu1 %v4759_v54, %s4315_s29  ;;  %v4801_v54 = vsel %vm574_vm0, 0.0, %v614_v11  ;;  %v4805_v27 = vsel %vm574_vm0, %v611_v26, %v612_v55  ;;  %v4808_v47 = vsel %vm574_vm0, 0.0, %v611_v26  ;;  %v990_v26 = vrot.slane %v4798_v49, 1  ;;  %9663 = vst [vmem:[#allocation41_spill] sm:$0xff] %v4823_v25 }
  0x43   :  { %9659 = vst [vmem:[#allocation37_spill] sm:$0xff] %v4801_v54  ;;  %v989_v11 = vrot.slane %v4801_v54, 1  ;;  %v617_v14 = vrot.slane %v421_v6, 7  ;;  %v985_v13 = vrot.slane %v4805_v27, 1  ;;  %v984_v46 = vrot.slane %v4808_v47, 1 }
  0x44   :  { %9660 = vst [vmem:[#allocation38_spill] sm:$0xff] %v4805_v27  ;;  %v473_v55 = vmax.f32 %v469_v18, 0.0  ;;  %v474_v6 = vmax.f32 %v470_v56, 0.0  ;;  %v4843_v49 = vsel %vm574_vm0, %v615_v24, 0.0  ;;  %v423_v18 = vmax.f32 %v359_v16, 0.0 }
  0x45   :  { %9661 = vst [vmem:[#allocation39_spill] sm:$0xff] %v4808_v47  ;;  %v4840_v54 = vsel %vm923_vm1, %v989_v11, %v990_v26  ;;  %v4846_v15 = vsel %vm923_vm1, %v984_v46, %v985_v13  ;;  %v363_v11 = vadd.f32 %v4383_v3, %v296_v63  ;;  %v364_v24 = vadd.f32 %v4383_v3, %v297_v57  ;;  %v231_v57 = vld [vmem:[%s9252_s1 + $0x110] sm:$0xff]  ;;  %v232_v63 = vld [vmem:[%s9252_s1 + $0x118] sm:$0xff] }
  0x46   :  { %9664 = vst [vmem:[#allocation42_spill] sm:$0xff] %v4840_v54  ;;  %v480_v9 = vmul.f32 0.0, %v473_v55  ;;  %v481_v47 = vmul.f32 0.0, %v474_v6  ;;  %v4865_v16 = vsel %vm574_vm0, 0.0, %v617_v14  ;;  %v992_v46 = vrot.slane %v4843_v49, 1  ;;  %v233_v55 = vld [vmem:[%s9252_s1 + $0x120] sm:$0xff] }
  0x47   :  { %1126 = vrot.lane.b32.xlu0 %v4795_v60, %s4315_s29  ;;  %v987_v60 = vrot.slane %v4823_v25, 1  ;;  %9665 = vst [vmem:[#allocation43_spill] sm:$0xff] %v4843_v49  ;;  %v299_v49 = vmul.f32 %v4378_v2, %v232_v63 }
  0x48   :  { %1130 = vrot.lane.b32.xlu2 %v4792_v30, %s4315_s29  ;;  %v360_v30 = vadd.f32 %v4383_v3, %v293_v29  ;;  %9666 = vst [vmem:[#allocation44_spill] sm:$0xff] %v4846_v15  ;;  %v4849_v29 = vsel %vm574_vm0, %v617_v14, %v618_v41  ;;  %v629_v14 = vrot.slane %v480_v9, 7  ;;  %v630_v6 = vrot.slane %v481_v47, 7 }
  0x49   :  { %9667 = vst [vmem:[#allocation45_spill] sm:$0xff] %v4849_v29  ;;  %v4855_v5 = vsel %vm923_vm1, %v985_v13, %v987_v60  ;;  %v620_v13 = vrot.slane %v423_v18, 7  ;;  %v234_v18 = vld [vmem:[%s9252_s1 + $0x128] sm:$0xff]  ;;  %v4891_v9 = vsel %vm923_vm1, %v990_v26, %v992_v46 }
  0x4a   :  { %1128 = vrot.lane.b32.xlu1 %v4813_v0, %s4315_s29  ;;  %v424_v56 = vmax.f32 %v360_v30, 0.0  ;;  %v4852_v0 = vsel %vm574_vm0, %v618_v41, 0.0  ;;  %9669 = vst [vmem:[#allocation47_spill] sm:$0xff] %v4855_v5  ;;  %v995_v30 = vrot.slane %v4849_v29, 1  ;;  %v300_v29 = vmul.f32 %v4378_v2, %v233_v55 }
  0x4b   :  { %9668 = vst [vmem:[#allocation46_spill] sm:$0xff] %v4852_v0  ;;  %v997_v60 = vrot.slane %v4852_v0, 1  ;;  %v298_v0 = vmul.f32 %v4378_v2, %v231_v57  ;;  %v4904_v57 = vsel %vm574_vm0, 0.0, %v620_v13 }
  0x4c   :  { %9670 = vst [vmem:[#allocation48_spill] sm:$0xff] %v4865_v16  ;;  %v621_v41 = vrot.slane %v424_v56, 7  ;;  %v994_v56 = vrot.slane %v4865_v16, 1 }
  0x4d   :  { %v4888_v62 = vsel %vm923_vm1, %v995_v30, %v997_v60  ;;  %9672 = vst [vmem:[#allocation50_spill] sm:$0xff] %v4891_v9 }
  0x4e   :  { %9671 = vst [vmem:[#allocation49_spill] sm:$0xff] %v4888_v62  ;;  %v4894_v47 = vsel %vm574_vm0, %v620_v13, %v621_v41  ;;  %v4907_v60 = vsel %vm923_vm1, %v994_v56, %v995_v30  ;;  %v4910_v26 = vsel %vm574_vm0, %v621_v41, 0.0  ;;  %v366_v13 = vadd.f32 %v4383_v3, %v299_v49  ;;  %v235_v56 = vld [vmem:[%s9252_s1 + $0x130] sm:$0xff]  ;;  %v236_v49 = vld [vmem:[%s9252_s1 + $0x138] sm:$0xff] }
  0x4f   :  { %1132 = vrot.lane.b32.xlu0 %v4846_v15, %s4315_s29  ;;  %v428_v15 = vmax.f32 %v364_v24, 0.0  ;;  %9673 = vst [vmem:[#allocation51_spill] sm:$0xff] %v4894_v47  ;;  %v4901_v24 = vsel %vm574_vm0, 0.0, %v629_v14  ;;  %v1000_v55 = vrot.slane %v4894_v47, 1  ;;  %v367_v30 = vadd.f32 %v4383_v3, %v300_v29 }
  0x50   :  { %1136 = vrot.lane.b32.xlu2 %v4840_v54, %s4315_s29  ;;  %v427_v54 = vmax.f32 %v363_v11, 0.0  ;;  %v4898_v11 = vsel %vm574_vm0, %v629_v14, %v630_v6  ;;  %9675 = vst [vmem:[#allocation53_spill] sm:$0xff] %v4901_v24  ;;  %v365_v14 = vadd.f32 %v4383_v3, %v298_v0  ;;  %v1002_v0 = vrot.slane %v4910_v26, 1 }
  0x51   :  { %9674 = vst [vmem:[#allocation52_spill] sm:$0xff] %v4898_v11  ;;  %v633_v63 = vrot.slane %v428_v15, 7  ;;  %v1005_v41 = vrot.slane %v4898_v11, 1  ;;  %v431_v11 = vmax.f32 %v367_v30, 0.0  ;;  %v303_v16 = vmul.f32 %v4378_v2, %v236_v49 }
  0x52   :  { %1134 = vrot.lane.b32.xlu1 %v4855_v5, %s4315_s29  ;;  %v301_v5 = vmul.f32 %v4378_v2, %v234_v18  ;;  %9676 = vst [vmem:[#allocation54_spill] sm:$0xff] %v4904_v57  ;;  %v632_v46 = vrot.slane %v427_v54, 7  ;;  %v1004_v18 = vrot.slane %v4901_v24, 1  ;;  %v999_v54 = vrot.slane %v4904_v57, 1 }
  0x53   :  { %9677 = vst [vmem:[#allocation55_spill] sm:$0xff] %v4907_v60  ;;  %v430_v24 = vmax.f32 %v366_v13, 0.0  ;;  %v4949_v25 = vsel %vm923_vm1, %v1000_v55, %v1002_v0 }
  0x54   :  { %9678 = vst [vmem:[#allocation56_spill] sm:$0xff] %v4910_v26  ;;  %v368_v15 = vadd.f32 %v4383_v3, %v301_v5  ;;  %v4934_v29 = vsel %vm574_vm0, %v632_v46, %v633_v63  ;;  %v4940_v5 = vsel %vm574_vm0, %v630_v6, 0.0  ;;  %v1006_v57 = vsel %vm923_vm1, %v1004_v18, %v1005_v41 }
  0x55   :  { %9679 = vst [vmem:[#allocation57_spill] sm:$0xff] %v4934_v29  ;;  %v4945_v26 = vsel %vm923_vm1, %v999_v54, %v1000_v55  ;;  %v1010_v6 = vrot.slane %v4934_v29, 1  ;;  %v1007_v13 = vrot.slane %v4940_v5, 1  ;;  %v636_v18 = vrot.slane %v430_v24, 7  ;;  %v240_v24 = vld [vmem:[%s9252_s1 + $0x158] sm:$0xff] }
  0x56   :  { %9681 = vst [vmem:[#allocation59_spill] sm:$0xff] %v4940_v5  ;;  %v432_v47 = vmax.f32 %v368_v15, 0.0  ;;  %v638_v54 = vrot.slane %v431_v11, 7  ;;  %v307_v5 = vmul.f32 %v4378_v2, %v240_v24 }
  0x57   :  { %1138 = vrot.lane.b32.xlu0 %v4891_v9, %s4315_s29  ;;  %v429_v9 = vmax.f32 %v365_v14, 0.0  ;;  %9682 = vst [vmem:[#allocation60_spill] sm:$0xff] %v4945_v26 }
  0x58   :  { %1142 = vrot.lane.b32.xlu2 %v4888_v62, %s4315_s29  ;;  %v4937_v62 = vsel %vm574_vm0, %v633_v63, 0.0  ;;  %9683 = vst [vmem:[#allocation61_spill] sm:$0xff] %v4949_v25  ;;  %v4952_v63 = vsel %vm574_vm0, 0.0, %v632_v46  ;;  %v639_v15 = vrot.slane %v432_v47, 7  ;;  %v370_v46 = vadd.f32 %v4383_v3, %v303_v16  ;;  %v239_v16 = vld [vmem:[%s9252_s1 + $0x150] sm:$0xff] }
  0x59   :  { %9680 = vst [vmem:[#allocation58_spill] sm:$0xff] %v4937_v62  ;;  %v1012_v14 = vrot.slane %v4937_v62, 1  ;;  %v635_v30 = vrot.slane %v429_v9, 7  ;;  %v1009_v9 = vrot.slane %v4952_v63, 1  ;;  %v1008_v47 = vsel %vm923_vm1, %v1005_v41, %v1007_v13 }
  0x5a   :  { %1140 = vrot.lane.b32.xlu1 %v4907_v60, %s4315_s29  ;;  %v302_v60 = vmul.f32 %v4378_v2, %v235_v56  ;;  %9684 = vst [vmem:[#allocation62_spill] sm:$0xff] %v4952_v63  ;;  %v237_v56 = vld [vmem:[%s9252_s1 + $0x140] sm:$0xff]  ;;  %v4985_v0 = vsel %vm574_vm0, 0.0, %v638_v54  ;;  %v4991_v41 = vsel %vm574_vm0, %v638_v54, %v639_v15  ;;  %v434_v13 = vmax.f32 %v370_v46, 0.0 }
  0x5b   :  { %v4972_v11 = vsel %vm923_vm1, %v1010_v6, %v1012_v14  ;;  %9687 = vst [vmem:[#allocation65_spill] sm:$0xff] %v4985_v0  ;;  %v4988_v49 = vsel %vm574_vm0, 0.0, %v635_v30  ;;  %v306_v62 = vmul.f32 %v4378_v2, %v239_v16  ;;  %v4998_v29 = vsel %vm923_vm1, %v1009_v9, %v1010_v6 }
  0x5c   :  { %v369_v55 = vadd.f32 %v4383_v3, %v302_v60  ;;  %9685 = vst [vmem:[#allocation63_spill] sm:$0xff] %v4972_v11  ;;  %v4982_v60 = vsel %vm574_vm0, %v635_v30, %v636_v18  ;;  %v5001_v63 = vsel %vm574_vm0, %v636_v18, 0.0  ;;  %v1019_v54 = vrot.slane %v4985_v0, 1 }
  0x5d   :  { %9686 = vst [vmem:[#allocation64_spill] sm:$0xff] %v4982_v60  ;;  %v1015_v30 = vrot.slane %v4982_v60, 1  ;;  %v1014_v46 = vrot.slane %v4988_v49, 1  ;;  %v373_v16 = vadd.f32 %v4383_v3, %v306_v62  ;;  %v1017_v24 = vrot.slane %v5001_v63, 1 }
  0x5e   :  { %9688 = vst [vmem:[#allocation66_spill] sm:$0xff] %v4988_v49  ;;  %v433_v14 = vmax.f32 %v369_v55, 0.0  ;;  %v1020_v55 = vrot.slane %v4991_v41, 1 }
  0x5f   :  { %1144 = vrot.lane.b32.xlu0 %v4945_v26, %s4315_s29  ;;  %9689 = vst [vmem:[#allocation67_spill] sm:$0xff] %v4991_v41  ;;  %v304_v26 = vmul.f32 %v4378_v2, %v237_v56  ;;  %v437_v41 = vmax.f32 %v373_v16, 0.0  ;;  %v246_v16 = vld [vmem:[%s9252_s1 + $0x188] sm:$0xff] }
  0x60   :  { %1148 = vrot.lane.b32.xlu2 %v1006_v57, %s4315_s29  ;;  %v238_v57 = vld [vmem:[%s9252_s1 + $0x148] sm:$0xff]  ;;  %9690 = vst [vmem:[#allocation68_spill] sm:$0xff] %v4998_v29  ;;  %v641_v56 = vrot.slane %v433_v14, 7  ;;  %v241_v14 = vld [vmem:[%s9252_s1 + $0x160] sm:$0xff] }
  0x61   :  { %9691 = vst [vmem:[#allocation69_spill] sm:$0xff] %v5001_v63  ;;  %v371_v6 = vadd.f32 %v4383_v3, %v304_v26  ;;  %v242_v26 = vld [vmem:[%s9252_s1 + $0x168] sm:$0xff]  ;;  %v308_v49 = vmul.f32 %v4378_v2, %v241_v14  ;;  %v5046_v63 = vsel %vm923_vm1, %v1015_v30, %v1017_v24 }
  0x62   :  { %1146 = vrot.lane.b32.xlu1 %v4949_v25, %s4315_s29  ;;  %v305_v25 = vmul.f32 %v4378_v2, %v238_v57  ;;  %v642_v57 = vrot.slane %v434_v13, 7  ;;  %v5029_v13 = vsel %vm923_vm1, %v1014_v46, %v1015_v30  ;;  %v5032_v62 = vsel %vm574_vm0, 0.0, %v641_v56  ;;  %9699 = vst [vmem:[#allocation77_spill] sm:$0xff] %v5046_v63 }
  0x63   :  { %9694 = vst [vmem:[#allocation72_spill] sm:$0xff] %v5029_v13  ;;  %v309_v46 = vmul.f32 %v4378_v2, %v242_v26 }
  0x64   :  { %v372_v18 = vadd.f32 %v4383_v3, %v305_v25  ;;  %v5026_v25 = vsel %vm923_vm1, %v1019_v54, %v1020_v55  ;;  %9695 = vst [vmem:[#allocation73_spill] sm:$0xff] %v5032_v62 }
  0x65   :  { %9693 = vst [vmem:[#allocation71_spill] sm:$0xff] %v5026_v25 }
  0x66   :  { %v436_v0 = vmax.f32 %v372_v18, 0.0  ;;  %v245_v18 = vld [vmem:[%s9252_s1 + $0x180] sm:$0xff] }
  0x67   :  { %1150 = vrot.lane.b32.xlu0 %v1008_v47, %s4315_s29  ;;  %v374_v47 = vadd.f32 %v4383_v3, %v307_v5  ;;  %v5035_v5 = vsel %vm574_vm0, %v639_v15, 0.0  ;;  %v243_v15 = vld [vmem:[%s9252_s1 + $0x170] sm:$0xff]  ;;  %v312_v27 = vmul.f32 %v4378_v2, %v245_v18 }
  0x68   :  { %1154 = vrot.lane.b32.xlu2 %v4972_v11, %s4315_s29  ;;  %9696 = vst [vmem:[#allocation74_spill] sm:$0xff] %v5035_v5  ;;  %v5041_v11 = vsel %vm574_vm0, %v642_v57, 0.0  ;;  %v1022_v30 = vrot.slane %v5035_v5, 1  ;;  %v645_v14 = vrot.slane %v436_v0, 7  ;;  %v375_v5 = vadd.f32 %v4383_v3, %v308_v49 }
  0x69   :  { %9698 = vst [vmem:[#allocation76_spill] sm:$0xff] %v5041_v11  ;;  %v438_v54 = vmax.f32 %v374_v47, 0.0  ;;  %v1027_v47 = vrot.slane %v5041_v11, 1  ;;  %v379_v18 = vadd.f32 %v4383_v3, %v312_v27  ;;  %v247_v27 = vld [vmem:[%s9252_s1 + $0x190] sm:$0xff] }
  0x6a   :  { %1152 = vrot.lane.b32.xlu1 %v4998_v29, %s4315_s29  ;;  %v5014_v9 = vpop.permute.xlu2 %1092  ;;  %v435_v29 = vmax.f32 %v371_v6, 0.0 }
  0x6b   :  { %9692 = vst [vmem:[#allocation70_spill] sm:$0xff] %v5014_v9  ;;  %v5038_v9 = vsel %vm574_vm0, %v641_v56, %v642_v57  ;;  %v244_v56 = vld [vmem:[%s9252_s1 + $0x178] sm:$0xff]  ;;  %v1024_v57 = vrot.slane %v5032_v62, 1  ;;  %v310_v62 = vmul.f32 %v4378_v2, %v243_v15 }
  0x6c   :  { %9697 = vst [vmem:[#allocation75_spill] sm:$0xff] %v5038_v9  ;;  %v1025_v6 = vrot.slane %v5038_v9, 1  ;;  %v644_v24 = vrot.slane %v435_v29, 7  ;;  %v376_v9 = vadd.f32 %v4383_v3, %v309_v46  ;;  %v311_v60 = vmul.f32 %v4378_v2, %v244_v56 }
  0x6d   :  { %v313_v29 = vmul.f32 %v4378_v2, %v246_v16 }
  0x6e   :  { %v5079_v0 = vsel %vm923_vm1, %v1024_v57, %v1025_v6  ;;  %v5088_v49 = vsel %vm574_vm0, %v644_v24, %v645_v14  ;;  %v5094_v46 = vsel %vm574_vm0, 0.0, %v644_v24  ;;  %v440_v57 = vmax.f32 %v376_v9, 0.0 }
  0x6f   :  { %1156 = vrot.lane.b32.xlu0 %v5029_v13, %s4315_s29  ;;  %v648_v13 = vrot.slane %v438_v54, 7  ;;  %9701 = vst [vmem:[#allocation79_spill] sm:$0xff] %v5079_v0  ;;  %v5091_v54 = vsel %vm574_vm0, %v645_v14, 0.0  ;;  %v380_v16 = vadd.f32 %v4383_v3, %v313_v29 }
  0x70   :  { %1160 = vrot.lane.b32.xlu2 %v5026_v25, %s4315_s29  ;;  %v647_v25 = vrot.slane %v437_v41, 7  ;;  %v5085_v41 = vsel %vm923_vm1, %v1025_v6, %v1027_v47  ;;  %9704 = vst [vmem:[#allocation82_spill] sm:$0xff] %v5088_v49  ;;  %v377_v6 = vadd.f32 %v4383_v3, %v310_v62  ;;  %v1030_v47 = vrot.slane %v5088_v49, 1 }
  0x71   :  { %9703 = vst [vmem:[#allocation81_spill] sm:$0xff] %v5085_v41  ;;  %v651_v29 = vrot.slane %v440_v57, 7 }
  0x72   :  { %1158 = vrot.lane.b32.xlu1 %v5046_v63, %s4315_s29  ;;  %v5070_v26 = vpop.permute.xlu2 %1094  ;;  %v5082_v63 = vsel %vm923_vm1, %v1020_v55, %v1022_v30  ;;  %9705 = vst [vmem:[#allocation83_spill] sm:$0xff] %v5091_v54  ;;  %v5097_v15 = vsel %vm574_vm0, %v647_v25, %v648_v13  ;;  %v5100_v56 = vsel %vm574_vm0, 0.0, %v647_v25  ;;  %v439_v55 = vmax.f32 %v375_v5, 0.0  ;;  %v248_v5 = vld [vmem:[%s9252_s1 + $0x198] sm:$0xff] }
  0x73   :  { %9700 = vst [vmem:[#allocation78_spill] sm:$0xff] %v5070_v26  ;;  %v378_v30 = vadd.f32 %v4383_v3, %v311_v60  ;;  %v1032_v25 = vrot.slane %v5091_v54, 1  ;;  %v1034_v9 = vrot.slane %v5100_v56, 1  ;;  %v1035_v62 = vrot.slane %v5097_v15, 1 }
  0x74   :  { %9702 = vst [vmem:[#allocation80_spill] sm:$0xff] %v5082_v63  ;;  %v1029_v60 = vrot.slane %v5094_v46, 1  ;;  %v650_v14 = vrot.slane %v439_v55, 7  ;;  %v441_v26 = vmax.f32 %v377_v6, 0.0  ;;  %v5143_v6 = vsel %vm574_vm0, %v651_v29, 0.0 }
  0x75   :  { %9706 = vst [vmem:[#allocation84_spill] sm:$0xff] %v5094_v46  ;;  %v315_v46 = vmul.f32 %v4378_v2, %v248_v5  ;;  %v5128_v11 = vsel %vm923_vm1, %v1030_v47, %v1032_v25  ;;  %v5131_v54 = vsel %vm923_vm1, %v1034_v9, %v1035_v62 }
  0x76   :  { %9707 = vst [vmem:[#allocation85_spill] sm:$0xff] %v5097_v15  ;;  %v314_v15 = vmul.f32 %v4378_v2, %v247_v27  ;;  %v5137_v55 = vsel %vm574_vm0, %v650_v14, %v651_v29  ;;  %v5140_v57 = vsel %vm574_vm0, 0.0, %v650_v14  ;;  %v5146_v2 = vsel %vm574_vm0, %v648_v13, 0.0 }
  0x77   :  { %9708 = vst [vmem:[#allocation86_spill] sm:$0xff] %v5100_v56  ;;  %1162 = vrot.lane.b32.xlu0 %v5082_v63, %s4315_s29  ;;  %v443_v63 = vmax.f32 %v379_v18, 0.0  ;;  %v444_v56 = vmax.f32 %v380_v16, 0.0  ;;  %v382_v9 = vadd.f32 %v4383_v3, %v315_v46  ;;  %v1042_v27 = vrot.slane %v5143_v6, 1 }
  0x78   :  { %1166 = vrot.lane.b32.xlu2 %v5085_v41, %s4315_s29  ;;  %v442_v41 = vmax.f32 %v378_v30, 0.0  ;;  %9710 = vst [vmem:[#allocation88_spill] sm:$0xff] %v5128_v11  ;;  %v653_v30 = vrot.slane %v441_v26, 7  ;;  %v1037_v13 = vrot.slane %v5146_v2, 1  ;;  %v250_v26 = vld [vmem:[%s9252_s1 + $0x1a8] sm:$0xff]  ;;  %v1039_v46 = vrot.slane %v5140_v57, 1 }
  0x79   :  { %9711 = vst [vmem:[#allocation89_spill] sm:$0xff] %v5131_v54  ;;  %v656_v16 = vrot.slane %v443_v63, 7  ;;  %v657_v25 = vrot.slane %v444_v56, 7  ;;  %v249_v63 = vld [vmem:[%s9252_s1 + $0x1a0] sm:$0xff]  ;;  %v252_v56 = vld [vmem:[%s9252_s1 + $0x1b8] sm:$0xff] }
  0x7a   :  { %1164 = vrot.lane.b32.xlu1 %v5079_v0, %s4315_s29  ;;  %v5123_v24 = vpop.permute.xlu2 %1100  ;;  %v5134_v0 = vsel %vm923_vm1, %v1029_v60, %v1030_v47  ;;  %9713 = vst [vmem:[#allocation91_spill] sm:$0xff] %v5137_v55  ;;  %v654_v18 = vrot.slane %v442_v41, 7  ;;  %v381_v47 = vadd.f32 %v4383_v3, %v314_v15  ;;  %v1040_v60 = vrot.slane %v5137_v55, 1  ;;  %v251_v15 = vld [vmem:[%s9252_s1 + $0x1b0] sm:$0xff] }
  0x7b   :  { %9709 = vst [vmem:[#allocation87_spill] sm:$0xff] %v5123_v24  ;;  %v5180_v14 = vsel %vm574_vm0, %v656_v16, %v657_v25  ;;  %v5183_v29 = vsel %vm574_vm0, 0.0, %v656_v16  ;;  %v5201_v16 = vsel %vm923_vm1, %v1035_v62, %v1037_v13 }
  0x7c   :  { %9712 = vst [vmem:[#allocation90_spill] sm:$0xff] %v5134_v0  ;;  %v5177_v5 = vsel %vm574_vm0, %v653_v30, %v654_v18 }
  0x7d   :  { %9714 = vst [vmem:[#allocation92_spill] sm:$0xff] %v5140_v57 }
  0x7e   :  { %9715 = vst [vmem:[#allocation93_spill] sm:$0xff] %v5143_v6 }
  0x7f   :  { %9716 = vst [vmem:[#allocation94_spill] sm:$0xff] %v5146_v2  ;;  %1168 = vrot.lane.b32.xlu0 %v5134_v0, %s4315_s29  ;;  %v5193_v0 = vld [vmem:[%s9254_s3] ss:$0 sm:$0xff]  ;;  %v5198_v2 = vsel %vm923_vm1, %v1040_v60, %v1042_v27  ;;  %v1050_v27 = vrot.slane %v5180_v14, 1 }
  0x80   :  { %1172 = vrot.lane.b32.xlu2 %v5131_v54, %s4315_s29  ;;  %9719 = vst [vmem:[#allocation97_spill] sm:$0xff] %v5177_v5  ;;  %v446_v54 = vmax.f32 %v382_v9, 0.0  ;;  %v317_v6 = vmul.f32 %v5193_v0, %v250_v26  ;;  %v5206_v9 = vsel %vm923_vm1, %v1039_v46, %v1040_v60  ;;  %v1049_v26 = vrot.slane %v5183_v29, 1 }
  0x81   :  { %v5165_v41 = vpop.permute.xlu0 %1096  ;;  %9720 = vst [vmem:[#allocation98_spill] sm:$0xff] %v5180_v14 }
  0x82   :  { %1170 = vrot.lane.b32.xlu1 %v5128_v11, %s4315_s29  ;;  %9717 = vst [vmem:[#allocation95_spill] sm:$0xff] %v5165_v41  ;;  %v5167_v3 = vpop.permute.xlu2 %1106  ;;  %v445_v41 = vmax.f32 %v381_v47, 0.0  ;;  %v316_v11 = vmul.f32 %v5193_v0, %v249_v63  ;;  %v319_v47 = vmul.f32 %v5193_v0, %v252_v56  ;;  %v1045_v63 = vrot.slane %v5177_v5, 1 }
  0x83   :  { %9718 = vst [vmem:[#allocation96_spill] sm:$0xff] %v5167_v3  ;;  %v5186_v3 = vsel %vm574_vm0, 0.0, %v653_v30  ;;  %v318_v30 = vmul.f32 %v5193_v0, %v251_v15  ;;  %v660_v60 = vrot.slane %v446_v54, 7  ;;  %v253_v54 = vld [vmem:[%s9252_s1 + $0x1c0] sm:$0xff] }
  0x84   :  { %9721 = vst [vmem:[#allocation99_spill] sm:$0xff] %v5183_v29  ;;  %v5188_v24 = vpop.permute.xlu1 %1088  ;;  %v1044_v55 = vrot.slane %v5186_v3, 1  ;;  %v659_v62 = vrot.slane %v445_v41, 7 }
  0x85   :  { %9722 = vst [vmem:[#allocation100_spill] sm:$0xff] %v5186_v3 }
  0x86   :  { %9723 = vst [vmem:[#allocation101_spill] sm:$0xff] %v5188_v24  ;;  %v5209_v24 = vsel %vm574_vm0, %v654_v18, 0.0  ;;  %v5222_v18 = vld [vmem:[%s9255_s4] ss:$0 sm:$0xff] }
  0x87   :  { %9724 = vst [vmem:[#allocation102_spill] sm:$0xff] %v5193_v0  ;;  %1174 = vrot.lane.b32.xlu0 %v5201_v16, %s4315_s29  ;;  %v383_v13 = vadd.f32 %v5222_v18, %v316_v11  ;;  %v384_v46 = vadd.f32 %v5222_v18, %v317_v6  ;;  %v385_v15 = vadd.f32 %v5222_v18, %v318_v30  ;;  %v254_v11 = vld [vmem:[%s9252_s1 + $0x1c8] sm:$0xff]  ;;  %v1047_v6 = vrot.slane %v5209_v24, 1 }
  0x88   :  { %9725 = vst [vmem:[#allocation103_spill] sm:$0xff] %v5198_v2  ;;  %1178 = vrot.lane.b32.xlu2 %v5198_v2, %s4315_s29  ;;  %v386_v56 = vadd.f32 %v5222_v18, %v319_v47  ;;  %v5242_v30 = vsel %vm923_vm1, %v1049_v26, %v1050_v27  ;;  %v5245_v47 = vsel %vm923_vm1, %v1044_v55, %v1045_v63 }
  0x89   :  { %9726 = vst [vmem:[#allocation104_spill] sm:$0xff] %v5201_v16  ;;  %v5232_v41 = vpop.permute.xlu0 %1084  ;;  %v5253_v16 = vsel %vm574_vm0, %v659_v62, %v660_v60  ;;  %v447_v29 = vmax.f32 %v383_v13, 0.0  ;;  %v448_v14 = vmax.f32 %v384_v46, 0.0  ;;  %v449_v3 = vmax.f32 %v385_v15, 0.0 }
  0x8a   :  { %9727 = vst [vmem:[#allocation105_spill] sm:$0xff] %v5206_v9  ;;  %1176 = vrot.lane.b32.xlu1 %v5206_v9, %s4315_s29  ;;  %v5230_v2 = vpop.permute.xlu2 %1112  ;;  %v5256_v9 = vsel %vm574_vm0, %v660_v60, 0.0  ;;  %v320_v26 = vmul.f32 %v5193_v0, %v253_v54  ;;  %v321_v55 = vmul.f32 %v5193_v0, %v254_v11  ;;  %v5261_v5 = vsel %vm923_vm1, %v1045_v63, %v1047_v6 }
  0x8b   :  { %9728 = vst [vmem:[#allocation106_spill] sm:$0xff] %v5209_v24  ;;  %v450_v24 = vmax.f32 %v386_v56, 0.0  ;;  %v1055_v60 = vrot.slane %v5253_v16, 1  ;;  %v1057_v13 = vrot.slane %v5256_v9, 1  ;;  %v662_v46 = vrot.slane %v447_v29, 7 }
  0x8c   :  { %9729 = vst [vmem:[#allocation107_spill] sm:$0xff] %v5222_v18  ;;  %v663_v15 = vrot.slane %v448_v14, 7  ;;  %v665_v56 = vrot.slane %v449_v3, 7  ;;  %v387_v54 = vadd.f32 %v5222_v18, %v320_v26  ;;  %v257_v3 = vld [vmem:[%s9252_s1 + $0x1e0] sm:$0xff]  ;;  %v258_v14 = vld [vmem:[%s9252_s1 + $0x1e8] sm:$0xff] }
  0x8d   :  { %9730 = vst [vmem:[#allocation108_spill] sm:$0xff] %v5230_v2  ;;  %v5248_v2 = vsel %vm574_vm0, %v657_v25, 0.0  ;;  %v5264_v25 = vsel %vm574_vm0, 0.0, %v659_v62  ;;  %v666_v63 = vrot.slane %v450_v24, 7  ;;  %v388_v62 = vadd.f32 %v5222_v18, %v321_v55  ;;  %v256_v24 = vld [vmem:[%s9252_s1 + $0x1d8] sm:$0xff] }
  0x8e   :  { %9731 = vst [vmem:[#allocation109_spill] sm:$0xff] %v5232_v41  ;;  %v5250_v41 = vpop.permute.xlu1 %1090  ;;  %v1054_v29 = vrot.slane %v5264_v25, 1  ;;  %v5297_v55 = vsel %vm923_vm1, %v1055_v60, %v1057_v13 }
  0x8f   :  { %9732 = vst [vmem:[#allocation110_spill] sm:$0xff] %v5242_v30  ;;  %1180 = vrot.lane.b32.xlu0 %v5245_v47, %s4315_s29 }
  0x90   :  { %9733 = vst [vmem:[#allocation111_spill] sm:$0xff] %v5245_v47  ;;  %1184 = vrot.lane.b32.xlu2 %v5242_v30, %s4315_s29  ;;  %v255_v30 = vld [vmem:[%s9252_s1 + $0x1d0] sm:$0xff]  ;;  %v5306_v47 = vsel %vm574_vm0, 0.0, %v662_v46 }
  0x91   :  { %9734 = vst [vmem:[#allocation112_spill] sm:$0xff] %v5248_v2  ;;  %v5279_v6 = vpop.permute.xlu0 %1086  ;;  %v322_v13 = vmul.f32 %v5193_v0, %v255_v30 }
  0x92   :  { %9735 = vst [vmem:[#allocation113_spill] sm:$0xff] %v5250_v41  ;;  %v1052_v41 = vrot.slane %v5248_v2, 1  ;;  %1182 = vrot.lane.b32.xlu1 %v5261_v5, %s4315_s29  ;;  %v5277_v11 = vpop.permute.xlu2 %1118  ;;  %v451_v2 = vmax.f32 %v387_v54, 0.0 }
  0x93   :  { %9736 = vst [vmem:[#allocation114_spill] sm:$0xff] %v5253_v16  ;;  %v323_v16 = vmul.f32 %v5193_v0, %v256_v24 }
  0x94   :  { %9737 = vst [vmem:[#allocation115_spill] sm:$0xff] %v5256_v9  ;;  %v5312_v9 = vsel %vm574_vm0, 0.0, %v665_v56  ;;  %v668_v24 = vrot.slane %v451_v2, 7 }
  0x95   :  { %9738 = vst [vmem:[#allocation116_spill] sm:$0xff] %v5261_v5  ;;  %v5309_v5 = vsel %vm574_vm0, %v665_v56, %v666_v63  ;;  %v1064_v30 = vrot.slane %v5312_v9, 1 }
  0x96   :  { %9739 = vst [vmem:[#allocation117_spill] sm:$0xff] %v5264_v25  ;;  %v5294_v26 = vpop.permute.xlu1 %1098  ;;  %v5319_v25 = vsel %vm923_vm1, %v1054_v29, %v1055_v60  ;;  %v1065_v56 = vrot.slane %v5309_v5, 1 }
  0x97   :  { %9740 = vst [vmem:[#allocation118_spill] sm:$0xff] %v5277_v11  ;;  %v5300_v11 = vsel %vm923_vm1, %v1050_v27, %v1052_v41  ;;  %v324_v27 = vmul.f32 %v5193_v0, %v257_v3  ;;  %v325_v41 = vmul.f32 %v5193_v0, %v258_v14  ;;  %v390_v14 = vadd.f32 %v5222_v18, %v323_v16 }
  0x98   :  { %9741 = vst [vmem:[#allocation119_spill] sm:$0xff] %v5279_v6  ;;  %v5303_v6 = vsel %vm574_vm0, %v662_v46, %v663_v15  ;;  %1190 = vrot.lane.b32.xlu2 %v5297_v55, %s4315_s29  ;;  %1186 = vrot.lane.b32.xlu0 %v5300_v11, %s4315_s29  ;;  %v5326_v46 = vsel %vm574_vm0, %v663_v15, 0.0  ;;  %v389_v15 = vadd.f32 %v5222_v18, %v322_v13  ;;  %v5358_v16 = vsel %vm574_vm0, %v666_v63, 0.0 }
  0x99   :  { %9742 = vst [vmem:[#allocation120_spill] sm:$0xff] %v5294_v26  ;;  %v452_v26 = vmax.f32 %v388_v62, 0.0  ;;  %v1060_v54 = vrot.slane %v5303_v6, 1  ;;  %v1059_v62 = vrot.slane %v5306_v47, 1  ;;  %v5336_v3 = vpop.permute.xlu0 %1102  ;;  %v1062_v0 = vrot.slane %v5326_v46, 1 }
  0x9a   :  { %9743 = vst [vmem:[#allocation121_spill] sm:$0xff] %v5297_v55  ;;  %1188 = vrot.lane.b32.xlu1 %v5319_v25, %s4315_s29  ;;  %v5334_v29 = vpop.permute.xlu2 %1124  ;;  %v391_v55 = vadd.f32 %v5222_v18, %v324_v27  ;;  %v5346_v2 = vsel %vm923_vm1, %v1064_v30, %v1065_v56  ;;  %v453_v27 = vmax.f32 %v389_v15, 0.0  ;;  %v5368_v30 = vsel %vm574_vm0, 0.0, %v668_v24 }
  0x9b   :  { %9744 = vst [vmem:[#allocation122_spill] sm:$0xff] %v5300_v11  ;;  %v669_v60 = vrot.slane %v452_v26, 7  ;;  %v392_v11 = vadd.f32 %v5222_v18, %v325_v41  ;;  %v5349_v26 = vsel %vm923_vm1, %v1059_v62, %v1060_v54  ;;  %v454_v41 = vmax.f32 %v390_v14, 0.0 }
  0x9c   :  { %9745 = vst [vmem:[#allocation123_spill] sm:$0xff] %v5303_v6 }
  0x9d   :  { %9746 = vst [vmem:[#allocation124_spill] sm:$0xff] %v5306_v47  ;;  %v5355_v13 = vsel %vm574_vm0, %v669_v60, 0.0 }
  0x9e   :  { %9747 = vst [vmem:[#allocation125_spill] sm:$0xff] %v5309_v5  ;;  %v1072_v63 = vrot.slane %v5355_v13, 1 }
  0x9f   :  { %9748 = vst [vmem:[#allocation126_spill] sm:$0xff] %v5312_v9  ;;  %v5343_v9 = vpop.permute.xlu1 %1104 }
  0xa0   :  { %9749 = vst [vmem:[#allocation127_spill] sm:$0xff] %v5319_v25  ;;  %v456_v25 = vmax.f32 %v392_v11, 0.0  ;;  %1196 = vrot.lane.b32.xlu2 %v5346_v2, %s4315_s29  ;;  %1192 = vrot.lane.b32.xlu0 %v5349_v26, %s4315_s29 }
  0xa1   :  { %9750 = vst [vmem:[#allocation128_spill] sm:$0xff] %v5334_v29  ;;  %v455_v29 = vmax.f32 %v391_v55, 0.0  ;;  %v5377_v11 = vpop.permute.xlu0 %1108  ;;  %v671_v55 = vrot.slane %v453_v27, 7 }
  0xa2   :  { %9751 = vst [vmem:[#allocation129_spill] sm:$0xff] %v5336_v3  ;;  %v5352_v3 = vsel %vm574_vm0, %v668_v24, %v669_v60  ;;  %v1067_v60 = vrot.slane %v5358_v16, 1  ;;  %v675_v14 = vrot.slane %v456_v25, 7  ;;  %v1069_v24 = vrot.slane %v5368_v30, 1 }
  0xa3   :  { %9752 = vst [vmem:[#allocation130_spill] sm:$0xff] %v5343_v9  ;;  %v5361_v9 = vsel %vm923_vm1, %v1060_v54, %v1062_v0  ;;  %v1070_v62 = vrot.slane %v5352_v3, 1  ;;  %v5375_v0 = vpop.permute.xlu2 %1130  ;;  %v672_v54 = vrot.slane %v454_v41, 7  ;;  %v674_v15 = vrot.slane %v455_v29, 7 }
  0xa4   :  { %9753 = vst [vmem:[#allocation131_spill] sm:$0xff] %v5346_v2  ;;  %1194 = vrot.lane.b32.xlu1 %v5361_v9, %s4315_s29  ;;  %v5386_v18 = vsel %vm923_vm1, %v1065_v56, %v1067_v60  ;;  %v5398_v25 = vsel %vm574_vm0, 0.0, %v671_v55 }
  0xa5   :  { %9754 = vst [vmem:[#allocation132_spill] sm:$0xff] %v5349_v26  ;;  %v5383_v26 = vsel %vm923_vm1, %v1070_v62, %v1072_v63  ;;  %v5395_v27 = vsel %vm574_vm0, 0.0, %v674_v15  ;;  %v5401_v29 = vsel %vm923_vm1, %v1069_v24, %v1070_v62  ;;  %v5408_v56 = vsel %vm574_vm0, %v672_v54, 0.0 }
  0xa6   :  { %9755 = vst [vmem:[#allocation133_spill] sm:$0xff] %v5352_v3  ;;  %v1079_v63 = vrot.slane %v5395_v27, 1  ;;  %v1077_v24 = vrot.slane %v5408_v56, 1 }
  0xa7   :  { %9756 = vst [vmem:[#allocation134_spill] sm:$0xff] %v5361_v9  ;;  %v5380_v2 = vpop.permute.xlu1 %1110  ;;  %v5389_v9 = vsel %vm574_vm0, %v671_v55, %v672_v54  ;;  %v1074_v55 = vrot.slane %v5398_v25, 1 }
  0xa8   :  { %9757 = vst [vmem:[#allocation135_spill] sm:$0xff] %v5368_v30  ;;  %1202 = vrot.lane.b32.xlu2 %v5383_v26, %s4315_s29  ;;  %1198 = vrot.lane.b32.xlu0 %v5386_v18, %s4315_s29  ;;  %v1075_v41 = vrot.slane %v5389_v9, 1 }
  0xa9   :  { %9758 = vst [vmem:[#allocation136_spill] sm:$0xff] %v5375_v0  ;;  %v5392_v0 = vsel %vm574_vm0, %v674_v15, %v675_v14  ;;  %v5418_v15 = vpop.permute.xlu0 %1114 }
  0xaa   :  { %9759 = vst [vmem:[#allocation137_spill] sm:$0xff] %v5377_v11  ;;  %v1080_v60 = vrot.slane %v5392_v0, 1  ;;  %v5427_v11 = vsel %vm923_vm1, %v1074_v55, %v1075_v41 }
  0xab   :  { %9760 = vst [vmem:[#allocation138_spill] sm:$0xff] %v5380_v2  ;;  %v5416_v62 = vpop.permute.xlu2 %1136 }
  0xac   :  { %9761 = vst [vmem:[#allocation139_spill] sm:$0xff] %v5383_v26  ;;  %1200 = vrot.lane.b32.xlu1 %v5401_v29, %s4315_s29  ;;  %v5424_v54 = vsel %vm923_vm1, %v1079_v63, %v1080_v60  ;;  %v5430_v26 = vsel %vm574_vm0, %v675_v14, 0.0  ;;  %v1280_v63 = vrot.slane %v4505_v21, 2 }
  0xad   :  { %9762 = vst [vmem:[#allocation140_spill] sm:$0xff] %v5386_v18  ;;  %v5433_v18 = vsel %vm923_vm1, %v1075_v41, %v1077_v24  ;;  %v1277_v41 = vrot.slane %v4486_v8, 2  ;;  %v1283_v8 = vrot.slane %v4436_v50, 2 }
  0xae   :  { %9763 = vst [vmem:[#allocation141_spill] sm:$0xff] %v5389_v9 }
  0xaf   :  { %9764 = vst [vmem:[#allocation142_spill] sm:$0xff] %v5392_v0  ;;  %v5421_v2 = vpop.permute.xlu1 %1116 }
  0xb0   :  { %9765 = vst [vmem:[#allocation143_spill] sm:$0xff] %v5395_v27  ;;  %1208 = vrot.lane.b32.xlu2 %v5424_v54, %s4315_s29  ;;  %1204 = vrot.lane.b32.xlu0 %v5427_v11, %s4315_s29 }
  0xb1   :  { %9766 = vst [vmem:[#allocation144_spill] sm:$0xff] %v5398_v25  ;;  %v5446_v55 = vpop.permute.xlu0 %1120 }
  0xb2   :  { %9767 = vst [vmem:[#allocation145_spill] sm:$0xff] %v5401_v29 }
  0xb3   :  { %9768 = vst [vmem:[#allocation146_spill] sm:$0xff] %v5416_v62  ;;  %v1082_v62 = vrot.slane %v5430_v26, 1  ;;  %v5444_v14 = vpop.permute.xlu2 %1142 }
  0xb4   :  { %9769 = vst [vmem:[#allocation147_spill] sm:$0xff] %v5418_v15  ;;  %v1278_v15 = vrot.slane %v4483_v7, 2  ;;  %1206 = vrot.lane.b32.xlu1 %v5433_v18, %s4315_s29 }
  0xb5   :  { %9770 = vst [vmem:[#allocation148_spill] sm:$0xff] %v5421_v2  ;;  %v5453_v7 = vsel %vm923_vm1, %v1080_v60, %v1082_v62 }
  0xb6   :  { %9771 = vst [vmem:[#allocation149_spill] sm:$0xff] %v5424_v54  ;;  %v1281_v2 = vsel %vm1276_vm2, %v1278_v15, %v1280_v63  ;;  %v1279_v21 = vsel %vm1276_vm2, %v1277_v41, %v1278_v15  ;;  %v1285_v15 = vrot.slane %v4445_v53, 2  ;;  %v1295_v53 = vrot.slane %v4508_v22, 2 }
  0xb7   :  { %9772 = vst [vmem:[#allocation150_spill] sm:$0xff] %v5427_v11  ;;  %v5449_v24 = vpop.permute.xlu1 %1122 }
  0xb8   :  { %9773 = vst [vmem:[#allocation151_spill] sm:$0xff] %v5433_v18  ;;  %1439 = vrot.lane.b32.xlu2 %v1281_v2, %s4316_s0  ;;  %1210 = vrot.lane.b32.xlu0 %v5453_v7, %s4315_s29  ;;  %v9862_v18 = vld [vmem:[#allocation58_spill] sm:$0xff]  ;;  %s4317_s29 = smov 12  }
  0xb9   :  { %9774 = vst [vmem:[#allocation152_spill] sm:$0xff] %v5444_v14  ;;  %v1287_v14 = vrot.slane %v4429_v45, 2  ;;  %v5466_v62 = vpop.permute.xlu0 %1126 }
  0xba   :  { %9775 = vst [vmem:[#allocation153_spill] sm:$0xff] %v5446_v55  ;;  %v1288_v55 = vrot.slane %v4426_v44, 2 }
  0xbb   :  { %9776 = vst [vmem:[#allocation154_spill] sm:$0xff] %v5449_v24  ;;  %v1282_v24 = vrot.slane %v4439_v51, 2  ;;  %v5464_v60 = vpop.permute.xlu2 %1148 }
  0xbc   :  { %9777 = vst [vmem:[#allocation155_spill] sm:$0xff] %v5453_v7  ;;  %1437 = vrot.lane.b32.xlu1 %v1279_v21, %s4316_s0  ;;  %v5472_v63 = vsel %vm1276_vm2, %v1287_v14, %v1288_v55  ;;  %v5478_v7 = vsel %vm1276_vm2, %v1283_v8, %v1285_v15  ;;  %v1293_v21 = vrot.slane %v4420_v42, 2 }
  0xbd   :  { %9778 = vst [vmem:[#allocation156_spill] sm:$0xff] %v5464_v60  ;;  %v5475_v41 = vsel %vm1276_vm2, %v1282_v24, %v1283_v8  ;;  %v1292_v8 = vrot.slane %v4423_v43, 2 }
  0xbe   :  { %9779 = vst [vmem:[#allocation157_spill] sm:$0xff] %v5466_v62  ;;  %v5497_v62 = vsel %vm1276_vm2, %v1293_v21, %v1295_v53  ;;  %v1297_v53 = vrot.slane %v4532_v37, 2 }
  0xbf   :  { %v5469_v2 = vpop.permute.xlu1 %1128  ;;  %9781 = vst [vmem:[#allocation159_spill] sm:$0xff] %v5472_v63  ;;  %v5503_v22 = vsel %vm1276_vm2, %v1292_v8, %v1293_v21  ;;  %v1300_v21 = vrot.slane %v4553_v61, 2  ;;  %v1310_v61 = vrot.slane %v4627_v59, 2 }
  0xc0   :  { %9780 = vst [vmem:[#allocation158_spill] sm:$0xff] %v5469_v2  ;;  %1445 = vrot.lane.b32.xlu2 %v5472_v63, %s4316_s0  ;;  %1441 = vrot.lane.b32.xlu0 %v5475_v41, %s4316_s0  ;;  %v1290_v2 = vrot.slane %v4442_v52, 2  ;;  %v1302_v52 = vrot.slane %v4574_v12, 2 }
  0xc1   :  { %9782 = vst [vmem:[#allocation160_spill] sm:$0xff] %v5475_v41  ;;  %v5491_v24 = vpop.permute.xlu0 %1132 }
  0xc2   :  { %9783 = vst [vmem:[#allocation161_spill] sm:$0xff] %v5478_v7  ;;  %v5500_v60 = vsel %vm1276_vm2, %v1288_v55, %v1290_v2 }
  0xc3   :  { %v5489_v14 = vpop.permute.xlu2 %1154  ;;  %9785 = vst [vmem:[#allocation163_spill] sm:$0xff] %v5491_v24  ;;  %v1303_v24 = vrot.slane %v4556_v1, 2 }
  0xc4   :  { %1443 = vrot.lane.b32.xlu1 %v5478_v7, %s4316_s0  ;;  %9784 = vst [vmem:[#allocation162_spill] sm:$0xff] %v5489_v14 }
  0xc5   :  { %9787 = vst [vmem:[#allocation165_spill] sm:$0xff] %v5497_v62  ;;  %v5523_v14 = vsel %vm1276_vm2, %v1302_v52, %v1303_v24 }
  0xc6   :  { %9788 = vst [vmem:[#allocation166_spill] sm:$0xff] %v5500_v60 }
  0xc7   :  { %v5494_v15 = vpop.permute.xlu1 %1134  ;;  %9789 = vst [vmem:[#allocation167_spill] sm:$0xff] %v5503_v22 }
  0xc8   :  { %9786 = vst [vmem:[#allocation164_spill] sm:$0xff] %v5494_v15  ;;  %1451 = vrot.lane.b32.xlu2 %v5497_v62, %s4316_s0  ;;  %1447 = vrot.lane.b32.xlu0 %v5500_v60, %s4316_s0  ;;  %v1298_v15 = vrot.slane %v4529_v36, 2 }
  0xc9   :  { %v5517_v2 = vpop.permute.xlu0 %1138  ;;  %9793 = vst [vmem:[#allocation171_spill] sm:$0xff] %v5523_v14 }
  0xca   :  { %9791 = vst [vmem:[#allocation169_spill] sm:$0xff] %v5517_v2  ;;  %v5526_v62 = vsel %vm1276_vm2, %v1297_v53, %v1298_v15  ;;  %v5529_v60 = vsel %vm1276_vm2, %v1298_v15, %v1300_v21  ;;  %v1308_v2 = vrot.slane %v4608_v39, 2  ;;  %v1307_v15 = vrot.slane %v4611_v40, 2 }
  0xcb   :  { %v5515_v55 = vpop.permute.xlu2 %1160  ;;  %9794 = vst [vmem:[#allocation172_spill] sm:$0xff] %v5526_v62 }
  0xcc   :  { %1449 = vrot.lane.b32.xlu1 %v5503_v22, %s4316_s0  ;;  %9790 = vst [vmem:[#allocation168_spill] sm:$0xff] %v5515_v55  ;;  %v5548_v55 = vsel %vm1276_vm2, %v1308_v2, %v1310_v61  ;;  %v5554_v59 = vsel %vm1276_vm2, %v1307_v15, %v1308_v2  ;;  %v1312_v61 = vrot.slane %v4604_v35, 2 }
  0xcd   :  { %9795 = vst [vmem:[#allocation173_spill] sm:$0xff] %v5529_v60 }
  0xce   :  { %9799 = vst [vmem:[#allocation177_spill] sm:$0xff] %v5548_v55 }
  0xcf   :  { %v5520_v8 = vpop.permute.xlu1 %1140  ;;  %9801 = vst [vmem:[#allocation179_spill] sm:$0xff] %v5554_v59 }
  0xd0   :  { %9792 = vst [vmem:[#allocation170_spill] sm:$0xff] %v5520_v8  ;;  %1457 = vrot.lane.b32.xlu2 %v5523_v14, %s4316_s0  ;;  %1453 = vrot.lane.b32.xlu0 %v5526_v62, %s4316_s0  ;;  %v1305_v8 = vrot.slane %v4559_v4, 2  ;;  %v1317_v4 = vrot.slane %v4671_v48, 2 }
  0xd1   :  { %v5542_v53 = vpop.permute.xlu0 %1144 }
  0xd2   :  { %9797 = vst [vmem:[#allocation175_spill] sm:$0xff] %v5542_v53  ;;  %v5551_v14 = vsel %vm1276_vm2, %v1303_v24, %v1305_v8  ;;  %v1318_v53 = vrot.slane %v4657_v31, 2  ;;  %v1315_v8 = vrot.slane %v4646_v20, 2  ;;  %v1325_v20 = vrot.slane %v4724_v10, 2 }
  0xd3   :  { %v5540_v52 = vpop.permute.xlu2 %1166  ;;  %9800 = vst [vmem:[#allocation178_spill] sm:$0xff] %v5551_v14 }
  0xd4   :  { %1455 = vrot.lane.b32.xlu1 %v5529_v60, %s4316_s0  ;;  %9796 = vst [vmem:[#allocation174_spill] sm:$0xff] %v5540_v52  ;;  %v5574_v52 = vsel %vm1276_vm2, %v1317_v4, %v1318_v53 }
  0xd5   :  { %9805 = vst [vmem:[#allocation183_spill] sm:$0xff] %v5574_v52 }
  0xd7   :  { %v5545_v21 = vpop.permute.xlu1 %1146 }
  0xd8   :  { %9798 = vst [vmem:[#allocation176_spill] sm:$0xff] %v5545_v21  ;;  %1463 = vrot.lane.b32.xlu2 %v5548_v55, %s4316_s0  ;;  %1459 = vrot.lane.b32.xlu0 %v5551_v14, %s4316_s0  ;;  %v1313_v21 = vrot.slane %v4601_v34, 2 }
  0xd9   :  { %v5568_v2 = vpop.permute.xlu0 %1150 }
  0xda   :  { %9803 = vst [vmem:[#allocation181_spill] sm:$0xff] %v5568_v2  ;;  %v5577_v55 = vsel %vm1276_vm2, %v1312_v61, %v1313_v21  ;;  %v5580_v14 = vsel %vm1276_vm2, %v1313_v21, %v1315_v8  ;;  %v1322_v21 = vrot.slane %v4710_v58, 2 }
  0xdb   :  { %v5566_v24 = vpop.permute.xlu2 %1172  ;;  %9806 = vst [vmem:[#allocation184_spill] sm:$0xff] %v5577_v55 }
  0xdc   :  { %1461 = vrot.lane.b32.xlu1 %v5554_v59, %s4316_s0  ;;  %9802 = vst [vmem:[#allocation180_spill] sm:$0xff] %v5566_v24  ;;  %v1323_v24 = vrot.slane %v4707_v28, 2 }
  0xdd   :  { %9807 = vst [vmem:[#allocation185_spill] sm:$0xff] %v5580_v14 }
  0xde   :  { %v5599_v2 = vsel %vm1276_vm2, %v1323_v24, %v1325_v20  ;;  %v5605_v10 = vsel %vm1276_vm2, %v1322_v21, %v1323_v24  ;;  %v1327_v20 = vrot.slane %v4696_v23, 2 }
  0xdf   :  { %v5571_v15 = vpop.permute.xlu1 %1152  ;;  %9811 = vst [vmem:[#allocation189_spill] sm:$0xff] %v5599_v2 }
  0xe0   :  { %9804 = vst [vmem:[#allocation182_spill] sm:$0xff] %v5571_v15  ;;  %1469 = vrot.lane.b32.xlu2 %v5574_v52, %s4316_s0  ;;  %1465 = vrot.lane.b32.xlu0 %v5577_v55, %s4316_s0  ;;  %v1320_v15 = vrot.slane %v4660_v32, 2  ;;  %v1332_v32 = vrot.slane %v4775_v17, 2 }
  0xe1   :  { %v5593_v61 = vpop.permute.xlu0 %1156  ;;  %9813 = vst [vmem:[#allocation191_spill] sm:$0xff] %v5605_v10 }
  0xe2   :  { %9809 = vst [vmem:[#allocation187_spill] sm:$0xff] %v5593_v61  ;;  %v5602_v52 = vsel %vm1276_vm2, %v1318_v53, %v1320_v15  ;;  %v1330_v15 = vrot.slane %v4742_v38, 2  ;;  %v9821_v38 = vld [vmem:[#allocation41_spill] sm:$0xff] }
  0xe3   :  { %v5591_v4 = vpop.permute.xlu2 %1178  ;;  %9812 = vst [vmem:[#allocation190_spill] sm:$0xff] %v5602_v52 }
  0xe4   :  { %1467 = vrot.lane.b32.xlu1 %v5580_v14, %s4316_s0  ;;  %9808 = vst [vmem:[#allocation186_spill] sm:$0xff] %v5591_v4  ;;  %v1333_v4 = vrot.slane %v4748_v33, 2 }
  0xe6   :  { %v5625_v61 = vsel %vm1276_vm2, %v1332_v32, %v1333_v4 }
  0xe7   :  { %v5596_v8 = vpop.permute.xlu1 %1158  ;;  %9817 = vst [vmem:[#allocation195_spill] sm:$0xff] %v5625_v61 }
  0xe8   :  { %9810 = vst [vmem:[#allocation188_spill] sm:$0xff] %v5596_v8  ;;  %1475 = vrot.lane.b32.xlu2 %v5599_v2, %s4316_s0  ;;  %1471 = vrot.lane.b32.xlu0 %v5602_v52, %s4316_s0  ;;  %v1328_v8 = vrot.slane %v4702_v19, 2 }
  0xe9   :  { %v5619_v24 = vpop.permute.xlu0 %1162 }
  0xea   :  { %9815 = vst [vmem:[#allocation193_spill] sm:$0xff] %v5619_v24  ;;  %v5628_v2 = vsel %vm1276_vm2, %v1327_v20, %v1328_v8  ;;  %v5631_v52 = vsel %vm1276_vm2, %v1328_v8, %v1330_v15  ;;  %v9820_v24 = vld [vmem:[#allocation38_spill] sm:$0xff]  ;;  %v9825_v8 = vld [vmem:[#allocation39_spill] sm:$0xff] }
  0xeb   :  { %v5617_v53 = vpop.permute.xlu2 %1184  ;;  %9818 = vst [vmem:[#allocation196_spill] sm:$0xff] %v5628_v2  ;;  %v1337_v15 = vrot.slane %v9825_v8, 2 }
  0xec   :  { %1473 = vrot.lane.b32.xlu1 %v5605_v10, %s4316_s0  ;;  %9814 = vst [vmem:[#allocation192_spill] sm:$0xff] %v5617_v53  ;;  %v1338_v53 = vrot.slane %v9820_v24, 2  ;;  %v1340_v10 = vrot.slane %v9821_v38, 2 }
  0xed   :  { %9819 = vst [vmem:[#allocation197_spill] sm:$0xff] %v5631_v52 }
  0xee   :  { %v5656_v38 = vsel %vm1276_vm2, %v1337_v15, %v1338_v53 }
  0xef   :  { %v5622_v21 = vpop.permute.xlu1 %1164  ;;  %9829 = vst [vmem:[#allocation201_spill] sm:$0xff] %v5656_v38 }
  0xf0   :  { %9816 = vst [vmem:[#allocation194_spill] sm:$0xff] %v5622_v21  ;;  %1481 = vrot.lane.b32.xlu2 %v5625_v61, %s4316_s0  ;;  %1477 = vrot.lane.b32.xlu0 %v5628_v2, %s4316_s0  ;;  %v9822_v21 = vld [vmem:[#allocation31_spill] sm:$0xff]  ;;  %v5650_v61 = vsel %vm1276_vm2, %v1338_v53, %v1340_v10  ;;  %v9833_v10 = vld [vmem:[#allocation37_spill] sm:$0xff] }
  0xf1   :  { %v1335_v55 = vrot.slane %v9822_v21, 2  ;;  %v5644_v20 = vpop.permute.xlu0 %1168  ;;  %9827 = vst [vmem:[#allocation199_spill] sm:$0xff] %v5650_v61  ;;  %v9830_v21 = vld [vmem:[#allocation48_spill] sm:$0xff]  ;;  %v1342_v62 = vrot.slane %v9833_v10, 2  ;;  %v9836_v53 = vld [vmem:[#allocation43_spill] sm:$0xff] }
  0xf2   :  { %9824 = vst [vmem:[#allocation31_spill] sm:$0xff] %v5644_v20  ;;  %v1347_v20 = vrot.slane %v9830_v21, 2  ;;  %v1345_v15 = vrot.slane %v9836_v53, 2  ;;  %v9842_v53 = vld [vmem:[#allocation56_spill] sm:$0xff] }
  0xf3   :  { %v5642_v32 = vpop.permute.xlu2 %1190  ;;  %v5653_v2 = vsel %vm1276_vm2, %v1333_v4, %v1335_v55 }
  0xf4   :  { %1479 = vrot.lane.b32.xlu1 %v5631_v52, %s4316_s0  ;;  %9823 = vst [vmem:[#allocation41_spill] sm:$0xff] %v5642_v32  ;;  %v9831_v32 = vld [vmem:[#allocation45_spill] sm:$0xff] }
  0xf5   :  { %9828 = vst [vmem:[#allocation200_spill] sm:$0xff] %v5653_v2  ;;  %v1348_v52 = vrot.slane %v9831_v32, 2 }
  0xf7   :  { %v5647_v14 = vpop.permute.xlu1 %1170 }
  0xf8   :  { %9826 = vst [vmem:[#allocation198_spill] sm:$0xff] %v5647_v14  ;;  %1487 = vrot.lane.b32.xlu2 %v5650_v61, %s4316_s0  ;;  %1483 = vrot.lane.b32.xlu0 %v5653_v2, %s4316_s0  ;;  %v9832_v14 = vld [vmem:[#allocation36_spill] sm:$0xff]  ;;  %v5676_v2 = vsel %vm1276_vm2, %v1347_v20, %v1348_v52 }
  0xf9   :  { %v1343_v59 = vrot.slane %v9832_v14, 2  ;;  %v5670_v4 = vpop.permute.xlu0 %1174  ;;  %9838 = vst [vmem:[#allocation204_spill] sm:$0xff] %v5676_v2 }
  0xfa   :  { %9835 = vst [vmem:[#allocation203_spill] sm:$0xff] %v5670_v4  ;;  %v9841_v4 = vld [vmem:[#allocation51_spill] sm:$0xff] }
  0xfb   :  { %v5668_v55 = vpop.permute.xlu2 %1196  ;;  %v5679_v60 = vsel %vm1276_vm2, %v1342_v62, %v1343_v59  ;;  %v5682_v63 = vsel %vm1276_vm2, %v1343_v59, %v1345_v15  ;;  %v9846_v59 = vld [vmem:[#allocation54_spill] sm:$0xff] }
  0xfc   :  { %1485 = vrot.lane.b32.xlu1 %v5656_v38, %s4316_s0  ;;  %9834 = vst [vmem:[#allocation202_spill] sm:$0xff] %v5668_v55  ;;  %v1353_v55 = vrot.slane %v9841_v4, 2  ;;  %v1355_v38 = vrot.slane %v9842_v53, 2  ;;  %v1352_v15 = vrot.slane %v9846_v59, 2 }
  0xfd   :  { %9839 = vst [vmem:[#allocation205_spill] sm:$0xff] %v5679_v60 }
  0xfe   :  { %9840 = vst [vmem:[#allocation206_spill] sm:$0xff] %v5682_v63  ;;  %v5707_v53 = vsel %vm1276_vm2, %v1352_v15, %v1353_v55 }
  0xff   :  { %v5673_v61 = vpop.permute.xlu1 %1176  ;;  %9850 = vst [vmem:[#allocation210_spill] sm:$0xff] %v5707_v53 }
 0x100   :  { %9837 = vst [vmem:[#allocation43_spill] sm:$0xff] %v5673_v61  ;;  %1493 = vrot.lane.b32.xlu2 %v5676_v2, %s4316_s0  ;;  %1489 = vrot.lane.b32.xlu0 %v5679_v60, %s4316_s0  ;;  %v9843_v61 = vld [vmem:[#allocation46_spill] sm:$0xff]  ;;  %v5701_v2 = vsel %vm1276_vm2, %v1353_v55, %v1355_v38  ;;  %v9854_v38 = vld [vmem:[#allocation53_spill] sm:$0xff]  ;;  %v9857_v55 = vld [vmem:[#allocation59_spill] sm:$0xff] }
 0x101   :  { %v1350_v22 = vrot.slane %v9843_v61, 2  ;;  %v5695_v20 = vpop.permute.xlu0 %1180  ;;  %9848 = vst [vmem:[#allocation208_spill] sm:$0xff] %v5701_v2  ;;  %v9851_v61 = vld [vmem:[#allocation62_spill] sm:$0xff]  ;;  %v1357_v54 = vrot.slane %v9854_v38, 2  ;;  %v1360_v15 = vrot.slane %v9857_v55, 2  ;;  %v9860_v38 = vld [vmem:[#allocation64_spill] sm:$0xff] }
 0x102   :  { %9845 = vst [vmem:[#allocation46_spill] sm:$0xff] %v5695_v20  ;;  %v9852_v20 = vld [vmem:[#allocation57_spill] sm:$0xff]  ;;  %v1365_v55 = vrot.slane %v9862_v18, 2 }
 0x103   :  { %v5693_v62 = vpop.permute.xlu2 %1202  ;;  %v5704_v60 = vsel %vm1276_vm2, %v1348_v52, %v1350_v22  ;;  %v9870_v18 = vld [vmem:[#allocation73_spill] sm:$0xff] }
 0x104   :  { %1491 = vrot.lane.b32.xlu1 %v5682_v63, %s4316_s0  ;;  %9844 = vst [vmem:[#allocation56_spill] sm:$0xff] %v5693_v62  ;;  %v1362_v62 = vrot.slane %v9851_v61, 2  ;;  %v1363_v63 = vrot.slane %v9852_v20, 2 }
 0x105   :  { %9849 = vst [vmem:[#allocation209_spill] sm:$0xff] %v5704_v60 }
 0x107   :  { %v5698_v41 = vpop.permute.xlu1 %1182 }
 0x108   :  { %9847 = vst [vmem:[#allocation207_spill] sm:$0xff] %v5698_v41  ;;  %1499 = vrot.lane.b32.xlu2 %v5701_v2, %s4316_s0  ;;  %1495 = vrot.lane.b32.xlu0 %v5704_v60, %s4316_s0  ;;  %v9853_v41 = vld [vmem:[#allocation52_spill] sm:$0xff]  ;;  %v5727_v60 = vsel %vm1276_vm2, %v1362_v62, %v1363_v63 }
 0x109   :  { %v1358_v7 = vrot.slane %v9853_v41, 2  ;;  %9859 = vst [vmem:[#allocation213_spill] sm:$0xff] %v5727_v60 }
 0x10a   :  { %v5721_v52 = vpop.permute.xlu0 %1186 }
 0x10b   :  { %v5719_v22 = vpop.permute.xlu2 %1208  ;;  %9856 = vst [vmem:[#allocation212_spill] sm:$0xff] %v5721_v52  ;;  %v1359_v11 = vsel %vm1276_vm2, %v1357_v54, %v1358_v7  ;;  %v1361_v41 = vsel %vm1276_vm2, %v1358_v7, %v1360_v15  ;;  %v9865_v54 = vld [vmem:[#allocation66_spill] sm:$0xff] }
 0x10c   :  { %1497 = vrot.lane.b32.xlu1 %v5707_v53, %s4316_s0  ;;  %9855 = vst [vmem:[#allocation211_spill] sm:$0xff] %v5719_v22  ;;  %v1368_v22 = vrot.slane %v9860_v38, 2  ;;  %v9861_v53 = vld [vmem:[#allocation69_spill] sm:$0xff]  ;;  %v1367_v29 = vrot.slane %v9865_v54, 2 }
 0x10d   :  { %v1370_v52 = vrot.slane %v9861_v53, 2 }
 0x10e   :  { %v5752_v53 = vsel %vm1276_vm2, %v1367_v29, %v1368_v22 }
 0x10f   :  { %v5724_v2 = vpop.permute.xlu1 %1188  ;;  %v5746_v15 = vsel %vm1276_vm2, %v1368_v22, %v1370_v52  ;;  %9869 = vst [vmem:[#allocation217_spill] sm:$0xff] %v5752_v53  ;;  %v9873_v52 = vld [vmem:[#allocation65_spill] sm:$0xff]  ;;  %v9876_v22 = vld [vmem:[#allocation74_spill] sm:$0xff] }
 0x110   :  { %9858 = vst [vmem:[#allocation59_spill] sm:$0xff] %v5724_v2  ;;  %1505 = vrot.lane.b32.xlu2 %v5727_v60, %s4316_s0  ;;  %1501 = vrot.lane.b32.xlu0 %v1359_v11, %s4316_s0  ;;  %v5749_v11 = vsel %vm1276_vm2, %v1363_v63, %v1365_v55  ;;  %v1372_v38 = vrot.slane %v9873_v52, 2  ;;  %v1375_v55 = vrot.slane %v9876_v22, 2  ;;  %v9881_v22 = vld [vmem:[#allocation83_spill] sm:$0xff] }
 0x111   :  { %9867 = vst [vmem:[#allocation215_spill] sm:$0xff] %v5746_v15 }
 0x112   :  { %v5740_v62 = vpop.permute.xlu0 %1192  ;;  %9868 = vst [vmem:[#allocation216_spill] sm:$0xff] %v5749_v11 }
 0x113   :  { %v5738_v2 = vpop.permute.xlu2 %1439  ;;  %9864 = vst [vmem:[#allocation58_spill] sm:$0xff] %v5740_v62  ;;  %v9871_v62 = vld [vmem:[#allocation75_spill] sm:$0xff] }
 0x114   :  { %1503 = vrot.lane.b32.xlu1 %v1361_v41, %s4316_s0  ;;  %9863 = vst [vmem:[#allocation69_spill] sm:$0xff] %v5738_v2  ;;  %v1377_v41 = vrot.slane %v9870_v18, 2  ;;  %v1378_v2 = vrot.slane %v9871_v62, 2 }
 0x117   :  { %v5743_v7 = vpop.permute.xlu1 %1194 }
 0x118   :  { %9866 = vst [vmem:[#allocation214_spill] sm:$0xff] %v5743_v7  ;;  %1511 = vrot.lane.b32.xlu2 %v5746_v15, %s4316_s0  ;;  %1507 = vrot.lane.b32.xlu0 %v5749_v11, %s4316_s0  ;;  %v9872_v7 = vld [vmem:[#allocation67_spill] sm:$0xff]  ;;  %v5772_v11 = vsel %vm1276_vm2, %v1377_v41, %v1378_v2 }
 0x119   :  { %v1373_v60 = vrot.slane %v9872_v7, 2  ;;  %9878 = vst [vmem:[#allocation220_spill] sm:$0xff] %v5772_v11 }
 0x11a   :  { %v5766_v29 = vpop.permute.xlu0 %1198 }
 0x11b   :  { %v5764_v63 = vpop.permute.xlu2 %1445  ;;  %9875 = vst [vmem:[#allocation219_spill] sm:$0xff] %v5766_v29  ;;  %v5775_v18 = vsel %vm1276_vm2, %v1372_v38, %v1373_v60  ;;  %v5778_v7 = vsel %vm1276_vm2, %v1373_v60, %v1375_v55  ;;  %v1383_v29 = vrot.slane %v5088_v49, 2  ;;  %v9885_v60 = vld [vmem:[#allocation84_spill] sm:$0xff] }
 0x11c   :  { %1509 = vrot.lane.b32.xlu1 %v5752_v53, %s4316_s0  ;;  %9874 = vst [vmem:[#allocation218_spill] sm:$0xff] %v5764_v63  ;;  %v1385_v63 = vrot.slane %v9881_v22, 2  ;;  %v1382_v55 = vrot.slane %v9885_v60, 2 }
 0x11d   :  { %9879 = vst [vmem:[#allocation221_spill] sm:$0xff] %v5775_v18 }
 0x11e   :  { %9880 = vst [vmem:[#allocation222_spill] sm:$0xff] %v5778_v7  ;;  %v5803_v22 = vsel %vm1276_vm2, %v1382_v55, %v1383_v29 }
 0x11f   :  { %v5769_v15 = vpop.permute.xlu1 %1200  ;;  %9889 = vst [vmem:[#allocation226_spill] sm:$0xff] %v5803_v22 }
 0x120   :  { %9877 = vst [vmem:[#allocation74_spill] sm:$0xff] %v5769_v15  ;;  %1517 = vrot.lane.b32.xlu2 %v5772_v11, %s4316_s0  ;;  %1513 = vrot.lane.b32.xlu0 %v5775_v18, %s4316_s0  ;;  %v9882_v15 = vld [vmem:[#allocation76_spill] sm:$0xff]  ;;  %v5797_v11 = vsel %vm1276_vm2, %v1383_v29, %v1385_v63  ;;  %v9892_v63 = vld [vmem:[#allocation86_spill] sm:$0xff] }
 0x121   :  { %v1380_v53 = vrot.slane %v9882_v15, 2  ;;  %9887 = vst [vmem:[#allocation224_spill] sm:$0xff] %v5797_v11  ;;  %v1392_v15 = vrot.slane %v5140_v57, 2  ;;  %v1387_v49 = vrot.slane %v9892_v63, 2  ;;  %v9895_v29 = vld [vmem:[#allocation94_spill] sm:$0xff] }
 0x122   :  { %v5791_v41 = vpop.permute.xlu0 %1204  ;;  %v1390_v55 = vrot.slane %v9895_v29, 2  ;;  %v9901_v29 = vld [vmem:[#allocation106_spill] sm:$0xff] }
 0x123   :  { %v5789_v38 = vpop.permute.xlu2 %1451  ;;  %9884 = vst [vmem:[#allocation76_spill] sm:$0xff] %v5791_v41  ;;  %v5800_v18 = vsel %vm1276_vm2, %v1378_v2, %v1380_v53  ;;  %v9890_v41 = vld [vmem:[#allocation91_spill] sm:$0xff] }
 0x124   :  { %1515 = vrot.lane.b32.xlu1 %v5778_v7, %s4316_s0  ;;  %9883 = vst [vmem:[#allocation83_spill] sm:$0xff] %v5789_v38  ;;  %v1393_v38 = vrot.slane %v9890_v41, 2 }
 0x125   :  { %9888 = vst [vmem:[#allocation225_spill] sm:$0xff] %v5800_v18 }
 0x127   :  { %v5794_v62 = vpop.permute.xlu1 %1206 }
 0x128   :  { %9886 = vst [vmem:[#allocation223_spill] sm:$0xff] %v5794_v62  ;;  %1523 = vrot.lane.b32.xlu2 %v5797_v11, %s4316_s0  ;;  %1519 = vrot.lane.b32.xlu0 %v5800_v18, %s4316_s0  ;;  %v9891_v62 = vld [vmem:[#allocation85_spill] sm:$0xff]  ;;  %v5823_v18 = vsel %vm1276_vm2, %v1392_v15, %v1393_v38 }
 0x129   :  { %v1388_v7 = vrot.slane %v9891_v62, 2  ;;  %9897 = vst [vmem:[#allocation229_spill] sm:$0xff] %v5823_v18 }
 0x12a   :  { %v5817_v53 = vpop.permute.xlu0 %1210 }
 0x12b   :  { %v5815_v2 = vpop.permute.xlu2 %1457  ;;  %9894 = vst [vmem:[#allocation228_spill] sm:$0xff] %v5817_v53  ;;  %v5826_v57 = vsel %vm1276_vm2, %v1387_v49, %v1388_v7  ;;  %v5829_v62 = vsel %vm1276_vm2, %v1388_v7, %v1390_v55  ;;  %v9900_v53 = vld [vmem:[#allocation97_spill] sm:$0xff]  ;;  %v9905_v7 = vld [vmem:[#allocation100_spill] sm:$0xff] }
 0x12c   :  { %1521 = vrot.lane.b32.xlu1 %v5803_v22, %s4316_s0  ;;  %9893 = vst [vmem:[#allocation227_spill] sm:$0xff] %v5815_v2  ;;  %v1398_v2 = vrot.slane %v9900_v53, 2  ;;  %v1400_v22 = vrot.slane %v9901_v29, 2  ;;  %v1397_v55 = vrot.slane %v9905_v7, 2 }
 0x12d   :  { %9898 = vst [vmem:[#allocation230_spill] sm:$0xff] %v5826_v57 }
 0x12e   :  { %9899 = vst [vmem:[#allocation231_spill] sm:$0xff] %v5829_v62  ;;  %v5854_v29 = vsel %vm1276_vm2, %v1397_v55, %v1398_v2 }
 0x12f   :  { %v5820_v11 = vpop.permute.xlu1 %1437  ;;  %9909 = vst [vmem:[#allocation235_spill] sm:$0xff] %v5854_v29 }
 0x130   :  { %9896 = vst [vmem:[#allocation94_spill] sm:$0xff] %v5820_v11  ;;  %1529 = vrot.lane.b32.xlu2 %v5823_v18, %s4316_s0  ;;  %1525 = vrot.lane.b32.xlu0 %v5826_v57, %s4316_s0  ;;  %v9902_v11 = vld [vmem:[#allocation93_spill] sm:$0xff]  ;;  %v5848_v18 = vsel %vm1276_vm2, %v1398_v2, %v1400_v22  ;;  %v9913_v22 = vld [vmem:[#allocation99_spill] sm:$0xff]  ;;  %v9916_v2 = vld [vmem:[#allocation112_spill] sm:$0xff] }
 0x131   :  { %v1395_v41 = vrot.slane %v9902_v11, 2  ;;  %9907 = vst [vmem:[#allocation233_spill] sm:$0xff] %v5848_v18  ;;  %v9910_v11 = vld [vmem:[#allocation117_spill] sm:$0xff]  ;;  %v1402_v7 = vrot.slane %v9913_v22, 2  ;;  %v1405_v55 = vrot.slane %v9916_v2, 2  ;;  %v1415_v2 = vrot.slane %v5326_v46, 2 }
 0x132   :  { %v5842_v15 = vpop.permute.xlu0 %1441 }
 0x133   :  { %v5840_v49 = vpop.permute.xlu2 %1463  ;;  %9904 = vst [vmem:[#allocation93_spill] sm:$0xff] %v5842_v15  ;;  %v5851_v57 = vsel %vm1276_vm2, %v1393_v38, %v1395_v41  ;;  %v9911_v15 = vld [vmem:[#allocation114_spill] sm:$0xff] }
 0x134   :  { %1527 = vrot.lane.b32.xlu1 %v5829_v62, %s4316_s0  ;;  %9903 = vst [vmem:[#allocation106_spill] sm:$0xff] %v5840_v49  ;;  %v1407_v49 = vrot.slane %v9910_v11, 2  ;;  %v1408_v62 = vrot.slane %v9911_v15, 2 }
 0x135   :  { %9908 = vst [vmem:[#allocation234_spill] sm:$0xff] %v5851_v57 }
 0x137   :  { %v5845_v60 = vpop.permute.xlu1 %1443 }
 0x138   :  { %9906 = vst [vmem:[#allocation232_spill] sm:$0xff] %v5845_v60  ;;  %1535 = vrot.lane.b32.xlu2 %v5848_v18, %s4316_s0  ;;  %1531 = vrot.lane.b32.xlu0 %v5851_v57, %s4316_s0  ;;  %v9912_v60 = vld [vmem:[#allocation98_spill] sm:$0xff]  ;;  %v5874_v57 = vsel %vm1276_vm2, %v1407_v49, %v1408_v62 }
 0x139   :  { %v1403_v53 = vrot.slane %v9912_v60, 2  ;;  %9918 = vst [vmem:[#allocation238_spill] sm:$0xff] %v5874_v57 }
 0x13a   :  { %v5868_v41 = vpop.permute.xlu0 %1447 }
 0x13b   :  { %v5866_v38 = vpop.permute.xlu2 %1469  ;;  %9915 = vst [vmem:[#allocation237_spill] sm:$0xff] %v5868_v41  ;;  %v5877_v11 = vsel %vm1276_vm2, %v1402_v7, %v1403_v53  ;;  %v5880_v60 = vsel %vm1276_vm2, %v1403_v53, %v1405_v55  ;;  %v1413_v41 = vrot.slane %v5303_v6, 2  ;;  %v1412_v53 = vrot.slane %v5306_v47, 2 }
 0x13c   :  { %1533 = vrot.lane.b32.xlu1 %v5854_v29, %s4316_s0  ;;  %9914 = vst [vmem:[#allocation236_spill] sm:$0xff] %v5866_v38 }
 0x13d   :  { %9919 = vst [vmem:[#allocation239_spill] sm:$0xff] %v5877_v11  ;;  %v5905_v46 = vsel %vm1276_vm2, %v1412_v53, %v1413_v41 }
 0x13e   :  { %9920 = vst [vmem:[#allocation240_spill] sm:$0xff] %v5880_v60 }
 0x13f   :  { %v5871_v18 = vpop.permute.xlu1 %1449  ;;  %9927 = vst [vmem:[#allocation245_spill] sm:$0xff] %v5905_v46 }
 0x140   :  { %9917 = vst [vmem:[#allocation112_spill] sm:$0xff] %v5871_v18  ;;  %1541 = vrot.lane.b32.xlu2 %v5874_v57, %s4316_s0  ;;  %1537 = vrot.lane.b32.xlu0 %v5877_v11, %s4316_s0  ;;  %v9921_v18 = vld [vmem:[#allocation115_spill] sm:$0xff]  ;;  %v5899_v57 = vsel %vm1276_vm2, %v1413_v41, %v1415_v2  ;;  %v9928_v2 = vld [vmem:[#allocation126_spill] sm:$0xff]  ;;  %v1420_v41 = vrot.slane %v5358_v16, 2  ;;  %v1430_v16 = vrot.slane %v5408_v56, 2 }
 0x141   :  { %v1410_v38 = vrot.slane %v9921_v18, 2  ;;  %9925 = vst [vmem:[#allocation243_spill] sm:$0xff] %v5899_v57  ;;  %v1422_v18 = vrot.slane %v5368_v30, 2 }
 0x142   :  { %v5893_v7 = vpop.permute.xlu0 %1453 }
 0x143   :  { %v5891_v49 = vpop.permute.xlu2 %1475  ;;  %9923 = vst [vmem:[#allocation241_spill] sm:$0xff] %v5893_v7  ;;  %v5902_v11 = vsel %vm1276_vm2, %v1408_v62, %v1410_v38  ;;  %v1423_v7 = vrot.slane %v5352_v3, 2 }
 0x144   :  { %1539 = vrot.lane.b32.xlu1 %v5880_v60, %s4316_s0  ;;  %9922 = vst [vmem:[#allocation115_spill] sm:$0xff] %v5891_v49  ;;  %v1417_v49 = vrot.slane %v9928_v2, 2 }
 0x145   :  { %9926 = vst [vmem:[#allocation244_spill] sm:$0xff] %v5902_v11 }
 0x147   :  { %v5896_v55 = vpop.permute.xlu1 %1455 }
 0x148   :  { %9924 = vst [vmem:[#allocation242_spill] sm:$0xff] %v5896_v55  ;;  %1547 = vrot.lane.b32.xlu2 %v5899_v57, %s4316_s0  ;;  %1543 = vrot.lane.b32.xlu0 %v5902_v11, %s4316_s0  ;;  %v1418_v55 = vrot.slane %v5309_v5, 2  ;;  %v5925_v57 = vsel %vm1276_vm2, %v1422_v18, %v1423_v7 }
 0x149   :  { %9932 = vst [vmem:[#allocation249_spill] sm:$0xff] %v5925_v57 }
 0x14a   :  { %v5919_v38 = vpop.permute.xlu0 %1459  ;;  %v5928_v11 = vsel %vm1276_vm2, %v1417_v49, %v1418_v55  ;;  %v5931_v60 = vsel %vm1276_vm2, %v1418_v55, %v1420_v41  ;;  %v1427_v55 = vrot.slane %v5398_v25, 2 }
 0x14b   :  { %v5917_v62 = vpop.permute.xlu2 %1481  ;;  %9930 = vst [vmem:[#allocation247_spill] sm:$0xff] %v5919_v38  ;;  %v1428_v38 = vrot.slane %v5389_v9, 2 }
 0x14c   :  { %1545 = vrot.lane.b32.xlu1 %v5905_v46, %s4316_s0  ;;  %9929 = vst [vmem:[#allocation246_spill] sm:$0xff] %v5917_v62 }
 0x14d   :  { %9933 = vst [vmem:[#allocation250_spill] sm:$0xff] %v5928_v11  ;;  %v5950_v62 = vsel %vm1276_vm2, %v1428_v38, %v1430_v16  ;;  %v5956_v56 = vsel %vm1276_vm2, %v1427_v55, %v1428_v38  ;;  %v1435_v38 = vrot.slane %v5430_v26, 2 }
 0x14e   :  { %9934 = vst [vmem:[#allocation251_spill] sm:$0xff] %v5931_v60 }
 0x14f   :  { %v5922_v53 = vpop.permute.xlu1 %1461  ;;  %9938 = vst [vmem:[#allocation255_spill] sm:$0xff] %v5950_v62 }
 0x150   :  { %9931 = vst [vmem:[#allocation248_spill] sm:$0xff] %v5922_v53  ;;  %1553 = vrot.lane.b32.xlu2 %v5925_v57, %s4316_s0  ;;  %1549 = vrot.lane.b32.xlu0 %v5928_v11, %s4316_s0  ;;  %v1425_v53 = vrot.slane %v5355_v13, 2  ;;  %v1433_v13 = vrot.slane %v5392_v0, 2 }
 0x151   :  { %9940 = vst [vmem:[#allocation257_spill] sm:$0xff] %v5956_v56 }
 0x152   :  { %v5944_v18 = vpop.permute.xlu0 %1465  ;;  %v5953_v57 = vsel %vm1276_vm2, %v1423_v7, %v1425_v53 }
 0x153   :  { %v5942_v49 = vpop.permute.xlu2 %1487  ;;  %9936 = vst [vmem:[#allocation253_spill] sm:$0xff] %v5944_v18  ;;  %v1432_v18 = vrot.slane %v5395_v27, 2 }
 0x154   :  { %1551 = vrot.lane.b32.xlu1 %v5931_v60, %s4316_s0  ;;  %9935 = vst [vmem:[#allocation252_spill] sm:$0xff] %v5942_v49 }
 0x155   :  { %9939 = vst [vmem:[#allocation256_spill] sm:$0xff] %v5953_v57  ;;  %v5974_v55 = vsel %vm1276_vm2, %v1432_v18, %v1433_v13 }
 0x156   :  { %9944 = vst [vmem:[#allocation261_spill] sm:$0xff] %v5974_v55 }
 0x157   :  { %v5947_v41 = vpop.permute.xlu1 %1467 }
 0x158   :  { %9937 = vst [vmem:[#allocation254_spill] sm:$0xff] %v5947_v41  ;;  %1559 = vrot.lane.b32.xlu2 %v5950_v62, %s4316_s0  ;;  %1555 = vrot.lane.b32.xlu0 %v5953_v57, %s4316_s0  ;;  %v5977_v41 = vsel %vm1276_vm2, %v1433_v13, %v1435_v38 }
 0x159   :  { %9945 = vst [vmem:[#allocation262_spill] sm:$0xff] %v5977_v41 }
 0x15a   :  { %v5968_v7 = vpop.permute.xlu0 %1471 }
 0x15b   :  { %v5966_v16 = vpop.permute.xlu2 %1493  ;;  %9942 = vst [vmem:[#allocation259_spill] sm:$0xff] %v5968_v7 }
 0x15c   :  { %1557 = vrot.lane.b32.xlu1 %v5956_v56, %s4316_s0  ;;  %9941 = vst [vmem:[#allocation258_spill] sm:$0xff] %v5966_v16 }
 0x15f   :  { %v5971_v53 = vpop.permute.xlu1 %1473 }
 0x160   :  { %9943 = vst [vmem:[#allocation260_spill] sm:$0xff] %v5971_v53  ;;  %1631 = vrot.lane.b32.xlu2 %v4439_v51, %s4317_s29  ;;  %1561 = vrot.lane.b32.xlu0 %v5974_v55, %s4316_s0  ;;  %v9971_v53 = vld [vmem:[#allocation107_spill] sm:$0xff] }
 0x162   :  { %v5987_v26 = vpop.permute.xlu0 %1477 }
 0x163   :  { %v5985_v16 = vpop.permute.xlu2 %1499  ;;  %9947 = vst [vmem:[#allocation264_spill] sm:$0xff] %v5987_v26 }
 0x164   :  { %1563 = vrot.lane.b32.xlu1 %v5977_v41, %s4316_s0  ;;  %9946 = vst [vmem:[#allocation263_spill] sm:$0xff] %v5985_v16 }
 0x167   :  { %v5989_v49 = vpop.permute.xlu1 %1479 }
 0x168   :  { %9948 = vst [vmem:[#allocation265_spill] sm:$0xff] %v5989_v49  ;;  %1637 = vrot.lane.b32.xlu2 %v4426_v44, %s4317_s29  ;;  %1633 = vrot.lane.b32.xlu0 %v4436_v50, %s4317_s29 }
 0x16a   :  { %v5999_v13 = vpop.permute.xlu0 %1483 }
 0x16b   :  { %v5997_v18 = vpop.permute.xlu2 %1505  ;;  %9950 = vst [vmem:[#allocation267_spill] sm:$0xff] %v5999_v13 }
 0x16c   :  { %1635 = vrot.lane.b32.xlu1 %v4429_v45, %s4317_s29  ;;  %9949 = vst [vmem:[#allocation266_spill] sm:$0xff] %v5997_v18 }
 0x16f   :  { %v6001_v38 = vpop.permute.xlu1 %1485 }
 0x170   :  { %9951 = vst [vmem:[#allocation268_spill] sm:$0xff] %v6001_v38  ;;  %1643 = vrot.lane.b32.xlu2 %v4532_v37, %s4317_s29  ;;  %1639 = vrot.lane.b32.xlu0 %v4423_v43, %s4317_s29 }
 0x172   :  { %v6011_v49 = vpop.permute.xlu0 %1489 }
 0x173   :  { %v6009_v16 = vpop.permute.xlu2 %1511  ;;  %9953 = vst [vmem:[#allocation270_spill] sm:$0xff] %v6011_v49 }
 0x174   :  { %1641 = vrot.lane.b32.xlu1 %v4420_v42, %s4317_s29  ;;  %9952 = vst [vmem:[#allocation269_spill] sm:$0xff] %v6009_v16 }
 0x177   :  { %v6013_v26 = vpop.permute.xlu1 %1491 }
 0x178   :  { %9954 = vst [vmem:[#allocation271_spill] sm:$0xff] %v6013_v26  ;;  %1649 = vrot.lane.b32.xlu2 %v4556_v1, %s4317_s29  ;;  %1645 = vrot.lane.b32.xlu0 %v4529_v36, %s4317_s29 }
 0x17a   :  { %v6023_v13 = vpop.permute.xlu0 %1495 }
 0x17b   :  { %v6021_v38 = vpop.permute.xlu2 %1517  ;;  %9956 = vst [vmem:[#allocation273_spill] sm:$0xff] %v6023_v13 }
 0x17c   :  { %1647 = vrot.lane.b32.xlu1 %v4574_v12, %s4317_s29  ;;  %9955 = vst [vmem:[#allocation272_spill] sm:$0xff] %v6021_v38 }
 0x17f   :  { %v6025_v18 = vpop.permute.xlu1 %1497 }
 0x180   :  { %9957 = vst [vmem:[#allocation274_spill] sm:$0xff] %v6025_v18  ;;  %1655 = vrot.lane.b32.xlu2 %v4604_v35, %s4317_s29  ;;  %1651 = vrot.lane.b32.xlu0 %v4611_v40, %s4317_s29 }
 0x182   :  { %v6035_v49 = vpop.permute.xlu0 %1501 }
 0x183   :  { %v6033_v26 = vpop.permute.xlu2 %1523  ;;  %9959 = vst [vmem:[#allocation276_spill] sm:$0xff] %v6035_v49 }
 0x184   :  { %1653 = vrot.lane.b32.xlu1 %v4608_v39, %s4317_s29  ;;  %9958 = vst [vmem:[#allocation275_spill] sm:$0xff] %v6033_v26 }
 0x187   :  { %v6037_v16 = vpop.permute.xlu1 %1503 }
 0x188   :  { %9960 = vst [vmem:[#allocation277_spill] sm:$0xff] %v6037_v16  ;;  %1661 = vrot.lane.b32.xlu2 %v4657_v31, %s4317_s29  ;;  %1657 = vrot.lane.b32.xlu0 %v4601_v34, %s4317_s29 }
 0x18a   :  { %v6047_v13 = vpop.permute.xlu0 %1507 }
 0x18b   :  { %v6045_v18 = vpop.permute.xlu2 %1529  ;;  %9962 = vst [vmem:[#allocation279_spill] sm:$0xff] %v6047_v13 }
 0x18c   :  { %1659 = vrot.lane.b32.xlu1 %v4671_v48, %s4317_s29  ;;  %9961 = vst [vmem:[#allocation278_spill] sm:$0xff] %v6045_v18 }
 0x18f   :  { %v6049_v38 = vpop.permute.xlu1 %1509 }
 0x190   :  { %9963 = vst [vmem:[#allocation280_spill] sm:$0xff] %v6049_v38  ;;  %1667 = vrot.lane.b32.xlu2 %v4696_v23, %s4317_s29  ;;  %1663 = vrot.lane.b32.xlu0 %v4710_v58, %s4317_s29 }
 0x192   :  { %v6059_v16 = vpop.permute.xlu0 %1513 }
 0x193   :  { %v6057_v26 = vpop.permute.xlu2 %1535  ;;  %9965 = vst [vmem:[#allocation282_spill] sm:$0xff] %v6059_v16 }
 0x194   :  { %1665 = vrot.lane.b32.xlu1 %v4707_v28, %s4317_s29  ;;  %9964 = vst [vmem:[#allocation281_spill] sm:$0xff] %v6057_v26  ;;  %v227_v26 = vld [vmem:[%s9252_s1 + $0xf0] sm:$0xff] }
 0x197   :  { %v6061_v49 = vpop.permute.xlu1 %1515 }
 0x198   :  { %9966 = vst [vmem:[#allocation283_spill] sm:$0xff] %v6061_v49  ;;  %1673 = vrot.lane.b32.xlu2 %v4748_v33, %s4317_s29  ;;  %1669 = vrot.lane.b32.xlu0 %v4702_v19, %s4317_s29  ;;  %v9970_v49 = vld [vmem:[#allocation102_spill] sm:$0xff] }
 0x199   :  { %v294_v13 = vmul.f32 %v9970_v49, %v227_v26 }
 0x19a   :  { %v6071_v38 = vpop.permute.xlu0 %1519 }
 0x19b   :  { %v6069_v18 = vpop.permute.xlu2 %1541  ;;  %9968 = vst [vmem:[#allocation285_spill] sm:$0xff] %v6071_v38  ;;  %v361_v7 = vadd.f32 %v9971_v53, %v294_v13 }
 0x19c   :  { %1671 = vrot.lane.b32.xlu1 %v4775_v17, %s4317_s29  ;;  %9967 = vst [vmem:[#allocation284_spill] sm:$0xff] %v6069_v18 }
 0x19d   :  { %v425_v50 = vmax.f32 %v361_v7, 0.0 }
 0x19f   :  { %v6076_v16 = vpop.permute.xlu1 %1521  ;;  %v623_v13 = vrot.slane %v425_v50, 7 }
 0x1a0   :  { %9969 = vst [vmem:[#allocation286_spill] sm:$0xff] %v6076_v16  ;;  %1679 = vrot.lane.b32.xlu2 %v9833_v10, %s4317_s29  ;;  %1675 = vrot.lane.b32.xlu0 %v9825_v8, %s4317_s29  ;;  %v228_v16 = vld [vmem:[%s9252_s1 + $0xf8] sm:$0xff] }
 0x1a1   :  { %v295_v51 = vmul.f32 %v9970_v49, %v228_v16  ;;  %v6110_v49 = vsel %vm574_vm0, 0.0, %v623_v13 }
 0x1a2   :  { %v6088_v18 = vpop.permute.xlu0 %1525 }
 0x1a3   :  { %v6086_v38 = vpop.permute.xlu2 %1547  ;;  %9973 = vst [vmem:[#allocation107_spill] sm:$0xff] %v6088_v18 }
 0x1a4   :  { %1677 = vrot.lane.b32.xlu1 %v9820_v24, %s4317_s29  ;;  %9972 = vst [vmem:[#allocation102_spill] sm:$0xff] %v6086_v38  ;;  %v362_v38 = vadd.f32 %v9971_v53, %v295_v51 }
 0x1a6   :  { %v426_v16 = vmax.f32 %v362_v38, 0.0 }
 0x1a7   :  { %v6093_v26 = vpop.permute.xlu1 %1527 }
 0x1a8   :  { %9974 = vst [vmem:[#allocation287_spill] sm:$0xff] %v6093_v26  ;;  %1685 = vrot.lane.b32.xlu2 %v9831_v32, %s4317_s29  ;;  %1681 = vrot.lane.b32.xlu0 %v9832_v14, %s4317_s29  ;;  %v6116_v50 = vrot.slane %v426_v16, 7 }
 0x1aa   :  { %v6105_v10 = vpop.permute.xlu0 %1531  ;;  %v6128_v38 = vsel %vm574_vm0, %v623_v13, %v6116_v50  ;;  %v9984_v13 = vld [vmem:[#allocation64_spill] sm:$0xff] }
 0x1ab   :  { %v6103_v18 = vpop.permute.xlu2 %1553  ;;  %9976 = vst [vmem:[#allocation289_spill] sm:$0xff] %v6105_v10 }
 0x1ac   :  { %1683 = vrot.lane.b32.xlu1 %v9830_v21, %s4317_s29  ;;  %9975 = vst [vmem:[#allocation288_spill] sm:$0xff] %v6103_v18 }
 0x1af   :  { %v6107_v26 = vpop.permute.xlu1 %1533 }
 0x1b0   :  { %9977 = vst [vmem:[#allocation290_spill] sm:$0xff] %v6107_v26  ;;  %1691 = vrot.lane.b32.xlu2 %v6110_v49, %s4317_s29  ;;  %1687 = vrot.lane.b32.xlu0 %v9846_v59, %s4317_s29  ;;  %v9988_v26 = vld [vmem:[#allocation75_spill] sm:$0xff] }
 0x1b2   :  { %v6122_v7 = vpop.permute.xlu0 %1537 }
 0x1b3   :  { %v6120_v51 = vpop.permute.xlu2 %1559  ;;  %9979 = vst [vmem:[#allocation292_spill] sm:$0xff] %v6122_v7 }
 0x1b4   :  { %1689 = vrot.lane.b32.xlu1 %v9841_v4, %s4317_s29  ;;  %9978 = vst [vmem:[#allocation291_spill] sm:$0xff] %v6120_v51 }
 0x1b7   :  { %v6124_v53 = vpop.permute.xlu1 %1539 }
 0x1b8   :  { %9980 = vst [vmem:[#allocation293_spill] sm:$0xff] %v6124_v53  ;;  %1697 = vrot.lane.b32.xlu2 %v9852_v20, %s4317_s29  ;;  %1693 = vrot.lane.b32.xlu0 %v6128_v38, %s4317_s29 }
 0x1ba   :  { %v6138_v51 = vpop.permute.xlu0 %1543 }
 0x1bb   :  { %v6136_v16 = vpop.permute.xlu2 %1631  ;;  %9982 = vst [vmem:[#allocation295_spill] sm:$0xff] %v6138_v51  ;;  %v9990_v51 = vld [vmem:[#allocation73_spill] sm:$0xff] }
 0x1bc   :  { %1695 = vrot.lane.b32.xlu1 %v9851_v61, %s4317_s29  ;;  %9981 = vst [vmem:[#allocation294_spill] sm:$0xff] %v6136_v16 }
 0x1bf   :  { %v6140_v10 = vpop.permute.xlu1 %1545 }
 0x1c0   :  { %9983 = vst [vmem:[#allocation296_spill] sm:$0xff] %v6140_v10  ;;  %1703 = vrot.lane.b32.xlu2 %v9873_v52, %s4317_s29  ;;  %1699 = vrot.lane.b32.xlu0 %v9865_v54, %s4317_s29  ;;  %v9989_v10 = vld [vmem:[#allocation67_spill] sm:$0xff] }
 0x1c2   :  { %v6150_v53 = vpop.permute.xlu0 %1549 }
 0x1c3   :  { %v6148_v18 = vpop.permute.xlu2 %1637  ;;  %9986 = vst [vmem:[#allocation298_spill] sm:$0xff] %v6150_v53  ;;  %v9995_v53 = vld [vmem:[#allocation82_spill] sm:$0xff] }
 0x1c4   :  { %1701 = vrot.lane.b32.xlu1 %v9984_v13, %s4317_s29  ;;  %9985 = vst [vmem:[#allocation297_spill] sm:$0xff] %v6148_v18 }
 0x1c7   :  { %v6152_v7 = vpop.permute.xlu1 %1551 }
 0x1c8   :  { %9987 = vst [vmem:[#allocation299_spill] sm:$0xff] %v6152_v7  ;;  %1709 = vrot.lane.b32.xlu2 %v9988_v26, %s4317_s29  ;;  %1705 = vrot.lane.b32.xlu0 %v9989_v10, %s4317_s29  ;;  %v9994_v7 = vld [vmem:[#allocation84_spill] sm:$0xff] }
 0x1ca   :  { %v6162_v61 = vpop.permute.xlu0 %1555 }
 0x1cb   :  { %v6160_v20 = vpop.permute.xlu2 %1643  ;;  %9992 = vst [vmem:[#allocation301_spill] sm:$0xff] %v6162_v61  ;;  %v10001_v61 = vld [vmem:[#allocation92_spill] sm:$0xff] }
 0x1cc   :  { %1707 = vrot.lane.b32.xlu1 %v9990_v51, %s4317_s29  ;;  %9991 = vst [vmem:[#allocation300_spill] sm:$0xff] %v6160_v20  ;;  %v9999_v20 = vld [vmem:[#allocation91_spill] sm:$0xff] }
 0x1cf   :  { %v6164_v16 = vpop.permute.xlu1 %1557 }
 0x1d0   :  { %9993 = vst [vmem:[#allocation302_spill] sm:$0xff] %v6164_v16  ;;  %1715 = vrot.lane.b32.xlu2 %v9892_v63, %s4317_s29  ;;  %1711 = vrot.lane.b32.xlu0 %v9994_v7, %s4317_s29  ;;  %v10000_v16 = vld [vmem:[#allocation85_spill] sm:$0xff] }
 0x1d2   :  { %v6174_v26 = vpop.permute.xlu0 %1561 }
 0x1d3   :  { %v6172_v18 = vpop.permute.xlu2 %1649  ;;  %9997 = vst [vmem:[#allocation304_spill] sm:$0xff] %v6174_v26  ;;  %v10006_v26 = vld [vmem:[#allocation97_spill] sm:$0xff] }
 0x1d4   :  { %1713 = vrot.lane.b32.xlu1 %v9995_v53, %s4317_s29  ;;  %9996 = vst [vmem:[#allocation303_spill] sm:$0xff] %v6172_v18 }
 0x1d7   :  { %v6176_v10 = vpop.permute.xlu1 %1563 }
 0x1d8   :  { %9998 = vst [vmem:[#allocation305_spill] sm:$0xff] %v6176_v10  ;;  %1721 = vrot.lane.b32.xlu2 %v9999_v20, %s4317_s29  ;;  %1717 = vrot.lane.b32.xlu0 %v10000_v16, %s4317_s29  ;;  %v10005_v10 = vld [vmem:[#allocation100_spill] sm:$0xff] }
 0x1da   :  { %v6186_v7 = vpop.permute.xlu0 %1633 }
 0x1db   :  { %v6184_v63 = vpop.permute.xlu2 %1655  ;;  %10003 = vst [vmem:[#allocation307_spill] sm:$0xff] %v6186_v7 }
 0x1dc   :  { %1719 = vrot.lane.b32.xlu1 %v10001_v61, %s4317_s29  ;;  %10002 = vst [vmem:[#allocation306_spill] sm:$0xff] %v6184_v63  ;;  %v10010_v63 = vld [vmem:[#allocation98_spill] sm:$0xff] }
 0x1df   :  { %v6188_v53 = vpop.permute.xlu1 %1635 }
 0x1e0   :  { %10004 = vst [vmem:[#allocation308_spill] sm:$0xff] %v6188_v53  ;;  %1727 = vrot.lane.b32.xlu2 %v9913_v22, %s4317_s29  ;;  %1723 = vrot.lane.b32.xlu0 %v10005_v10, %s4317_s29  ;;  %v10011_v53 = vld [vmem:[#allocation117_spill] sm:$0xff] }
 0x1e2   :  { %v6198_v20 = vpop.permute.xlu0 %1639 }
 0x1e3   :  { %v6196_v18 = vpop.permute.xlu2 %1661  ;;  %10008 = vst [vmem:[#allocation310_spill] sm:$0xff] %v6198_v20  ;;  %v6235_v20 = vld [vmem:[%s9254_s3] ss:$0 sm:$0xff] }
 0x1e4   :  { %1725 = vrot.lane.b32.xlu1 %v10006_v26, %s4317_s29  ;;  %10007 = vst [vmem:[#allocation309_spill] sm:$0xff] %v6196_v18 }
 0x1e7   :  { %v6200_v16 = vpop.permute.xlu1 %1641 }
 0x1e8   :  { %10009 = vst [vmem:[#allocation311_spill] sm:$0xff] %v6200_v16  ;;  %1733 = vrot.lane.b32.xlu2 %v9911_v15, %s4317_s29  ;;  %1729 = vrot.lane.b32.xlu0 %v10010_v63, %s4317_s29 }
 0x1ea   :  { %v6210_v22 = vpop.permute.xlu0 %1645 }
 0x1eb   :  { %v6208_v7 = vpop.permute.xlu2 %1667  ;;  %10013 = vst [vmem:[#allocation313_spill] sm:$0xff] %v6210_v22 }
 0x1ec   :  { %1731 = vrot.lane.b32.xlu1 %v10011_v53, %s4317_s29  ;;  %10012 = vst [vmem:[#allocation312_spill] sm:$0xff] %v6208_v7  ;;  %v259_v7 = vld [vmem:[%s9252_s1 + $0x1f0] sm:$0xff] }
 0x1ef   :  { %v6212_v10 = vpop.permute.xlu1 %1647 }
 0x1f0   :  { %10014 = vst [vmem:[#allocation314_spill] sm:$0xff] %v6212_v10  ;;  %1739 = vrot.lane.b32.xlu2 %v9928_v2, %s4317_s29  ;;  %1735 = vrot.lane.b32.xlu0 %v5306_v47, %s4317_s29  ;;  %v260_v10 = vld [vmem:[%s9252_s1 + $0x1f8] sm:$0xff]  ;;  %v326_v2 = vmul.f32 %v6235_v20, %v259_v7  ;;  %s4318_s1 = smov 16  }
 0x1f2   :  { %v6222_v16 = vpop.permute.xlu0 %1651 }
 0x1f3   :  { %v6220_v18 = vpop.permute.xlu2 %1673  ;;  %10016 = vst [vmem:[#allocation316_spill] sm:$0xff] %v6222_v16  ;;  %v6246_v16 = vld [vmem:[%s9255_s4] ss:$0 sm:$0xff] }
 0x1f4   :  { %1737 = vrot.lane.b32.xlu1 %v5303_v6, %s4317_s29  ;;  %10015 = vst [vmem:[#allocation315_spill] sm:$0xff] %v6220_v18  ;;  %v327_v18 = vmul.f32 %v6235_v20, %v260_v10 }
 0x1f6   :  { %v394_v47 = vadd.f32 %v6246_v16, %v327_v18 }
 0x1f7   :  { %v6230_v22 = vpop.permute.xlu1 %1653 }
 0x1f8   :  { %10017 = vst [vmem:[#allocation317_spill] sm:$0xff] %v6230_v22  ;;  %1745 = vrot.lane.b32.xlu2 %v5352_v3, %s4317_s29  ;;  %1741 = vrot.lane.b32.xlu0 %v5309_v5, %s4317_s29  ;;  %v393_v22 = vadd.f32 %v6246_v16, %v326_v2  ;;  %v458_v5 = vmax.f32 %v394_v47, 0.0 }
 0x1fa   :  { %v6254_v10 = vpop.permute.xlu0 %1657  ;;  %v457_v15 = vmax.f32 %v393_v22, 0.0  ;;  %v6262_v6 = vrot.slane %v458_v5, 7 }
 0x1fb   :  { %v6252_v7 = vpop.permute.xlu2 %1679  ;;  %10019 = vst [vmem:[#allocation319_spill] sm:$0xff] %v6254_v10 }
 0x1fc   :  { %1743 = vrot.lane.b32.xlu1 %v5368_v30, %s4317_s29  ;;  %10018 = vst [vmem:[#allocation318_spill] sm:$0xff] %v6252_v7  ;;  %v677_v2 = vrot.slane %v457_v15, 7 }
 0x1fe   :  { %v6274_v47 = vsel %vm574_vm0, %v677_v2, %v6262_v6  ;;  %v6277_v22 = vsel %vm574_vm0, 0.0, %v677_v2  ;;  %v10029_v2 = vld [vmem:[#allocation8_spill] sm:$0xff] }
 0x1ff   :  { %v6256_v3 = vpop.permute.xlu1 %1659  ;;  %10024 = vst [vmem:[#allocation324_spill] sm:$0xff] %v6274_v47 }
 0x200   :  { %10020 = vst [vmem:[#allocation320_spill] sm:$0xff] %v6256_v3  ;;  %1751 = vrot.lane.b32.xlu2 %v5395_v27, %s4317_s29  ;;  %1747 = vrot.lane.b32.xlu0 %v5398_v25, %s4317_s29  ;;  %v10028_v3 = vld [vmem:[#allocation7_spill] sm:$0xff]  ;;  %v10090_v25 = vld [vmem:[#allocation68_spill] sm:$0xff] }
 0x202   :  { %v6268_v7 = vpop.permute.xlu0 %1663 }
 0x203   :  { %v6266_v18 = vpop.permute.xlu2 %1685  ;;  %10022 = vst [vmem:[#allocation322_spill] sm:$0xff] %v6268_v7 }
 0x204   :  { %1749 = vrot.lane.b32.xlu1 %v5389_v9, %s4317_s29  ;;  %10021 = vst [vmem:[#allocation321_spill] sm:$0xff] %v6266_v18 }
 0x207   :  { %v6270_v10 = vpop.permute.xlu1 %1665 }
 0x208   :  { %10023 = vst [vmem:[#allocation323_spill] sm:$0xff] %v6270_v10  ;;  %1757 = vrot.lane.b32.xlu2 %v6274_v47, %s4317_s29  ;;  %1753 = vrot.lane.b32.xlu0 %v5392_v0, %s4317_s29  ;;  %v10030_v10 = vld [vmem:[#allocation12_spill] sm:$0xff] }
 0x20a   :  { %v6287_v15 = vpop.permute.xlu0 %1669 }
 0x20b   :  { %v6285_v5 = vpop.permute.xlu2 %1691  ;;  %10026 = vst [vmem:[#allocation326_spill] sm:$0xff] %v6287_v15  ;;  %v10036_v15 = vld [vmem:[#allocation6_spill] sm:$0xff] }
 0x20c   :  { %1755 = vrot.lane.b32.xlu1 %v6277_v22, %s4317_s29  ;;  %10025 = vst [vmem:[#allocation325_spill] sm:$0xff] %v6285_v5  ;;  %v10034_v5 = vld [vmem:[#allocation15_spill] sm:$0xff] }
 0x20f   :  { %v6289_v18 = vpop.permute.xlu1 %1671 }
 0x210   :  { %10027 = vst [vmem:[#allocation327_spill] sm:$0xff] %v6289_v18  ;;  %1839 = vrot.lane.b32.xlu2 %v10028_v3, %s4318_s1  ;;  %1835 = vrot.lane.b32.xlu0 %v10029_v2, %s4318_s1  ;;  %v10035_v18 = vld [vmem:[#allocation11_spill] sm:$0xff] }
 0x212   :  { %v6299_v0 = vpop.permute.xlu0 %1675 }
 0x213   :  { %v6297_v7 = vpop.permute.xlu2 %1697  ;;  %10032 = vst [vmem:[#allocation12_spill] sm:$0xff] %v6299_v0  ;;  %v10042_v0 = vld [vmem:[#allocation16_spill] sm:$0xff] }
 0x214   :  { %1837 = vrot.lane.b32.xlu1 %v10030_v10, %s4318_s1  ;;  %10031 = vst [vmem:[#allocation8_spill] sm:$0xff] %v6297_v7  ;;  %v10040_v7 = vld [vmem:[#allocation22_spill] sm:$0xff] }
 0x217   :  { %v6301_v27 = vpop.permute.xlu1 %1677 }
 0x218   :  { %10033 = vst [vmem:[#allocation328_spill] sm:$0xff] %v6301_v27  ;;  %1845 = vrot.lane.b32.xlu2 %v10034_v5, %s4318_s1  ;;  %1841 = vrot.lane.b32.xlu0 %v10035_v18, %s4318_s1  ;;  %v10041_v27 = vld [vmem:[#allocation13_spill] sm:$0xff] }
 0x21a   :  { %v6311_v2 = vpop.permute.xlu0 %1681 }
 0x21b   :  { %v6309_v3 = vpop.permute.xlu2 %1703  ;;  %10038 = vst [vmem:[#allocation330_spill] sm:$0xff] %v6311_v2  ;;  %v10048_v2 = vld [vmem:[#allocation24_spill] sm:$0xff] }
 0x21c   :  { %1843 = vrot.lane.b32.xlu1 %v10036_v15, %s4318_s1  ;;  %10037 = vst [vmem:[#allocation329_spill] sm:$0xff] %v6309_v3  ;;  %v10046_v3 = vld [vmem:[#allocation25_spill] sm:$0xff] }
 0x21f   :  { %v6313_v10 = vpop.permute.xlu1 %1683 }
 0x220   :  { %10039 = vst [vmem:[#allocation331_spill] sm:$0xff] %v6313_v10  ;;  %1851 = vrot.lane.b32.xlu2 %v10040_v7, %s4318_s1  ;;  %1847 = vrot.lane.b32.xlu0 %v10041_v27, %s4318_s1  ;;  %v10047_v10 = vld [vmem:[#allocation17_spill] sm:$0xff] }
 0x222   :  { %v6323_v18 = vpop.permute.xlu0 %1687 }
 0x223   :  { %v6321_v5 = vpop.permute.xlu2 %1709  ;;  %10044 = vst [vmem:[#allocation333_spill] sm:$0xff] %v6323_v18  ;;  %v10054_v18 = vld [vmem:[#allocation26_spill] sm:$0xff] }
 0x224   :  { %1849 = vrot.lane.b32.xlu1 %v10042_v0, %s4318_s1  ;;  %10043 = vst [vmem:[#allocation332_spill] sm:$0xff] %v6321_v5  ;;  %v10052_v5 = vld [vmem:[#allocation28_spill] sm:$0xff] }
 0x227   :  { %v6325_v15 = vpop.permute.xlu1 %1689 }
 0x228   :  { %10045 = vst [vmem:[#allocation334_spill] sm:$0xff] %v6325_v15  ;;  %1857 = vrot.lane.b32.xlu2 %v10046_v3, %s4318_s1  ;;  %1853 = vrot.lane.b32.xlu0 %v10047_v10, %s4318_s1  ;;  %v10053_v15 = vld [vmem:[#allocation23_spill] sm:$0xff] }
 0x22a   :  { %v6335_v27 = vpop.permute.xlu0 %1693 }
 0x22b   :  { %v6333_v7 = vpop.permute.xlu2 %1715  ;;  %10050 = vst [vmem:[#allocation336_spill] sm:$0xff] %v6335_v27  ;;  %v10059_v27 = vld [vmem:[#allocation27_spill] sm:$0xff] }
 0x22c   :  { %1855 = vrot.lane.b32.xlu1 %v10048_v2, %s4318_s1  ;;  %10049 = vst [vmem:[#allocation335_spill] sm:$0xff] %v6333_v7  ;;  %v10058_v7 = vld [vmem:[#allocation33_spill] sm:$0xff] }
 0x22f   :  { %v6337_v0 = vpop.permute.xlu1 %1695 }
 0x230   :  { %10051 = vst [vmem:[#allocation337_spill] sm:$0xff] %v6337_v0  ;;  %1863 = vrot.lane.b32.xlu2 %v10052_v5, %s4318_s1  ;;  %1859 = vrot.lane.b32.xlu0 %v10053_v15, %s4318_s1  ;;  %v10060_v0 = vld [vmem:[#allocation32_spill] sm:$0xff] }
 0x232   :  { %v6347_v10 = vpop.permute.xlu0 %1699 }
 0x233   :  { %v6345_v3 = vpop.permute.xlu2 %1721  ;;  %10056 = vst [vmem:[#allocation339_spill] sm:$0xff] %v6347_v10  ;;  %v10066_v10 = vld [vmem:[#allocation35_spill] sm:$0xff] }
 0x234   :  { %1861 = vrot.lane.b32.xlu1 %v10054_v18, %s4318_s1  ;;  %10055 = vst [vmem:[#allocation338_spill] sm:$0xff] %v6345_v3  ;;  %v10064_v3 = vld [vmem:[#allocation40_spill] sm:$0xff] }
 0x237   :  { %v6349_v2 = vpop.permute.xlu1 %1701 }
 0x238   :  { %10057 = vst [vmem:[#allocation340_spill] sm:$0xff] %v6349_v2  ;;  %1869 = vrot.lane.b32.xlu2 %v10058_v7, %s4318_s1  ;;  %1865 = vrot.lane.b32.xlu0 %v10059_v27, %s4318_s1  ;;  %v10065_v2 = vld [vmem:[#allocation29_spill] sm:$0xff] }
 0x23a   :  { %v6359_v15 = vpop.permute.xlu0 %1705 }
 0x23b   :  { %v6357_v5 = vpop.permute.xlu2 %1727  ;;  %10062 = vst [vmem:[#allocation342_spill] sm:$0xff] %v6359_v15  ;;  %v10072_v15 = vld [vmem:[#allocation44_spill] sm:$0xff] }
 0x23c   :  { %1867 = vrot.lane.b32.xlu1 %v10060_v0, %s4318_s1  ;;  %10061 = vst [vmem:[#allocation341_spill] sm:$0xff] %v6357_v5  ;;  %v10070_v5 = vld [vmem:[#allocation47_spill] sm:$0xff] }
 0x23f   :  { %v6361_v18 = vpop.permute.xlu1 %1707 }
 0x240   :  { %10063 = vst [vmem:[#allocation343_spill] sm:$0xff] %v6361_v18  ;;  %1875 = vrot.lane.b32.xlu2 %v10064_v3, %s4318_s1  ;;  %1871 = vrot.lane.b32.xlu0 %v10065_v2, %s4318_s1  ;;  %v10071_v18 = vld [vmem:[#allocation34_spill] sm:$0xff] }
 0x242   :  { %v6371_v27 = vpop.permute.xlu0 %1711 }
 0x243   :  { %v6369_v7 = vpop.permute.xlu2 %1733  ;;  %10068 = vst [vmem:[#allocation345_spill] sm:$0xff] %v6371_v27  ;;  %v10078_v27 = vld [vmem:[#allocation50_spill] sm:$0xff] }
 0x244   :  { %1873 = vrot.lane.b32.xlu1 %v10066_v10, %s4318_s1  ;;  %10067 = vst [vmem:[#allocation344_spill] sm:$0xff] %v6369_v7  ;;  %v10076_v7 = vld [vmem:[#allocation55_spill] sm:$0xff] }
 0x247   :  { %v6373_v0 = vpop.permute.xlu1 %1713 }
 0x248   :  { %10069 = vst [vmem:[#allocation346_spill] sm:$0xff] %v6373_v0  ;;  %1881 = vrot.lane.b32.xlu2 %v10070_v5, %s4318_s1  ;;  %1877 = vrot.lane.b32.xlu0 %v10071_v18, %s4318_s1  ;;  %v10077_v0 = vld [vmem:[#allocation42_spill] sm:$0xff] }
 0x24a   :  { %v6383_v2 = vpop.permute.xlu0 %1717 }
 0x24b   :  { %v6381_v3 = vpop.permute.xlu2 %1739  ;;  %10074 = vst [vmem:[#allocation348_spill] sm:$0xff] %v6383_v2  ;;  %v6405_v2 = vsel %vm574_vm0, %v6116_v50, 0.0 }
 0x24c   :  { %1879 = vrot.lane.b32.xlu1 %v10072_v15, %s4318_s1  ;;  %10073 = vst [vmem:[#allocation347_spill] sm:$0xff] %v6381_v3  ;;  %v10082_v3 = vld [vmem:[#allocation61_spill] sm:$0xff] }
 0x24f   :  { %v6385_v10 = vpop.permute.xlu1 %1719 }
 0x250   :  { %10075 = vst [vmem:[#allocation349_spill] sm:$0xff] %v6385_v10  ;;  %1887 = vrot.lane.b32.xlu2 %v10076_v7, %s4318_s1  ;;  %1883 = vrot.lane.b32.xlu0 %v10077_v0, %s4318_s1  ;;  %v10083_v10 = vld [vmem:[#allocation49_spill] sm:$0xff]  ;;  %v1825_v7 = vrot.slane %v6110_v49, 1 }
 0x252   :  { %v6395_v18 = vpop.permute.xlu0 %1723 }
 0x253   :  { %v6393_v5 = vpop.permute.xlu2 %1745  ;;  %10080 = vst [vmem:[#allocation351_spill] sm:$0xff] %v6395_v18 }
 0x254   :  { %1885 = vrot.lane.b32.xlu1 %v10078_v27, %s4318_s1  ;;  %10079 = vst [vmem:[#allocation350_spill] sm:$0xff] %v6393_v5  ;;  %v1826_v27 = vrot.slane %v6128_v38, 1  ;;  %v10084_v5 = vld [vmem:[#allocation60_spill] sm:$0xff] }
 0x257   :  { %v6397_v15 = vpop.permute.xlu1 %1725 }
 0x258   :  { %10081 = vst [vmem:[#allocation352_spill] sm:$0xff] %v6397_v15  ;;  %1893 = vrot.lane.b32.xlu2 %v10082_v3, %s4318_s1  ;;  %1889 = vrot.lane.b32.xlu0 %v10083_v10, %s4318_s1  ;;  %v1828_v3 = vrot.slane %v6405_v2, 1  ;;  %v6419_v10 = vsel %vm923_vm1, %v1825_v7, %v1826_v27  ;;  %v10094_v7 = vld [vmem:[#allocation77_spill] sm:$0xff] }
 0x259   :  { %10088 = vst [vmem:[#allocation356_spill] sm:$0xff] %v6419_v10 }
 0x25a   :  { %v6413_v15 = vpop.permute.xlu0 %1729  ;;  %v6422_v50 = vsel %vm923_vm1, %v1826_v27, %v1828_v3  ;;  %v10095_v3 = vld [vmem:[#allocation63_spill] sm:$0xff]  ;;  %v10096_v27 = vld [vmem:[#allocation72_spill] sm:$0xff] }
 0x25b   :  { %v6411_v18 = vpop.permute.xlu2 %1751  ;;  %10086 = vst [vmem:[#allocation354_spill] sm:$0xff] %v6413_v15 }
 0x25c   :  { %1891 = vrot.lane.b32.xlu1 %v10084_v5, %s4318_s1  ;;  %10085 = vst [vmem:[#allocation353_spill] sm:$0xff] %v6411_v18 }
 0x25d   :  { %10089 = vst [vmem:[#allocation357_spill] sm:$0xff] %v6422_v50 }
 0x25f   :  { %v6416_v0 = vpop.permute.xlu1 %1731 }
 0x260   :  { %10087 = vst [vmem:[#allocation355_spill] sm:$0xff] %v6416_v0  ;;  %1899 = vrot.lane.b32.xlu2 %v10090_v25, %s4318_s1  ;;  %1895 = vrot.lane.b32.xlu0 %v6419_v10, %s4318_s1 }
 0x262   :  { %v6432_v15 = vpop.permute.xlu0 %1735 }
 0x263   :  { %v6430_v18 = vpop.permute.xlu2 %1757  ;;  %10092 = vst [vmem:[#allocation358_spill] sm:$0xff] %v6432_v15  ;;  %v10102_v15 = vld [vmem:[#allocation80_spill] sm:$0xff] }
 0x264   :  { %1897 = vrot.lane.b32.xlu1 %v6422_v50, %s4318_s1  ;;  %10091 = vst [vmem:[#allocation68_spill] sm:$0xff] %v6430_v18  ;;  %v10100_v18 = vld [vmem:[#allocation79_spill] sm:$0xff] }
 0x267   :  { %v6434_v0 = vpop.permute.xlu1 %1737 }
 0x268   :  { %10093 = vst [vmem:[#allocation359_spill] sm:$0xff] %v6434_v0  ;;  %1905 = vrot.lane.b32.xlu2 %v10094_v7, %s4318_s1  ;;  %1901 = vrot.lane.b32.xlu0 %v10095_v3, %s4318_s1  ;;  %v10101_v0 = vld [vmem:[#allocation71_spill] sm:$0xff] }
 0x26a   :  { %v6444_v10 = vpop.permute.xlu0 %1741 }
 0x26b   :  { %v6442_v25 = vpop.permute.xlu2 %1839  ;;  %10098 = vst [vmem:[#allocation360_spill] sm:$0xff] %v6444_v10  ;;  %v10108_v10 = vld [vmem:[#allocation90_spill] sm:$0xff] }
 0x26c   :  { %1903 = vrot.lane.b32.xlu1 %v10096_v27, %s4318_s1  ;;  %10097 = vst [vmem:[#allocation63_spill] sm:$0xff] %v6442_v25  ;;  %v10106_v25 = vld [vmem:[#allocation88_spill] sm:$0xff] }
 0x26f   :  { %v6446_v50 = vpop.permute.xlu1 %1743 }
 0x270   :  { %10099 = vst [vmem:[#allocation361_spill] sm:$0xff] %v6446_v50  ;;  %1911 = vrot.lane.b32.xlu2 %v10100_v18, %s4318_s1  ;;  %1907 = vrot.lane.b32.xlu0 %v10101_v0, %s4318_s1  ;;  %v10107_v50 = vld [vmem:[#allocation81_spill] sm:$0xff] }
 0x272   :  { %v6456_v3 = vpop.permute.xlu0 %1747 }
 0x273   :  { %v6454_v5 = vpop.permute.xlu2 %1845  ;;  %10104 = vst [vmem:[#allocation363_spill] sm:$0xff] %v6456_v3  ;;  %v10114_v3 = vld [vmem:[#allocation104_spill] sm:$0xff] }
 0x274   :  { %1909 = vrot.lane.b32.xlu1 %v10102_v15, %s4318_s1  ;;  %10103 = vst [vmem:[#allocation362_spill] sm:$0xff] %v6454_v5  ;;  %v10112_v5 = vld [vmem:[#allocation105_spill] sm:$0xff] }
 0x277   :  { %v6458_v7 = vpop.permute.xlu1 %1749 }
 0x278   :  { %10105 = vst [vmem:[#allocation364_spill] sm:$0xff] %v6458_v7  ;;  %1917 = vrot.lane.b32.xlu2 %v10106_v25, %s4318_s1  ;;  %1913 = vrot.lane.b32.xlu0 %v10107_v50, %s4318_s1  ;;  %v10113_v7 = vld [vmem:[#allocation89_spill] sm:$0xff] }
 0x27a   :  { %v6468_v0 = vpop.permute.xlu0 %1753 }
 0x27b   :  { %v6466_v18 = vpop.permute.xlu2 %1851  ;;  %10110 = vst [vmem:[#allocation366_spill] sm:$0xff] %v6468_v0  ;;  %v10120_v0 = vld [vmem:[#allocation111_spill] sm:$0xff] }
 0x27c   :  { %1915 = vrot.lane.b32.xlu1 %v10108_v10, %s4318_s1  ;;  %10109 = vst [vmem:[#allocation365_spill] sm:$0xff] %v6466_v18  ;;  %v10118_v18 = vld [vmem:[#allocation116_spill] sm:$0xff] }
 0x27f   :  { %v6470_v15 = vpop.permute.xlu1 %1755 }
 0x280   :  { %10111 = vst [vmem:[#allocation367_spill] sm:$0xff] %v6470_v15  ;;  %1923 = vrot.lane.b32.xlu2 %v10112_v5, %s4318_s1  ;;  %1919 = vrot.lane.b32.xlu0 %v10113_v7, %s4318_s1  ;;  %v10119_v15 = vld [vmem:[#allocation103_spill] sm:$0xff] }
 0x282   :  { %v6480_v50 = vpop.permute.xlu0 %1835 }
 0x283   :  { %v6478_v25 = vpop.permute.xlu2 %1857  ;;  %10116 = vst [vmem:[#allocation369_spill] sm:$0xff] %v6480_v50 }
 0x284   :  { %1921 = vrot.lane.b32.xlu1 %v10114_v3, %s4318_s1  ;;  %10115 = vst [vmem:[#allocation368_spill] sm:$0xff] %v6478_v25  ;;  %v10124_v25 = vld [vmem:[#allocation127_spill] sm:$0xff] }
 0x287   :  { %v6482_v10 = vpop.permute.xlu1 %1837 }
 0x288   :  { %10117 = vst [vmem:[#allocation370_spill] sm:$0xff] %v6482_v10  ;;  %1929 = vrot.lane.b32.xlu2 %v10118_v18, %s4318_s1  ;;  %1925 = vrot.lane.b32.xlu0 %v10119_v15, %s4318_s1  ;;  %v10125_v10 = vld [vmem:[#allocation110_spill] sm:$0xff] }
 0x289   :  { %v10126_v18 = vld [vmem:[#allocation122_spill] sm:$0xff] }
 0x28a   :  { %v6492_v7 = vpop.permute.xlu0 %1841 }
 0x28b   :  { %v6490_v5 = vpop.permute.xlu2 %1863  ;;  %10122 = vst [vmem:[#allocation372_spill] sm:$0xff] %v6492_v7 }
 0x28c   :  { %1927 = vrot.lane.b32.xlu1 %v10120_v0, %s4318_s1  ;;  %10121 = vst [vmem:[#allocation371_spill] sm:$0xff] %v6490_v5  ;;  %v10130_v5 = vld [vmem:[#allocation134_spill] sm:$0xff] }
 0x28f   :  { %v6494_v3 = vpop.permute.xlu1 %1843 }
 0x290   :  { %10123 = vst [vmem:[#allocation373_spill] sm:$0xff] %v6494_v3  ;;  %1935 = vrot.lane.b32.xlu2 %v10124_v25, %s4318_s1  ;;  %1931 = vrot.lane.b32.xlu0 %v10125_v10, %s4318_s1  ;;  %v10131_v3 = vld [vmem:[#allocation121_spill] sm:$0xff]  ;;  %v10132_v25 = vld [vmem:[#allocation132_spill] sm:$0xff] }
 0x292   :  { %v6504_v15 = vpop.permute.xlu0 %1847 }
 0x293   :  { %v6502_v50 = vpop.permute.xlu2 %1869  ;;  %10128 = vst [vmem:[#allocation375_spill] sm:$0xff] %v6504_v15 }
 0x294   :  { %1933 = vrot.lane.b32.xlu1 %v10126_v18, %s4318_s1  ;;  %10127 = vst [vmem:[#allocation374_spill] sm:$0xff] %v6502_v50  ;;  %v10136_v50 = vld [vmem:[#allocation145_spill] sm:$0xff] }
 0x297   :  { %v6506_v0 = vpop.permute.xlu1 %1849 }
 0x298   :  { %10129 = vst [vmem:[#allocation376_spill] sm:$0xff] %v6506_v0  ;;  %1941 = vrot.lane.b32.xlu2 %v10130_v5, %s4318_s1  ;;  %1937 = vrot.lane.b32.xlu0 %v10131_v3, %s4318_s1  ;;  %v10137_v0 = vld [vmem:[#allocation131_spill] sm:$0xff]  ;;  %v10138_v5 = vld [vmem:[#allocation140_spill] sm:$0xff] }
 0x29a   :  { %v6516_v10 = vpop.permute.xlu0 %1853 }
 0x29b   :  { %v6514_v7 = vpop.permute.xlu2 %1875  ;;  %10134 = vst [vmem:[#allocation378_spill] sm:$0xff] %v6516_v10  ;;  %v1830_v10 = vrot.slane %v6277_v22, 1 }
 0x29c   :  { %1939 = vrot.lane.b32.xlu1 %v10132_v25, %s4318_s1  ;;  %10133 = vst [vmem:[#allocation377_spill] sm:$0xff] %v6514_v7  ;;  %v10142_v7 = vld [vmem:[#allocation151_spill] sm:$0xff] }
 0x29f   :  { %v6518_v18 = vpop.permute.xlu1 %1855 }
 0x2a0   :  { %10135 = vst [vmem:[#allocation379_spill] sm:$0xff] %v6518_v18  ;;  %1947 = vrot.lane.b32.xlu2 %v10136_v50, %s4318_s1  ;;  %1943 = vrot.lane.b32.xlu0 %v10137_v0, %s4318_s1  ;;  %v10143_v18 = vld [vmem:[#allocation139_spill] sm:$0xff]  ;;  %v1831_v50 = vrot.slane %v6274_v47, 1  ;;  %v10144_v0 = vld [vmem:[#allocation150_spill] sm:$0xff] }
 0x2a2   :  { %v6528_v3 = vpop.permute.xlu0 %1859 }
 0x2a3   :  { %v6526_v15 = vpop.permute.xlu2 %1881  ;;  %10140 = vst [vmem:[#allocation381_spill] sm:$0xff] %v6528_v3 }
 0x2a4   :  { %1945 = vrot.lane.b32.xlu1 %v10138_v5, %s4318_s1  ;;  %10139 = vst [vmem:[#allocation380_spill] sm:$0xff] %v6526_v15 }
 0x2a7   :  { %v6530_v25 = vpop.permute.xlu1 %1861 }
 0x2a8   :  { %10141 = vst [vmem:[#allocation382_spill] sm:$0xff] %v6530_v25  ;;  %1953 = vrot.lane.b32.xlu2 %v10142_v7, %s4318_s1  ;;  %1949 = vrot.lane.b32.xlu0 %v10143_v18, %s4318_s1  ;;  %v6547_v25 = vsel %vm923_vm1, %v1830_v10, %v1831_v50  ;;  %v6551_v7 = vsel %vm574_vm0, %v6262_v6, 0.0  ;;  %v10149_v18 = vld [vmem:[#allocation149_spill] sm:$0xff] }
 0x2a9   :  { %10148 = vst [vmem:[#allocation386_spill] sm:$0xff] %v6547_v25 }
 0x2aa   :  { %v6542_v15 = vpop.permute.xlu0 %1865 }
 0x2ab   :  { %v6540_v5 = vpop.permute.xlu2 %1887  ;;  %10146 = vst [vmem:[#allocation384_spill] sm:$0xff] %v6542_v15 }
 0x2ac   :  { %1951 = vrot.lane.b32.xlu1 %v10144_v0, %s4318_s1  ;;  %10145 = vst [vmem:[#allocation383_spill] sm:$0xff] %v6540_v5  ;;  %v1833_v0 = vrot.slane %v6551_v7, 1  ;;  %v10150_v5 = vld [vmem:[#allocation155_spill] sm:$0xff] }
 0x2ae   :  { %v6567_v6 = vsel %vm923_vm1, %v1831_v50, %v1833_v0  ;;  %v10161_v0 = vld [vmem:[#allocation159_spill] sm:$0xff]  ;;  %v10162_v50 = vld [vmem:[#allocation166_spill] sm:$0xff] }
 0x2af   :  { %v6544_v3 = vpop.permute.xlu1 %1867  ;;  %10154 = vst [vmem:[#allocation390_spill] sm:$0xff] %v6567_v6 }
 0x2b0   :  { %10147 = vst [vmem:[#allocation385_spill] sm:$0xff] %v6544_v3  ;;  %1959 = vrot.lane.b32.xlu2 %v6547_v25, %s4318_s1  ;;  %1955 = vrot.lane.b32.xlu0 %v10149_v18, %s4318_s1  ;;  %v10155_v25 = vld [vmem:[#allocation161_spill] sm:$0xff]  ;;  %v10156_v18 = vld [vmem:[#allocation160_spill] sm:$0xff] }
 0x2b2   :  { %v6562_v3 = vpop.permute.xlu0 %1871 }
 0x2b3   :  { %v6560_v15 = vpop.permute.xlu2 %1893  ;;  %10152 = vst [vmem:[#allocation388_spill] sm:$0xff] %v6562_v3 }
 0x2b4   :  { %1957 = vrot.lane.b32.xlu1 %v10150_v5, %s4318_s1  ;;  %10151 = vst [vmem:[#allocation387_spill] sm:$0xff] %v6560_v15 }
 0x2b7   :  { %v6564_v10 = vpop.permute.xlu1 %1873 }
 0x2b8   :  { %10153 = vst [vmem:[#allocation389_spill] sm:$0xff] %v6564_v10  ;;  %2039 = vrot.lane.b32.xlu2 %v10155_v25, %s4319_s24  ;;  %1961 = vrot.lane.b32.xlu0 %v6567_v6, %s4318_s1  ;;  %v10160_v10 = vld [vmem:[#allocation167_spill] sm:$0xff] }
 0x2ba   :  { %v6577_v15 = vpop.permute.xlu0 %1877 }
 0x2bb   :  { %v6575_v5 = vpop.permute.xlu2 %1899  ;;  %10158 = vst [vmem:[#allocation160_spill] sm:$0xff] %v6577_v15  ;;  %v10168_v15 = vld [vmem:[#allocation172_spill] sm:$0xff] }
 0x2bc   :  { %2037 = vrot.lane.b32.xlu1 %v10156_v18, %s4319_s24  ;;  %10157 = vst [vmem:[#allocation161_spill] sm:$0xff] %v6575_v5  ;;  %v10166_v5 = vld [vmem:[#allocation173_spill] sm:$0xff] }
 0x2bf   :  { %v6579_v3 = vpop.permute.xlu1 %1879 }
 0x2c0   :  { %10159 = vst [vmem:[#allocation391_spill] sm:$0xff] %v6579_v3  ;;  %2045 = vrot.lane.b32.xlu2 %v10160_v10, %s4319_s24  ;;  %2041 = vrot.lane.b32.xlu0 %v10161_v0, %s4319_s24  ;;  %v10167_v3 = vld [vmem:[#allocation165_spill] sm:$0xff] }
 0x2c2   :  { %v6589_v6 = vpop.permute.xlu0 %1883 }
 0x2c3   :  { %v6587_v25 = vpop.permute.xlu2 %1905  ;;  %10164 = vst [vmem:[#allocation392_spill] sm:$0xff] %v6589_v6  ;;  %v10174_v6 = vld [vmem:[#allocation178_spill] sm:$0xff] }
 0x2c4   :  { %2043 = vrot.lane.b32.xlu1 %v10162_v50, %s4319_s24  ;;  %10163 = vst [vmem:[#allocation159_spill] sm:$0xff] %v6587_v25  ;;  %v10172_v25 = vld [vmem:[#allocation179_spill] sm:$0xff] }
 0x2c7   :  { %v6591_v18 = vpop.permute.xlu1 %1885 }
 0x2c8   :  { %10165 = vst [vmem:[#allocation393_spill] sm:$0xff] %v6591_v18  ;;  %2051 = vrot.lane.b32.xlu2 %v10166_v5, %s4319_s24  ;;  %2047 = vrot.lane.b32.xlu0 %v10167_v3, %s4319_s24  ;;  %v10173_v18 = vld [vmem:[#allocation171_spill] sm:$0xff] }
 0x2ca   :  { %v6601_v10 = vpop.permute.xlu0 %1889 }
 0x2cb   :  { %v6599_v27 = vpop.permute.xlu2 %1911  ;;  %10170 = vst [vmem:[#allocation395_spill] sm:$0xff] %v6601_v10  ;;  %v10180_v10 = vld [vmem:[#allocation184_spill] sm:$0xff] }
 0x2cc   :  { %2049 = vrot.lane.b32.xlu1 %v10168_v15, %s4319_s24  ;;  %10169 = vst [vmem:[#allocation394_spill] sm:$0xff] %v6599_v27  ;;  %v10178_v27 = vld [vmem:[#allocation185_spill] sm:$0xff] }
 0x2cf   :  { %v6603_v50 = vpop.permute.xlu1 %1891 }
 0x2d0   :  { %10171 = vst [vmem:[#allocation396_spill] sm:$0xff] %v6603_v50  ;;  %2057 = vrot.lane.b32.xlu2 %v10172_v25, %s4319_s24  ;;  %2053 = vrot.lane.b32.xlu0 %v10173_v18, %s4319_s24  ;;  %v10179_v50 = vld [vmem:[#allocation177_spill] sm:$0xff] }
 0x2d2   :  { %v6613_v3 = vpop.permute.xlu0 %1895 }
 0x2d3   :  { %v6611_v5 = vpop.permute.xlu2 %1917  ;;  %10176 = vst [vmem:[#allocation398_spill] sm:$0xff] %v6613_v3  ;;  %v10186_v3 = vld [vmem:[#allocation190_spill] sm:$0xff] }
 0x2d4   :  { %2055 = vrot.lane.b32.xlu1 %v10174_v6, %s4319_s24  ;;  %10175 = vst [vmem:[#allocation397_spill] sm:$0xff] %v6611_v5  ;;  %v10184_v5 = vld [vmem:[#allocation191_spill] sm:$0xff] }
 0x2d7   :  { %v6615_v15 = vpop.permute.xlu1 %1897 }
 0x2d8   :  { %10177 = vst [vmem:[#allocation399_spill] sm:$0xff] %v6615_v15  ;;  %2063 = vrot.lane.b32.xlu2 %v10178_v27, %s4319_s24  ;;  %2059 = vrot.lane.b32.xlu0 %v10179_v50, %s4319_s24  ;;  %v10185_v15 = vld [vmem:[#allocation183_spill] sm:$0xff] }
 0x2da   :  { %v6625_v18 = vpop.permute.xlu0 %1901 }
 0x2db   :  { %v6623_v25 = vpop.permute.xlu2 %1923  ;;  %10182 = vst [vmem:[#allocation401_spill] sm:$0xff] %v6625_v18  ;;  %v10192_v18 = vld [vmem:[#allocation196_spill] sm:$0xff] }
 0x2dc   :  { %2061 = vrot.lane.b32.xlu1 %v10180_v10, %s4319_s24  ;;  %10181 = vst [vmem:[#allocation400_spill] sm:$0xff] %v6623_v25  ;;  %v10190_v25 = vld [vmem:[#allocation197_spill] sm:$0xff] }
 0x2df   :  { %v6627_v6 = vpop.permute.xlu1 %1903 }
 0x2e0   :  { %10183 = vst [vmem:[#allocation402_spill] sm:$0xff] %v6627_v6  ;;  %2069 = vrot.lane.b32.xlu2 %v10184_v5, %s4319_s24  ;;  %2065 = vrot.lane.b32.xlu0 %v10185_v15, %s4319_s24  ;;  %v10191_v6 = vld [vmem:[#allocation189_spill] sm:$0xff] }
 0x2e2   :  { %v6637_v50 = vpop.permute.xlu0 %1907 }
 0x2e3   :  { %v6635_v27 = vpop.permute.xlu2 %1929  ;;  %10188 = vst [vmem:[#allocation404_spill] sm:$0xff] %v6637_v50  ;;  %v10198_v50 = vld [vmem:[#allocation200_spill] sm:$0xff] }
 0x2e4   :  { %2067 = vrot.lane.b32.xlu1 %v10186_v3, %s4319_s24  ;;  %10187 = vst [vmem:[#allocation403_spill] sm:$0xff] %v6635_v27  ;;  %v10196_v27 = vld [vmem:[#allocation201_spill] sm:$0xff] }
 0x2e7   :  { %v6639_v10 = vpop.permute.xlu1 %1909 }
 0x2e8   :  { %10189 = vst [vmem:[#allocation405_spill] sm:$0xff] %v6639_v10  ;;  %2075 = vrot.lane.b32.xlu2 %v10190_v25, %s4319_s24  ;;  %2071 = vrot.lane.b32.xlu0 %v10191_v6, %s4319_s24  ;;  %v10197_v10 = vld [vmem:[#allocation195_spill] sm:$0xff] }
 0x2ea   :  { %v6649_v15 = vpop.permute.xlu0 %1913 }
 0x2eb   :  { %v6647_v5 = vpop.permute.xlu2 %1935  ;;  %10194 = vst [vmem:[#allocation407_spill] sm:$0xff] %v6649_v15  ;;  %v10204_v15 = vld [vmem:[#allocation205_spill] sm:$0xff] }
 0x2ec   :  { %2073 = vrot.lane.b32.xlu1 %v10192_v18, %s4319_s24  ;;  %10193 = vst [vmem:[#allocation406_spill] sm:$0xff] %v6647_v5  ;;  %v10202_v5 = vld [vmem:[#allocation206_spill] sm:$0xff] }
 0x2ef   :  { %v6651_v3 = vpop.permute.xlu1 %1915 }
 0x2f0   :  { %10195 = vst [vmem:[#allocation408_spill] sm:$0xff] %v6651_v3  ;;  %2081 = vrot.lane.b32.xlu2 %v10196_v27, %s4319_s24  ;;  %2077 = vrot.lane.b32.xlu0 %v10197_v10, %s4319_s24  ;;  %v10203_v3 = vld [vmem:[#allocation199_spill] sm:$0xff] }
 0x2f2   :  { %v6661_v6 = vpop.permute.xlu0 %1919 }
 0x2f3   :  { %v6659_v25 = vpop.permute.xlu2 %1941  ;;  %10200 = vst [vmem:[#allocation410_spill] sm:$0xff] %v6661_v6  ;;  %v2028_v6 = vrot.slane %v6128_v38, 2 }
 0x2f4   :  { %2079 = vrot.lane.b32.xlu1 %v10198_v50, %s4319_s24  ;;  %10199 = vst [vmem:[#allocation409_spill] sm:$0xff] %v6659_v25  ;;  %v10208_v25 = vld [vmem:[#allocation210_spill] sm:$0xff] }
 0x2f7   :  { %v6663_v18 = vpop.permute.xlu1 %1921 }
 0x2f8   :  { %10201 = vst [vmem:[#allocation411_spill] sm:$0xff] %v6663_v18  ;;  %2087 = vrot.lane.b32.xlu2 %v10202_v5, %s4319_s24  ;;  %2083 = vrot.lane.b32.xlu0 %v10203_v3, %s4319_s24  ;;  %v10209_v18 = vld [vmem:[#allocation204_spill] sm:$0xff]  ;;  %v2030_v5 = vrot.slane %v6405_v2, 2  ;;  %v10210_v3 = vld [vmem:[#allocation209_spill] sm:$0xff] }
 0x2f9   :  { %v10216_v2 = vld [vmem:[#allocation208_spill] sm:$0xff] }
 0x2fa   :  { %v6673_v10 = vpop.permute.xlu0 %1925 }
 0x2fb   :  { %v6671_v27 = vpop.permute.xlu2 %1947  ;;  %10206 = vst [vmem:[#allocation413_spill] sm:$0xff] %v6673_v10  ;;  %v2027_v10 = vrot.slane %v6110_v49, 2 }
 0x2fc   :  { %2085 = vrot.lane.b32.xlu1 %v10204_v15, %s4319_s24  ;;  %10205 = vst [vmem:[#allocation412_spill] sm:$0xff] %v6671_v27 }
 0x2ff   :  { %v6675_v50 = vpop.permute.xlu1 %1927 }
 0x300   :  { %10207 = vst [vmem:[#allocation414_spill] sm:$0xff] %v6675_v50  ;;  %2093 = vrot.lane.b32.xlu2 %v10208_v25, %s4319_s24  ;;  %2089 = vrot.lane.b32.xlu0 %v10209_v18, %s4319_s24  ;;  %v6693_v25 = vsel %vm1276_vm2, %v2028_v6, %v2030_v5  ;;  %v6696_v18 = vsel %vm1276_vm2, %v2027_v10, %v2028_v6  ;;  %v10220_v5 = vld [vmem:[#allocation217_spill] sm:$0xff]  ;;  %v10222_v6 = vld [vmem:[#allocation216_spill] sm:$0xff] }
 0x301   :  { %10214 = vst [vmem:[#allocation418_spill] sm:$0xff] %v6693_v25  ;;  %v10221_v10 = vld [vmem:[#allocation213_spill] sm:$0xff] }
 0x302   :  { %v6687_v27 = vpop.permute.xlu0 %1931  ;;  %10215 = vst [vmem:[#allocation419_spill] sm:$0xff] %v6696_v18 }
 0x303   :  { %v6685_v15 = vpop.permute.xlu2 %1953  ;;  %10212 = vst [vmem:[#allocation416_spill] sm:$0xff] %v6687_v27 }
 0x304   :  { %2091 = vrot.lane.b32.xlu1 %v10210_v3, %s4319_s24  ;;  %10211 = vst [vmem:[#allocation415_spill] sm:$0xff] %v6685_v15 }
 0x307   :  { %v6690_v50 = vpop.permute.xlu1 %1933 }
 0x308   :  { %10213 = vst [vmem:[#allocation417_spill] sm:$0xff] %v6690_v50  ;;  %2099 = vrot.lane.b32.xlu2 %v6693_v25, %s4319_s24  ;;  %2095 = vrot.lane.b32.xlu0 %v10216_v2, %s4319_s24 }
 0x30a   :  { %v6706_v27 = vpop.permute.xlu0 %1937 }
 0x30b   :  { %v6704_v15 = vpop.permute.xlu2 %1959  ;;  %10218 = vst [vmem:[#allocation421_spill] sm:$0xff] %v6706_v27  ;;  %v10228_v27 = vld [vmem:[#allocation221_spill] sm:$0xff] }
 0x30c   :  { %2097 = vrot.lane.b32.xlu1 %v6696_v18, %s4319_s24  ;;  %10217 = vst [vmem:[#allocation420_spill] sm:$0xff] %v6704_v15  ;;  %v10226_v15 = vld [vmem:[#allocation222_spill] sm:$0xff] }
 0x30f   :  { %v6708_v50 = vpop.permute.xlu1 %1939 }
 0x310   :  { %10219 = vst [vmem:[#allocation422_spill] sm:$0xff] %v6708_v50  ;;  %2105 = vrot.lane.b32.xlu2 %v10220_v5, %s4319_s24  ;;  %2101 = vrot.lane.b32.xlu0 %v10221_v10, %s4319_s24  ;;  %v10227_v50 = vld [vmem:[#allocation215_spill] sm:$0xff] }
 0x312   :  { %v6718_v2 = vpop.permute.xlu0 %1943 }
 0x313   :  { %v6716_v25 = vpop.permute.xlu2 %2039  ;;  %10224 = vst [vmem:[#allocation213_spill] sm:$0xff] %v6718_v2  ;;  %v10234_v2 = vld [vmem:[#allocation225_spill] sm:$0xff] }
 0x314   :  { %2103 = vrot.lane.b32.xlu1 %v10222_v6, %s4319_s24  ;;  %10223 = vst [vmem:[#allocation217_spill] sm:$0xff] %v6716_v25  ;;  %v10232_v25 = vld [vmem:[#allocation226_spill] sm:$0xff] }
 0x317   :  { %v6720_v18 = vpop.permute.xlu1 %1945 }
 0x318   :  { %10225 = vst [vmem:[#allocation216_spill] sm:$0xff] %v6720_v18  ;;  %2111 = vrot.lane.b32.xlu2 %v10226_v15, %s4319_s24  ;;  %2107 = vrot.lane.b32.xlu0 %v10227_v50, %s4319_s24  ;;  %v10233_v18 = vld [vmem:[#allocation220_spill] sm:$0xff] }
 0x31a   :  { %v6730_v10 = vpop.permute.xlu0 %1949 }
 0x31b   :  { %v6728_v3 = vpop.permute.xlu2 %2045  ;;  %10230 = vst [vmem:[#allocation424_spill] sm:$0xff] %v6730_v10  ;;  %v10240_v10 = vld [vmem:[#allocation230_spill] sm:$0xff] }
 0x31c   :  { %2109 = vrot.lane.b32.xlu1 %v10228_v27, %s4319_s24  ;;  %10229 = vst [vmem:[#allocation423_spill] sm:$0xff] %v6728_v3  ;;  %v10238_v3 = vld [vmem:[#allocation231_spill] sm:$0xff] }
 0x31f   :  { %v6732_v6 = vpop.permute.xlu1 %1951 }
 0x320   :  { %10231 = vst [vmem:[#allocation425_spill] sm:$0xff] %v6732_v6  ;;  %2117 = vrot.lane.b32.xlu2 %v10232_v25, %s4319_s24  ;;  %2113 = vrot.lane.b32.xlu0 %v10233_v18, %s4319_s24  ;;  %v10239_v6 = vld [vmem:[#allocation224_spill] sm:$0xff] }
 0x322   :  { %v6742_v50 = vpop.permute.xlu0 %1955 }
 0x323   :  { %v6740_v15 = vpop.permute.xlu2 %2051  ;;  %10236 = vst [vmem:[#allocation427_spill] sm:$0xff] %v6742_v50  ;;  %v10244_v50 = vld [vmem:[#allocation234_spill] sm:$0xff] }
 0x324   :  { %2115 = vrot.lane.b32.xlu1 %v10234_v2, %s4319_s24  ;;  %10235 = vst [vmem:[#allocation426_spill] sm:$0xff] %v6740_v15 }
 0x327   :  { %v6744_v27 = vpop.permute.xlu1 %1957 }
 0x328   :  { %10237 = vst [vmem:[#allocation428_spill] sm:$0xff] %v6744_v27  ;;  %2123 = vrot.lane.b32.xlu2 %v10238_v3, %s4319_s24  ;;  %2119 = vrot.lane.b32.xlu0 %v10239_v6, %s4319_s24  ;;  %v10243_v27 = vld [vmem:[#allocation229_spill] sm:$0xff] }
 0x32a   :  { %v6754_v18 = vpop.permute.xlu0 %1961 }
 0x32b   :  { %v6752_v25 = vpop.permute.xlu2 %2057  ;;  %10242 = vst [vmem:[#allocation430_spill] sm:$0xff] %v6754_v18  ;;  %v10248_v18 = vld [vmem:[#allocation233_spill] sm:$0xff] }
 0x32c   :  { %2121 = vrot.lane.b32.xlu1 %v10240_v10, %s4319_s24  ;;  %10241 = vst [vmem:[#allocation429_spill] sm:$0xff] %v6752_v25  ;;  %v10247_v25 = vld [vmem:[#allocation240_spill] sm:$0xff] }
 0x32f   :  { %v6756_v2 = vpop.permute.xlu1 %2037 }
 0x330   :  { %2129 = vrot.lane.b32.xlu2 %v5854_v29, %s4319_s24  ;;  %2125 = vrot.lane.b32.xlu0 %v10243_v27, %s4319_s24  ;;  %v10249_v29 = vld [vmem:[#allocation239_spill] sm:$0xff] }
 0x332   :  { %v6766_v6 = vpop.permute.xlu0 %2041 }
 0x333   :  { %v6764_v3 = vpop.permute.xlu2 %2063 }
 0x334   :  { %2127 = vrot.lane.b32.xlu1 %v10244_v50, %s4319_s24  ;;  %10245 = vst [vmem:[#allocation431_spill] sm:$0xff] %v6764_v3  ;;  %v10252_v3 = vld [vmem:[#allocation238_spill] sm:$0xff] }
 0x337   :  { %v6768_v10 = vpop.permute.xlu1 %2043 }
 0x338   :  { %10246 = vst [vmem:[#allocation432_spill] sm:$0xff] %v6768_v10  ;;  %2135 = vrot.lane.b32.xlu2 %v10247_v25, %s4319_s24  ;;  %2131 = vrot.lane.b32.xlu0 %v10248_v18, %s4319_s24  ;;  %v10253_v25 = vld [vmem:[#allocation244_spill] sm:$0xff] }
 0x33a   :  { %v6778_v27 = vpop.permute.xlu0 %2047 }
 0x33b   :  { %v6776_v15 = vpop.permute.xlu2 %2069  ;;  %10250 = vst [vmem:[#allocation433_spill] sm:$0xff] %v6778_v27 }
 0x33c   :  { %2133 = vrot.lane.b32.xlu1 %v10249_v29, %s4319_s24 }
 0x33f   :  { %v6780_v50 = vpop.permute.xlu1 %2049 }
 0x340   :  { %10251 = vst [vmem:[#allocation434_spill] sm:$0xff] %v6780_v50  ;;  %2141 = vrot.lane.b32.xlu2 %v5905_v46, %s4319_s24  ;;  %2137 = vrot.lane.b32.xlu0 %v10252_v3, %s4319_s24  ;;  %v10255_v50 = vld [vmem:[#allocation243_spill] sm:$0xff] }
 0x342   :  { %v6790_v18 = vpop.permute.xlu0 %2053 }
 0x343   :  { %v6788_v10 = vpop.permute.xlu2 %2075 }
 0x344   :  { %2139 = vrot.lane.b32.xlu1 %v10253_v25, %s4319_s24 }
 0x347   :  { %v6792_v29 = vpop.permute.xlu1 %2055 }
 0x348   :  { %10254 = vst [vmem:[#allocation238_spill] sm:$0xff] %v6792_v29  ;;  %2147 = vrot.lane.b32.xlu2 %v5931_v60, %s4319_s24  ;;  %2143 = vrot.lane.b32.xlu0 %v10255_v50, %s4319_s24  ;;  %v10258_v29 = vld [vmem:[#allocation249_spill] sm:$0xff] }
 0x34a   :  { %v6802_v27 = vpop.permute.xlu0 %2059 }
 0x34b   :  { %v6800_v46 = vpop.permute.xlu2 %2081  ;;  %10256 = vst [vmem:[#allocation435_spill] sm:$0xff] %v6802_v27 }
 0x34c   :  { %2145 = vrot.lane.b32.xlu1 %v5928_v11, %s4319_s24 }
 0x34f   :  { %v6804_v25 = vpop.permute.xlu1 %2061 }
 0x350   :  { %10257 = vst [vmem:[#allocation436_spill] sm:$0xff] %v6804_v25  ;;  %2153 = vrot.lane.b32.xlu2 %v5956_v56, %s4319_s24  ;;  %2149 = vrot.lane.b32.xlu0 %v10258_v29, %s4319_s24  ;;  %v2033_v56 = vrot.slane %v6274_v47, 2  ;;  %v2032_v25 = vrot.slane %v6277_v22, 2 }
 0x352   :  { %v6814_v50 = vpop.permute.xlu0 %2065 }
 0x353   :  { %v6812_v60 = vpop.permute.xlu2 %2087  ;;  %10260 = vst [vmem:[#allocation438_spill] sm:$0xff] %v6814_v50  ;;  %v2035_v50 = vrot.slane %v6551_v7, 2 }
 0x354   :  { %2151 = vrot.lane.b32.xlu1 %v5953_v57, %s4319_s24  ;;  %10259 = vst [vmem:[#allocation437_spill] sm:$0xff] %v6812_v60 }
 0x357   :  { %v6816_v11 = vpop.permute.xlu1 %2067 }
 0x358   :  { %10261 = vst [vmem:[#allocation439_spill] sm:$0xff] %v6816_v11  ;;  %2159 = vrot.lane.b32.xlu2 %v5977_v41, %s4319_s24  ;;  %2155 = vrot.lane.b32.xlu0 %v5950_v62, %s4319_s24  ;;  %v6834_v41 = vsel %vm1276_vm2, %v2032_v25, %v2033_v56  ;;  %v6837_v62 = vsel %vm1276_vm2, %v2033_v56, %v2035_v50 }
 0x359   :  { %10263 = vst [vmem:[#allocation441_spill] sm:$0xff] %v6834_v41 }
 0x35a   :  { %v6828_v60 = vpop.permute.xlu0 %2071  ;;  %10264 = vst [vmem:[#allocation442_spill] sm:$0xff] %v6837_v62 }
 0x35b   :  { %v6826_v57 = vpop.permute.xlu2 %2093 }
 0x35c   :  { %2157 = vrot.lane.b32.xlu1 %v5974_v55, %s4319_s24  ;;  %10262 = vst [vmem:[#allocation440_spill] sm:$0xff] %v6826_v57 }
 0x35f   :  { %v6831_v11 = vpop.permute.xlu1 %2073 }
 0x360   :  { %2231 = vrot.lane.b32.xlu2 %v4429_v45, %s4320_s25  ;;  %2161 = vrot.lane.b32.xlu0 %v6834_v41, %s4319_s24 }
 0x362   :  { %v6847_v7 = vpop.permute.xlu0 %2077 }
 0x363   :  { %v6845_v57 = vpop.permute.xlu2 %2099 }
 0x364   :  { %2163 = vrot.lane.b32.xlu1 %v6837_v62, %s4319_s24  ;;  %10265 = vst [vmem:[#allocation443_spill] sm:$0xff] %v6845_v57 }
 0x367   :  { %v6849_v47 = vpop.permute.xlu1 %2079 }
 0x368   :  { %2237 = vrot.lane.b32.xlu2 %v4420_v42, %s4320_s25  ;;  %2233 = vrot.lane.b32.xlu0 %v4426_v44, %s4320_s25 }
 0x36a   :  { %v6859_v50 = vpop.permute.xlu0 %2083 }
 0x36b   :  { %v6857_v56 = vpop.permute.xlu2 %2105  ;;  %10266 = vst [vmem:[#allocation444_spill] sm:$0xff] %v6859_v50  ;;  %v10365_v50 = vld [vmem:[#allocation34_spill] sm:$0xff] }
 0x36c   :  { %2235 = vrot.lane.b32.xlu1 %v4423_v43, %s4320_s25 }
 0x36f   :  { %v6861_v25 = vpop.permute.xlu1 %2085 }
 0x370   :  { %10267 = vst [vmem:[#allocation445_spill] sm:$0xff] %v6861_v25  ;;  %2243 = vrot.lane.b32.xlu2 %v4574_v12, %s4320_s25  ;;  %2239 = vrot.lane.b32.xlu0 %v4532_v37, %s4320_s25 }
 0x372   :  { %v6871_v62 = vpop.permute.xlu0 %2089 }
 0x373   :  { %v6869_v57 = vpop.permute.xlu2 %2111  ;;  %10269 = vst [vmem:[#allocation447_spill] sm:$0xff] %v6871_v62 }
 0x374   :  { %2241 = vrot.lane.b32.xlu1 %v4529_v36, %s4320_s25  ;;  %10268 = vst [vmem:[#allocation446_spill] sm:$0xff] %v6869_v57 }
 0x377   :  { %v6873_v41 = vpop.permute.xlu1 %2091 }
 0x378   :  { %10270 = vst [vmem:[#allocation448_spill] sm:$0xff] %v6873_v41  ;;  %2249 = vrot.lane.b32.xlu2 %v4608_v39, %s4320_s25  ;;  %2245 = vrot.lane.b32.xlu0 %v4556_v1, %s4320_s25 }
 0x37a   :  { %v6883_v25 = vpop.permute.xlu0 %2095 }
 0x37b   :  { %v6881_v55 = vpop.permute.xlu2 %2117  ;;  %10272 = vst [vmem:[#allocation450_spill] sm:$0xff] %v6883_v25 }
 0x37c   :  { %2247 = vrot.lane.b32.xlu1 %v4611_v40, %s4320_s25  ;;  %10271 = vst [vmem:[#allocation449_spill] sm:$0xff] %v6881_v55 }
 0x37f   :  { %v6885_v29 = vpop.permute.xlu1 %2097 }
 0x380   :  { %10273 = vst [vmem:[#allocation451_spill] sm:$0xff] %v6885_v29  ;;  %2255 = vrot.lane.b32.xlu2 %v4671_v48, %s4320_s25  ;;  %2251 = vrot.lane.b32.xlu0 %v4604_v35, %s4320_s25 }
 0x382   :  { %v6895_v62 = vpop.permute.xlu0 %2101 }
 0x383   :  { %v6893_v41 = vpop.permute.xlu2 %2123 }
 0x384   :  { %2253 = vrot.lane.b32.xlu1 %v4601_v34, %s4320_s25  ;;  %10274 = vst [vmem:[#allocation452_spill] sm:$0xff] %v6893_v41 }
 0x387   :  { %v6897_v39 = vpop.permute.xlu1 %2103 }
 0x388   :  { %2261 = vrot.lane.b32.xlu2 %v4707_v28, %s4320_s25  ;;  %2257 = vrot.lane.b32.xlu0 %v4657_v31, %s4320_s25 }
 0x38a   :  { %v6907_v25 = vpop.permute.xlu0 %2107 }
 0x38b   :  { %v6905_v29 = vpop.permute.xlu2 %2129  ;;  %10276 = vst [vmem:[#allocation454_spill] sm:$0xff] %v6907_v25  ;;  %v10410_v25 = vld [vmem:[#allocation370_spill] sm:$0xff] }
 0x38c   :  { %2259 = vrot.lane.b32.xlu1 %v4710_v58, %s4320_s25  ;;  %10275 = vst [vmem:[#allocation453_spill] sm:$0xff] %v6905_v29  ;;  %v4214_v29 = vld [vmem:[%s9253_s2 + $0xf0] sm:$0xff] }
 0x38d   :  { %v486_v57 = vmul.f32 %v6235_v20, %v4214_v29  ;;  %v10284_v29 = vld [vmem:[#allocation37_spill] sm:$0xff] }
 0x38f   :  { %v6909_v55 = vpop.permute.xlu1 %2109  ;;  %v490_v40 = vadd.f32 %v6246_v16, %v486_v57 }
 0x390   :  { %10277 = vst [vmem:[#allocation455_spill] sm:$0xff] %v6909_v55  ;;  %2267 = vrot.lane.b32.xlu2 %v4775_v17, %s4320_s25  ;;  %2263 = vrot.lane.b32.xlu0 %v4696_v23, %s4320_s25 }
 0x391   :  { %v494_v55 = vmax.f32 %v490_v40, 0.0 }
 0x392   :  { %v6919_v34 = vpop.permute.xlu0 %2113 }
 0x393   :  { %v6917_v41 = vpop.permute.xlu2 %2135  ;;  %10279 = vst [vmem:[#allocation457_spill] sm:$0xff] %v6919_v34 }
 0x394   :  { %2265 = vrot.lane.b32.xlu1 %v4702_v19, %s4320_s25  ;;  %10278 = vst [vmem:[#allocation456_spill] sm:$0xff] %v6917_v41 }
 0x397   :  { %v6921_v35 = vpop.permute.xlu1 %2115 }
 0x398   :  { %10280 = vst [vmem:[#allocation458_spill] sm:$0xff] %v6921_v35  ;;  %2273 = vrot.lane.b32.xlu2 %v9820_v24, %s4320_s25  ;;  %2269 = vrot.lane.b32.xlu0 %v4748_v33, %s4320_s25  ;;  %v4215_v24 = vld [vmem:[%s9253_s2 + $0xf8] sm:$0xff] }
 0x39a   :  { %v6935_v34 = vpop.permute.xlu0 %2119 }
 0x39b   :  { %v6933_v41 = vpop.permute.xlu2 %2141  ;;  %10282 = vst [vmem:[#allocation460_spill] sm:$0xff] %v6935_v34 }
 0x39c   :  { %2271 = vrot.lane.b32.xlu1 %v9825_v8, %s4320_s25  ;;  %10281 = vst [vmem:[#allocation459_spill] sm:$0xff] %v6933_v41  ;;  %v487_v8 = vmul.f32 %v6235_v20, %v4215_v24  ;;  %v498_v41 = vmul.f32 0.0, %v494_v55 }
 0x39e   :  { %v491_v27 = vadd.f32 %v6246_v16, %v487_v8  ;;  %v626_v40 = vrot.slane %v498_v41, 7 }
 0x39f   :  { %v6937_v35 = vpop.permute.xlu1 %2121 }
 0x3a0   :  { %10283 = vst [vmem:[#allocation461_spill] sm:$0xff] %v6937_v35  ;;  %2279 = vrot.lane.b32.xlu2 %v9830_v21, %s4320_s25  ;;  %2275 = vrot.lane.b32.xlu0 %v10284_v29, %s4320_s25  ;;  %v495_v24 = vmax.f32 %v491_v27, 0.0  ;;  %v6970_v55 = vsel %vm574_vm0, 0.0, %v626_v40 }
 0x3a2   :  { %v6952_v35 = vpop.permute.xlu0 %2125  ;;  %v6972_v8 = vmul.f32 0.0, %v495_v24 }
 0x3a3   :  { %v6950_v34 = vpop.permute.xlu2 %2147  ;;  %10286 = vst [vmem:[#allocation463_spill] sm:$0xff] %v6952_v35 }
 0x3a4   :  { %2277 = vrot.lane.b32.xlu1 %v9832_v14, %s4320_s25  ;;  %10285 = vst [vmem:[#allocation462_spill] sm:$0xff] %v6950_v34  ;;  %v9605_v41 = vrot.slane %v6972_v8, 7  ;;  %v10315_v14 = vld [vmem:[#allocation123_spill] sm:$0xff] }
 0x3a5   :  { %10291 = vst [vmem:[#allocation468_spill] sm:$0xff] %v6972_v8  ;;  %v10326_v8 = vld [vmem:[#allocation143_spill] sm:$0xff] }
 0x3a6   :  { %v6990_v24 = vsel %vm574_vm0, %v626_v40, %v9605_v41  ;;  %v10298_v40 = vld [vmem:[#allocation67_spill] sm:$0xff] }
 0x3a7   :  { %v6954_v57 = vpop.permute.xlu1 %2127  ;;  %10295 = vst [vmem:[#allocation472_spill] sm:$0xff] %v6990_v24 }
 0x3a8   :  { %10287 = vst [vmem:[#allocation464_spill] sm:$0xff] %v6954_v57  ;;  %2285 = vrot.lane.b32.xlu2 %v9841_v4, %s4320_s25  ;;  %2281 = vrot.lane.b32.xlu0 %v9831_v32, %s4320_s25  ;;  %v10301_v4 = vld [vmem:[#allocation82_spill] sm:$0xff] }
 0x3aa   :  { %v6965_v34 = vpop.permute.xlu0 %2131 }
 0x3ab   :  { %v6963_v20 = vpop.permute.xlu2 %2153  ;;  %10289 = vst [vmem:[#allocation466_spill] sm:$0xff] %v6965_v34 }
 0x3ac   :  { %2283 = vrot.lane.b32.xlu1 %v9846_v59, %s4320_s25  ;;  %10288 = vst [vmem:[#allocation465_spill] sm:$0xff] %v6963_v20  ;;  %v10302_v59 = vld [vmem:[#allocation75_spill] sm:$0xff] }
 0x3af   :  { %v6967_v35 = vpop.permute.xlu1 %2133 }
 0x3b0   :  { %10290 = vst [vmem:[#allocation467_spill] sm:$0xff] %v6967_v35  ;;  %2291 = vrot.lane.b32.xlu2 %v6970_v55, %s4320_s25  ;;  %2287 = vrot.lane.b32.xlu0 %v6110_v49, %s4320_s25  ;;  %v10338_v35 = vld [vmem:[#allocation165_spill] sm:$0xff] }
 0x3b2   :  { %v6983_v27 = vpop.permute.xlu0 %2137 }
 0x3b3   :  { %v6981_v16 = vpop.permute.xlu2 %2159  ;;  %10293 = vst [vmem:[#allocation470_spill] sm:$0xff] %v6983_v27 }
 0x3b4   :  { %2289 = vrot.lane.b32.xlu1 %v6128_v38, %s4320_s25  ;;  %10292 = vst [vmem:[#allocation469_spill] sm:$0xff] %v6981_v16 }
 0x3b7   :  { %v6985_v34 = vpop.permute.xlu1 %2139 }
 0x3b8   :  { %10294 = vst [vmem:[#allocation471_spill] sm:$0xff] %v6985_v34  ;;  %2297 = vrot.lane.b32.xlu2 %v9984_v13, %s4320_s25  ;;  %2293 = vrot.lane.b32.xlu0 %v6990_v24, %s4320_s25  ;;  %v10316_v34 = vld [vmem:[#allocation114_spill] sm:$0xff] }
 0x3ba   :  { %v7000_v38 = vpop.permute.xlu0 %2143 }
 0x3bb   :  { %v6998_v49 = vpop.permute.xlu2 %2231  ;;  %10296 = vst [vmem:[#allocation473_spill] sm:$0xff] %v7000_v38 }
 0x3bc   :  { %2295 = vrot.lane.b32.xlu1 %v9865_v54, %s4320_s25  ;;  %v10343_v54 = vld [vmem:[#allocation29_spill] sm:$0xff] }
 0x3bf   :  { %v7002_v16 = vpop.permute.xlu1 %2145 }
 0x3c0   :  { %10297 = vst [vmem:[#allocation474_spill] sm:$0xff] %v7002_v16  ;;  %2303 = vrot.lane.b32.xlu2 %v9990_v51, %s4320_s25  ;;  %2299 = vrot.lane.b32.xlu0 %v9873_v52, %s4320_s25  ;;  %v10303_v16 = vld [vmem:[#allocation84_spill] sm:$0xff] }
 0x3c2   :  { %v7012_v20 = vpop.permute.xlu0 %2149 }
 0x3c3   :  { %v7010_v41 = vpop.permute.xlu2 %2237  ;;  %10299 = vst [vmem:[#allocation475_spill] sm:$0xff] %v7012_v20  ;;  %v10307_v20 = vld [vmem:[#allocation85_spill] sm:$0xff] }
 0x3c4   :  { %2301 = vrot.lane.b32.xlu1 %v10298_v40, %s4320_s25 }
 0x3c7   :  { %v7014_v57 = vpop.permute.xlu1 %2151 }
 0x3c8   :  { %10300 = vst [vmem:[#allocation476_spill] sm:$0xff] %v7014_v57  ;;  %2309 = vrot.lane.b32.xlu2 %v10301_v4, %s4320_s25  ;;  %2305 = vrot.lane.b32.xlu0 %v10302_v59, %s4320_s25  ;;  %v10306_v57 = vld [vmem:[#allocation86_spill] sm:$0xff] }
 0x3ca   :  { %v7024_v38 = vpop.permute.xlu0 %2155 }
 0x3cb   :  { %v7022_v32 = vpop.permute.xlu2 %2243  ;;  %10304 = vst [vmem:[#allocation477_spill] sm:$0xff] %v7024_v38  ;;  %v10311_v38 = vld [vmem:[#allocation100_spill] sm:$0xff] }
 0x3cc   :  { %2307 = vrot.lane.b32.xlu1 %v10303_v16, %s4320_s25 }
 0x3cf   :  { %v7026_v21 = vpop.permute.xlu1 %2157 }
 0x3d0   :  { %10305 = vst [vmem:[#allocation478_spill] sm:$0xff] %v7026_v21  ;;  %2315 = vrot.lane.b32.xlu2 %v10001_v61, %s4320_s25  ;;  %2311 = vrot.lane.b32.xlu0 %v10306_v57, %s4320_s25  ;;  %v10310_v21 = vld [vmem:[#allocation91_spill] sm:$0xff] }
 0x3d2   :  { %v7036_v59 = vpop.permute.xlu0 %2161 }
 0x3d3   :  { %v7034_v4 = vpop.permute.xlu2 %2249  ;;  %10308 = vst [vmem:[#allocation479_spill] sm:$0xff] %v7036_v59 }
 0x3d4   :  { %2313 = vrot.lane.b32.xlu1 %v10307_v20, %s4320_s25 }
 0x3d7   :  { %v7038_v16 = vpop.permute.xlu1 %2163 }
 0x3d8   :  { %10309 = vst [vmem:[#allocation480_spill] sm:$0xff] %v7038_v16  ;;  %2321 = vrot.lane.b32.xlu2 %v10006_v26, %s4320_s25  ;;  %2317 = vrot.lane.b32.xlu0 %v10310_v21, %s4320_s25  ;;  %v10313_v16 = vld [vmem:[#allocation99_spill] sm:$0xff] }
 0x3d9   :  { %v10327_v26 = vld [vmem:[#allocation7_spill] sm:$0xff] }
 0x3da   :  { %v7048_v57 = vpop.permute.xlu0 %2233 }
 0x3db   :  { %v7046_v61 = vpop.permute.xlu2 %2255 }
 0x3dc   :  { %2319 = vrot.lane.b32.xlu1 %v10311_v38, %s4320_s25  ;;  %10312 = vst [vmem:[#allocation481_spill] sm:$0xff] %v7046_v61  ;;  %v10342_v38 = vld [vmem:[#allocation196_spill] sm:$0xff] }
 0x3df   :  { %v7050_v20 = vpop.permute.xlu1 %2235 }
 0x3e0   :  { %2327 = vrot.lane.b32.xlu2 %v10011_v53, %s4320_s25  ;;  %2323 = vrot.lane.b32.xlu0 %v10313_v16, %s4320_s25  ;;  %v10317_v53 = vld [vmem:[#allocation124_spill] sm:$0xff]  ;;  %v10321_v16 = vld [vmem:[#allocation133_spill] sm:$0xff] }
 0x3e2   :  { %v7060_v21 = vpop.permute.xlu0 %2239 }
 0x3e3   :  { %v7058_v59 = vpop.permute.xlu2 %2261 }
 0x3e4   :  { %2325 = vrot.lane.b32.xlu1 %v10010_v63, %s4320_s25  ;;  %10314 = vst [vmem:[#allocation482_spill] sm:$0xff] %v7058_v59  ;;  %v10318_v59 = vld [vmem:[#allocation126_spill] sm:$0xff] }
 0x3e7   :  { %v7062_v51 = vpop.permute.xlu1 %2241 }
 0x3e8   :  { %2333 = vrot.lane.b32.xlu2 %v10315_v14, %s4320_s25  ;;  %2329 = vrot.lane.b32.xlu0 %v10316_v34, %s4320_s25  ;;  %v10319_v14 = vld [vmem:[#allocation125_spill] sm:$0xff] }
 0x3ea   :  { %v7072_v29 = vpop.permute.xlu0 %2245 }
 0x3eb   :  { %v7070_v40 = vpop.permute.xlu2 %2267 }
 0x3ec   :  { %2331 = vrot.lane.b32.xlu1 %v10317_v53, %s4320_s25 }
 0x3ef   :  { %v7074_v63 = vpop.permute.xlu1 %2247 }
 0x3f0   :  { %2339 = vrot.lane.b32.xlu2 %v5368_v30, %s4320_s25  ;;  %2335 = vrot.lane.b32.xlu0 %v10318_v59, %s4320_s25  ;;  %v10322_v30 = vld [vmem:[#allocation144_spill] sm:$0xff] }
 0x3f2   :  { %v7084_v34 = vpop.permute.xlu0 %2251 }
 0x3f3   :  { %v7082_v27 = vpop.permute.xlu2 %2273 }
 0x3f4   :  { %2337 = vrot.lane.b32.xlu1 %v10319_v14, %s4320_s25 }
 0x3f7   :  { %v7086_v53 = vpop.permute.xlu1 %2253 }
 0x3f8   :  { %10320 = vst [vmem:[#allocation483_spill] sm:$0xff] %v7086_v53  ;;  %2345 = vrot.lane.b32.xlu2 %v5389_v9, %s4320_s25  ;;  %2341 = vrot.lane.b32.xlu0 %v10321_v16, %s4320_s25 }
 0x3fa   :  { %v7096_v59 = vpop.permute.xlu0 %2257 }
 0x3fb   :  { %v7094_v52 = vpop.permute.xlu2 %2279  ;;  %10324 = vst [vmem:[#allocation485_spill] sm:$0xff] %v7096_v59  ;;  %v10329_v59 = vld [vmem:[#allocation142_spill] sm:$0xff] }
 0x3fc   :  { %2343 = vrot.lane.b32.xlu1 %v10322_v30, %s4320_s25  ;;  %10323 = vst [vmem:[#allocation484_spill] sm:$0xff] %v7094_v52  ;;  %v10334_v52 = vld [vmem:[#allocation6_spill] sm:$0xff] }
 0x3ff   :  { %v7098_v14 = vpop.permute.xlu1 %2259 }
 0x400   :  { %10325 = vst [vmem:[#allocation486_spill] sm:$0xff] %v7098_v14  ;;  %2347 = vrot.lane.b32.xlu2 %v10326_v8, %s4320_s25  ;;  %2435 = vrot.lane.b32.xlu0 %v10327_v26, %s4321_s9  ;;  %v10330_v14 = vld [vmem:[#allocation11_spill] sm:$0xff]  ;;  %v10331_v8 = vld [vmem:[#allocation166_spill] sm:$0xff] }
 0x402   :  { %v7108_v30 = vpop.permute.xlu0 %2263 }
 0x403   :  { %v7106_v9 = vpop.permute.xlu2 %2285 }
 0x404   :  { %2637 = vrot.lane.b32.xlu1 %v10161_v0, %s4322_s10  ;;  %10328 = vst [vmem:[#allocation7_spill] sm:$0xff] %v7106_v9  ;;  %v10333_v9 = vld [vmem:[#allocation15_spill] sm:$0xff] }
 0x407   :  { %v7110_v16 = vpop.permute.xlu1 %2265 }
 0x408   :  { %2349 = vrot.lane.b32.xlu2 %v10329_v59, %s4320_s25  ;;  %2437 = vrot.lane.b32.xlu0 %v10330_v14, %s4321_s9  ;;  %v10335_v59 = vld [vmem:[#allocation167_spill] sm:$0xff] }
 0x40a   :  { %v7120_v13 = vpop.permute.xlu0 %2269 }
 0x40b   :  { %v7118_v26 = vpop.permute.xlu2 %2291 }
 0x40c   :  { %2639 = vrot.lane.b32.xlu1 %v10331_v8, %s4322_s10  ;;  %10332 = vst [vmem:[#allocation11_spill] sm:$0xff] %v7118_v26  ;;  %v10337_v26 = vld [vmem:[#allocation13_spill] sm:$0xff] }
 0x40f   :  { %v7122_v0 = vpop.permute.xlu1 %2271 }
 0x410   :  { %2441 = vrot.lane.b32.xlu2 %v10333_v9, %s4321_s9  ;;  %2439 = vrot.lane.b32.xlu0 %v10334_v52, %s4321_s9 }
 0x412   :  { %v7132_v14 = vpop.permute.xlu0 %2275 }
 0x413   :  { %v7130_v61 = vpop.permute.xlu2 %2297 }
 0x414   :  { %2641 = vrot.lane.b32.xlu1 %v10335_v59, %s4322_s10 }
 0x417   :  { %v7134_v8 = vpop.permute.xlu1 %2277 }
 0x418   :  { %10336 = vst [vmem:[#allocation166_spill] sm:$0xff] %v7134_v8  ;;  %2443 = vrot.lane.b32.xlu2 %v10337_v26, %s4321_s9  ;;  %2643 = vrot.lane.b32.xlu0 %v10338_v35, %s4322_s10  ;;  %v10344_v26 = vld [vmem:[#allocation172_spill] sm:$0xff] }
 0x41a   :  { %v7144_v52 = vpop.permute.xlu0 %2281 }
 0x41b   :  { %v7142_v9 = vpop.permute.xlu2 %2303  ;;  %10340 = vst [vmem:[#allocation6_spill] sm:$0xff] %v7144_v52 }
 0x41c   :  { %2351 = vrot.lane.b32.xlu1 %v6277_v22, %s4320_s25  ;;  %10339 = vst [vmem:[#allocation15_spill] sm:$0xff] %v7142_v9  ;;  %v10348_v9 = vld [vmem:[#allocation173_spill] sm:$0xff] }
 0x41f   :  { %v7146_v59 = vpop.permute.xlu1 %2283 }
 0x420   :  { %10341 = vst [vmem:[#allocation167_spill] sm:$0xff] %v7146_v59  ;;  %2669 = vrot.lane.b32.xlu2 %v10342_v38, %s4322_s10  ;;  %2467 = vrot.lane.b32.xlu0 %v10343_v54, %s4321_s9  ;;  %v10349_v59 = vld [vmem:[#allocation16_spill] sm:$0xff]  ;;  %v10350_v38 = vld [vmem:[#allocation35_spill] sm:$0xff] }
 0x422   :  { %v7156_v35 = vpop.permute.xlu0 %2287 }
 0x423   :  { %v7154_v53 = vpop.permute.xlu2 %2309  ;;  %10346 = vst [vmem:[#allocation165_spill] sm:$0xff] %v7156_v35 }
 0x424   :  { %2645 = vrot.lane.b32.xlu1 %v10344_v26, %s4322_s10  ;;  %10345 = vst [vmem:[#allocation13_spill] sm:$0xff] %v7154_v53  ;;  %v10353_v53 = vld [vmem:[#allocation40_spill] sm:$0xff] }
 0x427   :  { %v7158_v22 = vpop.permute.xlu1 %2289 }
 0x428   :  { %10347 = vst [vmem:[#allocation196_spill] sm:$0xff] %v7158_v22  ;;  %2647 = vrot.lane.b32.xlu2 %v10348_v9, %s4322_s10  ;;  %2445 = vrot.lane.b32.xlu0 %v10349_v59, %s4321_s9  ;;  %v10354_v22 = vld [vmem:[#allocation197_spill] sm:$0xff]  ;;  %v10355_v9 = vld [vmem:[#allocation22_spill] sm:$0xff] }
 0x42a   :  { %v7168_v54 = vpop.permute.xlu0 %2293 }
 0x42b   :  { %v7166_v52 = vpop.permute.xlu2 %2315  ;;  %10352 = vst [vmem:[#allocation172_spill] sm:$0xff] %v7168_v54  ;;  %v10359_v54 = vld [vmem:[#allocation171_spill] sm:$0xff] }
 0x42c   :  { %2469 = vrot.lane.b32.xlu1 %v10350_v38, %s4321_s9  ;;  %10351 = vst [vmem:[#allocation29_spill] sm:$0xff] %v7166_v52  ;;  %v10358_v52 = vld [vmem:[#allocation17_spill] sm:$0xff] }
 0x42f   :  { %v7170_v26 = vpop.permute.xlu1 %2295 }
 0x430   :  { %2471 = vrot.lane.b32.xlu2 %v10353_v53, %s4321_s9  ;;  %2671 = vrot.lane.b32.xlu0 %v10354_v22, %s4322_s10  ;;  %v10360_v53 = vld [vmem:[#allocation195_spill] sm:$0xff] }
 0x432   :  { %v7180_v59 = vpop.permute.xlu0 %2299 }
 0x433   :  { %v7178_v35 = vpop.permute.xlu2 %2321 }
 0x434   :  { %2447 = vrot.lane.b32.xlu1 %v10355_v9, %s4321_s9  ;;  %10356 = vst [vmem:[#allocation173_spill] sm:$0xff] %v7178_v35  ;;  %v10364_v35 = vld [vmem:[#allocation200_spill] sm:$0xff] }
 0x437   :  { %v7182_v38 = vpop.permute.xlu1 %2301 }
 0x438   :  { %10357 = vst [vmem:[#allocation16_spill] sm:$0xff] %v7182_v38  ;;  %2449 = vrot.lane.b32.xlu2 %v10358_v52, %s4321_s9  ;;  %2649 = vrot.lane.b32.xlu0 %v10359_v54, %s4322_s10  ;;  %v10366_v52 = vld [vmem:[#allocation178_spill] sm:$0xff]  ;;  %v10403_v38 = vld [vmem:[#allocation205_spill] sm:$0xff] }
 0x43a   :  { %v7192_v22 = vpop.permute.xlu0 %2305 }
 0x43b   :  { %v7190_v8 = vpop.permute.xlu2 %2327  ;;  %10362 = vst [vmem:[#allocation40_spill] sm:$0xff] %v7192_v22 }
 0x43c   :  { %2673 = vrot.lane.b32.xlu1 %v10360_v53, %s4322_s10  ;;  %10361 = vst [vmem:[#allocation35_spill] sm:$0xff] %v7190_v8  ;;  %v10370_v8 = vld [vmem:[#allocation24_spill] sm:$0xff] }
 0x43f   :  { %v7194_v9 = vpop.permute.xlu1 %2307 }
 0x440   :  { %10363 = vst [vmem:[#allocation197_spill] sm:$0xff] %v7194_v9  ;;  %2675 = vrot.lane.b32.xlu2 %v10364_v35, %s4322_s10  ;;  %2473 = vrot.lane.b32.xlu0 %v10365_v50, %s4321_s9  ;;  %v10371_v9 = vld [vmem:[#allocation72_spill] sm:$0xff] }
 0x442   :  { %v7204_v54 = vpop.permute.xlu0 %2311 }
 0x443   :  { %v7202_v1 = vpop.permute.xlu2 %2333  ;;  %10368 = vst [vmem:[#allocation17_spill] sm:$0xff] %v7204_v54  ;;  %v3353_v54 = vld [vmem:[%s9256_s5 + $0x20] sm:$0xf] }
 0x444   :  { %2651 = vrot.lane.b32.xlu1 %v10366_v52, %s4322_s10  ;;  %10367 = vst [vmem:[#allocation22_spill] sm:$0xff] %v7202_v1  ;;  %4218 = vmatpush.msk.msra.mxu0 %vm3547_vm3, %v3353_v54 }
 0x445   :  { %4283 = vmatpush.msk.msra.mxu1 %vm3547_vm3, %v3353_v54  ;;  %4284 = vmatpush.msk.msra.mxu2 %vm3547_vm3, %v3353_v54 }
 0x446   :  { %4285 = vmatpush.msk.msra.mxu3 %vm3547_vm3, %v3353_v54  ;;  %v3350_v54 = vld [vmem:[%s9256_s5 + $0x8] sm:$0xff] }
 0x447   :  { %v7206_v53 = vpop.permute.xlu1 %2313 }
 0x448   :  { %10369 = vst [vmem:[#allocation171_spill] sm:$0xff] %v7206_v53  ;;  %2451 = vrot.lane.b32.xlu2 %v10370_v8, %s4321_s9  ;;  %2499 = vrot.lane.b32.xlu0 %v10371_v9, %s4321_s9  ;;  %v3352_v8 = vld [vmem:[%s9256_s5 + $0x18] sm:$0xff]  ;;  %v10376_v9 = vld [vmem:[#allocation44_spill] sm:$0xff] }
 0x449   :  { %3563 = vmatpush.msra.mxu0 %v3352_v8  ;;  %4286 = vmatpush.msra.mxu1 %v3352_v8 }
 0x44a   :  { %v7216_v50 = vpop.permute.xlu0 %2317  ;;  %4287 = vmatpush.msra.mxu2 %v3352_v8  ;;  %4288 = vmatpush.msra.mxu3 %v3352_v8 }
 0x44b   :  { %v7214_v35 = vpop.permute.xlu2 %2339  ;;  %10373 = vst [vmem:[#allocation200_spill] sm:$0xff] %v7216_v50  ;;  %v10377_v50 = vld [vmem:[#allocation179_spill] sm:$0xff] }
 0x44c   :  { %2701 = vrot.lane.b32.xlu1 %v10220_v5, %s4322_s10  ;;  %10372 = vst [vmem:[#allocation195_spill] sm:$0xff] %v7214_v35  ;;  %v10375_v5 = vld [vmem:[#allocation201_spill] sm:$0xff] }
 0x44f   :  { %v7218_v52 = vpop.permute.xlu1 %2319 }
 0x450   :  { %10374 = vst [vmem:[#allocation34_spill] sm:$0xff] %v7218_v52  ;;  %2677 = vrot.lane.b32.xlu2 %v10375_v5, %s4322_s10  ;;  %2475 = vrot.lane.b32.xlu0 %v10376_v9, %s4321_s9  ;;  %v3351_v52 = vld [vmem:[%s9256_s5 + $0x10] sm:$0xff]  ;;  %v3349_v9 = vld [vmem:[%s9256_s5] sm:$0xff] }
 0x451   :  { %3564 = vmatpush.msra.mxu0 %v3351_v52  ;;  %4289 = vmatpush.msra.mxu1 %v3351_v52 }
 0x452   :  { %v7237_v53 = vpop.permute.xlu0 %2323  ;;  %4290 = vmatpush.msra.mxu2 %v3351_v52  ;;  %4291 = vmatpush.msra.mxu3 %v3351_v52  ;;  %v10387_v52 = vld [vmem:[#allocation199_spill] sm:$0xff] }
 0x453   :  { %v7235_v35 = vpop.permute.xlu2 %2345  ;;  %10379 = vst [vmem:[#allocation24_spill] sm:$0xff] %v7237_v53  ;;  %3565 = vmatpush.msra.mxu0 %v3350_v54  ;;  %4292 = vmatpush.msra.mxu1 %v3350_v54  ;;  %v10382_v53 = vld [vmem:[#allocation77_spill] sm:$0xff] }
 0x454   :  { %2653 = vrot.lane.b32.xlu1 %v10377_v50, %s4322_s10  ;;  %10378 = vst [vmem:[#allocation178_spill] sm:$0xff] %v7235_v35  ;;  %4293 = vmatpush.msra.mxu2 %v3350_v54  ;;  %v10381_v50 = vld [vmem:[#allocation25_spill] sm:$0xff] }
 0x455   :  { %3566 = vmatpush.msra.mxu0 %v3349_v9  ;;  %4295 = vmatpush.msra.mxu1 %v3349_v9 }
 0x456   :  { %4296 = vmatpush.msra.mxu2 %v3349_v9  ;;  %4294 = vmatpush.msra.mxu3 %v3350_v54 }
 0x457   :  { %v7242_v5 = vpop.permute.xlu1 %2325 }
 0x458   :  { %10380 = vst [vmem:[#allocation72_spill] sm:$0xff] %v7242_v5  ;;  %2453 = vrot.lane.b32.xlu2 %v10381_v50, %s4321_s9  ;;  %2501 = vrot.lane.b32.xlu0 %v10382_v53, %s4321_s9  ;;  %v10383_v5 = vld [vmem:[#allocation215_spill] sm:$0xff]  ;;  %v10389_v53 = vld [vmem:[#allocation177_spill] sm:$0xff] }
 0x459   :  { %4297 = vmatpush.msra.mxu3 %v3349_v9  ;;  %v10388_v50 = vld [vmem:[#allocation47_spill] sm:$0xff] }
 0x45a   :  { %v7255_v8 = vpop.permute.xlu0 %2329  ;;  %v10394_v9 = vld [vmem:[#allocation71_spill] sm:$0xff] }
 0x45b   :  { %v7253_v35 = vpop.permute.xlu2 %2347  ;;  %10385 = vst [vmem:[#allocation44_spill] sm:$0xff] %v7255_v8 }
 0x45c   :  { %2703 = vrot.lane.b32.xlu1 %v10383_v5, %s4322_s10  ;;  %10384 = vst [vmem:[#allocation201_spill] sm:$0xff] %v7253_v35  ;;  %v10393_v35 = vld [vmem:[#allocation23_spill] sm:$0xff] }
 0x45f   :  { %v7257_v1 = vpop.permute.xlu1 %2331 }
 0x460   :  { %10386 = vst [vmem:[#allocation179_spill] sm:$0xff] %v7257_v1  ;;  %2679 = vrot.lane.b32.xlu2 %v10387_v52, %s4322_s10  ;;  %2477 = vrot.lane.b32.xlu0 %v10388_v50, %s4321_s9  ;;  %v10395_v52 = vld [vmem:[#allocation221_spill] sm:$0xff] }
 0x462   :  { %v7267_v22 = vpop.permute.xlu0 %2335 }
 0x463   :  { %v7265_v54 = vpop.permute.xlu2 %2349  ;;  %10391 = vst [vmem:[#allocation77_spill] sm:$0xff] %v7267_v22  ;;  %v10399_v22 = vld [vmem:[#allocation10_spill] sm:$0xff] }
 0x464   :  { %2655 = vrot.lane.b32.xlu1 %v10389_v53, %s4322_s10  ;;  %10390 = vst [vmem:[#allocation25_spill] sm:$0xff] %v7265_v54  ;;  %v10398_v54 = vld [vmem:[#allocation109_spill] sm:$0xff] }
 0x467   :  { %v7269_v5 = vpop.permute.xlu1 %2337 }
 0x468   :  { %10392 = vst [vmem:[#allocation215_spill] sm:$0xff] %v7269_v5  ;;  %2455 = vrot.lane.b32.xlu2 %v10393_v35, %s4321_s9  ;;  %2503 = vrot.lane.b32.xlu0 %v10394_v9, %s4321_s9  ;;  %v2830_v5 = vsel %vm192_vm4, %v10399_v22, %v10398_v54  ;;  %v10400_v35 = vld [vmem:[#allocation94_spill] sm:$0xff] }
 0x469   :  { %v2895_v8 = vsel %vm2894_vm6, %v2830_v5, %v10400_v35  ;;  %v10401_v9 = vld [vmem:[#allocation294_spill] sm:$0xff] }
 0x46a   :  { %v7279_v50 = vpop.permute.xlu0 %2341  ;;  %v2960_v33 = vsel %vm2959_vm5, %v2895_v8, %v10401_v9  ;;  %v10405_v8 = vld [vmem:[#allocation184_spill] sm:$0xff]  ;;  %v10406_v9 = vld [vmem:[#allocation119_spill] sm:$0xff] }
 0x46b   :  { %v7277_v1 = vpop.permute.xlu2 %2441  ;;  %10396 = vst [vmem:[#allocation199_spill] sm:$0xff] %v7279_v50 }
 0x46c   :  { %2705 = vrot.lane.b32.xlu1 %v10395_v52, %s4322_s10  ;;  %v10402_v52 = vld [vmem:[#allocation369_spill] sm:$0xff] }
 0x46d   :  { %v3025_v50 = vsel %vm3024_vm7, %v2960_v33, %v10402_v52 }
 0x46e   :  { %v3090_v22 = vsel %vm3089_vm9, %v3025_v50, %v6756_v2  ;;  %v10408_v50 = vld [vmem:[#allocation69_spill] sm:$0xff] }
 0x46f   :  { %v7281_v53 = vpop.permute.xlu1 %2343  ;;  %v3155_v54 = vsel %vm3154_vm8, %v3090_v22, %v6998_v49  ;;  %v10409_v22 = vld [vmem:[#allocation307_spill] sm:$0xff] }
 0x470   :  { %10397 = vst [vmem:[#allocation47_spill] sm:$0xff] %v7281_v53  ;;  %2681 = vrot.lane.b32.xlu2 %v10403_v38, %s4322_s10  ;;  %v10404_v53 = vld [vmem:[#allocation42_spill] sm:$0xff] }
 0x471   :  { %2479 = vrot.lane.b32.xlu0 %v10404_v53, %s4321_s9  ;;  %v10407_v53 = vld [vmem:[#allocation9_spill] sm:$0xff] }
 0x472   :  { %v2436_v33 = vpop.permute.xlu0 %2435  ;;  %v2831_v52 = vsel %vm192_vm4, %v10407_v53, %v10406_v9  ;;  %v10413_v9 = vld [vmem:[#allocation217_spill] sm:$0xff]  ;;  %v10414_v53 = vld [vmem:[#allocation222_spill] sm:$0xff] }
 0x473   :  { %v7302_v5 = vpop.permute.xlu2 %2443  ;;  %v3220_v35 = vsel %vm3219_vm10, %v3155_v54, %v2436_v33  ;;  %v2896_v49 = vsel %vm2894_vm6, %v2831_v52, %v10408_v50  ;;  %v10411_v54 = vld [vmem:[#allocation26_spill] sm:$0xff]  ;;  %v10412_v33 = vld [vmem:[#allocation80_spill] sm:$0xff] }
 0x474   :  { %2657 = vrot.lane.b32.xlu1 %v10405_v8, %s4322_s10  ;;  %v2961_v8 = vsel %vm2959_vm5, %v2896_v49, %v10409_v22  ;;  %v10415_v49 = vld [vmem:[#allocation101_spill] sm:$0xff] }
 0x475   :  { %v3026_v24 = vsel %vm3024_vm7, %v2961_v8, %v10410_v25  ;;  %v10416_v22 = vld [vmem:[#allocation5_spill] sm:$0xff] }
 0x476   :  { %v2832_v8 = vsel %vm192_vm4, %v10416_v22, %v10415_v49  ;;  %v10422_v49 = vld [vmem:[#allocation185_spill] sm:$0xff] }
 0x477   :  { %v2638_v38 = vpop.permute.xlu1 %2637 }
 0x478   :  { %v3285_v2 = vsel %vm3284_vm11, %v3220_v35, %v2638_v38  ;;  %2457 = vrot.lane.b32.xlu2 %v10411_v54, %s4321_s9  ;;  %v3091_v35 = vsel %vm3089_vm9, %v3026_v24, %v10413_v9 }
 0x479   :  { %4219 = vmatmul.msk.f32.vlgmr.msra.gmra.mxu0 %vm3354_vm12, %v3285_v2  ;;  %2505 = vrot.lane.b32.xlu0 %v10412_v33, %s4321_s9  ;;  %v3156_v38 = vsel %vm3154_vm8, %v3091_v35, %v7048_v57  ;;  %v10417_v33 = vld [vmem:[#allocation93_spill] sm:$0xff]  ;;  %v10418_v57 = vld [vmem:[#allocation308_spill] sm:$0xff]  ;;  %v10419_v35 = vld [vmem:[#allocation63_spill] sm:$0xff] }
 0x47a   :  { %v2438_v2 = vpop.permute.xlu0 %2437  ;;  %v2897_v24 = vsel %vm2894_vm6, %v2832_v8, %v10417_v33  ;;  %v10423_v33 = vld [vmem:[#allocation113_spill] sm:$0xff] }
 0x47b   :  { %v2670_v52 = vpop.permute.xlu2 %2669  ;;  %v3221_v50 = vsel %vm3219_vm10, %v3156_v38, %v2438_v2  ;;  %v2962_v9 = vsel %vm2959_vm5, %v2897_v24, %v10418_v57  ;;  %v10420_v38 = vld [vmem:[#allocation206_spill] sm:$0xff]  ;;  %v10424_v24 = vld [vmem:[#allocation4_spill] sm:$0xff] }
 0x47c   :  { %2707 = vrot.lane.b32.xlu1 %v10414_v53, %s4322_s10  ;;  %v3027_v53 = vsel %vm3024_vm7, %v2962_v9, %v10419_v35  ;;  %v10421_v2 = vld [vmem:[#allocation50_spill] sm:$0xff]  ;;  %v2833_v57 = vsel %vm192_vm4, %v10424_v24, %v10423_v33  ;;  %v10425_v35 = vld [vmem:[#allocation232_spill] sm:$0xff]  ;;  %v10430_v33 = vld [vmem:[#allocation79_spill] sm:$0xff] }
 0x47f   :  { %v2640_v25 = vpop.permute.xlu1 %2639 }
 0x480   :  { %v3286_v54 = vsel %vm3284_vm11, %v3221_v50, %v2640_v25  ;;  %2683 = vrot.lane.b32.xlu2 %v10420_v38, %s4322_s10  ;;  %v3092_v50 = vsel %vm3089_vm9, %v3027_v53, %v6766_v6  ;;  %v2898_v38 = vsel %vm2894_vm6, %v2833_v57, %v10425_v35  ;;  %v10426_v53 = vld [vmem:[#allocation297_spill] sm:$0xff]  ;;  %v10431_v57 = vld [vmem:[#allocation127_spill] sm:$0xff] }
 0x481   :  { %4220 = vmatmul.msk.f32.gmra.mxu0 %vm3354_vm12, %v3286_v54  ;;  %2481 = vrot.lane.b32.xlu0 %v10421_v2, %s4321_s9  ;;  %v3157_v25 = vsel %vm3154_vm8, %v3092_v50, %v7050_v20  ;;  %v2963_v20 = vsel %vm2959_vm5, %v2898_v38, %v10426_v53  ;;  %v10427_v2 = vld [vmem:[#allocation372_spill] sm:$0xff] }
 0x482   :  { %v2440_v8 = vpop.permute.xlu0 %2439  ;;  %v3028_v50 = vsel %vm3024_vm7, %v2963_v20, %v10427_v2  ;;  %v10432_v53 = vld [vmem:[#allocation148_spill] sm:$0xff]  ;;  %v10433_v2 = vld [vmem:[#allocation70_spill] sm:$0xff] }
 0x483   :  { %v2648_v22 = vpop.permute.xlu2 %2647  ;;  %v3222_v54 = vsel %vm3219_vm10, %v3157_v25, %v2440_v8  ;;  %v10429_v8 = vld [vmem:[#allocation220_spill] sm:$0xff]  ;;  %v2846_v20 = vsel %vm192_vm4, %v4671_v48, %v10432_v53 }
 0x484   :  { %2659 = vrot.lane.b32.xlu1 %v10422_v49, %s4322_s10  ;;  %v10428_v49 = vld [vmem:[#allocation432_spill] sm:$0xff] }
 0x485   :  { %v3093_v25 = vsel %vm3089_vm9, %v3028_v50, %v10428_v49  ;;  %v10434_v50 = vld [vmem:[#allocation236_spill] sm:$0xff]  ;;  %v10435_v49 = vld [vmem:[#allocation218_spill] sm:$0xff] }
 0x487   :  { %v2642_v9 = vpop.permute.xlu1 %2641 }
 0x488   :  { %v3287_v6 = vsel %vm3284_vm11, %v3222_v54, %v2642_v9  ;;  %2709 = vrot.lane.b32.xlu2 %v10429_v8, %s4322_s10  ;;  %v3158_v54 = vsel %vm3154_vm8, %v3093_v25, %v7010_v41  ;;  %v2834_v41 = vsel %vm192_vm4, %v4429_v45, %v10433_v2  ;;  %v10436_v8 = vld [vmem:[#allocation322_spill] sm:$0xff]  ;;  %v10440_v45 = vld [vmem:[#allocation373_spill] sm:$0xff] }
 0x489   :  { %4221 = vmatmul.msk.f32.gmra.mxu0 %vm3354_vm12, %v3287_v6  ;;  %2507 = vrot.lane.b32.xlu0 %v10430_v33, %s4321_s9  ;;  %v3223_v24 = vsel %vm3219_vm10, %v3158_v54, %v7277_v1  ;;  %v2911_v1 = vsel %vm2894_vm6, %v2846_v20, %v10434_v50  ;;  %v2899_v25 = vsel %vm2894_vm6, %v2834_v41, %v10435_v49  ;;  %v10437_v54 = vld [vmem:[#allocation310_spill] sm:$0xff]  ;;  %v10441_v20 = vld [vmem:[#allocation423_spill] sm:$0xff]  ;;  %v10442_v50 = vld [vmem:[#allocation28_spill] sm:$0xff] }
 0x48a   :  { %v2644_v35 = vpop.permute.xlu0 %2643  ;;  %v2976_v33 = vsel %vm2959_vm5, %v2911_v1, %v10436_v8 }
 0x48b   :  { %v7372_v9 = vpop.permute.xlu2 %2471  ;;  %v3288_v38 = vsel %vm3284_vm11, %v3223_v24, %v2644_v35  ;;  %v2964_v24 = vsel %vm2959_vm5, %v2899_v25, %v10437_v54  ;;  %v10439_v35 = vld [vmem:[#allocation55_spill] sm:$0xff]  ;;  %v10443_v54 = vld [vmem:[#allocation78_spill] sm:$0xff] }
 0x48c   :  { %2531 = vrot.lane.b32.xlu1 %v10431_v57, %s4321_s9  ;;  %v10438_v57 = vld [vmem:[#allocation385_spill] sm:$0xff] }
 0x48d   :  { %v3041_v48 = vsel %vm3024_vm7, %v2976_v33, %v10438_v57  ;;  %v10444_v57 = vld [vmem:[#allocation237_spill] sm:$0xff] }
 0x48e   :  { %v3106_v53 = vsel %vm3089_vm9, %v3041_v48, %v6776_v15 }
 0x48f   :  { %v7375_v6 = vpop.permute.xlu1 %2351  ;;  %v3171_v41 = vsel %vm3154_vm8, %v3106_v53, %v7108_v30  ;;  %v2835_v30 = vsel %vm192_vm4, %v4426_v44, %v10443_v54  ;;  %v10448_v44 = vld [vmem:[#allocation183_spill] sm:$0xff] }
 0x490   :  { %2483 = vrot.lane.b32.xlu2 %v10439_v35, %s4321_s9  ;;  %v2900_v48 = vsel %vm2894_vm6, %v2835_v30, %v10444_v57  ;;  %v10453_v30 = vld [vmem:[#allocation323_spill] sm:$0xff] }
 0x491   :  { %4222 = vmatmul.msk.f32.gmra.mxu0 %vm3354_vm12, %v3288_v38  ;;  %2733 = vrot.lane.b32.xlu0 %v10252_v3, %s4322_s10  ;;  %v3029_v38 = vsel %vm3024_vm7, %v2964_v24, %v10440_v45 }
 0x492   :  { %v3094_v2 = vsel %vm3089_vm9, %v3029_v38, %v10441_v20  ;;  %v2468_v49 = vpop.permute.xlu0 %2467  ;;  %v10449_v38 = vld [vmem:[#allocation433_spill] sm:$0xff] }
 0x493   :  { %v7408_v1 = vpop.permute.xlu2 %2449  ;;  %v3159_v3 = vsel %vm3154_vm8, %v3094_v2, %v7060_v21  ;;  %v3236_v25 = vsel %vm3219_vm10, %v3171_v41, %v2468_v49  ;;  %v10445_v21 = vld [vmem:[#allocation311_spill] sm:$0xff]  ;;  %v10450_v2 = vld [vmem:[#allocation204_spill] sm:$0xff] }
 0x494   :  { %2459 = vrot.lane.b32.xlu1 %v10442_v50, %s4321_s9  ;;  %v3224_v15 = vsel %vm3219_vm10, %v3159_v3, %v7302_v5  ;;  %v3301_v33 = vsel %vm3284_vm11, %v3236_v25, %v2670_v52  ;;  %v2965_v35 = vsel %vm2959_vm5, %v2900_v48, %v10445_v21  ;;  %v10446_v5 = vld [vmem:[#allocation362_spill] sm:$0xff]  ;;  %v10447_v52 = vld [vmem:[#allocation81_spill] sm:$0xff]  ;;  %v10455_v21 = vld [vmem:[#allocation244_spill] sm:$0xff] }
 0x495   :  { %4235 = vmatmul.msk.f32.vlgmr.msra.gmra.mxu1 %vm3354_vm12, %v3301_v33  ;;  %v3030_v45 = vsel %vm3024_vm7, %v2965_v35, %v10446_v5  ;;  %v10451_v3 = vld [vmem:[#allocation118_spill] sm:$0xff]  ;;  %v10452_v33 = vld [vmem:[#allocation259_spill] sm:$0xff]  ;;  %v10457_v5 = vld [vmem:[#allocation225_spill] sm:$0xff] }
 0x496   :  { %v3095_v53 = vsel %vm3089_vm9, %v3030_v45, %v10449_v38  ;;  %v2847_v25 = vsel %vm192_vm4, %v4657_v31, %v10451_v3  ;;  %v10456_v31 = vld [vmem:[#allocation121_spill] sm:$0xff] }
 0x497   :  { %v2646_v8 = vpop.permute.xlu1 %2645  ;;  %v3160_v20 = vsel %vm3154_vm8, %v3095_v53, %v7062_v51  ;;  %v2912_v54 = vsel %vm2894_vm6, %v2847_v25, %v10452_v33  ;;  %v10462_v25 = vld [vmem:[#allocation260_spill] sm:$0xff] }
 0x498   :  { %v3289_v24 = vsel %vm3284_vm11, %v3224_v15, %v2646_v8  ;;  %2509 = vrot.lane.b32.xlu2 %v10447_v52, %s4321_s9  ;;  %v2977_v51 = vsel %vm2959_vm5, %v2912_v54, %v10453_v30  ;;  %v10465_v30 = vld [vmem:[#allocation434_spill] sm:$0xff] }
 0x499   :  { %4223 = vmatmul.msk.f32.gmra.mxu0 %vm3354_vm12, %v3289_v24  ;;  %2661 = vrot.lane.b32.xlu0 %v10448_v44, %s4322_s10  ;;  %v10454_v24 = vld [vmem:[#allocation374_spill] sm:$0xff] }
 0x49a   :  { %v2446_v50 = vpop.permute.xlu0 %2445  ;;  %v3042_v57 = vsel %vm3024_vm7, %v2977_v51, %v10454_v24  ;;  %v10466_v24 = vld [vmem:[#allocation190_spill] sm:$0xff] }
 0x49b   :  { %v7438_v41 = vpop.permute.xlu2 %2675  ;;  %v3225_v49 = vsel %vm3219_vm10, %v3160_v20, %v2446_v50  ;;  %v3107_v48 = vsel %vm3089_vm9, %v3042_v57, %v6828_v60  ;;  %v10458_v60 = vld [vmem:[#allocation95_spill] sm:$0xff]  ;;  %v10459_v20 = vld [vmem:[#allocation112_spill] sm:$0xff] }
 0x49c   :  { %2685 = vrot.lane.b32.xlu1 %v10450_v2, %s4322_s10  ;;  %v3290_v8 = vsel %vm3284_vm11, %v3225_v49, %v2648_v22  ;;  %v3172_v22 = vsel %vm3154_vm8, %v3107_v48, %v7110_v16  ;;  %v2836_v38 = vsel %vm192_vm4, %v4423_v43, %v10458_v60  ;;  %v10460_v2 = vld [vmem:[#allocation153_spill] sm:$0xff]  ;;  %v10461_v49 = vld [vmem:[#allocation300_spill] sm:$0xff] }
 0x49d   :  { %v2901_v16 = vsel %vm2894_vm6, %v2836_v38, %v10459_v20  ;;  %v2848_v50 = vsel %vm192_vm4, %v4710_v58, %v10460_v2  ;;  %v10464_v43 = vld [vmem:[#allocation312_spill] sm:$0xff]  ;;  %v10467_v58 = vld [vmem:[#allocation27_spill] sm:$0xff] }
 0x49e   :  { %v2966_v3 = vsel %vm2959_vm5, %v2901_v16, %v10461_v49  ;;  %v10468_v57 = vld [vmem:[#allocation388_spill] sm:$0xff]  ;;  %v10473_v49 = vld [vmem:[#allocation83_spill] sm:$0xff] }
 0x49f   :  { %v2470_v15 = vpop.permute.xlu1 %2469  ;;  %v10471_v16 = vld [vmem:[#allocation120_spill] sm:$0xff] }
 0x4a0   :  { %2735 = vrot.lane.b32.xlu2 %v10455_v21, %s4322_s10  ;;  %v3237_v35 = vsel %vm3219_vm10, %v3172_v22, %v2470_v15  ;;  %v2913_v15 = vsel %vm2894_vm6, %v2848_v50, %v10462_v25  ;;  %v2837_v2 = vsel %vm192_vm4, %v4420_v42, %v10471_v16  ;;  %v10472_v50 = vld [vmem:[#allocation115_spill] sm:$0xff]  ;;  %v10478_v42 = vld [vmem:[#allocation209_spill] sm:$0xff] }
 0x4a1   :  { %4224 = vmatmul.msk.f32.gmra.mxu0 %vm3354_vm12, %v3290_v8  ;;  %2533 = vrot.lane.b32.xlu0 %v10456_v31, %s4321_s9  ;;  %v10463_v8 = vld [vmem:[#allocation375_spill] sm:$0xff]  ;;  %v2978_v54 = vsel %vm2959_vm5, %v2913_v15, %v10464_v43  ;;  %v10475_v15 = vld [vmem:[#allocation313_spill] sm:$0xff]  ;;  %v10477_v43 = vld [vmem:[#allocation132_spill] sm:$0xff] }
 0x4a2   :  { %v2672_v52 = vpop.permute.xlu0 %2671  ;;  %v3031_v33 = vsel %vm3024_vm7, %v2966_v3, %v10463_v8  ;;  %v3043_v48 = vsel %vm3024_vm7, %v2978_v54, %v10468_v57  ;;  %v10474_v3 = vld [vmem:[#allocation326_spill] sm:$0xff]  ;;  %v10476_v8 = vld [vmem:[#allocation389_spill] sm:$0xff]  ;;  %v10479_v54 = vld [vmem:[#allocation376_spill] sm:$0xff] }
 0x4a3   :  { %v7463_v45 = vpop.permute.xlu2 %2451  ;;  %v3302_v44 = vsel %vm3284_vm11, %v3237_v35, %v2672_v52  ;;  %v3096_v51 = vsel %vm3089_vm9, %v3031_v33, %v10465_v30  ;;  %v3108_v31 = vsel %vm3089_vm9, %v3043_v48, %v6831_v11  ;;  %v10469_v35 = vld [vmem:[#allocation49_spill] sm:$0xff]  ;;  %v10470_v11 = vld [vmem:[#allocation154_spill] sm:$0xff] }
 0x4a4   :  { %2711 = vrot.lane.b32.xlu1 %v10457_v5, %s4322_s10  ;;  %4236 = vmatmul.msk.f32.gmra.mxu1 %vm3354_vm12, %v3302_v44  ;;  %v3161_v21 = vsel %vm3154_vm8, %v3096_v51, %v7022_v32  ;;  %v3173_v44 = vsel %vm3154_vm8, %v3108_v31, %v7070_v40  ;;  %v10481_v48 = vld [vmem:[#allocation90_spill] sm:$0xff] }
 0x4a5   :  { %v3238_v38 = vsel %vm3219_vm10, %v3173_v44, %v7372_v9  ;;  %v2902_v9 = vsel %vm2894_vm6, %v2837_v2, %v10473_v49  ;;  %v10488_v2 = vld [vmem:[#allocation226_spill] sm:$0xff]  ;;  %v10489_v49 = vld [vmem:[#allocation245_spill] sm:$0xff] }
 0x4a7   :  { %v2448_v53 = vpop.permute.xlu1 %2447 }
 0x4a8   :  { %2663 = vrot.lane.b32.xlu2 %v10466_v24, %s4322_s10  ;;  %v3226_v22 = vsel %vm3219_vm10, %v3161_v21, %v2448_v53  ;;  %v2849_v53 = vsel %vm192_vm4, %v4707_v28, %v10470_v11  ;;  %v2967_v28 = vsel %vm2959_vm5, %v2902_v9, %v10475_v15  ;;  %v10480_v24 = vld [vmem:[#allocation426_spill] sm:$0xff]  ;;  %v10484_v11 = vld [vmem:[#allocation276_spill] sm:$0xff] }
 0x4a9   :  { %2461 = vrot.lane.b32.xlu0 %v10467_v58, %s4321_s9  ;;  %v2914_v40 = vsel %vm2894_vm6, %v2849_v53, %v10472_v50  ;;  %v3032_v30 = vsel %vm3024_vm7, %v2967_v28, %v10479_v54  ;;  %v10490_v28 = vld [vmem:[#allocation128_spill] sm:$0xff]  ;;  %v10493_v54 = vld [vmem:[#allocation241_spill] sm:$0xff] }
 0x4aa   :  { %v2650_v52 = vpop.permute.xlu0 %2649  ;;  %v2979_v25 = vsel %vm2959_vm5, %v2914_v40, %v10474_v3  ;;  %v3097_v58 = vsel %vm3089_vm9, %v3032_v30, %v10480_v24 }
 0x4ab   :  { %v7498_v5 = vpop.permute.xlu2 %2677  ;;  %v3291_v60 = vsel %vm3284_vm11, %v3226_v22, %v2650_v52  ;;  %v3044_v33 = vsel %vm3024_vm7, %v2979_v25, %v10476_v8  ;;  %v3162_v22 = vsel %vm3154_vm8, %v3097_v58, %v7072_v29  ;;  %v10485_v29 = vld [vmem:[#allocation337_spill] sm:$0xff]  ;;  %v2850_v8 = vsel %vm192_vm4, %v4696_v23, %v10490_v28  ;;  %v10495_v58 = vld [vmem:[#allocation314_spill] sm:$0xff] }
 0x4ac   :  { %2485 = vrot.lane.b32.xlu1 %v10469_v35, %s4321_s9  ;;  %4225 = vmatmul.msk.f32.gmra.mxu0 %vm3354_vm12, %v3291_v60  ;;  %v3109_v51 = vsel %vm3089_vm9, %v3044_v33, %v6788_v10  ;;  %v3227_v10 = vsel %vm3219_vm10, %v3162_v22, %v7408_v1  ;;  %v10482_v60 = vld [vmem:[#allocation156_spill] sm:$0xff]  ;;  %v10499_v22 = vld [vmem:[#allocation365_spill] sm:$0xff] }
 0x4ad   :  { %v3174_v57 = vsel %vm3154_vm8, %v3109_v51, %v7120_v13  ;;  %v10483_v13 = vld [vmem:[#allocation53_spill] sm:$0xff]  ;;  %v10494_v51 = vld [vmem:[#allocation327_spill] sm:$0xff] }
 0x4af   :  { %v2674_v32 = vpop.permute.xlu1 %2673 }
 0x4b0   :  { %v3303_v20 = vsel %vm3284_vm11, %v3238_v38, %v2674_v32  ;;  %2535 = vrot.lane.b32.xlu2 %v10477_v43, %s4321_s9  ;;  %v2862_v38 = vsel %vm192_vm4, %v10483_v13, %v10482_v60  ;;  %v10491_v43 = vld [vmem:[#allocation87_spill] sm:$0xff] }
 0x4b1   :  { %4237 = vmatmul.msk.f32.gmra.mxu1 %vm3354_vm12, %v3303_v20  ;;  %2687 = vrot.lane.b32.xlu0 %v10478_v42, %s4322_s10  ;;  %v2927_v53 = vsel %vm2894_vm6, %v2862_v38, %v10484_v11  ;;  %v10486_v20 = vld [vmem:[#allocation161_spill] sm:$0xff]  ;;  %v10500_v60 = vld [vmem:[#allocation191_spill] sm:$0xff] }
 0x4b2   :  { %v2474_v31 = vpop.permute.xlu0 %2473  ;;  %v2992_v1 = vsel %vm2959_vm5, %v2927_v53, %v10485_v29  ;;  %v10501_v29 = vld [vmem:[#allocation181_spill] sm:$0xff] }
 0x4b3   :  { %v7538_v21 = vpop.permute.xlu2 %2453  ;;  %v3239_v35 = vsel %vm3219_vm10, %v3174_v57, %v2474_v31  ;;  %v3057_v16 = vsel %vm3024_vm7, %v2992_v1, %v10486_v20  ;;  %v10496_v57 = vld [vmem:[#allocation377_spill] sm:$0xff]  ;;  %v10497_v31 = vld [vmem:[#allocation210_spill] sm:$0xff] }
 0x4b4   :  { %2511 = vrot.lane.b32.xlu1 %v10481_v48, %s4321_s9  ;;  %v3304_v44 = vsel %vm3284_vm11, %v3239_v35, %v7438_v41  ;;  %v10487_v41 = vld [vmem:[#allocation32_spill] sm:$0xff]  ;;  %v3122_v50 = vsel %vm3089_vm9, %v3057_v16, %v6895_v62  ;;  %v2838_v62 = vsel %vm192_vm4, %v4532_v37, %v10491_v43  ;;  %v10503_v16 = vld [vmem:[#allocation277_spill] sm:$0xff] }
 0x4b5   :  { %v3187_v40 = vsel %vm3154_vm8, %v3122_v50, %v7170_v26  ;;  %v10492_v26 = vld [vmem:[#allocation264_spill] sm:$0xff]  ;;  %v2903_v30 = vsel %vm2894_vm6, %v2838_v62, %v10493_v54  ;;  %v10509_v43 = vld [vmem:[#allocation157_spill] sm:$0xff] }
 0x4b6   :  { %v2915_v42 = vsel %vm2894_vm6, %v2850_v8, %v10492_v26  ;;  %v2968_v23 = vsel %vm2959_vm5, %v2903_v30, %v10495_v58  ;;  %v10498_v37 = vld [vmem:[#allocation60_spill] sm:$0xff]  ;;  %v2851_v62 = vsel %vm192_vm4, %v4702_v19, %v10509_v43  ;;  %v10512_v30 = vld [vmem:[#allocation242_spill] sm:$0xff] }
 0x4b7   :  { %v2652_v52 = vpop.permute.xlu1 %2651  ;;  %v2980_v24 = vsel %vm2959_vm5, %v2915_v42, %v10494_v51  ;;  %v3033_v35 = vsel %vm3024_vm7, %v2968_v23, %v10499_v22  ;;  %v10510_v42 = vld [vmem:[#allocation129_spill] sm:$0xff]  ;;  %v10514_v23 = vld [vmem:[#allocation303_spill] sm:$0xff]  ;;  %v10530_v43 = vld [vmem:[#allocation130_spill] sm:$0xff] }
 0x4b8   :  { %v3292_v32 = vsel %vm3284_vm11, %v3227_v10, %v2652_v52  ;;  %2463 = vrot.lane.b32.xlu2 %v10487_v41, %s4321_s9  ;;  %v3045_v48 = vsel %vm3024_vm7, %v2980_v24, %v10496_v57  ;;  %v3098_v52 = vsel %vm3089_vm9, %v3033_v35, %v6790_v18  ;;  %v10504_v41 = vld [vmem:[#allocation8_spill] sm:$0xff]  ;;  %v10513_v24 = vld [vmem:[#allocation315_spill] sm:$0xff] }
 0x4b9   :  { %4226 = vmatmul.msk.f32.gmra.mxu0 %vm3354_vm12, %v3292_v32  ;;  %4238 = vmatmul.msk.f32.gmra.mxu1 %vm3354_vm12, %v3304_v44  ;;  %v3110_v10 = vsel %vm3089_vm9, %v3045_v48, %v6847_v7  ;;  %v3163_v32 = vsel %vm3154_vm8, %v3098_v52, %v7074_v63  ;;  %v10515_v57 = vld [vmem:[#allocation160_spill] sm:$0xff] }
 0x4ba   :  { %2713 = vrot.lane.b32.xlu0 %v10488_v2, %s4322_s10  ;;  %v2500_v3 = vpop.permute.xlu0 %2499  ;;  %v3175_v44 = vsel %vm3154_vm8, %v3110_v10, %v7122_v0  ;;  %v3228_v7 = vsel %vm3219_vm10, %v3163_v32, %v7463_v45  ;;  %v10502_v0 = vld [vmem:[#allocation52_spill] sm:$0xff]  ;;  %v10505_v2 = vld [vmem:[#allocation401_spill] sm:$0xff]  ;;  %v10519_v10 = vld [vmem:[#allocation238_spill] sm:$0xff] }
 0x4bb   :  { %v7569_v9 = vpop.permute.xlu2 %2679  ;;  %v3252_v25 = vsel %vm3219_vm10, %v3187_v40, %v2500_v3  ;;  %v2863_v1 = vsel %vm192_vm4, %v10502_v0, %v10501_v29  ;;  %v10507_v40 = vld [vmem:[#allocation88_spill] sm:$0xff]  ;;  %v10521_v29 = vld [vmem:[#allocation182_spill] sm:$0xff] }
 0x4bc   :  { %2737 = vrot.lane.b32.xlu1 %v10489_v49, %s4322_s10  ;;  %v2928_v63 = vsel %vm2894_vm6, %v2863_v1, %v10503_v16  ;;  %v10524_v16 = vld [vmem:[#allocation339_spill] sm:$0xff] }
 0x4bd   :  { %v2993_v45 = vsel %vm2959_vm5, %v2928_v63, %v10504_v41  ;;  %v10525_v63 = vld [vmem:[#allocation402_spill] sm:$0xff] }
 0x4be   :  { %v3058_v50 = vsel %vm3024_vm7, %v2993_v45, %v10505_v2  ;;  %v10527_v45 = vld [vmem:[#allocation189_spill] sm:$0xff] }
 0x4bf   :  { %v2702_v15 = vpop.permute.xlu1 %2701  ;;  %v3123_v49 = vsel %vm3089_vm9, %v3058_v50, %v6897_v39  ;;  %v2839_v39 = vsel %vm192_vm4, %v4529_v36, %v10510_v42  ;;  %v10517_v36 = vld [vmem:[#allocation243_spill] sm:$0xff] }
 0x4c0   :  { %v3317_v33 = vsel %vm3284_vm11, %v3252_v25, %v2702_v15  ;;  %2689 = vrot.lane.b32.xlu2 %v10497_v31, %s4322_s10  ;;  %v3188_v3 = vsel %vm3154_vm8, %v3123_v49, %v7130_v61  ;;  %v10508_v25 = vld [vmem:[#allocation134_spill] sm:$0xff]  ;;  %v10511_v61 = vld [vmem:[#allocation265_spill] sm:$0xff]  ;;  %v2904_v51 = vsel %vm2894_vm6, %v2839_v39, %v10512_v30  ;;  %v10533_v39 = vld [vmem:[#allocation12_spill] sm:$0xff] }
 0x4c1   :  { %4251 = vmatmul.msk.f32.vlgmr.msra.gmra.mxu2 %vm3354_vm12, %v3317_v33  ;;  %v2916_v54 = vsel %vm2894_vm6, %v2851_v62, %v10511_v61  ;;  %v2969_v19 = vsel %vm2959_vm5, %v2904_v51, %v10514_v23  ;;  %v10516_v31 = vld [vmem:[#allocation61_spill] sm:$0xff]  ;;  %v10535_v30 = vld [vmem:[#allocation391_spill] sm:$0xff] }
 0x4c2   :  { %2487 = vrot.lane.b32.xlu0 %v10498_v37, %s4321_s9  ;;  %v2476_v38 = vpop.permute.xlu0 %2475  ;;  %v2981_v58 = vsel %vm2959_vm5, %v2916_v54, %v10513_v24  ;;  %v10518_v37 = vld [vmem:[#allocation378_spill] sm:$0xff]  ;;  %v10534_v54 = vld [vmem:[#allocation316_spill] sm:$0xff] }
 0x4c3   :  { %v7604_v13 = vpop.permute.xlu2 %2455  ;;  %v3240_v11 = vsel %vm3219_vm10, %v3175_v44, %v2476_v38  ;;  %v3046_v48 = vsel %vm3024_vm7, %v2981_v58, %v10515_v57  ;;  %v3034_v22 = vsel %vm3024_vm7, %v2969_v19, %v10518_v37  ;;  %v10536_v24 = vld [vmem:[#allocation250_spill] sm:$0xff]  ;;  %v10538_v58 = vld [vmem:[#allocation379_spill] sm:$0xff]  ;;  %v10539_v57 = vld [vmem:[#allocation429_spill] sm:$0xff] }
 0x4c4   :  { %2665 = vrot.lane.b32.xlu1 %v10500_v60, %s4322_s10  ;;  %v3305_v18 = vsel %vm3284_vm11, %v3240_v11, %v7498_v5  ;;  %v10506_v5 = vld [vmem:[#allocation224_spill] sm:$0xff]  ;;  %v3111_v35 = vsel %vm3089_vm9, %v3046_v48, %v6849_v47  ;;  %v3099_v52 = vsel %vm3089_vm9, %v3034_v22, %v10519_v10  ;;  %v10520_v60 = vld [vmem:[#allocation33_spill] sm:$0xff] }
 0x4c5   :  { %4239 = vmatmul.msk.f32.gmra.mxu1 %vm3354_vm12, %v3305_v18  ;;  %v3176_v44 = vsel %vm3154_vm8, %v3111_v35, %v7082_v27  ;;  %v3164_v11 = vsel %vm3154_vm8, %v3099_v52, %v7034_v4  ;;  %v10522_v27 = vld [vmem:[#allocation62_spill] sm:$0xff]  ;;  %v2627_v52 = vrot.slane %v6970_v55, 2 }
 0x4c6   :  { %v3229_v47 = vsel %vm3219_vm10, %v3164_v11, %v7538_v21  ;;  %v2864_v0 = vsel %vm192_vm4, %v10522_v27, %v10521_v29  ;;  %v10542_v11 = vld [vmem:[#allocation162_spill] sm:$0xff]  ;;  %v10544_v29 = vld [vmem:[#allocation279_spill] sm:$0xff] }
 0x4c7   :  { %v2654_v53 = vpop.permute.xlu1 %2653 }
 0x4c8   :  { %v3293_v20 = vsel %vm3284_vm11, %v3228_v7, %v2654_v53  ;;  %2715 = vrot.lane.b32.xlu2 %v10506_v5, %s4322_s10  ;;  %v10528_v5 = vld [vmem:[#allocation208_spill] sm:$0xff] }
 0x4c9   :  { %4227 = vmatmul.msk.f32.gmra.mxu0 %vm3354_vm12, %v3293_v20  ;;  %v10523_v20 = vld [vmem:[#allocation266_spill] sm:$0xff] }
 0x4ca   :  { %2513 = vrot.lane.b32.xlu0 %v10507_v40, %s4321_s9  ;;  %v2502_v28 = vpop.permute.xlu0 %2501  ;;  %v2929_v4 = vsel %vm2894_vm6, %v2864_v0, %v10523_v20  ;;  %v10546_v0 = vld [vmem:[#allocation159_spill] sm:$0xff]  ;;  %v10547_v20 = vld [vmem:[#allocation104_spill] sm:$0xff] }
 0x4cb   :  { %v7635_v15 = vpop.permute.xlu2 %2681  ;;  %v3253_v8 = vsel %vm3219_vm10, %v3188_v3, %v2502_v28  ;;  %v2994_v21 = vsel %vm2959_vm5, %v2929_v4, %v10524_v16  ;;  %v10529_v28 = vld [vmem:[#allocation158_spill] sm:$0xff] }
 0x4cc   :  { %2537 = vrot.lane.b32.xlu1 %v10508_v25, %s4321_s9  ;;  %v3059_v41 = vsel %vm3024_vm7, %v2994_v21, %v10525_v63  ;;  %v10549_v16 = vld [vmem:[#allocation454_spill] sm:$0xff] }
 0x4cd   :  { %v3124_v2 = vsel %vm3089_vm9, %v3059_v41, %v6857_v56  ;;  %v2840_v56 = vsel %vm192_vm4, %v4574_v12, %v10530_v43  ;;  %v10537_v12 = vld [vmem:[#allocation131_spill] sm:$0xff]  ;;  %v10550_v41 = vld [vmem:[#allocation16_spill] sm:$0xff]  ;;  %v10555_v43 = vld [vmem:[#allocation14_spill] sm:$0xff] }
 0x4ce   :  { %v3189_v50 = vsel %vm3154_vm8, %v3124_v2, %v7180_v59  ;;  %v10531_v59 = vld [vmem:[#allocation246_spill] sm:$0xff] }
 0x4cf   :  { %v2704_v33 = vpop.permute.xlu1 %2703 }
 0x4d0   :  { %v3318_v26 = vsel %vm3284_vm11, %v3253_v8, %v2704_v33  ;;  %2489 = vrot.lane.b32.xlu2 %v10516_v31, %s4321_s9  ;;  %v2852_v8 = vsel %vm192_vm4, %v4775_v17, %v10529_v28 }
 0x4d1   :  { %4252 = vmatmul.msk.f32.gmra.mxu2 %vm3354_vm12, %v3318_v26  ;;  %v2917_v62 = vsel %vm2894_vm6, %v2852_v8, %v10531_v59  ;;  %v10532_v26 = vld [vmem:[#allocation227_spill] sm:$0xff] }
 0x4d2   :  { %2739 = vrot.lane.b32.xlu0 %v10517_v36, %s4322_s10  ;;  %v2478_v32 = vpop.permute.xlu0 %2477  ;;  %v2905_v42 = vsel %vm2894_vm6, %v2840_v56, %v10532_v26  ;;  %v2982_v61 = vsel %vm2959_vm5, %v2917_v62, %v10533_v39  ;;  %v10540_v36 = vld [vmem:[#allocation230_spill] sm:$0xff]  ;;  %v10556_v59 = vld [vmem:[#allocation267_spill] sm:$0xff]  ;;  %v10558_v39 = vld [vmem:[#allocation328_spill] sm:$0xff] }
 0x4d3   :  { %v7670_v38 = vpop.permute.xlu2 %2457  ;;  %v3241_v7 = vsel %vm3219_vm10, %v3176_v44, %v2478_v32  ;;  %v2970_v17 = vsel %vm2959_vm5, %v2905_v42, %v10534_v54  ;;  %v3047_v51 = vsel %vm3024_vm7, %v2982_v61, %v10535_v30  ;;  %v10557_v26 = vld [vmem:[#allocation247_spill] sm:$0xff]  ;;  %v10559_v54 = vld [vmem:[#allocation317_spill] sm:$0xff]  ;;  %v10560_v30 = vld [vmem:[#allocation380_spill] sm:$0xff] }
 0x4d4   :  { %2465 = vrot.lane.b32.xlu1 %v10520_v60, %s4321_s9  ;;  %v3306_v18 = vsel %vm3284_vm11, %v3241_v7, %v7569_v9  ;;  %v10526_v9 = vld [vmem:[#allocation89_spill] sm:$0xff]  ;;  %v3035_v23 = vsel %vm3024_vm7, %v2970_v17, %v10538_v58  ;;  %v3112_v19 = vsel %vm3089_vm9, %v3047_v51, %v6800_v46  ;;  %v10541_v46 = vld [vmem:[#allocation472_spill] sm:$0xff] }
 0x4d5   :  { %4240 = vmatmul.msk.f32.gmra.mxu1 %vm3354_vm12, %v3306_v18  ;;  %v3100_v48 = vsel %vm3089_vm9, %v3035_v23, %v10539_v57  ;;  %v3177_v31 = vsel %vm3154_vm8, %v3112_v19, %v7132_v14  ;;  %v2628_v44 = vrot.slane %v10541_v46, 2  ;;  %v10543_v7 = vld [vmem:[#allocation57_spill] sm:$0xff]  ;;  %v10563_v58 = vld [vmem:[#allocation368_spill] sm:$0xff] }
 0x4d6   :  { %v3165_v35 = vsel %vm3154_vm8, %v3100_v48, %v7084_v34  ;;  %v2426_v34 = vrot.slane %v10541_v46, 1  ;;  %v10564_v19 = vld [vmem:[#allocation444_spill] sm:$0xff]  ;;  %v10565_v48 = vld [vmem:[#allocation435_spill] sm:$0xff]  ;;  %v10630_v46 = vld [vmem:[#allocation485_spill] sm:$0xff] }
 0x4d7   :  { %v2656_v53 = vpop.permute.xlu1 %2655  ;;  %v3230_v60 = vsel %vm3219_vm10, %v3165_v35, %v7604_v13  ;;  %v10545_v13 = vld [vmem:[#allocation340_spill] sm:$0xff]  ;;  %v7768_v4 = vsel %vm1276_vm2, %v2627_v52, %v2628_v44  ;;  %v10567_v35 = vld [vmem:[#allocation231_spill] sm:$0xff] }
 0x4d8   :  { %v3294_v1 = vsel %vm3284_vm11, %v3229_v47, %v2656_v53  ;;  %2515 = vrot.lane.b32.xlu2 %v10526_v9, %s4321_s9  ;;  %v2865_v47 = vsel %vm192_vm4, %v10543_v7, %v10542_v11  ;;  %v2425_v53 = vrot.slane %v6970_v55, 1  ;;  %v10548_v55 = vld [vmem:[#allocation356_spill] sm:$0xff] }
 0x4d9   :  { %4228 = vmatmul.msk.f32.gmra.mxu0 %vm3354_vm12, %v3294_v1  ;;  %v2930_v27 = vsel %vm2894_vm6, %v2865_v47, %v10544_v29  ;;  %v10570_v29 = vld [vmem:[#allocation66_spill] sm:$0xff] }
 0x4da   :  { %2667 = vrot.lane.b32.xlu0 %v10527_v45, %s4322_s10  ;;  %v2504_v49 = vpop.permute.xlu0 %2503  ;;  %v7775_v63 = vsel %vm923_vm1, %v2425_v53, %v2426_v34  ;;  %v10551_v45 = vld [vmem:[#allocation419_spill] sm:$0xff] }
 0x4db   :  { %v7701_v40 = vpop.permute.xlu2 %2683  ;;  %v3254_v3 = vsel %vm3219_vm10, %v3189_v50, %v2504_v49 }
 0x4dc   :  { %2691 = vrot.lane.b32.xlu1 %v10528_v5, %s4322_s10 }
 0x4df   :  { %v2706_v25 = vpop.permute.xlu1 %2705 }
 0x4e0   :  { %v3319_v33 = vsel %vm3284_vm11, %v3254_v3, %v2706_v25  ;;  %2741 = vrot.lane.b32.xlu2 %v10536_v24, %s4322_s10  ;;  %v10552_v3 = vld [vmem:[#allocation136_spill] sm:$0xff]  ;;  %v10553_v25 = vld [vmem:[#allocation30_spill] sm:$0xff]  ;;  %v10561_v24 = vld [vmem:[#allocation251_spill] sm:$0xff] }
 0x4e1   :  { %4253 = vmatmul.msk.f32.gmra.mxu2 %vm3354_vm12, %v3319_v33  ;;  %v2853_v28 = vsel %vm192_vm4, %v10553_v25, %v10552_v3  ;;  %v10554_v33 = vld [vmem:[#allocation96_spill] sm:$0xff]  ;;  %v10579_v25 = vld [vmem:[#allocation46_spill] sm:$0xff] }
 0x4e2   :  { %2539 = vrot.lane.b32.xlu0 %v10537_v12, %s4321_s9  ;;  %v2841_v56 = vsel %vm192_vm4, %v10555_v43, %v10554_v33  ;;  %v2918_v62 = vsel %vm2894_vm6, %v2853_v28, %v10556_v59  ;;  %v10562_v12 = vld [vmem:[#allocation140_spill] sm:$0xff] }
 0x4e3   :  { %v7736_v37 = vpop.permute.xlu2 %2709  ;;  %v2480_v22 = vpop.permute.xlu0 %2479  ;;  %v2906_v42 = vsel %vm2894_vm6, %v2841_v56, %v10557_v26  ;;  %v2983_v61 = vsel %vm2959_vm5, %v2918_v62, %v10558_v39  ;;  %v10580_v28 = vld [vmem:[#allocation100_spill] sm:$0xff]  ;;  %v10581_v39 = vld [vmem:[#allocation290_spill] sm:$0xff] }
 0x4e4   :  { %2717 = vrot.lane.b32.xlu1 %v10540_v36, %s4322_s10  ;;  %v3242_v10 = vsel %vm3219_vm10, %v3177_v31, %v2480_v22  ;;  %v2971_v17 = vsel %vm2959_vm5, %v2906_v42, %v10559_v54  ;;  %v3048_v51 = vsel %vm3024_vm7, %v2983_v61, %v10560_v30  ;;  %v10566_v36 = vld [vmem:[#allocation166_spill] sm:$0xff] }
 0x4e5   :  { %v3307_v14 = vsel %vm3284_vm11, %v3242_v10, %v7635_v15  ;;  %v2995_v15 = vsel %vm2959_vm5, %v2930_v27, %v10545_v13  ;;  %v3036_v23 = vsel %vm3024_vm7, %v2971_v17, %v10563_v58  ;;  %v3113_v57 = vsel %vm3089_vm9, %v3048_v51, %v10564_v19  ;;  %v10582_v17 = vld [vmem:[#allocation341_spill] sm:$0xff]  ;;  %v10584_v19 = vld [vmem:[#allocation467_spill] sm:$0xff] }
 0x4e6   :  { %4241 = vmatmul.msk.f32.gmra.mxu1 %vm3354_vm12, %v3307_v14  ;;  %v3060_v1 = vsel %vm3024_vm7, %v2995_v15, %v10546_v0  ;;  %v3101_v31 = vsel %vm3089_vm9, %v3036_v23, %v10565_v48  ;;  %v3178_v22 = vsel %vm3154_vm8, %v3113_v57, %v10566_v36  ;;  %v10571_v15 = vld [vmem:[#allocation280_spill] sm:$0xff]  ;;  %v10572_v0 = vld [vmem:[#allocation329_spill] sm:$0xff] }
 0x4e7   :  { %v2658_v32 = vpop.permute.xlu1 %2657  ;;  %v3125_v21 = vsel %vm3089_vm9, %v3060_v1, %v10549_v16  ;;  %v10575_v16 = vld [vmem:[#allocation357_spill] sm:$0xff] }
 0x4e8   :  { %v3295_v18 = vsel %vm3284_vm11, %v3230_v60, %v2658_v32  ;;  %2517 = vrot.lane.b32.xlu2 %v10547_v20, %s4321_s9  ;;  %v3190_v9 = vsel %vm3154_vm8, %v3125_v21, %v10550_v41  ;;  %v10568_v60 = vld [vmem:[#allocation483_spill] sm:$0xff]  ;;  %v10573_v20 = vld [vmem:[#allocation404_spill] sm:$0xff]  ;;  %v10585_v57 = vld [vmem:[#allocation249_spill] sm:$0xff] }
 0x4e9   :  { %4229 = vmatmul.msk.f32.gmra.mxu0 %vm3354_vm12, %v3295_v18  ;;  %v3166_v32 = vsel %vm3154_vm8, %v3101_v31, %v10568_v60  ;;  %v10569_v18 = vld [vmem:[#allocation187_spill] sm:$0xff]  ;;  %v10586_v48 = vld [vmem:[#allocation145_spill] sm:$0xff] }
 0x4ea   :  { %2491 = vrot.lane.b32.xlu0 %v10548_v55, %s4321_s9  ;;  %v3231_v7 = vsel %vm3219_vm10, %v3166_v32, %v7670_v38  ;;  %v2866_v27 = vsel %vm192_vm4, %v10570_v29, %v10569_v18  ;;  %v10576_v21 = vld [vmem:[#allocation455_spill] sm:$0xff] }
 0x4eb   :  { %v7781_v2 = vpop.permute.xlu2 %2483  ;;  %v2506_v50 = vpop.permute.xlu0 %2505  ;;  %v2931_v38 = vsel %vm2894_vm6, %v2866_v27, %v10571_v15  ;;  %v10587_v31 = vld [vmem:[#allocation35_spill] sm:$0xff]  ;;  %v10591_v27 = vld [vmem:[#allocation248_spill] sm:$0xff] }
 0x4ec   :  { %2693 = vrot.lane.b32.xlu1 %v10551_v45, %s4322_s10  ;;  %v3255_v5 = vsel %vm3219_vm10, %v3190_v9, %v2506_v50  ;;  %v2996_v1 = vsel %vm2959_vm5, %v2931_v38, %v10572_v0  ;;  %v10577_v9 = vld [vmem:[#allocation15_spill] sm:$0xff] }
 0x4ed   :  { %v3061_v55 = vsel %vm3024_vm7, %v2996_v1, %v10573_v20  ;;  %v10592_v38 = vld [vmem:[#allocation163_spill] sm:$0xff]  ;;  %v10594_v20 = vld [vmem:[#allocation306_spill] sm:$0xff] }
 0x4ee   :  { %v3126_v41 = vsel %vm3089_vm9, %v3061_v55, %v10576_v21  ;;  %v10593_v0 = vld [vmem:[#allocation39_spill] sm:$0xff] }
 0x4ef   :  { %v2708_v49 = vpop.permute.xlu1 %2707  ;;  %v3191_v45 = vsel %vm3154_vm8, %v3126_v41, %v10577_v9  ;;  %v2854_v1 = vsel %vm192_vm4, %v10593_v0, %v10592_v38  ;;  %v10596_v41 = vld [vmem:[#allocation381_spill] sm:$0xff] }
 0x4f0   :  { %v3320_v8 = vsel %vm3284_vm11, %v3255_v5, %v2708_v49  ;;  %2743 = vrot.lane.b32.xlu2 %v10561_v24, %s4322_s10  ;;  %v10578_v5 = vld [vmem:[#allocation418_spill] sm:$0xff]  ;;  %v10617_v0 = vld [vmem:[#allocation417_spill] sm:$0xff] }
 0x4f1   :  { %4254 = vmatmul.msk.f32.gmra.mxu2 %vm3354_vm12, %v3320_v8  ;;  %v2878_v8 = vsel %vm192_vm4, %v10580_v28, %v10579_v25  ;;  %v10599_v28 = vld [vmem:[#allocation103_spill] sm:$0xff] }
 0x4f2   :  { %2541 = vrot.lane.b32.xlu0 %v10562_v12, %s4321_s9  ;;  %v2943_v61 = vsel %vm2894_vm6, %v2878_v8, %v10581_v39  ;;  %v10583_v12 = vld [vmem:[#allocation416_spill] sm:$0xff] }
 0x4f3   :  { %v7816_v10 = vpop.permute.xlu2 %2509  ;;  %v2482_v52 = vpop.permute.xlu0 %2481  ;;  %v3008_v30 = vsel %vm2959_vm5, %v2943_v61, %v10582_v17  ;;  %v10600_v8 = vld [vmem:[#allocation392_spill] sm:$0xff] }
 0x4f4   :  { %2719 = vrot.lane.b32.xlu1 %v10567_v35, %s4322_s10  ;;  %v3243_v11 = vsel %vm3219_vm10, %v3178_v22, %v2482_v52  ;;  %v3073_v58 = vsel %vm3024_vm7, %v3008_v30, %v10583_v12  ;;  %v10588_v35 = vld [vmem:[#allocation229_spill] sm:$0xff]  ;;  %v10603_v61 = vld [vmem:[#allocation484_spill] sm:$0xff] }
 0x4f5   :  { %v3308_v53 = vsel %vm3284_vm11, %v3243_v11, %v7701_v40  ;;  %v10574_v40 = vld [vmem:[#allocation105_spill] sm:$0xff] }
 0x4f6   :  { %v3568_v14 = vpop.f32.mrf.mxu0  ;;  %4242 = vmatmul.msk.f32.gmra.mxu1 %vm3354_vm12, %v3308_v53  ;;  %v10589_v11 = vld [vmem:[#allocation137_spill] sm:$0xff] }
 0x4f7   :  { %v2660_v47 = vpop.permute.xlu1 %2659  ;;  %3760 = vst.msk [vmem:[%s9257_s6] sm:$0xff] %vm192_vm4, %v3568_v14  ;;  %v3961_v50 = vmul.f32 %v3568_v14, %v3568_v14  ;;  %v3825_v56 = vsel %vm192_vm4, %v3568_v14, 0.0 }
 0x4f8   :  { %v3296_v13 = vsel %vm3284_vm11, %v3231_v7, %v2660_v47  ;;  %2519 = vrot.lane.b32.xlu2 %v10574_v40, %s4321_s9  ;;  %v10590_v7 = vld [vmem:[#allocation21_spill] sm:$0xff] }
 0x4f9   :  { %4230 = vmatmul.msk.f32.gmra.mxu0 %vm3354_vm12, %v3296_v13  ;;  %v4025_v51 = vsel %vm192_vm4, %v3961_v50, 0.0  ;;  %v2842_v47 = vsel %vm192_vm4, %v10590_v7, %v10589_v11  ;;  %v10597_v50 = vld [vmem:[#allocation318_spill] sm:$0xff] }
 0x4fa   :  { %2493 = vrot.lane.b32.xlu0 %v10575_v16, %s4321_s9  ;;  %v2907_v13 = vsel %vm2894_vm6, %v2842_v47, %v10591_v27  ;;  %v10595_v16 = vld [vmem:[#allocation268_spill] sm:$0xff]  ;;  %v10612_v47 = vld [vmem:[#allocation342_spill] sm:$0xff] }
 0x4fb   :  { %v7851_v49 = vpop.permute.xlu2 %2735  ;;  %v2508_v3 = vpop.permute.xlu0 %2507  ;;  %v2972_v55 = vsel %vm2959_vm5, %v2907_v13, %v10594_v20  ;;  %v2919_v21 = vsel %vm2894_vm6, %v2854_v1, %v10595_v16  ;;  %v10614_v27 = vld [vmem:[#allocation256_spill] sm:$0xff]  ;;  %v10615_v13 = vld [vmem:[#allocation139_spill] sm:$0xff] }
 0x4fc   :  { %2695 = vrot.lane.b32.xlu1 %v10578_v5, %s4322_s10  ;;  %v3256_v43 = vsel %vm3219_vm10, %v3191_v45, %v2508_v3  ;;  %v3037_v9 = vsel %vm3024_vm7, %v2972_v55, %v10596_v41  ;;  %v2984_v5 = vsel %vm2959_vm5, %v2919_v21, %v10597_v50  ;;  %v10598_v3 = vld [vmem:[#allocation436_spill] sm:$0xff]  ;;  %v10618_v55 = vld [vmem:[#allocation446_spill] sm:$0xff] }
 0x4fd   :  { %v3321_v42 = vsel %vm3284_vm11, %v3256_v43, %v7736_v37  ;;  %v3138_v37 = vsel %vm3089_vm9, %v3073_v58, %v10584_v19  ;;  %v3102_v25 = vsel %vm3089_vm9, %v3037_v9, %v10598_v3  ;;  %v10601_v43 = vld [vmem:[#allocation481_spill] sm:$0xff]  ;;  %v10605_v19 = vld [vmem:[#allocation64_spill] sm:$0xff]  ;;  %v10620_v41 = vld [vmem:[#allocation234_spill] sm:$0xff] }
 0x4fe   :  { %v3571_v33 = vpop.f32.mrf.mxu0  ;;  %4255 = vmatmul.msk.f32.gmra.mxu2 %vm3354_vm12, %v3321_v42  ;;  %v3203_v36 = vsel %vm3154_vm8, %v3138_v37, %v10587_v31  ;;  %v10619_v16 = vld [vmem:[#allocation456_spill] sm:$0xff] }
 0x4ff   :  { %v2532_v59 = vpop.permute.xlu1 %2531  ;;  %3761 = vst.msk [vmem:[%s9257_s6 + $0x8] sm:$0xff] %vm192_vm4, %v3571_v33  ;;  %v3826_v62 = vsel %vm192_vm4, %v3571_v33, 0.0  ;;  %v3962_v26 = vmul.f32 %v3571_v33, %v3571_v33  ;;  %v3049_v33 = vsel %vm3024_vm7, %v2984_v5, %v10600_v8  ;;  %v10621_v50 = vld [vmem:[#allocation40_spill] sm:$0xff] }
 0x500   :  { %v3827_v54 = vadd.f32 %v3826_v62, %v3825_v56  ;;  %2745 = vrot.lane.b32.xlu2 %v10585_v57, %s4322_s10  ;;  %v3268_v22 = vsel %vm3219_vm10, %v3203_v36, %v2532_v59  ;;  %v3167_v56 = vsel %vm3154_vm8, %v3102_v25, %v10601_v43  ;;  %v10602_v59 = vld [vmem:[#allocation445_spill] sm:$0xff]  ;;  %v10606_v57 = vld [vmem:[#allocation207_spill] sm:$0xff]  ;;  %v10608_v36 = vld [vmem:[#allocation468_spill] sm:$0xff] }
 0x501   :  { %v4026_v24 = vsel %vm192_vm4, %v3962_v26, 0.0  ;;  %v3114_v62 = vsel %vm3089_vm9, %v3049_v33, %v10602_v59  ;;  %v10622_v3 = vld [vmem:[#allocation44_spill] sm:$0xff] }
 0x502   :  { %v4027_v23 = vadd.f32 %v4026_v24, %v4025_v51  ;;  %2543 = vrot.lane.b32.xlu0 %v10586_v48, %s4321_s9 }
 0x503   :  { %v7885_v52 = vpop.permute.xlu2 %2663  ;;  %v2734_v60 = vpop.permute.xlu0 %2733 }
 0x504   :  { %2721 = vrot.lane.b32.xlu1 %v10588_v35, %s4322_s10  ;;  %v3333_v14 = vsel %vm3284_vm11, %v3268_v22, %v2734_v60  ;;  %v10609_v22 = vrot.slane %v10608_v36, 7  ;;  %v10610_v60 = vld [vmem:[#allocation269_spill] sm:$0xff] }
 0x505   :  { %4267 = vmatmul.msk.f32.vlgmr.msra.gmra.mxu3 %vm3354_vm12, %v3333_v14  ;;  %v10611_v14 = vld [vmem:[#allocation281_spill] sm:$0xff] }
 0x506   :  { %v3574_v32 = vpop.f32.mrf.mxu0  ;;  %v840_v35 = vsel %vm574_vm0, %v10609_v22, 0.0 }
 0x507   :  { %v2460_v53 = vpop.permute.xlu1 %2459  ;;  %3762 = vst.msk [vmem:[%s9257_s6 + $0x10] sm:$0xff] %vm192_vm4, %v3574_v32  ;;  %v3828_v18 = vsel %vm192_vm4, %v3574_v32, 0.0  ;;  %v3963_v29 = vmul.f32 %v3574_v32, %v3574_v32  ;;  %v2428_v20 = vrot.slane %v840_v35, 1  ;;  %v2630_v33 = vrot.slane %v840_v35, 2 }
 0x508   :  { %v3829_v15 = vadd.f32 %v3828_v18, %v3827_v54  ;;  %2521 = vrot.lane.b32.xlu2 %v10599_v28, %s4321_s9  ;;  %v3232_v26 = vsel %vm3219_vm10, %v3167_v56, %v2460_v53  ;;  %v10613_v18 = vld [vmem:[#allocation354_spill] sm:$0xff] }
 0x509   :  { %v4028_v40 = vsel %vm192_vm4, %v3963_v29, 0.0 }
 0x50a   :  { %v4029_v45 = vadd.f32 %v4028_v40, %v4027_v23  ;;  %2495 = vrot.lane.b32.xlu0 %v7775_v63, %s4321_s9  ;;  %v3179_v63 = vsel %vm3154_vm8, %v3114_v62, %v10603_v61  ;;  %v10604_v23 = vld [vmem:[#allocation188_spill] sm:$0xff] }
 0x50b   :  { %v7926_v42 = vpop.permute.xlu2 %2535  ;;  %v2662_v39 = vpop.permute.xlu0 %2661  ;;  %v3244_v30 = vsel %vm3219_vm10, %v3179_v63, %v7781_v2  ;;  %v2867_v37 = vsel %vm192_vm4, %v10605_v19, %v10604_v23  ;;  %v10607_v2 = vld [vmem:[#allocation97_spill] sm:$0xff]  ;;  %v10627_v23 = vld [vmem:[#allocation111_spill] sm:$0xff]  ;;  %v10628_v19 = vld [vmem:[#allocation382_spill] sm:$0xff] }
 0x50c   :  { %2697 = vrot.lane.b32.xlu1 %v7768_v4, %s4322_s10  ;;  %v3297_v17 = vsel %vm3284_vm11, %v3232_v26, %v2662_v39  ;;  %v2879_v48 = vsel %vm192_vm4, %v10607_v2, %v10606_v57  ;;  %v2932_v32 = vsel %vm2894_vm6, %v2867_v37, %v10610_v60  ;;  %v10629_v57 = vld [vmem:[#allocation431_spill] sm:$0xff] }
 0x50d   :  { %4231 = vmatmul.msk.f32.gmra.mxu0 %vm3354_vm12, %v3297_v17  ;;  %v2944_v11 = vsel %vm2894_vm6, %v2879_v48, %v10611_v14  ;;  %v2997_v53 = vsel %vm2959_vm5, %v2932_v32, %v10612_v47  ;;  %v10624_v17 = vld [vmem:[#allocation20_spill] sm:$0xff] }
 0x50e   :  { %v3577_v54 = vpop.f32.mrf.mxu0  ;;  %v3009_v29 = vsel %vm2959_vm5, %v2944_v11, %v10613_v18  ;;  %v10631_v14 = vld [vmem:[#allocation164_spill] sm:$0xff]  ;;  %v10632_v11 = vld [vmem:[#allocation38_spill] sm:$0xff] }
 0x50f   :  { %v2686_v51 = vpop.permute.xlu1 %2685  ;;  %3763 = vst.msk [vmem:[%s9257_s6 + $0x18] sm:$0xff] %vm192_vm4, %v3577_v54  ;;  %v3830_v4 = vsel %vm192_vm4, %v3577_v54, 0.0  ;;  %v3964_v24 = vmul.f32 %v3577_v54, %v3577_v54  ;;  %v3074_v1 = vsel %vm3024_vm7, %v3009_v29, %v10617_v0  ;;  %v10623_v54 = vld [vmem:[#allocation138_spill] sm:$0xff]  ;;  %v10633_v18 = vld [vmem:[#allocation252_spill] sm:$0xff]  ;;  %v10635_v0 = vld [vmem:[#allocation393_spill] sm:$0xff] }
 0x510   :  { %v3831_v12 = vadd.f32 %v3830_v4, %v3829_v15  ;;  %v3309_v58 = vsel %vm3284_vm11, %v3244_v30, %v2686_v51  ;;  %2747 = vrot.lane.b32.xlu2 %v10614_v27, %s4322_s10  ;;  %v10616_v15 = vld [vmem:[#allocation405_spill] sm:$0xff]  ;;  %v3139_v21 = vsel %vm3089_vm9, %v3074_v1, %v10619_v16  ;;  %v2843_v30 = vsel %vm192_vm4, %v10624_v17, %v10623_v54  ;;  %v10625_v4 = vld [vmem:[#allocation106_spill] sm:$0xff]  ;;  %v10647_v54 = vld [vmem:[#allocation343_spill] sm:$0xff] }
 0x511   :  { %v4030_v31 = vsel %vm192_vm4, %v3964_v24, 0.0  ;;  %4243 = vmatmul.msk.f32.gmra.mxu1 %vm3354_vm12, %v3309_v58  ;;  %v3062_v38 = vsel %vm3024_vm7, %v2997_v53, %v10616_v15  ;;  %v3204_v25 = vsel %vm3154_vm8, %v3139_v21, %v10622_v3  ;;  %v2908_v24 = vsel %vm2894_vm6, %v2843_v30, %v10625_v4  ;;  %v10626_v58 = vld [vmem:[#allocation319_spill] sm:$0xff]  ;;  %v10639_v21 = vld [vmem:[#allocation6_spill] sm:$0xff] }
 0x512   :  { %v4031_v7 = vadd.f32 %v4030_v31, %v4029_v45  ;;  %2545 = vrot.lane.b32.xlu0 %v10615_v13, %s4321_s9  ;;  %v3127_v40 = vsel %vm3089_vm9, %v3062_v38, %v10618_v55  ;;  %v7975_v45 = vpop.f32.mrf.mxu1  ;;  %v10634_v13 = vld [vmem:[#allocation330_spill] sm:$0xff]  ;;  %v10648_v30 = vld [vmem:[#allocation355_spill] sm:$0xff] }
 0x513   :  { %v7973_v9 = vpop.permute.xlu2 %2463  ;;  %v3192_v5 = vsel %vm3154_vm8, %v3127_v40, %v10621_v50  ;;  %3776 = vst.msk [vmem:[%s9257_s6 + $0x80] sm:$0xff] %vm192_vm4, %v7975_v45  ;;  %v2534_v8 = vpop.permute.xlu0 %2533  ;;  %v10637_v55 = vld [vmem:[#allocation150_spill] sm:$0xff]  ;;  %v10640_v50 = vld [vmem:[#allocation235_spill] sm:$0xff] }
 0x514   :  { %2723 = vrot.lane.b32.xlu1 %v10620_v41, %s4322_s10  ;;  %v3257_v43 = vsel %vm3219_vm10, %v3192_v5, %v7816_v10  ;;  %v3269_v26 = vsel %vm3219_vm10, %v3204_v25, %v2534_v8  ;;  %v2429_v10 = vsel %vm923_vm1, %v2426_v34, %v2428_v20  ;;  %v2973_v34 = vsel %vm2959_vm5, %v2908_v24, %v10626_v58  ;;  %v10636_v20 = vld [vmem:[#allocation257_spill] sm:$0xff]  ;;  %v10649_v4 = vld [vmem:[#allocation394_spill] sm:$0xff] }
 0x515   :  { %v3334_v63 = vsel %vm3284_vm11, %v3269_v26, %v7851_v49  ;;  %v2631_v49 = vsel %vm1276_vm2, %v2628_v44, %v2630_v33  ;;  %v3038_v37 = vsel %vm3024_vm7, %v2973_v34, %v10628_v19  ;;  %v10641_v33 = vld [vmem:[#allocation168_spill] sm:$0xff]  ;;  %v10652_v58 = vld [vmem:[#allocation406_spill] sm:$0xff] }
 0x516   :  { %v3580_v28 = vpop.f32.mrf.mxu0  ;;  %4268 = vmatmul.msk.f32.gmra.mxu3 %vm3354_vm12, %v3334_v63  ;;  %v3103_v2 = vsel %vm3089_vm9, %v3038_v37, %v10629_v57  ;;  %v10646_v63 = vld [vmem:[#allocation292_spill] sm:$0xff]  ;;  %v10654_v57 = vld [vmem:[#allocation470_spill] sm:$0xff] }
 0x517   :  { %v2712_v56 = vpop.permute.xlu1 %2711  ;;  %3764 = vst.msk [vmem:[%s9257_s6 + $0x20] sm:$0xff] %vm192_vm4, %v3580_v28  ;;  %v3832_v59 = vsel %vm192_vm4, %v3580_v28, 0.0  ;;  %v3965_v62 = vmul.f32 %v3580_v28, %v3580_v28  ;;  %v3168_v44 = vsel %vm3154_vm8, %v3103_v2, %v10630_v46  ;;  %v10655_v46 = vld [vmem:[#allocation197_spill] sm:$0xff] }
 0x518   :  { %v3833_v39 = vadd.f32 %v3832_v59, %v3831_v12  ;;  %v3322_v61 = vsel %vm3284_vm11, %v3257_v43, %v2712_v56  ;;  %2523 = vrot.lane.b32.xlu2 %v10627_v23, %s4321_s9  ;;  %v10642_v43 = vld [vmem:[#allocation65_spill] sm:$0xff]  ;;  %v10643_v59 = vld [vmem:[#allocation192_spill] sm:$0xff] }
 0x519   :  { %v4032_v51 = vsel %vm192_vm4, %v3965_v62, 0.0  ;;  %4256 = vmatmul.msk.f32.gmra.mxu2 %vm3354_vm12, %v3322_v61  ;;  %v2868_v56 = vsel %vm192_vm4, %v10642_v43, %v10641_v33  ;;  %v10644_v62 = vld [vmem:[#allocation99_spill] sm:$0xff]  ;;  %v10653_v23 = vld [vmem:[#allocation457_spill] sm:$0xff] }
 0x51a   :  { %v4033_v12 = vadd.f32 %v4032_v51, %v4031_v7  ;;  %2497 = vrot.lane.b32.xlu0 %v2429_v10, %s4321_s9  ;;  %v2855_v7 = vsel %vm192_vm4, %v10632_v11, %v10631_v14  ;;  %v2880_v26 = vsel %vm192_vm4, %v10644_v62, %v10643_v59  ;;  %v10668_v43 = vld [vmem:[#allocation371_spill] sm:$0xff] }
 0x51b   :  { %v8021_v48 = vpop.permute.xlu2 %2689  ;;  %v2462_v36 = vpop.permute.xlu0 %2461  ;;  %v2920_v29 = vsel %vm2894_vm6, %v2855_v7, %v10633_v18  ;;  %v2945_v10 = vsel %vm2894_vm6, %v2880_v26, %v10646_v63  ;;  %v10669_v59 = vld [vmem:[#allocation383_spill] sm:$0xff]  ;;  %v10670_v26 = vld [vmem:[#allocation438_spill] sm:$0xff] }
 0x51c   :  { %2699 = vrot.lane.b32.xlu1 %v2631_v49, %s4322_s10  ;;  %v3233_v32 = vsel %vm3219_vm10, %v3168_v44, %v2462_v36  ;;  %v2985_v15 = vsel %vm2959_vm5, %v2920_v29, %v10634_v13  ;;  %v3010_v51 = vsel %vm2959_vm5, %v2945_v10, %v10648_v30  ;;  %v10651_v49 = vld [vmem:[#allocation116_spill] sm:$0xff]  ;;  %v10672_v10 = vld [vmem:[#allocation447_spill] sm:$0xff] }
 0x51d   :  { %v3298_v53 = vsel %vm3284_vm11, %v3233_v32, %v7885_v52  ;;  %v3050_v1 = vsel %vm3024_vm7, %v2985_v15, %v10635_v0  ;;  %v10638_v52 = vld [vmem:[#allocation437_spill] sm:$0xff]  ;;  %v3075_v34 = vsel %vm3024_vm7, %v3010_v51, %v10652_v58  ;;  %v10658_v0 = vld [vmem:[#allocation108_spill] sm:$0xff] }
 0x51e   :  { %v3583_v31 = vpop.f32.mrf.mxu0  ;;  %4232 = vmatmul.msk.f32.gmra.mxu0 %vm3354_vm12, %v3298_v53  ;;  %v3115_v40 = vsel %vm3089_vm9, %v3050_v1, %v10638_v52  ;;  %v3140_v2 = vsel %vm3089_vm9, %v3075_v34, %v10654_v57  ;;  %v10659_v1 = vld [vmem:[#allocation19_spill] sm:$0xff] }
 0x51f   :  { %v2486_v22 = vpop.permute.xlu1 %2485  ;;  %3765 = vst.msk [vmem:[%s9257_s6 + $0x28] sm:$0xff] %vm192_vm4, %v3583_v31  ;;  %v3834_v35 = vsel %vm192_vm4, %v3583_v31, 0.0  ;;  %v3966_v60 = vmul.f32 %v3583_v31, %v3583_v31  ;;  %v3180_v41 = vsel %vm3154_vm8, %v3115_v40, %v10639_v21  ;;  %v10656_v31 = vld [vmem:[#allocation151_spill] sm:$0xff]  ;;  %v10662_v40 = vld [vmem:[#allocation253_spill] sm:$0xff] }
 0x520   :  { %v3835_v47 = vadd.f32 %v3834_v35, %v3833_v39  ;;  %2749 = vrot.lane.b32.xlu2 %v10636_v20, %s4322_s10  ;;  %v3245_v3 = vsel %vm3219_vm10, %v3180_v41, %v2486_v22  ;;  %v10645_v39 = vld [vmem:[#allocation282_spill] sm:$0xff] }
 0x521   :  { %v4034_v27 = vsel %vm192_vm4, %v3966_v60, 0.0  ;;  %v8050_v16 = vpop.f32.mrf.mxu1  ;;  %v2933_v61 = vsel %vm2894_vm6, %v2868_v56, %v10645_v39  ;;  %v10657_v60 = vld [vmem:[#allocation179_spill] sm:$0xff]  ;;  %v10660_v20 = vld [vmem:[#allocation146_spill] sm:$0xff] }
 0x522   :  { %v4035_v38 = vadd.f32 %v4034_v27, %v4033_v12  ;;  %2547 = vrot.lane.b32.xlu0 %v10637_v55, %s4321_s9  ;;  %3777 = vst.msk [vmem:[%s9257_s6 + $0x88] sm:$0xff] %vm192_vm4, %v8050_v16  ;;  %v2998_v17 = vsel %vm2959_vm5, %v2933_v61, %v10647_v54  ;;  %v10650_v12 = vld [vmem:[#allocation233_spill] sm:$0xff]  ;;  %v3205_v32 = vsel %vm3154_vm8, %v3140_v2, %v10657_v60  ;;  %v10663_v41 = vld [vmem:[#allocation270_spill] sm:$0xff] }
 0x523   :  { %v8061_v5 = vpop.permute.xlu2 %2715  ;;  %v2688_v25 = vpop.permute.xlu0 %2687  ;;  %v3063_v24 = vsel %vm3024_vm7, %v2998_v17, %v10649_v4  ;;  %v3270_v18 = vsel %vm3219_vm10, %v3205_v32, %v7926_v42  ;;  %v2844_v42 = vsel %vm192_vm4, %v10659_v1, %v10658_v0  ;;  %v10661_v55 = vld [vmem:[#allocation37_spill] sm:$0xff]  ;;  %v10671_v61 = vld [vmem:[#allocation110_spill] sm:$0xff]  ;;  %v4217_v32 = vld [vmem:[%s9253_s2 + $0x1f8] sm:$0xff] }
 0x524   :  { %2725 = vrot.lane.b32.xlu1 %v10640_v50, %s4322_s10  ;;  %v3310_v8 = vsel %vm3284_vm11, %v3245_v3, %v2688_v25  ;;  %v3128_v19 = vsel %vm3089_vm9, %v3063_v24, %v10653_v23  ;;  %v2856_v52 = vsel %vm192_vm4, %v10661_v55, %v10660_v20  ;;  %v2909_v21 = vsel %vm2894_vm6, %v2844_v42, %v10662_v40  ;;  %v10664_v50 = vld [vmem:[#allocation320_spill] sm:$0xff]  ;;  %v10665_v25 = vld [vmem:[#allocation149_spill] sm:$0xff]  ;;  %v10673_v17 = vld [vmem:[#allocation486_spill] sm:$0xff] }
 0x525   :  { %4244 = vmatmul.msk.f32.gmra.mxu1 %vm3354_vm12, %v3310_v8  ;;  %v3193_v44 = vsel %vm3154_vm8, %v3128_v19, %v10655_v46  ;;  %v2974_v3 = vsel %vm2959_vm5, %v2909_v21, %v10664_v50  ;;  %v10667_v8 = vld [vmem:[#allocation331_spill] sm:$0xff]  ;;  %v10682_v0 = vld [vmem:[#allocation261_spill] sm:$0xff]  ;;  %v10683_v42 = vld [vmem:[#allocation458_spill] sm:$0xff] }
 0x526   :  { %v3039_v56 = vsel %vm3024_vm7, %v2974_v3, %v10668_v43  ;;  %v10674_v24 = vld [vmem:[#allocation167_spill] sm:$0xff]  ;;  %v4314_v50 = vld [vmem:[%s9255_s4] ss:$0 sm:$0xff] }
 0x527   :  { %v2512_v28 = vpop.permute.xlu1 %2511  ;;  %v3104_v39 = vsel %vm3089_vm9, %v3039_v56, %v10670_v26  ;;  %v10687_v56 = vld [vmem:[#allocation293_spill] sm:$0xff] }
 0x528   :  { %2727 = vrot.lane.b32.xlu2 %v10650_v12, %s4322_s10  ;;  %v3258_v14 = vsel %vm3219_vm10, %v3193_v44, %v2512_v28  ;;  %v10666_v28 = vld [vmem:[#allocation255_spill] sm:$0xff]  ;;  %v3169_v30 = vsel %vm3154_vm8, %v3104_v39, %v10673_v17  ;;  %v4216_v44 = vld [vmem:[%s9253_s2 + $0x1f0] sm:$0xff] }
 0x529   :  { %v3586_v37 = vpop.f32.mrf.mxu0  ;;  %v10689_v39 = vld [vmem:[#allocation262_spill] sm:$0xff] }
 0x52a   :  { %2525 = vrot.lane.b32.xlu0 %v10651_v49, %s4321_s9  ;;  %3766 = vst.msk [vmem:[%s9257_s6 + $0x30] sm:$0xff] %vm192_vm4, %v3586_v37  ;;  %v3836_v36 = vsel %vm192_vm4, %v3586_v37, 0.0  ;;  %v3967_v22 = vmul.f32 %v3586_v37, %v3586_v37  ;;  %v3234_v49 = vsel %vm3219_vm10, %v3169_v30, %v7973_v9  ;;  %v10692_v30 = vld [vmem:[#allocation471_spill] sm:$0xff] }
 0x52b   :  { %v8101_v35 = vpop.permute.xlu2 %2489  ;;  %v3837_v11 = vadd.f32 %v3836_v36, %v3835_v47  ;;  %v10676_v36 = vld [vmem:[#allocation67_spill] sm:$0xff] }
 0x52c   :  { %2549 = vrot.lane.b32.xlu1 %v10656_v31, %s4321_s9  ;;  %v2714_v53 = vpop.permute.xlu0 %2713  ;;  %v4036_v29 = vsel %vm192_vm4, %v3967_v22, 0.0  ;;  %v10675_v31 = vld [vmem:[#allocation193_spill] sm:$0xff] }
 0x52d   :  { %v3323_v13 = vsel %vm3284_vm11, %v3258_v14, %v2714_v53  ;;  %v4037_v15 = vadd.f32 %v4036_v29, %v4035_v38  ;;  %v2921_v38 = vsel %vm2894_vm6, %v2856_v52, %v10663_v41  ;;  %v2869_v22 = vsel %vm192_vm4, %v10676_v36, %v10675_v31  ;;  %v10677_v14 = vld [vmem:[#allocation283_spill] sm:$0xff]  ;;  %v10684_v52 = vld [vmem:[#allocation13_spill] sm:$0xff] }
 0x52e   :  { %v8106_v7 = vpop.f32.mrf.mxu1  ;;  %4257 = vmatmul.msk.f32.gmra.mxu2 %vm3354_vm12, %v3323_v13  ;;  %v2986_v33 = vsel %vm2959_vm5, %v2921_v38, %v10667_v8  ;;  %v10679_v53 = vld [vmem:[#allocation239_spill] sm:$0xff] }
 0x52f   :  { %3778 = vst.msk [vmem:[%s9257_s6 + $0x90] sm:$0xff] %vm192_vm4, %v8106_v7  ;;  %v2738_v27 = vpop.permute.xlu1 %2737  ;;  %v3051_v62 = vsel %vm3024_vm7, %v2986_v33, %v10669_v59 }
 0x530   :  { %v3335_v47 = vsel %vm3284_vm11, %v3270_v18, %v2738_v27  ;;  %2551 = vrot.lane.b32.xlu2 %v10665_v25, %s4321_s9  ;;  %v3116_v54 = vsel %vm3089_vm9, %v3051_v62, %v10672_v10  ;;  %v10680_v18 = vld [vmem:[#allocation332_spill] sm:$0xff]  ;;  %v10691_v10 = vld [vmem:[#allocation421_spill] sm:$0xff] }
 0x531   :  { %4269 = vmatmul.msk.f32.gmra.mxu3 %vm3354_vm12, %v3335_v47  ;;  %v3181_v12 = vsel %vm3154_vm8, %v3116_v54, %v10674_v24  ;;  %v4313_v27 = vld [vmem:[%s9254_s3] ss:$0 sm:$0xff] }
 0x532   :  { %2751 = vrot.lane.b32.xlu0 %v10666_v28, %s4322_s10  ;;  %v488_v13 = vmul.f32 %v4313_v27, %v4216_v44  ;;  %v489_v1 = vmul.f32 %v4313_v27, %v4217_v32  ;;  %v10685_v25 = vld [vmem:[#allocation212_spill] sm:$0xff]  ;;  %v10686_v28 = vld [vmem:[#allocation98_spill] sm:$0xff]  ;;  %v10695_v32 = vld [vmem:[#allocation147_spill] sm:$0xff] }
 0x533   :  { %v8146_v63 = vpop.permute.xlu2 %2515  ;;  %v2881_v8 = vsel %vm192_vm4, %v10686_v28, %v10685_v25  ;;  %v10688_v62 = vld [vmem:[#allocation344_spill] sm:$0xff]  ;;  %v10707_v25 = vld [vmem:[#allocation439_spill] sm:$0xff] }
 0x534   :  { %2527 = vrot.lane.b32.xlu1 %v10671_v61, %s4321_s9  ;;  %v2488_v19 = vpop.permute.xlu0 %2487  ;;  %v492_v3 = vadd.f32 %v4314_v50, %v488_v13  ;;  %v493_v43 = vadd.f32 %v4314_v50, %v489_v1  ;;  %v2946_v59 = vsel %vm2894_vm6, %v2881_v8, %v10687_v56  ;;  %v10690_v61 = vld [vmem:[#allocation155_spill] sm:$0xff]  ;;  %v10693_v24 = vld [vmem:[#allocation240_spill] sm:$0xff]  ;;  %v10701_v1 = vld [vmem:[#allocation309_spill] sm:$0xff] }
 0x535   :  { %v3246_v57 = vsel %vm3219_vm10, %v3181_v12, %v2488_v19  ;;  %v3011_v26 = vsel %vm2959_vm5, %v2946_v59, %v10688_v62  ;;  %v10706_v50 = vld [vmem:[#allocation395_spill] sm:$0xff]  ;;  %v10708_v8 = vld [vmem:[#allocation448_spill] sm:$0xff]  ;;  %v10710_v59 = vld [vmem:[#allocation482_spill] sm:$0xff] }
 0x536   :  { %v3589_v51 = vpop.f32.mrf.mxu0  ;;  %v8152_v4 = vpop.f32.mrf.mxu1  ;;  %v3311_v46 = vsel %vm3284_vm11, %v3246_v57, %v8021_v48  ;;  %v10678_v48 = vld [vmem:[#allocation122_spill] sm:$0xff]  ;;  %v3076_v54 = vsel %vm3024_vm7, %v3011_v26, %v10691_v10  ;;  %v10711_v26 = vld [vmem:[#allocation7_spill] sm:$0xff] }
 0x537   :  { %3767 = vst.msk [vmem:[%s9257_s6 + $0x38] sm:$0xff] %vm192_vm4, %v3589_v51  ;;  %v3838_v58 = vsel %vm192_vm4, %v3589_v51, 0.0  ;;  %v3968_v34 = vmul.f32 %v3589_v51, %v3589_v51  ;;  %v2666_v23 = vpop.permute.xlu1 %2665  ;;  %4245 = vmatmul.msk.f32.gmra.mxu1 %vm3354_vm12, %v3311_v46  ;;  %v3141_v51 = vsel %vm3089_vm9, %v3076_v54, %v10692_v30 }
 0x538   :  { %v3839_v37 = vadd.f32 %v3838_v58, %v3837_v11  ;;  %3779 = vst.msk [vmem:[%s9257_s6 + $0x98] sm:$0xff] %vm192_vm4, %v8152_v4  ;;  %v3299_v9 = vsel %vm3284_vm11, %v3234_v49, %v2666_v23  ;;  %v2934_v11 = vsel %vm2894_vm6, %v2869_v22, %v10677_v14  ;;  %2529 = vrot.lane.b32.xlu2 %v10678_v48, %s4321_s9  ;;  %v497_v49 = vmax.f32 %v493_v43, 0.0  ;;  %v10694_v58 = vld [vmem:[#allocation22_spill] sm:$0xff]  ;;  %v10697_v48 = vld [vmem:[#allocation169_spill] sm:$0xff] }
 0x539   :  { %v4038_v2 = vsel %vm192_vm4, %v3968_v34, 0.0  ;;  %4233 = vmatmul.msk.f32.gmra.mxu0 %vm3354_vm12, %v3299_v9  ;;  %v2999_v29 = vsel %vm2959_vm5, %v2934_v11, %v10680_v18  ;;  %v3206_v34 = vsel %vm3154_vm8, %v3141_v51, %v10694_v58  ;;  %v10696_v14 = vld [vmem:[#allocation18_spill] sm:$0xff]  ;;  %v10709_v43 = vld [vmem:[#allocation441_spill] sm:$0xff] }
 0x53a   :  { %v4039_v60 = vadd.f32 %v4038_v2, %v4037_v15  ;;  %2729 = vrot.lane.b32.xlu0 %v10679_v53, %s4322_s10  ;;  %v10681_v15 = vld [vmem:[#allocation407_spill] sm:$0xff]  ;;  %v2845_v11 = vsel %vm192_vm4, %v10696_v14, %v10695_v32  ;;  %v10698_v53 = vld [vmem:[#allocation36_spill] sm:$0xff]  ;;  %v8264_v27 = vmul.f32 0.0, %v497_v49  ;;  %v10712_v49 = vld [vmem:[#allocation194_spill] sm:$0xff] }
 0x53b   :  { %v3064_v47 = vsel %vm3024_vm7, %v2999_v29, %v10681_v15  ;;  %v8201_v55 = vpop.permute.xlu2 %2741  ;;  %v2857_v18 = vsel %vm192_vm4, %v10698_v53, %v10697_v48  ;;  %v10700_v15 = vld [vmem:[#allocation271_spill] sm:$0xff]  ;;  %v10713_v58 = vld [vmem:[#allocation73_spill] sm:$0xff]  ;;  %v10720_v48 = vld [vmem:[#allocation358_spill] sm:$0xff] }
 0x53c   :  { %2753 = vrot.lane.b32.xlu1 %v10682_v0, %s4322_s10  ;;  %v3129_v20 = vsel %vm3089_vm9, %v3064_v47, %v10683_v42  ;;  %v2514_v41 = vpop.permute.xlu0 %2513  ;;  %v2922_v47 = vsel %vm2894_vm6, %v2857_v18, %v10700_v15  ;;  %v681_v56 = vrot.slane %v8264_v27, 7  ;;  %v10718_v32 = vld [vmem:[#allocation345_spill] sm:$0xff]  ;;  %v10721_v18 = vld [vmem:[#allocation408_spill] sm:$0xff]  ;;  %v10722_v15 = vld [vmem:[#allocation422_spill] sm:$0xff] }
 0x53d   :  { %v3194_v40 = vsel %vm3154_vm8, %v3129_v20, %v10684_v52  ;;  %v10702_v20 = vld [vmem:[#allocation321_spill] sm:$0xff] }
 0x53e   :  { %v3259_v38 = vsel %vm3219_vm10, %v3194_v40, %v2514_v41  ;;  %v2987_v52 = vsel %vm2959_vm5, %v2922_v47, %v10702_v20  ;;  %v10703_v40 = vld [vmem:[#allocation324_spill] sm:$0xff]  ;;  %v10724_v20 = vld [vmem:[#allocation442_spill] sm:$0xff] }
 0x53f   :  { %v2538_v21 = vpop.permute.xlu1 %2537  ;;  %v3324_v33 = vsel %vm3284_vm11, %v3259_v38, %v8061_v5  ;;  %v496_v5 = vmax.f32 %v492_v3, 0.0  ;;  %v10705_v41 = vld [vmem:[#allocation384_spill] sm:$0xff]  ;;  %v3052_v3 = vsel %vm3024_vm7, %v2987_v52, %v10706_v50 }
 0x540   :  { %4258 = vmatmul.msk.f32.gmra.mxu2 %vm3354_vm12, %v3324_v33  ;;  %2755 = vrot.lane.b32.xlu2 %v10689_v39, %s4322_s10  ;;  %v3271_v19 = vsel %vm3219_vm10, %v3206_v34, %v2538_v21  ;;  %v10704_v21 = vld [vmem:[#allocation386_spill] sm:$0xff]  ;;  %v3117_v33 = vsel %vm3089_vm9, %v3052_v3, %v10708_v8  ;;  %v2870_v34 = vsel %vm192_vm4, %v10713_v58, %v10712_v49 }
 0x541   :  { %v500_v22 = vmul.f32 0.0, %v496_v5  ;;  %v3182_v39 = vsel %vm3154_vm8, %v3117_v33, %v10711_v26  ;;  %v10730_v58 = vld [vmem:[#allocation258_spill] sm:$0xff] }
 0x542   :  { %2553 = vrot.lane.b32.xlu0 %v10690_v61, %s4321_s9  ;;  %v8236_v12 = vpop.f32.mrf.mxu1  ;;  %v3247_v61 = vsel %vm3219_vm10, %v3182_v39, %v8101_v35 }
 0x543   :  { %3780 = vst.msk [vmem:[%s9257_s6 + $0xa0] sm:$0xff] %vm192_vm4, %v8236_v12  ;;  %v8253_v31 = vpop.permute.xlu2 %2517 }
 0x544   :  { %v8225_v17 = vpop.f32.mrf.mxu2  ;;  %2731 = vrot.lane.b32.xlu1 %v10693_v24, %s4322_s10  ;;  %v2740_v46 = vpop.permute.xlu0 %2739 }
 0x545   :  { %3792 = vst.msk [vmem:[%s9257_s6 + $0x100] sm:$0xff] %vm192_vm4, %v8225_v17  ;;  %v3336_v36 = vsel %vm3284_vm11, %v3271_v19, %v2740_v46  ;;  %v10715_v19 = vld [vmem:[#allocation117_spill] sm:$0xff] }
 0x546   :  { %v3592_v23 = vpop.f32.mrf.mxu0  ;;  %4270 = vmatmul.msk.f32.gmra.mxu3 %vm3354_vm12, %v3336_v36  ;;  %v10717_v36 = vld [vmem:[#allocation284_spill] sm:$0xff] }
 0x547   :  { %3768 = vst.msk [vmem:[%s9257_s6 + $0x40] sm:$0xff] %vm192_vm4, %v3592_v23  ;;  %v3840_v57 = vsel %vm192_vm4, %v3592_v23, 0.0  ;;  %v3969_v9 = vmul.f32 %v3592_v23, %v3592_v23  ;;  %v2466_v2 = vpop.permute.xlu1 %2465  ;;  %v10714_v23 = vld [vmem:[#allocation59_spill] sm:$0xff] }
 0x548   :  { %v8251_v44 = vadd.f32 %v3840_v57, %v3839_v37  ;;  %v10699_v37 = vld [vmem:[#allocation254_spill] sm:$0xff]  ;;  %2353 = vrot.lane.b32.xlu2 %v10703_v40, %s4320_s25  ;;  %v2882_v57 = vsel %vm192_vm4, %v10715_v19, %v10714_v23  ;;  %v10725_v40 = vld [vmem:[#allocation459_spill] sm:$0xff] }
 0x549   :  { %v4040_v29 = vsel %vm192_vm4, %v3969_v9, 0.0  ;;  %v2910_v13 = vsel %vm2894_vm6, %v2845_v11, %v10699_v37  ;;  %v10716_v9 = vld [vmem:[#allocation272_spill] sm:$0xff]  ;;  %v10719_v11 = vld [vmem:[#allocation390_spill] sm:$0xff] }
 0x54a   :  { %v8270_v0 = vadd.f32 %v4040_v29, %v4039_v60  ;;  %v2975_v42 = vsel %vm2959_vm5, %v2910_v13, %v10701_v1  ;;  %2555 = vrot.lane.b32.xlu0 %v10704_v21, %s4321_s9  ;;  %v680_v60 = vrot.slane %v500_v22, 7  ;;  %v2947_v22 = vsel %vm2894_vm6, %v2882_v57, %v10717_v36  ;;  %v10723_v1 = vld [vmem:[#allocation449_spill] sm:$0xff]  ;;  %v10732_v57 = vld [vmem:[#allocation396_spill] sm:$0xff] }
 0x54b   :  { %v3040_v38 = vsel %vm3024_vm7, %v2975_v42, %v10705_v41  ;;  %v8314_v46 = vpop.permute.xlu2 %2743  ;;  %v3012_v53 = vsel %vm2959_vm5, %v2947_v22, %v10720_v48  ;;  %v10726_v41 = vld [vmem:[#allocation17_spill] sm:$0xff] }
 0x54c   :  { %v3105_v28 = vsel %vm3089_vm9, %v3040_v38, %v10707_v25  ;;  %2757 = vrot.lane.b32.xlu1 %v10709_v43, %s4322_s10  ;;  %v2668_v5 = vpop.permute.xlu0 %2667  ;;  %v822_v24 = vsel %vm574_vm0, 0.0, %v680_v60  ;;  %v8307_v35 = vsel %vm574_vm0, %v680_v60, %v681_v56  ;;  %v3077_v47 = vsel %vm3024_vm7, %v3012_v53, %v10722_v15  ;;  %v10727_v25 = vld [vmem:[#allocation77_spill] sm:$0xff]  ;;  %v10735_v53 = vld [vmem:[#allocation174_spill] sm:$0xff] }
 0x54d   :  { %v3170_v62 = vsel %vm3154_vm8, %v3105_v28, %v10710_v59  ;;  %v2430_v27 = vrot.slane %v822_v24, 1  ;;  %v2431_v13 = vrot.slane %v8307_v35, 1  ;;  %v3142_v21 = vsel %vm3089_vm9, %v3077_v47, %v10725_v40  ;;  %v10734_v22 = vld [vmem:[#allocation165_spill] sm:$0xff]  ;;  %v10738_v47 = vld [vmem:[#allocation114_spill] sm:$0xff] }
 0x54e   :  { %v3235_v10 = vsel %vm3219_vm10, %v3170_v62, %v2466_v2  ;;  %v2935_v2 = vsel %vm2894_vm6, %v2870_v34, %v10716_v9  ;;  %v2632_v50 = vrot.slane %v822_v24, 2  ;;  %v2633_v60 = vrot.slane %v8307_v35, 2  ;;  %v10733_v9 = vld [vmem:[#allocation440_spill] sm:$0xff]  ;;  %v10737_v15 = vld [vmem:[#allocation41_spill] sm:$0xff] }
 0x54f   :  { %v2692_v54 = vpop.permute.xlu1 %2691  ;;  %v3300_v30 = vsel %vm3284_vm11, %v3235_v10, %v2668_v5  ;;  %v3000_v14 = vsel %vm2959_vm5, %v2935_v2, %v10718_v32  ;;  %v3207_v28 = vsel %vm3154_vm8, %v3142_v21, %v10727_v25  ;;  %v2432_v10 = vsel %vm923_vm1, %v2430_v27, %v2431_v13  ;;  %v10740_v21 = vld [vmem:[#allocation295_spill] sm:$0xff]  ;;  %v10743_v25 = vld [vmem:[#allocation397_spill] sm:$0xff] }
 0x550   :  { %v3312_v51 = vsel %vm3284_vm11, %v3247_v61, %v2692_v54  ;;  %4234 = vmatmul.msk.f32.gmra.mxu0 %vm3354_vm12, %v3300_v30  ;;  %2355 = vrot.lane.b32.xlu2 %v822_v24, %s4320_s25  ;;  %v3065_v29 = vsel %vm3024_vm7, %v3000_v14, %v10721_v18  ;;  %v858_v5 = vsel %vm574_vm0, %v681_v56, 0.0  ;;  %v10728_v30 = vld [vmem:[#allocation170_spill] sm:$0xff]  ;;  %v2634_v49 = vsel %vm1276_vm2, %v2632_v50, %v2633_v60  ;;  %v10736_v18 = vld [vmem:[#allocation75_spill] sm:$0xff] }
 0x551   :  { %4246 = vmatmul.msk.f32.gmra.mxu1 %vm3354_vm12, %v3312_v51  ;;  %v3130_v42 = vsel %vm3089_vm9, %v3065_v29, %v10723_v1  ;;  %v10729_v51 = vld [vmem:[#allocation48_spill] sm:$0xff]  ;;  %v2433_v19 = vrot.slane %v858_v5, 1  ;;  %v2635_v36 = vrot.slane %v858_v5, 2  ;;  %v2871_v29 = vsel %vm192_vm4, %v10736_v18, %v10735_v53  ;;  %v10742_v50 = vld [vmem:[#allocation359_spill] sm:$0xff]  ;;  %v10754_v53 = vld [vmem:[#allocation450_spill] sm:$0xff] }
 0x552   :  { %2557 = vrot.lane.b32.xlu0 %v10719_v11, %s4321_s9  ;;  %v8341_v52 = vpop.f32.mrf.mxu1  ;;  %v3195_v38 = vsel %vm3154_vm8, %v3130_v42, %v10726_v41  ;;  %v2858_v24 = vsel %vm192_vm4, %v10729_v51, %v10728_v30  ;;  %v2883_v1 = vsel %vm192_vm4, %v10738_v47, %v10737_v15  ;;  %v10739_v42 = vld [vmem:[#allocation285_spill] sm:$0xff]  ;;  %v10741_v41 = vld [vmem:[#allocation346_spill] sm:$0xff]  ;;  %v10748_v30 = vld [vmem:[#allocation215_spill] sm:$0xff] }
 0x553   :  { %3781 = vst.msk [vmem:[%s9257_s6 + $0xa8] sm:$0xff] %vm192_vm4, %v8341_v52  ;;  %v3260_v8 = vsel %vm3219_vm10, %v3195_v38, %v8146_v63  ;;  %v2923_v34 = vsel %vm2894_vm6, %v2858_v24, %v10730_v58  ;;  %v8384_v23 = vpop.permute.xlu2 %2519  ;;  %v2434_v48 = vsel %vm923_vm1, %v2431_v13, %v2433_v19  ;;  %v2636_v40 = vsel %vm1276_vm2, %v2633_v60, %v2635_v36  ;;  %v10745_v60 = vld [vmem:[#allocation460_spill] sm:$0xff] }
 0x554   :  { %v8327_v37 = vpop.f32.mrf.mxu2  ;;  %2759 = vrot.lane.b32.xlu1 %v10724_v20, %s4322_s10  ;;  %v2540_v62 = vpop.permute.xlu0 %2539  ;;  %v2936_v20 = vsel %vm2894_vm6, %v2871_v29, %v10739_v42  ;;  %v2948_v13 = vsel %vm2894_vm6, %v2883_v1, %v10740_v21  ;;  %v10756_v1 = vld [vmem:[#allocation31_spill] sm:$0xff]  ;;  %v10757_v42 = vld [vmem:[#allocation84_spill] sm:$0xff]  ;;  %v10758_v21 = vld [vmem:[#allocation58_spill] sm:$0xff] }
 0x555   :  { %3793 = vst.msk [vmem:[%s9257_s6 + $0x108] sm:$0xff] %vm192_vm4, %v8327_v37  ;;  %v3272_v39 = vsel %vm3219_vm10, %v3207_v28, %v2540_v62  ;;  %v3001_v38 = vsel %vm2959_vm5, %v2936_v20, %v10741_v41  ;;  %v2872_v20 = vsel %vm192_vm4, %v10757_v42, %v10756_v1  ;;  %v10775_v42 = vld [vmem:[#allocation451_spill] sm:$0xff] }
 0x556   :  { %v3595_v3 = vpop.f32.mrf.mxu0  ;;  %v3337_v54 = vsel %vm3284_vm11, %v3272_v39, %v8201_v55  ;;  %v10731_v55 = vld [vmem:[#allocation333_spill] sm:$0xff]  ;;  %v3066_v28 = vsel %vm3024_vm7, %v3001_v38, %v10743_v25  ;;  %v10760_v38 = vld [vmem:[#allocation286_spill] sm:$0xff] }
 0x557   :  { %3769 = vst.msk [vmem:[%s9257_s6 + $0x48] sm:$0xff] %vm192_vm4, %v3595_v3  ;;  %v3842_v33 = vsel %vm192_vm4, %v3595_v3, 0.0  ;;  %v3970_v43 = vmul.f32 %v3595_v3, %v3595_v3  ;;  %v2718_v59 = vpop.permute.xlu1 %2717  ;;  %4271 = vmatmul.msk.f32.gmra.mxu3 %vm3354_vm12, %v3337_v54  ;;  %v2988_v56 = vsel %vm2959_vm5, %v2923_v34, %v10731_v55  ;;  %v3013_v3 = vsel %vm2959_vm5, %v2948_v13, %v10742_v50  ;;  %v10746_v39 = vld [vmem:[#allocation473_spill] sm:$0xff]  ;;  %v10759_v13 = vld [vmem:[#allocation124_spill] sm:$0xff] }
 0x558   :  { %v3843_v26 = vadd.f32 %v3842_v33, %v8251_v44  ;;  %v3325_v61 = vsel %vm3284_vm11, %v3260_v8, %v2718_v59  ;;  %2357 = vrot.lane.b32.xlu2 %v8307_v35, %s4320_s25  ;;  %v10744_v33 = vld [vmem:[#allocation409_spill] sm:$0xff]  ;;  %v3131_v59 = vsel %vm3089_vm9, %v3066_v28, %v10745_v60  ;;  %v2884_v41 = vsel %vm192_vm4, %v10759_v13, %v10758_v21  ;;  %v10762_v28 = vld [vmem:[#allocation335_spill] sm:$0xff] }
 0x559   :  { %v4042_v63 = vsel %vm192_vm4, %v3970_v43, 0.0  ;;  %4259 = vmatmul.msk.f32.gmra.mxu2 %vm3354_vm12, %v3325_v61  ;;  %v3078_v43 = vsel %vm3024_vm7, %v3013_v3, %v10744_v33  ;;  %v2937_v50 = vsel %vm2894_vm6, %v2872_v20, %v10760_v38  ;;  %v10761_v3 = vld [vmem:[#allocation296_spill] sm:$0xff]  ;;  %v10776_v20 = vld [vmem:[#allocation11_spill] sm:$0xff]  ;;  %v10778_v38 = vld [vmem:[#allocation82_spill] sm:$0xff] }
 0x55a   :  { %v4043_v44 = vadd.f32 %v4042_v63, %v8270_v0  ;;  %2559 = vrot.lane.b32.xlu0 %v2432_v10, %s4321_s9  ;;  %v3053_v0 = vsel %vm3024_vm7, %v2988_v56, %v10732_v57  ;;  %v3143_v61 = vsel %vm3089_vm9, %v3078_v43, %v10746_v39  ;;  %v10747_v10 = vld [vmem:[#allocation171_spill] sm:$0xff]  ;;  %v2949_v25 = vsel %vm2894_vm6, %v2884_v41, %v10761_v3  ;;  %v10777_v41 = vld [vmem:[#allocation198_spill] sm:$0xff] }
 0x55b   :  { %v3118_v2 = vsel %vm3089_vm9, %v3053_v0, %v10733_v9  ;;  %v3196_v63 = vsel %vm3154_vm8, %v3131_v59, %v10747_v10  ;;  %v2746_v54 = vpop.permute.xlu2 %2745  ;;  %v3208_v51 = vsel %vm3154_vm8, %v3143_v61, %v10748_v30  ;;  %v10749_v9 = vld [vmem:[#allocation152_spill] sm:$0xff]  ;;  %v3002_v33 = vsel %vm2959_vm5, %v2937_v50, %v10762_v28  ;;  %v10763_v43 = vld [vmem:[#allocation347_spill] sm:$0xff]  ;;  %v10764_v59 = vld [vmem:[#allocation410_spill] sm:$0xff] }
 0x55c   :  { %2761 = vrot.lane.b32.xlu1 %v2634_v49, %s4322_s10  ;;  %v3183_v35 = vsel %vm3154_vm8, %v3118_v2, %v10734_v22  ;;  %v2492_v14 = vpop.permute.xlu0 %2491  ;;  %v3261_v24 = vsel %vm3219_vm10, %v3196_v63, %v8253_v31  ;;  %v10750_v2 = vld [vmem:[#allocation45_spill] sm:$0xff]  ;;  %v3014_v60 = vsel %vm2959_vm5, %v2949_v25, %v10763_v43  ;;  %v3067_v39 = vsel %vm3024_vm7, %v3002_v33, %v10764_v59  ;;  %v10779_v25 = vld [vmem:[#allocation214_spill] sm:$0xff]  ;;  %v10780_v28 = vld [vmem:[#allocation123_spill] sm:$0xff] }
 0x55d   :  { %v3248_v11 = vsel %vm3219_vm10, %v3183_v35, %v2492_v14  ;;  %v2859_v36 = vsel %vm192_vm4, %v10750_v2, %v10749_v9  ;;  %v10751_v35 = vld [vmem:[#allocation273_spill] sm:$0xff]  ;;  %v2873_v50 = vsel %vm192_vm4, %v10778_v38, %v10777_v41  ;;  %v2885_v33 = vsel %vm192_vm4, %v10780_v28, %v10779_v25  ;;  %v10781_v43 = vld [vmem:[#allocation275_spill] sm:$0xff]  ;;  %v10782_v59 = vld [vmem:[#allocation102_spill] sm:$0xff] }
 0x55e   :  { %v10765_v10 = vld [vmem:[#allocation213_spill] sm:$0xff]  ;;  %v10797_v25 = vld [vmem:[#allocation172_spill] sm:$0xff] }
 0x55f   :  { %v2694_v32 = vpop.permute.xlu1 %2693  ;;  %v3079_v63 = vsel %vm3024_vm7, %v3014_v60, %v10765_v10  ;;  %v2938_v60 = vsel %vm2894_vm6, %v2873_v50, %v10781_v43  ;;  %v10783_v10 = vld [vmem:[#allocation348_spill] sm:$0xff] }
 0x560   :  { %v3313_v27 = vsel %vm3284_vm11, %v3248_v11, %v2694_v32  ;;  %v10752_v32 = vld [vmem:[#allocation334_spill] sm:$0xff]  ;;  %v10753_v11 = vld [vmem:[#allocation387_spill] sm:$0xff] }
 0x561   :  { %4247 = vmatmul.msk.f32.gmra.mxu1 %vm3354_vm12, %v3313_v27 }
 0x562   :  { %2561 = vrot.lane.b32.xlu0 %v2434_v48, %s4321_s9 }
 0x563   :  { %v8427_v62 = vpop.f32.mrf.mxu1 }
 0x564   :  { %v8415_v8 = vpop.f32.mrf.mxu2  ;;  %2763 = vrot.lane.b32.xlu1 %v2636_v40, %s4322_s10  ;;  %3782 = vst.msk [vmem:[%s9257_s6 + $0xb0] sm:$0xff] %vm192_vm4, %v8427_v62  ;;  %v2542_v55 = vpop.permute.xlu0 %2541 }
 0x565   :  { %3794 = vst.msk [vmem:[%s9257_s6 + $0x110] sm:$0xff] %vm192_vm4, %v8415_v8  ;;  %v3273_v19 = vsel %vm3219_vm10, %v3208_v51, %v2542_v55 }
 0x566   :  { %v3598_v5 = vpop.f32.mrf.mxu0  ;;  %v3338_v31 = vsel %vm3284_vm11, %v3273_v19, %v8314_v46  ;;  %v10755_v46 = vld [vmem:[#allocation196_spill] sm:$0xff]  ;;  %v10769_v19 = vld [vmem:[#allocation195_spill] sm:$0xff] }
 0x567   :  { %3770 = vst.msk [vmem:[%s9257_s6 + $0x50] sm:$0xff] %vm192_vm4, %v3598_v5  ;;  %v3844_v49 = vsel %vm192_vm4, %v3598_v5, 0.0  ;;  %v3971_v58 = vmul.f32 %v3598_v5, %v3598_v5  ;;  %v2720_v34 = vpop.permute.xlu1 %2719  ;;  %4272 = vmatmul.msk.f32.gmra.mxu3 %vm3354_vm12, %v3338_v31  ;;  %v10766_v5 = vld [vmem:[#allocation461_spill] sm:$0xff] }
 0x568   :  { %v3845_v56 = vadd.f32 %v3844_v49, %v3843_v26  ;;  %v3326_v57 = vsel %vm3284_vm11, %v3261_v24, %v2720_v34  ;;  %v2924_v26 = vsel %vm2894_vm6, %v2859_v36, %v10751_v35  ;;  %v3132_v30 = vsel %vm3089_vm9, %v3067_v39, %v10766_v5  ;;  %v10767_v24 = vld [vmem:[#allocation474_spill] sm:$0xff] }
 0x569   :  { %v4044_v0 = vsel %vm192_vm4, %v3971_v58, 0.0  ;;  %4260 = vmatmul.msk.f32.gmra.mxu2 %vm3354_vm12, %v3326_v57  ;;  %v2989_v14 = vsel %vm2959_vm5, %v2924_v26, %v10752_v32  ;;  %v3144_v49 = vsel %vm3089_vm9, %v3079_v63, %v10767_v24  ;;  %v10768_v58 = vld [vmem:[#allocation29_spill] sm:$0xff]  ;;  %v2950_v39 = vsel %vm2894_vm6, %v2885_v33, %v10782_v59 }
 0x56a   :  { %v4045_v22 = vadd.f32 %v4044_v0, %v4043_v44  ;;  %v3054_v48 = vsel %vm3024_vm7, %v2989_v14, %v10753_v11  ;;  %v8467_v44 = vpop.permute.xlu2 %2521  ;;  %v3197_v34 = vsel %vm3154_vm8, %v3132_v30, %v10768_v58  ;;  %v3209_v57 = vsel %vm3154_vm8, %v3144_v49, %v10769_v19  ;;  %v10770_v11 = vld [vmem:[#allocation175_spill] sm:$0xff]  ;;  %v10784_v30 = vld [vmem:[#allocation360_spill] sm:$0xff] }
 0x56b   :  { %v3119_v18 = vsel %vm3089_vm9, %v3054_v48, %v10754_v53  ;;  %v3262_v0 = vsel %vm3219_vm10, %v3197_v34, %v8384_v23  ;;  %v10771_v48 = vld [vmem:[#allocation54_spill] sm:$0xff]  ;;  %v3003_v63 = vsel %vm2959_vm5, %v2938_v60, %v10783_v10  ;;  %v3015_v24 = vsel %vm2959_vm5, %v2950_v39, %v10784_v30  ;;  %v10785_v49 = vld [vmem:[#allocation411_spill] sm:$0xff]  ;;  %v10798_v10 = vld [vmem:[#allocation180_spill] sm:$0xff] }
 0x56c   :  { %v3184_v29 = vsel %vm3154_vm8, %v3119_v18, %v10755_v46  ;;  %v2494_v15 = vpop.permute.xlu0 %2493  ;;  %v2860_v53 = vsel %vm192_vm4, %v10771_v48, %v10770_v11  ;;  %v3068_v58 = vsel %vm3024_vm7, %v3003_v63, %v10785_v49  ;;  %v10801_v49 = vld [vmem:[#allocation126_spill] sm:$0xff] }
 0x56d   :  { %v3249_v47 = vsel %vm3219_vm10, %v3184_v29, %v2494_v15  ;;  %v10772_v29 = vld [vmem:[#allocation274_spill] sm:$0xff] }
 0x56f   :  { %v2696_v27 = vpop.permute.xlu1 %2695 }
 0x570   :  { %v3314_v40 = vsel %vm3284_vm11, %v3249_v47, %v2696_v27  ;;  %v10773_v27 = vld [vmem:[#allocation325_spill] sm:$0xff]  ;;  %v10774_v47 = vld [vmem:[#allocation398_spill] sm:$0xff] }
 0x571   :  { %4248 = vmatmul.msk.f32.gmra.mxu1 %vm3354_vm12, %v3314_v40 }
 0x572   :  { %v2748_v18 = vpop.permute.xlu2 %2747 }
 0x573   :  { %v8499_v51 = vpop.f32.mrf.mxu1 }
 0x574   :  { %v8488_v61 = vpop.f32.mrf.mxu2  ;;  %3783 = vst.msk [vmem:[%s9257_s6 + $0xb8] sm:$0xff] %vm192_vm4, %v8499_v51  ;;  %v2544_v36 = vpop.permute.xlu0 %2543 }
 0x575   :  { %3795 = vst.msk [vmem:[%s9257_s6 + $0x118] sm:$0xff] %vm192_vm4, %v8488_v61  ;;  %v3274_v26 = vsel %vm3219_vm10, %v3209_v57, %v2544_v36  ;;  %v10787_v57 = vld [vmem:[#allocation452_spill] sm:$0xff] }
 0x576   :  { %v3601_v55 = vpop.f32.mrf.mxu0  ;;  %v3339_v23 = vsel %vm3284_vm11, %v3274_v26, %v2746_v54  ;;  %v10790_v26 = vld [vmem:[#allocation199_spill] sm:$0xff] }
 0x577   :  { %3771 = vst.msk [vmem:[%s9257_s6 + $0x58] sm:$0xff] %vm192_vm4, %v3601_v55  ;;  %v3846_v31 = vsel %vm192_vm4, %v3601_v55, 0.0  ;;  %v3972_v9 = vmul.f32 %v3601_v55, %v3601_v55  ;;  %v2722_v2 = vpop.permute.xlu1 %2721  ;;  %4273 = vmatmul.msk.f32.gmra.mxu3 %vm3354_vm12, %v3339_v23  ;;  %v10786_v55 = vld [vmem:[#allocation216_spill] sm:$0xff] }
 0x578   :  { %v3847_v35 = vadd.f32 %v3846_v31, %v3845_v56  ;;  %v3327_v32 = vsel %vm3284_vm11, %v3262_v0, %v2722_v2  ;;  %v2925_v56 = vsel %vm2894_vm6, %v2860_v53, %v10772_v29  ;;  %v3080_v19 = vsel %vm3024_vm7, %v3015_v24, %v10786_v55  ;;  %v10788_v31 = vld [vmem:[#allocation462_spill] sm:$0xff]  ;;  %v10789_v2 = vld [vmem:[#allocation200_spill] sm:$0xff]  ;;  %v10802_v55 = vld [vmem:[#allocation107_spill] sm:$0xff] }
 0x579   :  { %v4046_v14 = vsel %vm192_vm4, %v3972_v9, 0.0  ;;  %4261 = vmatmul.msk.f32.gmra.mxu2 %vm3354_vm12, %v3327_v32  ;;  %v2990_v15 = vsel %vm2959_vm5, %v2925_v56, %v10773_v27  ;;  %v3133_v0 = vsel %vm3089_vm9, %v3068_v58, %v10787_v57  ;;  %v3145_v9 = vsel %vm3089_vm9, %v3080_v19, %v10788_v31  ;;  %v10791_v56 = vld [vmem:[#allocation176_spill] sm:$0xff]  ;;  %v10792_v27 = vld [vmem:[#allocation51_spill] sm:$0xff]  ;;  %v10800_v24 = vld [vmem:[#allocation202_spill] sm:$0xff] }
 0x57a   :  { %v4047_v46 = vadd.f32 %v4046_v14, %v4045_v22  ;;  %v3055_v1 = vsel %vm3024_vm7, %v2990_v15, %v10774_v47  ;;  %v2524_v34 = vpop.permute.xlu2 %2523  ;;  %v3198_v36 = vsel %vm3154_vm8, %v3133_v0, %v10789_v2  ;;  %v3210_v32 = vsel %vm3154_vm8, %v3145_v9, %v10790_v26  ;;  %v10803_v57 = vld [vmem:[#allocation298_spill] sm:$0xff]  ;;  %v10804_v0 = vld [vmem:[#allocation349_spill] sm:$0xff] }
 0x57b   :  { %v3120_v54 = vsel %vm3089_vm9, %v3055_v1, %v10775_v42  ;;  %v3263_v14 = vsel %vm3219_vm10, %v3198_v36, %v8467_v44  ;;  %v2861_v15 = vsel %vm192_vm4, %v10792_v27, %v10791_v56  ;;  %v10793_v1 = vld [vmem:[#allocation263_spill] sm:$0xff]  ;;  %v10794_v42 = vld [vmem:[#allocation336_spill] sm:$0xff]  ;;  %v2886_v58 = vsel %vm192_vm4, %v10801_v49, %v10800_v24  ;;  %v10805_v9 = vld [vmem:[#allocation361_spill] sm:$0xff] }
 0x57c   :  { %v3185_v40 = vsel %vm3154_vm8, %v3120_v54, %v10776_v20  ;;  %v2496_v13 = vpop.permute.xlu0 %2495  ;;  %v2926_v44 = vsel %vm2894_vm6, %v2861_v15, %v10793_v1  ;;  %v10795_v20 = vld [vmem:[#allocation399_spill] sm:$0xff]  ;;  %v10806_v36 = vld [vmem:[#allocation400_spill] sm:$0xff] }
 0x57d   :  { %v3250_v22 = vsel %vm3219_vm10, %v3185_v40, %v2496_v13  ;;  %v10811_v27 = vld [vmem:[#allocation47_spill] sm:$0xff] }
 0x57f   :  { %v2698_v21 = vpop.permute.xlu1 %2697 }
 0x580   :  { %v3315_v3 = vsel %vm3284_vm11, %v3250_v22, %v2698_v21  ;;  %v10796_v22 = vld [vmem:[#allocation443_spill] sm:$0xff] }
 0x581   :  { %4249 = vmatmul.msk.f32.gmra.mxu1 %vm3354_vm12, %v3315_v3  ;;  %v8553_v5 = vpop.f32.mrf.mxu2 }
 0x582   :  { %3796 = vst.msk [vmem:[%s9257_s6 + $0x120] sm:$0xff] %vm192_vm4, %v8553_v5  ;;  %v2750_v38 = vpop.permute.xlu2 %2749 }
 0x584   :  { %v2546_v11 = vpop.permute.xlu0 %2545 }
 0x585   :  { %v3275_v48 = vsel %vm3219_vm10, %v3210_v32, %v2546_v11  ;;  %v10807_v32 = vld [vmem:[#allocation412_spill] sm:$0xff] }
 0x586   :  { %v3340_v29 = vsel %vm3284_vm11, %v3275_v48, %v2748_v18  ;;  %v2991_v18 = vsel %vm2959_vm5, %v2926_v44, %v10794_v42  ;;  %v10809_v48 = vld [vmem:[#allocation475_spill] sm:$0xff] }
 0x587   :  { %v2724_v23 = vpop.permute.xlu1 %2723  ;;  %4274 = vmatmul.msk.f32.gmra.mxu3 %vm3354_vm12, %v3340_v29  ;;  %v3056_v40 = vsel %vm3024_vm7, %v2991_v18, %v10795_v20  ;;  %v10810_v29 = vld [vmem:[#allocation34_spill] sm:$0xff] }
 0x588   :  { %v3328_v53 = vsel %vm3284_vm11, %v3263_v14, %v2724_v23  ;;  %v8584_v47 = vpop.f32.mrf.mxu3  ;;  %v3121_v41 = vsel %vm3089_vm9, %v3056_v40, %v10796_v22  ;;  %v10808_v23 = vld [vmem:[#allocation463_spill] sm:$0xff] }
 0x589   :  { %4262 = vmatmul.msk.f32.gmra.mxu2 %vm3354_vm12, %v3328_v53  ;;  %3808 = vst.msk [vmem:[%s9257_s6 + $0x180] sm:$0xff] %vm192_vm4, %v8584_v47  ;;  %v3186_v28 = vsel %vm3154_vm8, %v3121_v41, %v10797_v25  ;;  %v10814_v41 = vld [vmem:[#allocation287_spill] sm:$0xff]  ;;  %v10815_v25 = vld [vmem:[#allocation338_spill] sm:$0xff] }
 0x58a   :  { %v3604_v54 = vpop.f32.mrf.mxu0  ;;  %v2728_v18 = vpop.permute.xlu2 %2727 }
 0x58b   :  { %3772 = vst.msk [vmem:[%s9257_s6 + $0x60] sm:$0xff] %vm192_vm4, %v3604_v54  ;;  %v3848_v21 = vsel %vm192_vm4, %v3604_v54, 0.0  ;;  %v3973_v13 = vmul.f32 %v3604_v54, %v3604_v54 }
 0x58c   :  { %v3849_v50 = vadd.f32 %v3848_v21, %v3847_v35  ;;  %v2498_v60 = vpop.permute.xlu0 %2497  ;;  %v10799_v35 = vld [vmem:[#allocation86_spill] sm:$0xff]  ;;  %v10812_v21 = vld [vmem:[#allocation203_spill] sm:$0xff] }
 0x58d   :  { %v4048_v33 = vsel %vm192_vm4, %v3973_v13, 0.0  ;;  %v3251_v39 = vsel %vm3219_vm10, %v3186_v28, %v2498_v60  ;;  %v2874_v63 = vsel %vm192_vm4, %v10799_v35, %v10798_v10  ;;  %v10813_v13 = vld [vmem:[#allocation85_spill] sm:$0xff] }
 0x58e   :  { %v8604_v3 = vpop.f32.mrf.mxu1  ;;  %v4049_v59 = vadd.f32 %v4048_v33, %v4047_v46  ;;  %v2939_v19 = vsel %vm2894_vm6, %v2874_v63, %v10802_v55  ;;  %v2951_v46 = vsel %vm2894_vm6, %v2886_v58, %v10803_v57  ;;  %v2875_v22 = vsel %vm192_vm4, %v10813_v13, %v10812_v21  ;;  %v10816_v60 = vld [vmem:[#allocation413_spill] sm:$0xff]  ;;  %v10829_v21 = vld [vmem:[#allocation135_spill] sm:$0xff] }
 0x58f   :  { %3784 = vst.msk [vmem:[%s9257_s6 + $0xc0] sm:$0xff] %vm192_vm4, %v8604_v3  ;;  %v2700_v43 = vpop.permute.xlu1 %2699  ;;  %v3004_v31 = vsel %vm2959_vm5, %v2939_v19, %v10804_v0  ;;  %v3016_v2 = vsel %vm2959_vm5, %v2951_v46, %v10805_v9  ;;  %v10818_v63 = vld [vmem:[#allocation173_spill] sm:$0xff]  ;;  %v10819_v46 = vld [vmem:[#allocation219_spill] sm:$0xff] }
 0x590   :  { %v3316_v30 = vsel %vm3284_vm11, %v3251_v39, %v2700_v43  ;;  %v3069_v26 = vsel %vm3024_vm7, %v3004_v31, %v10806_v36  ;;  %v3081_v14 = vsel %vm3024_vm7, %v3016_v2, %v10807_v32  ;;  %v10820_v0 = vld [vmem:[#allocation125_spill] sm:$0xff]  ;;  %v10821_v36 = vld [vmem:[#allocation299_spill] sm:$0xff] }
 0x591   :  { %4250 = vmatmul.msk.f32.gmra.mxu1 %vm3354_vm12, %v3316_v30  ;;  %v3134_v11 = vsel %vm3089_vm9, %v3069_v26, %v10808_v23  ;;  %v3146_v53 = vsel %vm3089_vm9, %v3081_v14, %v10809_v48  ;;  %v2887_v31 = vsel %vm192_vm4, %v10820_v0, %v10819_v46  ;;  %v10838_v46 = vld [vmem:[#allocation24_spill] sm:$0xff] }
 0x592   :  { %v3199_v56 = vsel %vm3154_vm8, %v3134_v11, %v10810_v29  ;;  %v3211_v15 = vsel %vm3154_vm8, %v3146_v53, %v10811_v27  ;;  %v2952_v26 = vsel %vm2894_vm6, %v2887_v31, %v10821_v36  ;;  %v2552_v32 = vpop.permute.xlu2 %2551  ;;  %v10823_v11 = vld [vmem:[#allocation424_spill] sm:$0xff]  ;;  %v10825_v27 = vld [vmem:[#allocation178_spill] sm:$0xff]  ;;  %v10839_v31 = vld [vmem:[#allocation201_spill] sm:$0xff] }
 0x593   :  { %v3264_v1 = vsel %vm3219_vm10, %v3199_v56, %v2524_v34  ;;  %v2940_v34 = vsel %vm2894_vm6, %v2875_v22, %v10814_v41  ;;  %v10824_v53 = vld [vmem:[#allocation476_spill] sm:$0xff]  ;;  %v10830_v22 = vld [vmem:[#allocation278_spill] sm:$0xff] }
 0x594   :  { %v2548_v42 = vpop.permute.xlu0 %2547  ;;  %v3005_v28 = vsel %vm2959_vm5, %v2940_v34, %v10815_v25  ;;  %v10831_v34 = vld [vmem:[#allocation288_spill] sm:$0xff] }
 0x595   :  { %v3276_v54 = vsel %vm3219_vm10, %v3211_v15, %v2548_v42  ;;  %v3070_v39 = vsel %vm3024_vm7, %v3005_v28, %v10816_v60  ;;  %v10832_v28 = vld [vmem:[#allocation351_spill] sm:$0xff] }
 0x596   :  { %v3341_v40 = vsel %vm3284_vm11, %v3276_v54, %v2750_v38  ;;  %v10817_v38 = vld [vmem:[#allocation464_spill] sm:$0xff] }
 0x597   :  { %v2726_v44 = vpop.permute.xlu1 %2725  ;;  %4275 = vmatmul.msk.f32.gmra.mxu3 %vm3354_vm12, %v3341_v40  ;;  %v3135_v10 = vsel %vm3089_vm9, %v3070_v39, %v10817_v38  ;;  %v10827_v54 = vld [vmem:[#allocation92_spill] sm:$0xff]  ;;  %v10828_v40 = vld [vmem:[#allocation74_spill] sm:$0xff]  ;;  %v10833_v39 = vld [vmem:[#allocation363_spill] sm:$0xff] }
 0x598   :  { %v3329_v20 = vsel %vm3284_vm11, %v3264_v1, %v2726_v44  ;;  %v3200_v30 = vsel %vm3154_vm8, %v3135_v10, %v10818_v63  ;;  %v2888_v13 = vsel %vm192_vm4, %v10829_v21, %v10828_v40  ;;  %v10834_v10 = vld [vmem:[#allocation414_spill] sm:$0xff]  ;;  %v10835_v63 = vld [vmem:[#allocation425_spill] sm:$0xff]  ;;  %v10847_v40 = vld [vmem:[#allocation403_spill] sm:$0xff] }
 0x599   :  { %4263 = vmatmul.msk.f32.gmra.mxu2 %vm3354_vm12, %v3329_v20  ;;  %v8658_v43 = vpop.f32.mrf.mxu3  ;;  %v2953_v25 = vsel %vm2894_vm6, %v2888_v13, %v10831_v34  ;;  %v10849_v34 = vld [vmem:[#allocation466_spill] sm:$0xff] }
 0x59a   :  { %3809 = vst.msk [vmem:[%s9257_s6 + $0x188] sm:$0xff] %vm192_vm4, %v8658_v43  ;;  %v3018_v38 = vsel %vm2959_vm5, %v2953_v25, %v10833_v39  ;;  %v10851_v39 = vld [vmem:[#allocation72_spill] sm:$0xff] }
 0x59b   :  { %v3607_v35 = vpop.f32.mrf.mxu0 }
 0x59c   :  { %v8656_v33 = vpop.f32.mrf.mxu2  ;;  %3773 = vst.msk [vmem:[%s9257_s6 + $0x68] sm:$0xff] %vm192_vm4, %v3607_v35  ;;  %v3850_v49 = vsel %vm192_vm4, %v3607_v35, 0.0  ;;  %v3974_v58 = vmul.f32 %v3607_v35, %v3607_v35  ;;  %v2526_v55 = vpop.permute.xlu0 %2525 }
 0x59d   :  { %3797 = vst.msk [vmem:[%s9257_s6 + $0x128] sm:$0xff] %vm192_vm4, %v8656_v33  ;;  %v8681_v19 = vadd.f32 %v3850_v49, %v3849_v50  ;;  %v3265_v57 = vsel %vm3219_vm10, %v3200_v30, %v2526_v55  ;;  %v10822_v50 = vld [vmem:[#allocation350_spill] sm:$0xff]  ;;  %v3083_v30 = vsel %vm3024_vm7, %v3018_v38, %v10835_v63  ;;  %v10836_v49 = vld [vmem:[#allocation453_spill] sm:$0xff] }
 0x59e   :  { %v4050_v9 = vsel %vm192_vm4, %v3974_v58, 0.0  ;;  %v3330_v2 = vsel %vm3284_vm11, %v3265_v57, %v2728_v18  ;;  %v3017_v23 = vsel %vm2959_vm5, %v2952_v26, %v10822_v50  ;;  %v10826_v18 = vld [vmem:[#allocation43_spill] sm:$0xff]  ;;  %v10837_v55 = vld [vmem:[#allocation465_spill] sm:$0xff] }
 0x59f   :  { %v2550_v24 = vpop.permute.xlu1 %2549  ;;  %v8691_v14 = vadd.f32 %v4050_v9, %v4049_v59  ;;  %v3082_v48 = vsel %vm3024_vm7, %v3017_v23, %v10823_v11  ;;  %v2876_v20 = vsel %vm192_vm4, %v10827_v54, %v10826_v18  ;;  %v3148_v57 = vsel %vm3089_vm9, %v3083_v30, %v10837_v55  ;;  %v10846_v54 = vld [vmem:[#allocation301_spill] sm:$0xff] }
 0x5a0   :  { %v3147_v29 = vsel %vm3089_vm9, %v3082_v48, %v10824_v53  ;;  %v2941_v41 = vsel %vm2894_vm6, %v2876_v20, %v10830_v22  ;;  %v3213_v9 = vsel %vm3154_vm8, %v3148_v57, %v10839_v31  ;;  %v10840_v48 = vld [vmem:[#allocation186_spill] sm:$0xff]  ;;  %v10841_v53 = vld [vmem:[#allocation91_spill] sm:$0xff]  ;;  %v10848_v22 = vld [vmem:[#allocation364_spill] sm:$0xff] }
 0x5a1   :  { %4264 = vmatmul.msk.f32.gmra.mxu2 %vm3354_vm12, %v3330_v2  ;;  %v3212_v15 = vsel %vm3154_vm8, %v3147_v29, %v10825_v27  ;;  %v3006_v60 = vsel %vm2959_vm5, %v2941_v41, %v10832_v28  ;;  %v3278_v2 = vsel %vm3219_vm10, %v3213_v9, %v2552_v32  ;;  %v2877_v29 = vsel %vm192_vm4, %v10841_v53, %v10840_v48  ;;  %v10842_v27 = vld [vmem:[#allocation289_spill] sm:$0xff]  ;;  %v10843_v32 = vld [vmem:[#allocation56_spill] sm:$0xff]  ;;  %v10850_v28 = vld [vmem:[#allocation415_spill] sm:$0xff] }
 0x5a2   :  { %v8700_v56 = vpop.f32.mrf.mxu1  ;;  %v3277_v59 = vsel %vm3219_vm10, %v3212_v15, %v2550_v24  ;;  %v3071_v35 = vsel %vm3024_vm7, %v3006_v60, %v10834_v10  ;;  %v2530_v24 = vpop.permute.xlu2 %2529  ;;  %v2942_v15 = vsel %vm2894_vm6, %v2877_v29, %v10842_v27  ;;  %v10852_v63 = vld [vmem:[#allocation477_spill] sm:$0xff]  ;;  %v10856_v53 = vld [vmem:[#allocation302_spill] sm:$0xff] }
 0x5a3   :  { %3785 = vst.msk [vmem:[%s9257_s6 + $0xc8] sm:$0xff] %vm192_vm4, %v8700_v56  ;;  %v3136_v58 = vsel %vm3089_vm9, %v3071_v35, %v10836_v49  ;;  %v10857_v27 = vld [vmem:[#allocation353_spill] sm:$0xff] }
 0x5a4   :  { %v2752_v44 = vpop.permute.xlu0 %2751  ;;  %v3201_v0 = vsel %vm3154_vm8, %v3136_v58, %v10838_v46 }
 0x5a5   :  { %v3342_v42 = vsel %vm3284_vm11, %v3277_v59, %v2752_v44  ;;  %v10844_v59 = vld [vmem:[#allocation133_spill] sm:$0xff]  ;;  %v10845_v44 = vld [vmem:[#allocation352_spill] sm:$0xff] }
 0x5a6   :  { %4276 = vmatmul.msk.f32.gmra.mxu3 %vm3354_vm12, %v3342_v42  ;;  %v3007_v42 = vsel %vm2959_vm5, %v2942_v15, %v10845_v44 }
 0x5a7   :  { %v2528_v1 = vpop.permute.xlu1 %2527  ;;  %v3072_v21 = vsel %vm3024_vm7, %v3007_v42, %v10847_v40 }
 0x5a8   :  { %v3266_v36 = vsel %vm3219_vm10, %v3201_v0, %v2528_v1  ;;  %v2889_v1 = vsel %vm192_vm4, %v10844_v59, %v10843_v32  ;;  %v3137_v25 = vsel %vm3089_vm9, %v3072_v21, %v10849_v34  ;;  %v10853_v0 = vld [vmem:[#allocation25_spill] sm:$0xff]  ;;  %v10858_v32 = vld [vmem:[#allocation427_spill] sm:$0xff] }
 0x5a9   :  { %v2954_v20 = vsel %vm2894_vm6, %v2889_v1, %v10846_v54  ;;  %v3202_v38 = vsel %vm3154_vm8, %v3137_v25, %v10851_v39  ;;  %v10859_v1 = vld [vmem:[#allocation478_spill] sm:$0xff]  ;;  %v10862_v25 = vld [vmem:[#allocation291_spill] sm:$0xff] }
 0x5aa   :  { %v3019_v41 = vsel %vm2959_vm5, %v2954_v20, %v10848_v22  ;;  %v2756_v10 = vpop.permute.xlu2 %2755  ;;  %v3267_v49 = vsel %vm3219_vm10, %v3202_v38, %v2530_v24  ;;  %v10860_v22 = vld [vmem:[#allocation223_spill] sm:$0xff] }
 0x5ab   :  { %v3084_v60 = vsel %vm3024_vm7, %v3019_v41, %v10850_v28  ;;  %v10861_v41 = vld [vmem:[#allocation141_spill] sm:$0xff] }
 0x5ac   :  { %v2730_v50 = vpop.permute.xlu0 %2729  ;;  %v3149_v30 = vsel %vm3089_vm9, %v3084_v60, %v10852_v63  ;;  %v2891_v34 = vsel %vm192_vm4, %v10861_v41, %v10860_v22  ;;  %v10863_v60 = vld [vmem:[#allocation366_spill] sm:$0xff] }
 0x5ad   :  { %v3331_v23 = vsel %vm3284_vm11, %v3266_v36, %v2730_v50  ;;  %v3214_v31 = vsel %vm3154_vm8, %v3149_v30, %v10853_v0  ;;  %v2956_v28 = vsel %vm2894_vm6, %v2891_v34, %v10862_v25  ;;  %v10866_v0 = vld [vmem:[#allocation211_spill] sm:$0xff] }
 0x5ae   :  { %4265 = vmatmul.msk.f32.gmra.mxu2 %vm3354_vm12, %v3331_v23  ;;  %v3021_v39 = vsel %vm2959_vm5, %v2956_v28, %v10863_v60  ;;  %v10872_v28 = vld [vmem:[#allocation228_spill] sm:$0xff]  ;;  %v10873_v60 = vld [vmem:[#allocation142_spill] sm:$0xff] }
 0x5af   :  { %v2754_v26 = vpop.permute.xlu1 %2753 }
 0x5b0   :  { %v3343_v11 = vsel %vm3284_vm11, %v3278_v2, %v2754_v26 }
 0x5b1   :  { %4277 = vmatmul.msk.f32.gmra.mxu3 %vm3354_vm12, %v3343_v11  ;;  %v8754_v18 = vpop.f32.mrf.mxu2  ;;  %v10855_v11 = vld [vmem:[#allocation144_spill] sm:$0xff] }
 0x5b2   :  { %3798 = vst.msk [vmem:[%s9257_s6 + $0x130] sm:$0xff] %vm192_vm4, %v8754_v18  ;;  %v2354_v20 = vpop.permute.xlu2 %2353 }
 0x5b4   :  { %v8765_v13 = vpop.f32.mrf.mxu3  ;;  %v8788_v46 = vpop.f32.mrf.mxu1 }
 0x5b5   :  { %3810 = vst.msk [vmem:[%s9257_s6 + $0x190] sm:$0xff] %vm192_vm4, %v8765_v13  ;;  %v2554_v24 = vpop.permute.xlu0 %2553 }
 0x5b6   :  { %v3610_v35 = vpop.f32.mrf.mxu0  ;;  %3786 = vst.msk [vmem:[%s9257_s6 + $0xd0] sm:$0xff] %vm192_vm4, %v8788_v46  ;;  %v3279_v26 = vsel %vm3219_vm10, %v3214_v31, %v2554_v24  ;;  %v10867_v31 = vld [vmem:[#allocation143_spill] sm:$0xff] }
 0x5b7   :  { %3774 = vst.msk [vmem:[%s9257_s6 + $0x70] sm:$0xff] %vm192_vm4, %v3610_v35  ;;  %v3852_v58 = vsel %vm192_vm4, %v3610_v35, 0.0  ;;  %v3975_v55 = vmul.f32 %v3610_v35, %v3610_v35  ;;  %v2732_v57 = vpop.permute.xlu1 %2731  ;;  %v3344_v23 = vsel %vm3284_vm11, %v3279_v26, %v2756_v10  ;;  %v10865_v35 = vld [vmem:[#allocation469_spill] sm:$0xff]  ;;  %v2892_v24 = vsel %vm192_vm4, %v10867_v31, %v10866_v0  ;;  %v10876_v31 = vld [vmem:[#allocation430_spill] sm:$0xff] }
 0x5b8   :  { %v3853_v9 = vadd.f32 %v3852_v58, %v8681_v19  ;;  %v3332_v2 = vsel %vm3284_vm11, %v3267_v49, %v2732_v57  ;;  %v10854_v19 = vld [vmem:[#allocation76_spill] sm:$0xff] }
 0x5b9   :  { %v4052_v36 = vsel %vm192_vm4, %v3975_v55, 0.0  ;;  %4266 = vmatmul.msk.f32.gmra.mxu2 %vm3354_vm12, %v3332_v2  ;;  %v2890_v48 = vsel %vm192_vm4, %v10855_v11, %v10854_v19  ;;  %4278 = vmatmul.msk.f32.gmra.mxu3 %vm3354_vm12, %v3344_v23  ;;  %v10869_v19 = vld [vmem:[#allocation367_spill] sm:$0xff] }
 0x5ba   :  { %v4053_v50 = vadd.f32 %v4052_v36, %v8691_v14  ;;  %v2955_v29 = vsel %vm2894_vm6, %v2890_v48, %v10856_v53  ;;  %v2356_v2 = vpop.permute.xlu2 %2355  ;;  %v10868_v36 = vld [vmem:[#allocation304_spill] sm:$0xff] }
 0x5bb   :  { %v3020_v15 = vsel %vm2959_vm5, %v2955_v29, %v10857_v27  ;;  %v2957_v26 = vsel %vm2894_vm6, %v2892_v24, %v10868_v36  ;;  %v10870_v48 = vld [vmem:[#allocation420_spill] sm:$0xff] }
 0x5bc   :  { %v3085_v59 = vsel %vm3024_vm7, %v3020_v15, %v10858_v32  ;;  %v3022_v11 = vsel %vm2959_vm5, %v2957_v26, %v10869_v19  ;;  %v10871_v15 = vld [vmem:[#allocation479_spill] sm:$0xff]  ;;  %v10877_v26 = vld [vmem:[#allocation480_spill] sm:$0xff] }
 0x5bd   :  { %v3150_v14 = vsel %vm3089_vm9, %v3085_v59, %v10859_v1  ;;  %v2556_v54 = vpop.permute.xlu0 %2555  ;;  %v3087_v53 = vsel %vm3024_vm7, %v3022_v11, %v10870_v48  ;;  %v3977_v59 = vmul.f32 %v7975_v45, %v7975_v45  ;;  %v3862_v48 = vsel %vm192_vm4, %v8152_v4, 0.0 }
 0x5be   :  { %v3215_v42 = vsel %vm3154_vm8, %v3150_v14, %v7375_v6  ;;  %v10864_v6 = vld [vmem:[#allocation428_spill] sm:$0xff]  ;;  %v3152_v32 = vsel %vm3089_vm9, %v3087_v53, %v10871_v15 }
 0x5bf   :  { %v2758_v44 = vpop.permute.xlu1 %2757  ;;  %v3280_v40 = vsel %vm3219_vm10, %v3215_v42, %v2556_v54  ;;  %v3086_v10 = vsel %vm3024_vm7, %v3021_v39, %v10864_v6  ;;  %v3217_v42 = vsel %vm3154_vm8, %v3152_v32, %v2356_v2  ;;  %v2893_v39 = vsel %vm192_vm4, %v10873_v60, %v10872_v28 }
 0x5c0   :  { %v3345_v21 = vsel %vm3284_vm11, %v3280_v40, %v2758_v44  ;;  %v3151_v63 = vsel %vm3089_vm9, %v3086_v10, %v10865_v35  ;;  %v3856_v40 = vsel %vm192_vm4, %v7975_v45, 0.0  ;;  %v4056_v6 = vsel %vm192_vm4, %v3977_v59, 0.0  ;;  %v10874_v35 = vld [vmem:[#allocation305_spill] sm:$0xff] }
 0x5c1   :  { %4279 = vmatmul.msk.f32.gmra.mxu3 %vm3354_vm12, %v3345_v21  ;;  %v3216_v49 = vsel %vm3154_vm8, %v3151_v63, %v2354_v20  ;;  %v3978_v21 = vmul.f32 %v8050_v16, %v8050_v16  ;;  %v3858_v45 = vsel %vm192_vm4, %v8050_v16, 0.0  ;;  %v3979_v10 = vmul.f32 %v8106_v7, %v8106_v7 }
 0x5c2   :  { %v2958_v63 = vsel %vm2894_vm6, %v2893_v39, %v10874_v35  ;;  %v3980_v16 = vmul.f32 %v8152_v4, %v8152_v4  ;;  %v2358_v0 = vpop.permute.xlu2 %2357  ;;  %v3984_v28 = vmul.f32 %v8499_v51, %v8499_v51 }
 0x5c3   :  { %v8828_v38 = vpop.f32.mrf.mxu2  ;;  %v4060_v11 = vsel %vm192_vm4, %v3979_v10, 0.0 }
 0x5c4   :  { %3799 = vst.msk [vmem:[%s9257_s6 + $0x138] sm:$0xff] %vm192_vm4, %v8828_v38 }
 0x5c5   :  { %v2558_v58 = vpop.permute.xlu0 %2557 }
 0x5c6   :  { %v3281_v55 = vsel %vm3219_vm10, %v3216_v49, %v2558_v58  ;;  %v10875_v49 = vld [vmem:[#allocation68_spill] sm:$0xff] }
 0x5c7   :  { %v2760_v30 = vpop.permute.xlu1 %2759  ;;  %v3023_v58 = vsel %vm2959_vm5, %v2958_v63, %v10875_v49  ;;  %v3986_v49 = vmul.f32 %v8700_v56, %v8700_v56 }
 0x5c8   :  { %v3346_v57 = vsel %vm3284_vm11, %v3281_v55, %v2760_v30  ;;  %v4058_v55 = vsel %vm192_vm4, %v3978_v21, 0.0  ;;  %v3088_v24 = vsel %vm3024_vm7, %v3023_v58, %v10876_v31  ;;  %v3866_v21 = vsel %vm192_vm4, %v8341_v52, 0.0 }
 0x5c9   :  { %4280 = vmatmul.msk.f32.gmra.mxu3 %vm3354_vm12, %v3346_v57  ;;  %v8848_v23 = vpop.f32.mrf.mxu3  ;;  %v3860_v57 = vsel %vm192_vm4, %v8106_v7, 0.0  ;;  %v3153_v19 = vsel %vm3089_vm9, %v3088_v24, %v10877_v26  ;;  %v3981_v7 = vmul.f32 %v8236_v12, %v8236_v12  ;;  %v4074_v24 = vsel %vm192_vm4, %v3986_v49, 0.0 }
 0x5ca   :  { %3811 = vst.msk [vmem:[%s9257_s6 + $0x198] sm:$0xff] %vm192_vm4, %v8848_v23 }
 0x5cd   :  { %v3613_v29 = vpop.f32.mrf.mxu0  ;;  %v2560_v20 = vpop.permute.xlu0 %2559 }
 0x5ce   :  { %v8859_v27 = vpop.f32.mrf.mxu1  ;;  %3775 = vst.msk [vmem:[%s9257_s6 + $0x78] sm:$0xff] %vm192_vm4, %v3613_v29  ;;  %v3854_v1 = vsel %vm192_vm4, %v3613_v29, 0.0  ;;  %v3976_v14 = vmul.f32 %v3613_v29, %v3613_v29  ;;  %v3282_v41 = vsel %vm3219_vm10, %v3217_v42, %v2560_v20  ;;  %v3218_v29 = vsel %vm3154_vm8, %v3153_v19, %v2358_v0 }
 0x5cf   :  { %v2762_v44 = vpop.permute.xlu1 %2761  ;;  %v3855_v54 = vadd.f32 %v3854_v1, %v3853_v9  ;;  %3787 = vst.msk [vmem:[%s9257_s6 + $0xd8] sm:$0xff] %vm192_vm4, %v8859_v27  ;;  %v4062_v1 = vsel %vm192_vm4, %v3980_v16, 0.0  ;;  %v3987_v16 = vmul.f32 %v8788_v46, %v8788_v46 }
 0x5d0   :  { %v4054_v22 = vsel %vm192_vm4, %v3976_v14, 0.0  ;;  %v3347_v9 = vsel %vm3284_vm11, %v3282_v41, %v2762_v44  ;;  %v3864_v14 = vsel %vm192_vm4, %v8236_v12, 0.0  ;;  %v3982_v44 = vmul.f32 %v8341_v52, %v8341_v52 }
 0x5d1   :  { %v3857_v34 = vadd.f32 %v3856_v40, %v3855_v54  ;;  %v4055_v25 = vadd.f32 %v4054_v22, %v4053_v50  ;;  %4281 = vmatmul.msk.f32.gmra.mxu3 %vm3354_vm12, %v3347_v9  ;;  %v4064_v40 = vsel %vm192_vm4, %v3981_v7, 0.0  ;;  %v3983_v22 = vmul.f32 %v8427_v62, %v8427_v62 }
 0x5d2   :  { %v3868_v9 = vsel %vm192_vm4, %v8427_v62, 0.0  ;;  %v4076_v19 = vsel %vm192_vm4, %v3987_v16, 0.0 }
 0x5d3   :  { %v3859_v50 = vadd.f32 %v3858_v45, %v3857_v34  ;;  %v4057_v30 = vadd.f32 %v4056_v6, %v4055_v25  ;;  %v4066_v25 = vsel %vm192_vm4, %v3982_v44, 0.0  ;;  %v4068_v62 = vsel %vm192_vm4, %v3983_v22, 0.0 }
 0x5d4   :  { %v3870_v6 = vsel %vm192_vm4, %v8499_v51, 0.0  ;;  %v3985_v45 = vmul.f32 %v8604_v3, %v8604_v3 }
 0x5d5   :  { %v3861_v2 = vadd.f32 %v3860_v57, %v3859_v50  ;;  %v4059_v36 = vadd.f32 %v4058_v55, %v4057_v30  ;;  %v2562_v59 = vpop.permute.xlu0 %2561  ;;  %v4070_v50 = vsel %vm192_vm4, %v3984_v28, 0.0  ;;  %v3872_v30 = vsel %vm192_vm4, %v8604_v3, 0.0 }
 0x5d6   :  { %v3283_v42 = vsel %vm3219_vm10, %v3218_v29, %v2562_v59  ;;  %v4072_v55 = vsel %vm192_vm4, %v3985_v45, 0.0  ;;  %v3874_v57 = vsel %vm192_vm4, %v8700_v56, 0.0  ;;  %v3876_v3 = vsel %vm192_vm4, %v8788_v46, 0.0 }
 0x5d7   :  { %v2764_v53 = vpop.permute.xlu1 %2763  ;;  %v3863_v15 = vadd.f32 %v3862_v48, %v3861_v2  ;;  %v4061_v32 = vadd.f32 %v4060_v11, %v4059_v36  ;;  %v3988_v2 = vmul.f32 %v8859_v27, %v8859_v27  ;;  %v3878_v56 = vsel %vm192_vm4, %v8859_v27, 0.0 }
 0x5d8   :  { %v3348_v20 = vsel %vm3284_vm11, %v3283_v42, %v2764_v53 }
 0x5d9   :  { %v3865_v4 = vadd.f32 %v3864_v14, %v3863_v15  ;;  %v4063_v54 = vadd.f32 %v4062_v1, %v4061_v32  ;;  %4282 = vmatmul.msk.f32.gmra.mxu3 %vm3354_vm12, %v3348_v20  ;;  %v4078_v7 = vsel %vm192_vm4, %v3988_v2, 0.0 }
 0x5da   :  { %v8936_v52 = vpop.f32.mrf.mxu3 }
 0x5db   :  { %v3867_v12 = vadd.f32 %v3866_v21, %v3865_v4  ;;  %v4065_v41 = vadd.f32 %v4064_v40, %v4063_v54  ;;  %3812 = vst.msk [vmem:[%s9257_s6 + $0x1a0] sm:$0xff] %vm192_vm4, %v8936_v52 }
 0x5dc   :  { %v8924_v34 = vpop.f32.mrf.mxu2 }
 0x5dd   :  { %3800 = vst.msk [vmem:[%s9257_s6 + $0x140] sm:$0xff] %vm192_vm4, %v8924_v34  ;;  %v4067_v60 = vadd.f32 %v4066_v25, %v4065_v41  ;;  %v3869_v39 = vadd.f32 %v3868_v9, %v3867_v12 }
 0x5de   :  { %v3652_v10 = vpop.f32.mrf.mxu1 }
 0x5df   :  { %v3871_v35 = vadd.f32 %v3870_v6, %v3869_v39  ;;  %v4069_v63 = vadd.f32 %v4068_v62, %v4067_v60  ;;  %3788 = vst.msk [vmem:[%s9257_s6 + $0xe0] sm:$0xff] %vm192_vm4, %v3652_v10  ;;  %v3989_v1 = vmul.f32 %v3652_v10, %v3652_v10  ;;  %v3880_v44 = vsel %vm192_vm4, %v3652_v10, 0.0 }
 0x5e0   :  { %v3993_v62 = vmul.f32 %v8225_v17, %v8225_v17 }
 0x5e1   :  { %v3873_v51 = vadd.f32 %v3872_v30, %v3871_v35  ;;  %v4071_v58 = vadd.f32 %v4070_v50, %v4069_v63  ;;  %v4080_v20 = vsel %vm192_vm4, %v3989_v1, 0.0  ;;  %v3888_v63 = vsel %vm192_vm4, %v8225_v17, 0.0 }
 0x5e2   :  { %v3994_v50 = vmul.f32 %v8327_v37, %v8327_v37  ;;  %v3892_v17 = vsel %vm192_vm4, %v8415_v8, 0.0 }
 0x5e3   :  { %v3875_v0 = vadd.f32 %v3874_v57, %v3873_v51  ;;  %v4073_v31 = vadd.f32 %v4072_v55, %v4071_v58  ;;  %v4088_v58 = vsel %vm192_vm4, %v3993_v62, 0.0  ;;  %v3890_v55 = vsel %vm192_vm4, %v8327_v37, 0.0 }
 0x5e4   :  { %v3995_v57 = vmul.f32 %v8415_v8, %v8415_v8  ;;  %v3894_v37 = vsel %vm192_vm4, %v8488_v61, 0.0  ;;  %v3896_v8 = vsel %vm192_vm4, %v8553_v5, 0.0 }
 0x5e5   :  { %v3877_v36 = vadd.f32 %v3876_v3, %v3875_v0  ;;  %v4075_v26 = vadd.f32 %v4074_v24, %v4073_v31  ;;  %v4090_v31 = vsel %vm192_vm4, %v3994_v50, 0.0  ;;  %v3996_v24 = vmul.f32 %v8488_v61, %v8488_v61 }
 0x5e6   :  { %v3898_v61 = vsel %vm192_vm4, %v8656_v33, 0.0 }
 0x5e7   :  { %v3879_v11 = vadd.f32 %v3878_v56, %v3877_v36  ;;  %v4077_v48 = vadd.f32 %v4076_v19, %v4075_v26  ;;  %v4092_v36 = vsel %vm192_vm4, %v3995_v57, 0.0  ;;  %v3997_v26 = vmul.f32 %v8553_v5, %v8553_v5 }
 0x5e9   :  { %v4079_v53 = vadd.f32 %v4078_v7, %v4077_v48  ;;  %v3881_v54 = vadd.f32 %v3880_v44, %v3879_v11  ;;  %v4094_v11 = vsel %vm192_vm4, %v3996_v24, 0.0  ;;  %v3998_v48 = vmul.f32 %v8656_v33, %v8656_v33 }
 0x5ea   :  { %v8978_v46 = vpop.f32.mrf.mxu3  ;;  %v4000_v33 = vmul.f32 %v8828_v38, %v8828_v38 }
 0x5eb   :  { %3813 = vst.msk [vmem:[%s9257_s6 + $0x1a8] sm:$0xff] %vm192_vm4, %v8978_v46  ;;  %v4081_v12 = vadd.f32 %v4080_v20, %v4079_v53 }
 0x5ec   :  { %v8971_v29 = vpop.f32.mrf.mxu2 }
 0x5ed   :  { %3801 = vst.msk [vmem:[%s9257_s6 + $0x148] sm:$0xff] %vm192_vm4, %v8971_v29 }
 0x5ee   :  { %v3655_v27 = vpop.f32.mrf.mxu1 }
 0x5ef   :  { %3789 = vst.msk [vmem:[%s9257_s6 + $0xe8] sm:$0xff] %vm192_vm4, %v3655_v27  ;;  %v3990_v14 = vmul.f32 %v3655_v27, %v3655_v27  ;;  %v3882_v42 = vsel %vm192_vm4, %v3655_v27, 0.0  ;;  %v4096_v27 = vsel %vm192_vm4, %v3997_v26, 0.0 }
 0x5f0   :  { %v3883_v41 = vadd.f32 %v3882_v42, %v3881_v54  ;;  %v4098_v42 = vsel %vm192_vm4, %v3998_v48, 0.0 }
 0x5f1   :  { %v4082_v40 = vsel %vm192_vm4, %v3990_v14, 0.0 }
 0x5f2   :  { %v4083_v28 = vadd.f32 %v4082_v40, %v4081_v12  ;;  %v4001_v12 = vmul.f32 %v8924_v34, %v8924_v34 }
 0x5fa   :  { %v8996_v32 = vpop.f32.mrf.mxu3 }
 0x5fb   :  { %3814 = vst.msk [vmem:[%s9257_s6 + $0x1b0] sm:$0xff] %vm192_vm4, %v8996_v32 }
 0x5fc   :  { %v8989_v15 = vpop.f32.mrf.mxu2 }
 0x5fd   :  { %3802 = vst.msk [vmem:[%s9257_s6 + $0x150] sm:$0xff] %vm192_vm4, %v8989_v15  ;;  %v4003_v50 = vmul.f32 %v8989_v15, %v8989_v15 }
 0x5fe   :  { %v3658_v59 = vpop.f32.mrf.mxu1 }
 0x5ff   :  { %3790 = vst.msk [vmem:[%s9257_s6 + $0xf0] sm:$0xff] %vm192_vm4, %v3658_v59  ;;  %v3991_v4 = vmul.f32 %v3658_v59, %v3658_v59  ;;  %v3884_v21 = vsel %vm192_vm4, %v3658_v59, 0.0  ;;  %v3999_v59 = vmul.f32 %v8754_v18, %v8754_v18 }
 0x600   :  { %v3885_v60 = vadd.f32 %v3884_v21, %v3883_v41  ;;  %v3902_v21 = vsel %vm192_vm4, %v8828_v38, 0.0  ;;  %v3906_v38 = vsel %vm192_vm4, %v8971_v29, 0.0 }
 0x601   :  { %v4084_v9 = vsel %vm192_vm4, %v3991_v4, 0.0  ;;  %v3900_v4 = vsel %vm192_vm4, %v8754_v18, 0.0  ;;  %v4100_v40 = vsel %vm192_vm4, %v3999_v59, 0.0 }
 0x602   :  { %v4085_v10 = vadd.f32 %v4084_v9, %v4083_v28  ;;  %v4102_v9 = vsel %vm192_vm4, %v4000_v33, 0.0  ;;  %v3904_v28 = vsel %vm192_vm4, %v8924_v34, 0.0  ;;  %v4010_v33 = vmul.f32 %v8658_v43, %v8658_v43 }
 0x60a   :  { %v9019_v25 = vpop.f32.mrf.mxu3 }
 0x60b   :  { %3815 = vst.msk [vmem:[%s9257_s6 + $0x1b8] sm:$0xff] %vm192_vm4, %v9019_v25 }
 0x60c   :  { %v9012_v22 = vpop.f32.mrf.mxu2 }
 0x60d   :  { %3803 = vst.msk [vmem:[%s9257_s6 + $0x158] sm:$0xff] %vm192_vm4, %v9012_v22  ;;  %v3910_v57 = vsel %vm192_vm4, %v9012_v22, 0.0 }
 0x60e   :  { %v3661_v39 = vpop.f32.mrf.mxu1 }
 0x60f   :  { %3791 = vst.msk [vmem:[%s9257_s6 + $0xf8] sm:$0xff] %vm192_vm4, %v3661_v39  ;;  %v3886_v6 = vsel %vm192_vm4, %v3661_v39, 0.0  ;;  %v3992_v45 = vmul.f32 %v3661_v39, %v3661_v39 }
 0x610   :  { %v3887_v35 = vadd.f32 %v3886_v6, %v3885_v60  ;;  %v4002_v60 = vmul.f32 %v8971_v29, %v8971_v29  ;;  %v4104_v6 = vsel %vm192_vm4, %v4001_v12, 0.0  ;;  %v3922_v12 = vsel %vm192_vm4, %v8658_v43, 0.0 }
 0x611   :  { %v4086_v30 = vsel %vm192_vm4, %v3992_v45, 0.0 }
 0x612   :  { %v3889_v49 = vadd.f32 %v3888_v63, %v3887_v35  ;;  %v4087_v51 = vadd.f32 %v4086_v30, %v4085_v10  ;;  %v4106_v63 = vsel %vm192_vm4, %v4002_v60, 0.0  ;;  %v3924_v60 = vsel %vm192_vm4, %v8765_v13, 0.0 }
 0x614   :  { %v3891_v16 = vadd.f32 %v3890_v55, %v3889_v49  ;;  %v4089_v0 = vadd.f32 %v4088_v58, %v4087_v51  ;;  %v3908_v49 = vsel %vm192_vm4, %v8989_v15, 0.0  ;;  %v4108_v51 = vsel %vm192_vm4, %v4003_v50, 0.0 }
 0x615   :  { %v4004_v58 = vmul.f32 %v9012_v22, %v9012_v22  ;;  %v4014_v50 = vmul.f32 %v8978_v46, %v8978_v46 }
 0x616   :  { %v3893_v3 = vadd.f32 %v3892_v17, %v3891_v16  ;;  %v4091_v2 = vadd.f32 %v4090_v31, %v4089_v0 }
 0x617   :  { %v4110_v0 = vsel %vm192_vm4, %v4004_v58, 0.0  ;;  %v4015_v58 = vmul.f32 %v8996_v32, %v8996_v32 }
 0x618   :  { %v3895_v19 = vadd.f32 %v3894_v37, %v3893_v3  ;;  %v4093_v56 = vadd.f32 %v4092_v36, %v4091_v2 }
 0x61a   :  { %v3897_v7 = vadd.f32 %v3896_v8, %v3895_v19  ;;  %v4095_v53 = vadd.f32 %v4094_v11, %v4093_v56  ;;  %v9068_v5 = vpop.f32.mrf.mxu3 }
 0x61b   :  { %3816 = vst.msk [vmem:[%s9257_s6 + $0x1c0] sm:$0xff] %vm192_vm4, %v9068_v5 }
 0x61c   :  { %v3700_v1 = vpop.f32.mrf.mxu2  ;;  %v3899_v14 = vadd.f32 %v3898_v61, %v3897_v7  ;;  %v4097_v44 = vadd.f32 %v4096_v27, %v4095_v53  ;;  %v4009_v61 = vmul.f32 %v8584_v47, %v8584_v47 }
 0x61d   :  { %3804 = vst.msk [vmem:[%s9257_s6 + $0x160] sm:$0xff] %vm192_vm4, %v3700_v1  ;;  %v4005_v15 = vmul.f32 %v3700_v1, %v3700_v1  ;;  %v3912_v3 = vsel %vm192_vm4, %v3700_v1, 0.0 }
 0x61e   :  { %v4099_v54 = vadd.f32 %v4098_v42, %v4097_v44  ;;  %v3901_v20 = vadd.f32 %v3900_v4, %v3899_v14  ;;  %v3920_v4 = vsel %vm192_vm4, %v8584_v47, 0.0  ;;  %v4120_v47 = vsel %vm192_vm4, %v4009_v61, 0.0 }
 0x61f   :  { %v4112_v22 = vsel %vm192_vm4, %v4005_v15, 0.0 }
 0x620   :  { %v3903_v18 = vadd.f32 %v3902_v21, %v3901_v20  ;;  %v4101_v41 = vadd.f32 %v4100_v40, %v4099_v54  ;;  %v4323_v21 = vmov 0.0  }
 0x621   :  { %193 = vst.msk [vmem:[%s9258_s7] sm:$0xff] %vm192_vm4, %v4323_v21 }
 0x622   :  { %v3905_v39 = vadd.f32 %v3904_v28, %v3903_v18  ;;  %v4103_v62 = vadd.f32 %v4102_v9, %v4101_v41  ;;  %v4011_v18 = vmul.f32 %v8765_v13, %v8765_v13  ;;  %194 = vst.msk [vmem:[%s9259_s8] sm:$0xff] %vm192_vm4, %v4323_v21  ;;  %v4122_v28 = vsel %vm192_vm4, %v4010_v33, 0.0 }
 0x623   :  { %v3928_v13 = vsel %vm192_vm4, %v8936_v52, 0.0 }
 0x624   :  { %v3907_v45 = vadd.f32 %v3906_v38, %v3905_v39  ;;  %v4105_v10 = vadd.f32 %v4104_v6, %v4103_v62  ;;  %v3703_v35 = vpop.f32.mrf.mxu2  ;;  %v4012_v39 = vmul.f32 %v8848_v23, %v8848_v23  ;;  %v4124_v6 = vsel %vm192_vm4, %v4011_v18, 0.0 }
 0x625   :  { %3805 = vst.msk [vmem:[%s9257_s6 + $0x168] sm:$0xff] %vm192_vm4, %v3703_v35  ;;  %v4006_v36 = vmul.f32 %v3703_v35, %v3703_v35  ;;  %v3914_v19 = vsel %vm192_vm4, %v3703_v35, 0.0  ;;  %v3926_v38 = vsel %vm192_vm4, %v8848_v23, 0.0 }
 0x626   :  { %v4107_v34 = vadd.f32 %v4106_v63, %v4105_v10  ;;  %v3909_v29 = vadd.f32 %v3908_v49, %v3907_v45  ;;  %v4013_v45 = vmul.f32 %v8936_v52, %v8936_v52 }
 0x627   :  { %v4114_v8 = vsel %vm192_vm4, %v4006_v36, 0.0 }
 0x628   :  { %v4109_v55 = vadd.f32 %v4108_v51, %v4107_v34  ;;  %v3911_v16 = vadd.f32 %v3910_v57, %v3909_v29  ;;  %v4126_v34 = vsel %vm192_vm4, %v4012_v39, 0.0  ;;  %v4128_v29 = vsel %vm192_vm4, %v4013_v45, 0.0 }
 0x629   :  { %v9100_v30 = vpop.f32.mrf.mxu3  ;;  %v3930_v51 = vsel %vm192_vm4, %v8978_v46, 0.0  ;;  %v4130_v57 = vsel %vm192_vm4, %v4014_v50, 0.0  ;;  %v3934_v46 = vsel %vm192_vm4, %v9019_v25, 0.0 }
 0x62a   :  { %3817 = vst.msk [vmem:[%s9257_s6 + $0x1c8] sm:$0xff] %vm192_vm4, %v9100_v30  ;;  %v4111_v31 = vadd.f32 %v4110_v0, %v4109_v55  ;;  %v3913_v2 = vadd.f32 %v3912_v3, %v3911_v16  ;;  %v3932_v16 = vsel %vm192_vm4, %v8996_v32, 0.0  ;;  %v4016_v0 = vmul.f32 %v9019_v25, %v9019_v25 }
 0x62b   :  { %v4017_v3 = vmul.f32 %v9068_v5, %v9068_v5  ;;  %v3936_v32 = vsel %vm192_vm4, %v9068_v5, 0.0 }
 0x62c   :  { %v4113_v26 = vadd.f32 %v4112_v22, %v4111_v31  ;;  %v3915_v11 = vadd.f32 %v3914_v19, %v3913_v2 }
 0x62e   :  { %v4115_v7 = vadd.f32 %v4114_v8, %v4113_v26  ;;  %v4018_v26 = vmul.f32 %v9100_v30, %v9100_v30 }
 0x631   :  { %v3706_v17 = vpop.f32.mrf.mxu2 }
 0x632   :  { %3806 = vst.msk [vmem:[%s9257_s6 + $0x170] sm:$0xff] %vm192_vm4, %v3706_v17  ;;  %v4007_v37 = vmul.f32 %v3706_v17, %v3706_v17  ;;  %v3916_v56 = vsel %vm192_vm4, %v3706_v17, 0.0  ;;  %v4132_v17 = vsel %vm192_vm4, %v4015_v58, 0.0 }
 0x633   :  { %v3917_v53 = vadd.f32 %v3916_v56, %v3915_v11  ;;  %v4136_v56 = vsel %vm192_vm4, %v4017_v3, 0.0  ;;  %v3938_v11 = vsel %vm192_vm4, %v9100_v30, 0.0 }
 0x634   :  { %v9115_v24 = vpop.f32.mrf.mxu3  ;;  %v4116_v48 = vsel %vm192_vm4, %v4007_v37, 0.0  ;;  %v4134_v37 = vsel %vm192_vm4, %v4016_v0, 0.0  ;;  %v3960_v0 = vld [vmem:[%s9259_s8] sm:$0xff] }
 0x635   :  { %3818 = vst.msk [vmem:[%s9257_s6 + $0x1d0] sm:$0xff] %vm192_vm4, %v9115_v24  ;;  %v4117_v14 = vadd.f32 %v4116_v48, %v4115_v7  ;;  %v4019_v8 = vmul.f32 %v9115_v24, %v9115_v24  ;;  %v4138_v7 = vsel %vm192_vm4, %v4018_v26, 0.0 }
 0x63c   :  { %v3709_v27 = vpop.f32.mrf.mxu2  ;;  %v9139_v42 = vpop.f32.mrf.mxu3 }
 0x63d   :  { %3807 = vst.msk [vmem:[%s9257_s6 + $0x178] sm:$0xff] %vm192_vm4, %v3709_v27  ;;  %v3918_v59 = vsel %vm192_vm4, %v3709_v27, 0.0  ;;  %v4008_v1 = vmul.f32 %v3709_v27, %v3709_v27  ;;  %v4020_v27 = vmul.f32 %v9139_v42, %v9139_v42  ;;  %v3942_v30 = vsel %vm192_vm4, %v9139_v42, 0.0 }
 0x63e   :  { %v3919_v44 = vadd.f32 %v3918_v59, %v3917_v53  ;;  %3819 = vst.msk [vmem:[%s9257_s6 + $0x1d8] sm:$0xff] %vm192_vm4, %v9139_v42  ;;  %v3940_v53 = vsel %vm192_vm4, %v9115_v24, 0.0 }
 0x63f   :  { %v4118_v54 = vsel %vm192_vm4, %v4008_v1, 0.0  ;;  %v4140_v1 = vsel %vm192_vm4, %v4019_v8, 0.0 }
 0x640   :  { %v3921_v20 = vadd.f32 %v3920_v4, %v3919_v44  ;;  %v4119_v40 = vadd.f32 %v4118_v54, %v4117_v14  ;;  %v4142_v54 = vsel %vm192_vm4, %v4020_v27, 0.0 }
 0x642   :  { %v3923_v41 = vadd.f32 %v3922_v12, %v3921_v20  ;;  %v4121_v9 = vadd.f32 %v4120_v47, %v4119_v40 }
 0x644   :  { %v3925_v62 = vadd.f32 %v3924_v60, %v3923_v41  ;;  %v4123_v43 = vadd.f32 %v4122_v28, %v4121_v9  ;;  %v3748_v63 = vpop.f32.mrf.mxu3 }
 0x645   :  { %3820 = vst.msk [vmem:[%s9257_s6 + $0x1e0] sm:$0xff] %vm192_vm4, %v3748_v63  ;;  %v4021_v14 = vmul.f32 %v3748_v63, %v3748_v63  ;;  %v3944_v20 = vsel %vm192_vm4, %v3748_v63, 0.0 }
 0x646   :  { %v3927_v10 = vadd.f32 %v3926_v38, %v3925_v62  ;;  %v4125_v35 = vadd.f32 %v4124_v6, %v4123_v43 }
 0x647   :  { %v4144_v47 = vsel %vm192_vm4, %v4021_v14, 0.0 }
 0x648   :  { %v3929_v23 = vadd.f32 %v3928_v13, %v3927_v10  ;;  %v4127_v49 = vadd.f32 %v4126_v34, %v4125_v35 }
 0x64a   :  { %v3931_v55 = vadd.f32 %v3930_v51, %v3929_v23  ;;  %v4129_v52 = vadd.f32 %v4128_v29, %v4127_v49 }
 0x64c   :  { %v4131_v15 = vadd.f32 %v4130_v57, %v4129_v52  ;;  %v3933_v31 = vadd.f32 %v3932_v16, %v3931_v55  ;;  %v3751_v36 = vpop.f32.mrf.mxu3  ;;  %v3824_v52 = vld [vmem:[%s9258_s7] sm:$0xff] }
 0x64d   :  { %3821 = vst.msk [vmem:[%s9257_s6 + $0x1e8] sm:$0xff] %vm192_vm4, %v3751_v36  ;;  %v4022_v40 = vmul.f32 %v3751_v36, %v3751_v36  ;;  %v3946_v42 = vsel %vm192_vm4, %v3751_v36, 0.0 }
 0x64e   :  { %v3935_v2 = vadd.f32 %v3934_v46, %v3933_v31  ;;  %v4133_v22 = vadd.f32 %v4132_v17, %v4131_v15 }
 0x64f   :  { %v4146_v9 = vsel %vm192_vm4, %v4022_v40, 0.0 }
 0x650   :  { %v3937_v25 = vadd.f32 %v3936_v32, %v3935_v2  ;;  %v4135_v19 = vadd.f32 %v4134_v37, %v4133_v22 }
 0x652   :  { %v3939_v48 = vadd.f32 %v3938_v11, %v3937_v25  ;;  %v4137_v5 = vadd.f32 %v4136_v56, %v4135_v19 }
 0x654   :  { %v3941_v61 = vadd.f32 %v3940_v53, %v3939_v48  ;;  %v4139_v59 = vadd.f32 %v4138_v7, %v4137_v5  ;;  %v3754_v33 = vpop.f32.mrf.mxu3 }
 0x655   :  { %3822 = vst.msk [vmem:[%s9257_s6 + $0x1f0] sm:$0xff] %vm192_vm4, %v3754_v33  ;;  %v4023_v12 = vmul.f32 %v3754_v33, %v3754_v33  ;;  %v3948_v28 = vsel %vm192_vm4, %v3754_v33, 0.0 }
 0x656   :  { %v3943_v44 = vadd.f32 %v3942_v30, %v3941_v61  ;;  %v4141_v4 = vadd.f32 %v4140_v1, %v4139_v59 }
 0x657   :  { %v4148_v62 = vsel %vm192_vm4, %v4023_v12, 0.0 }
 0x658   :  { %v4143_v24 = vadd.f32 %v4142_v54, %v4141_v4  ;;  %v3945_v21 = vadd.f32 %v3944_v20, %v3943_v44 }
 0x65a   :  { %v4145_v18 = vadd.f32 %v4144_v47, %v4143_v24  ;;  %v3947_v41 = vadd.f32 %v3946_v42, %v3945_v21 }
 0x65c   :  { %v4147_v60 = vadd.f32 %v4146_v9, %v4145_v18  ;;  %v3949_v39 = vadd.f32 %v3948_v28, %v3947_v41  ;;  %v3757_v6 = vpop.f32.mrf.mxu3 }
 0x65d   :  { %3823 = vst.msk [vmem:[%s9257_s6 + $0x1f8] sm:$0xff] %vm192_vm4, %v3757_v6  ;;  %v3950_v38 = vsel %vm192_vm4, %v3757_v6, 0.0  ;;  %v4024_v45 = vmul.f32 %v3757_v6, %v3757_v6 }
 0x65e   :  { %v4149_v43 = vadd.f32 %v4148_v62, %v4147_v60  ;;  %v3951_v10 = vadd.f32 %v3950_v38, %v3949_v39 }
 0x65f   :  { %v4150_v35 = vsel %vm192_vm4, %v4024_v45, 0.0 }
 0x660   :  { %v3952_v63 = vrot.slane %v3951_v10, 4  ;;  %v4151_v34 = vadd.f32 %v4150_v35, %v4149_v43 }
 0x662   :  { %v3953_v13 = vadd.f32 %v3952_v63, %v3951_v10  ;;  %v4152_v50 = vrot.slane %v4151_v34, 4 }
 0x664   :  { %v3954_v23 = vrot.slane %v3953_v13, 2  ;;  %v4153_v49 = vadd.f32 %v4152_v50, %v4151_v34 }
 0x666   :  { %v3955_v29 = vadd.f32 %v3954_v23, %v3953_v13  ;;  %v4154_v51 = vrot.slane %v4153_v49, 2 }
 0x668   :  { %v3956_v58 = vrot.slane %v3955_v29, 1  ;;  %v4155_v55 = vadd.f32 %v4154_v51, %v4153_v49 }
 0x66a   :  { %v3957_v57 = vadd.f32 %v3956_v58, %v3955_v29  ;;  %v4156_v16 = vrot.slane %v4155_v55, 1 }
 0x66c   :  { %v3958_v15 = vadd.f32 %v3957_v57, %v3824_v52  ;;  %v4157_v31 = vadd.f32 %v4156_v16, %v4155_v55 }
 0x66e   :  { %3959 = vst.msk [vmem:[%s9258_s7] sm:$0xff] %vm192_vm4, %v3958_v15  ;;  %v4158_v17 = vadd.f32 %v4157_v31, %v3960_v0 }
 0x670   :  { %4159 = vst.msk [vmem:[%s9259_s8] sm:$0xff] %vm192_vm4, %v4158_v17 }

</bundles_post_ra>
